<compile_context>
chip_gen: v7x
topology: tpu7x:2x2x1
jax: 0.10.0
libtpu: 0.0.40
codegen_flags: <defaults>
</compile_context>

<pallas_src>
import functools
import math

import jax
import jax.numpy as jnp
from jax.experimental import pallas as pl
from jax.experimental.pallas import tpu as pltpu

CFG = [16, "M", 32, "M", 64, "M", 128, "M", 512]
NUM_CLASSES = 43
IN_CHANNELS = 3
IN_HW = 16
LANE = 128     # channel padding target (TPU lane width)
CHUNK = 128    # conv row-chunk: (128,128) f32 accumulator stays ~16 vregs


def _round_up(x, m):
    return (x + m - 1) // m * m


def _ds2(start, size):
    """Stride-2 row slice (plain slice when size == 1)."""
    return pl.ds(start, size) if size == 1 else pl.ds(start, size, 2)


def _stage_descriptors(n_batch):
    """Static geometry of the 4 conv+pool stages.

    Stage 1 is the im2col stage: dense (n, y, x) rows over the valid 16x16
    grid (pitch 16).  Stages 2-4 use zero-padded planes with pitch and guard
    rounded up to multiples of 8 so all full-width passes are sublane aligned.
    """
    stages = []
    h = IN_HW
    for si in range(4):
        h2 = h // 2
        if si == 0:
            pitch, plane, origin, guard, im2col = h, h * h, 0, 0, True
        else:
            pitch = _round_up(h + 2, 8)
            plane = pitch * pitch
            origin = pitch + 1
            guard = _round_up(pitch + 1, 8)
            im2col = False
        r = n_batch * plane
        if im2col:
            blocks = [(s, min(CHUNK, r - s)) for s in range(0, r, CHUNK)]
        else:
            # acc rows actually read by the pool: [pitch+1, h*pitch + h + 1)
            lo = pitch
            wl = _round_up(h * pitch + h + 1, 8) - lo
            if r <= CHUNK:
                blocks = [(0, r)]
            else:
                blocks = [(n * plane + lo + s, min(CHUNK, wl - s))
                          for n in range(n_batch) for s in range(0, wl, CHUNK)]
        stages.append(dict(P=pitch, PL=plane, O=origin, g=guard, h=h, h2=h2,
                           im2col=im2col, blocks=blocks))
        h = h2
    return stages


def _vgg_kernel(x1, w1, b1, w2, b2, w3, b3, w4, b4, w5, b5, wfc, bfc,
                out_ref, acc, vp, buf2, buf3, buf4, feat,
                *, stages, n_batch, zero_from, zero_len):
    srcs = [x1, buf2, buf3, buf4]
    dsts = [buf2, buf3, buf4, feat]
    w_refs = [w1, w2, w3, w4]
    b_refs = [b1, b2, b3, b4]

    # One-time init: zero padded borders of the intermediate activation
    # buffers, the feature rows, and the acc tail over-read by stage 1's
    # vertical-pool pass.
    buf2[...] = jnp.zeros_like(buf2)
    buf3[...] = jnp.zeros_like(buf3)
    buf4[...] = jnp.zeros_like(buf4)
    feat[...] = jnp.zeros_like(feat)
    acc[pl.ds(zero_from, zero_len), :] = jnp.zeros((zero_len, LANE), jnp.float32)

    for li, st in enumerate(stages):
        src, wl = srcs[li], w_refs[li]
        bias = b_refs[li][...]                              # (1, 128) f32
        P, PL, O, g, h2 = st["P"], st["PL"], st["O"], st["g"], st["h2"]

        # ---- conv (+ bias + ReLU), register-chunked over row blocks -------
        for bs, blen in st["blocks"]:
            if st["im2col"]:
                total = jnp.dot(src[pl.ds(bs, blen), :], wl[...],
                                preferred_element_type=jnp.float32)
            else:
                total = None
                for t in range(9):
                    ky, kx = t // 3, t % 3
                    shift = (ky - 1) * P + (kx - 1)        # 3 alignment classes
                    d = jnp.dot(src[pl.ds(g + bs + shift, blen), :], wl[t],
                                preferred_element_type=jnp.float32)
                    total = d if total is None else total + d
            acc[pl.ds(bs, blen), :] = jnp.maximum(total + bias, 0.0)

        # ---- 2x2 maxpool: full-width aligned vertical max ------------------
        for bs, blen in st["blocks"]:
            vp[pl.ds(bs, blen), :] = jnp.maximum(acc[pl.ds(bs, blen), :],
                                                 acc[pl.ds(bs + P, blen), :])

        # ---- horizontal max + 2x subsample + store into next buffer -------
        last = li + 1 == len(stages)
        dst = dsts[li]
        if not last:
            nxt = stages[li + 1]
            g2, PL2, P2 = nxt["g"], nxt["PL"], nxt["P"]
        for n in range(n_batch):
            for ho in range(h2):
                base = n * PL + O + (2 * ho) * P
                a = vp[_ds2(base, h2), :]
                b = vp[_ds2(base + 1, h2), :]
                pooled = jnp.maximum(a, b)
                if last:
                    feat[pl.ds(n, 1), :] = pooled.astype(feat.dtype)
                else:
                    drow = g2 + n * PL2 + (ho + 1) * P2 + 1
                    dst[pl.ds(drow, h2), :] = pooled.astype(dst.dtype)

    # ---- conv5: 3x3 / pad 1 on 1x1 spatial == center-tap GEMM, + ReLU ------
    h5 = jnp.dot(feat[...], w5[...], preferred_element_type=jnp.float32)
    h5 = jnp.maximum(h5 + b5[...], 0.0)
    # ---- classifier Linear(512, 43) (output padded to 128 lanes) -----------
    logits = jnp.dot(h5.astype(wfc.dtype), wfc[...],
                     preferred_element_type=jnp.float32)
    out_ref[...] = logits + bfc[...]


def vgg_forward(params, x_nchw):
    n, c, h, w = x_nchw.shape
    assert c == IN_CHANNELS and h == IN_HW and w == IN_HW
    stages = _stage_descriptors(n)
    nb = _round_up(max(n, 8), 8)

    # Stage-1 im2col slab built in the wrapper (cheap XLA glue): rows are
    # (n, y, x) over the valid 16x16 grid, lanes 0..26 = 3x3x3 patch, rest 0.
    xt = jnp.transpose(x_nchw.astype(jnp.float32), (0, 2, 3, 1))      # NHWC
    xp = jnp.pad(xt, ((0, 0), (1, 1), (1, 1), (0, 0)))                # (n,18,18,3)
    patches = [xp[:, ky:ky + IN_HW, kx:kx + IN_HW, :]
               for ky in range(3) for kx in range(3)]
    im2col = jnp.concatenate(patches, axis=-1)                        # (n,16,16,27)
    im2col = jnp.pad(im2col, ((0, 0), (0, 0), (0, 0), (0, LANE - 27)))
    x1 = im2col.reshape(n * IN_HW * IN_HW, LANE).astype(jnp.bfloat16)

    (w1, b1), (w2, b2), (w3, b3), (w4, b4) = params["convs"]
    w5, b5 = params["conv5"]
    wfc, bfc = params["fc"]

    zero_from = n * stages[0]["PL"]          # rows over-read by stage-1 v-pool
    zero_len = stages[0]["P"]
    acc_rows = zero_from + zero_len
    vp_rows = max(bs + bl for st in stages for (bs, bl) in st["blocks"])

    def buf_rows(st):
        return n * st["PL"] + 2 * st["g"]

    kernel = functools.partial(_vgg_kernel, stages=stages, n_batch=n,
                               zero_from=zero_from, zero_len=zero_len)
    scratch = [
        pltpu.VMEM((acc_rows, LANE), jnp.float32),                 # conv acc (f32)
        pltpu.VMEM((vp_rows, LANE), jnp.float32),                  # vertical pool
        pltpu.VMEM((buf_rows(stages[1]), LANE), jnp.bfloat16),     # stage-2 input
        pltpu.VMEM((buf_rows(stages[2]), LANE), jnp.bfloat16),     # stage-3 input
        pltpu.VMEM((buf_rows(stages[3]), LANE), jnp.bfloat16),     # stage-4 input
        pltpu.VMEM((nb, LANE), jnp.bfloat16),                      # 1x1 features
    ]
    out = pl.pallas_call(
        kernel,
        out_shape=jax.ShapeDtypeStruct((nb, LANE), jnp.float32),
        scratch_shapes=scratch,
    )(x1, w1, b1, w2, b2, w3, b3, w4, b4, w5, b5, wfc, bfc)
    return out[:n, :NUM_CLASSES]


# ------------------------- parameter init / packing ------------------------ #

def _pack_conv_taps(wt):
    """(co, ci, 3, 3) f32 -> (9, 128, 128) bf16, taps transposed to (ci, co)."""
    co, ci = wt.shape[0], wt.shape[1]
    taps = []
    for ky in range(3):
        for kx in range(3):
            t = jnp.transpose(wt[:, :, ky, kx])                   # (ci, co)
            taps.append(jnp.pad(t, ((0, LANE - ci), (0, LANE - co))))
    return jnp.stack(taps).astype(jnp.bfloat16)


def init_params(key):
    """Sample weights with VGG._initialize_weights statistics, then pre-pack
    (transpose / pad / cast to bf16) once so the forward pass has zero weight
    prep ops."""
    convs = []
    ci = IN_CHANNELS
    for v in CFG:
        if v == "M":
            continue
        key, k = jax.random.split(key)
        fan = 3 * 3 * v
        wt = jax.random.normal(k, (v, ci, 3, 3), jnp.float32) * math.sqrt(2.0 / fan)
        bt = jnp.zeros((v,), jnp.float32)
        convs.append((wt, bt))
        ci = v
    key, k = jax.random.split(key)
    fc_w = jax.random.normal(k, (NUM_CLASSES, 512), jnp.float32) * 0.01
    fc_b = jnp.zeros((NUM_CLASSES,), jnp.float32)

    packed = {"convs": [], "conv5": None, "fc": None}

    # conv1 -> single im2col GEMM weight: rows ky*9 + kx*3 + ci (27 of 128).
    w1t, b1t = convs[0]
    co1 = w1t.shape[0]
    w1p = jnp.transpose(w1t, (2, 3, 1, 0)).reshape(27, co1)
    w1p = jnp.pad(w1p, ((0, LANE - 27), (0, LANE - co1))).astype(jnp.bfloat16)
    b1p = jnp.pad(b1t, (0, LANE - co1)).reshape(1, LANE).astype(jnp.float32)
    packed["convs"].append((w1p, b1p))

    # convs 2-4 -> 9 shifted-GEMM taps.
    for wt, bt in convs[1:4]:
        co = wt.shape[0]
        bp = jnp.pad(bt, (0, LANE - co)).reshape(1, LANE).astype(jnp.float32)
        packed["convs"].append((_pack_conv_taps(wt), bp))

    w5t, b5t = convs[4]
    packed["conv5"] = (jnp.transpose(w5t[:, :, 1, 1]).astype(jnp.bfloat16),   # (128,512)
                       b5t.reshape(1, 512).astype(jnp.float32))
    wfc = jnp.pad(jnp.transpose(fc_w),
                  ((0, 0), (0, LANE - NUM_CLASSES))).astype(jnp.bfloat16)     # (512,128)
    bfc = jnp.pad(fc_b, (0, LANE - NUM_CLASSES)).reshape(1, LANE).astype(jnp.float32)
    packed["fc"] = (wfc, bfc)
    return packed


if __name__ == "__main__":
    key = jax.random.PRNGKey(0)
    pkey, xkey = jax.random.split(key)
    params = init_params(pkey)
    x = jax.random.normal(xkey, (2, IN_CHANNELS, IN_HW, IN_HW), jnp.float32)  # NCHW
    fwd = jax.jit(vgg_forward)
    out = fwd(params, x)
    jax.block_until_ready(out)
    assert out.shape == (2, NUM_CLASSES)
    assert bool(jnp.all(jnp.isfinite(out)))
    print("KERNEL_OK")
</pallas_src>

<mosaic_0001>
module attributes {stable_mosaic.version = 11 : i64} {
  func.func @_vgg_kernel(%arg0: memref<512x128xbf16, #tpu.memory_space<vmem>>, %arg1: memref<128x128xbf16, #tpu.memory_space<vmem>>, %arg2: memref<1x128xf32, #tpu.memory_space<vmem>>, %arg3: memref<9x128x128xbf16, #tpu.memory_space<vmem>>, %arg4: memref<1x128xf32, #tpu.memory_space<vmem>>, %arg5: memref<9x128x128xbf16, #tpu.memory_space<vmem>>, %arg6: memref<1x128xf32, #tpu.memory_space<vmem>>, %arg7: memref<9x128x128xbf16, #tpu.memory_space<vmem>>, %arg8: memref<1x128xf32, #tpu.memory_space<vmem>>, %arg9: memref<128x512xbf16, #tpu.memory_space<vmem>>, %arg10: memref<1x512xf32, #tpu.memory_space<vmem>>, %arg11: memref<512x128xbf16, #tpu.memory_space<vmem>>, %arg12: memref<1x128xf32, #tpu.memory_space<vmem>>, %arg13: memref<8x128xf32, #tpu.memory_space<vmem>>, %arg14: memref<528x128xf32, #tpu.memory_space<vmem>>, %arg15: memref<512x128xf32, #tpu.memory_space<vmem>>, %arg16: memref<560x128xbf16, #tpu.memory_space<vmem>>, %arg17: memref<160x128xbf16, #tpu.memory_space<vmem>>, %arg18: memref<160x128xbf16, #tpu.memory_space<vmem>>, %arg19: memref<8x128xbf16, #tpu.memory_space<vmem>>) attributes {dimension_semantics = [], scalar_prefetch = 0 : i64, scratch_operands = 6 : i64, tpu.core_type = #tpu.core_type<tc>} {
    %cst = arith.constant 0.000000e+00 : bf16
    %0 = vector.broadcast %cst : bf16 to vector<560x128xbf16>
    %c0 = arith.constant 0 : index
    %c0_0 = arith.constant 0 : index
    %1 = vector.load %arg16[%c0, %c0_0] : memref<560x128xbf16, #tpu.memory_space<vmem>>, vector<560x128xbf16>
    tpu.vector_store %arg16[%c0, %c0_0], %0 {strides = array<i32>} : memref<560x128xbf16, #tpu.memory_space<vmem>>, vector<560x128xbf16>,
    %cst_1 = arith.constant 0.000000e+00 : bf16
    %2 = vector.broadcast %cst_1 : bf16 to vector<160x128xbf16>
    %c0_2 = arith.constant 0 : index
    %c0_3 = arith.constant 0 : index
    %3 = vector.load %arg17[%c0_2, %c0_3] : memref<160x128xbf16, #tpu.memory_space<vmem>>, vector<160x128xbf16>
    tpu.vector_store %arg17[%c0_2, %c0_3], %2 {strides = array<i32>} : memref<160x128xbf16, #tpu.memory_space<vmem>>, vector<160x128xbf16>,
    %cst_4 = arith.constant 0.000000e+00 : bf16
    %4 = vector.broadcast %cst_4 : bf16 to vector<160x128xbf16>
    %c0_5 = arith.constant 0 : index
    %c0_6 = arith.constant 0 : index
    %5 = vector.load %arg18[%c0_5, %c0_6] : memref<160x128xbf16, #tpu.memory_space<vmem>>, vector<160x128xbf16>
    tpu.vector_store %arg18[%c0_5, %c0_6], %4 {strides = array<i32>} : memref<160x128xbf16, #tpu.memory_space<vmem>>, vector<160x128xbf16>,
    %cst_7 = arith.constant 0.000000e+00 : bf16
    %6 = vector.broadcast %cst_7 : bf16 to vector<8x128xbf16>
    %c0_8 = arith.constant 0 : index
    %c0_9 = arith.constant 0 : index
    %7 = vector.load %arg19[%c0_8, %c0_9] : memref<8x128xbf16, #tpu.memory_space<vmem>>, vector<8x128xbf16>
    tpu.vector_store %arg19[%c0_8, %c0_9], %6 {strides = array<i32>} : memref<8x128xbf16, #tpu.memory_space<vmem>>, vector<8x128xbf16>,
    %cst_10 = arith.constant 0.000000e+00 : f32
    %8 = vector.broadcast %cst_10 : f32 to vector<16x128xf32>
    %c512 = arith.constant 512 : index
    %c0_11 = arith.constant 0 : index
    %9 = vector.load %arg14[%c512, %c0_11] : memref<528x128xf32, #tpu.memory_space<vmem>>, vector<16x128xf32>
    tpu.vector_store %arg14[%c512, %c0_11], %8 {strides = array<i32>} : memref<528x128xf32, #tpu.memory_space<vmem>>, vector<16x128xf32>,
    %c0_12 = arith.constant 0 : index
    %c0_13 = arith.constant 0 : index
    %10 = vector.load %arg2[%c0_12, %c0_13] : memref<1x128xf32, #tpu.memory_space<vmem>>, vector<1x128xf32>
    %c0_14 = arith.constant 0 : index
    %c0_15 = arith.constant 0 : index
    %11 = vector.load %arg0[%c0_14, %c0_15] : memref<512x128xbf16, #tpu.memory_space<vmem>>, vector<128x128xbf16>
    %c0_16 = arith.constant 0 : index
    %c0_17 = arith.constant 0 : index
    %12 = vector.load %arg1[%c0_16, %c0_17] : memref<128x128xbf16, #tpu.memory_space<vmem>>, vector<128x128xbf16>
    %cst_18 = arith.constant dense<0.000000e+00> : vector<128x128xf32>
    %13 = tpu.matmul %11, %12, %cst_18 {dimension_numbers = #tpu.dot_dimension_numbers<[1], [0], [0], [1], [0, 0, 1, 1], [], []>} : vector<128x128xbf16>, vector<128x128xbf16>, vector<128x128xf32> -> vector<128x128xf32>
    %14 = vector.broadcast %10 : vector<1x128xf32> to vector<128x128xf32>
    %15 = arith.addf %13, %14 : vector<128x128xf32>
    %cst_19 = arith.constant 0.000000e+00 : f32
    %16 = vector.broadcast %cst_19 : f32 to vector<128x128xf32>
    %17 = arith.maximumf %15, %16 : vector<128x128xf32>
    %c0_20 = arith.constant 0 : index
    %c0_21 = arith.constant 0 : index
    %18 = vector.load %arg14[%c0_20, %c0_21] : memref<528x128xf32, #tpu.memory_space<vmem>>, vector<128x128xf32>
    tpu.vector_store %arg14[%c0_20, %c0_21], %17 {strides = array<i32>} : memref<528x128xf32, #tpu.memory_space<vmem>>, vector<128x128xf32>,
    %c128 = arith.constant 128 : index
    %c0_22 = arith.constant 0 : index
    %19 = vector.load %arg0[%c128, %c0_22] : memref<512x128xbf16, #tpu.memory_space<vmem>>, vector<128x128xbf16>
    %c0_23 = arith.constant 0 : index
    %c0_24 = arith.constant 0 : index
    %20 = vector.load %arg1[%c0_23, %c0_24] : memref<128x128xbf16, #tpu.memory_space<vmem>>, vector<128x128xbf16>
    %cst_25 = arith.constant dense<0.000000e+00> : vector<128x128xf32>
    %21 = tpu.matmul %19, %20, %cst_25 {dimension_numbers = #tpu.dot_dimension_numbers<[1], [0], [0], [1], [0, 0, 1, 1], [], []>} : vector<128x128xbf16>, vector<128x128xbf16>, vector<128x128xf32> -> vector<128x128xf32>
    %22 = vector.broadcast %10 : vector<1x128xf32> to vector<128x128xf32>
    %23 = arith.addf %21, %22 : vector<128x128xf32>
    %cst_26 = arith.constant 0.000000e+00 : f32
    %24 = vector.broadcast %cst_26 : f32 to vector<128x128xf32>
    %25 = arith.maximumf %23, %24 : vector<128x128xf32>
    %c128_27 = arith.constant 128 : index
    %c0_28 = arith.constant 0 : index
    %26 = vector.load %arg14[%c128_27, %c0_28] : memref<528x128xf32, #tpu.memory_space<vmem>>, vector<128x128xf32>
    tpu.vector_store %arg14[%c128_27, %c0_28], %25 {strides = array<i32>} : memref<528x128xf32, #tpu.memory_space<vmem>>, vector<128x128xf32>,
    %c256 = arith.constant 256 : index
    %c0_29 = arith.constant 0 : index
    %27 = vector.load %arg0[%c256, %c0_29] : memref<512x128xbf16, #tpu.memory_space<vmem>>, vector<128x128xbf16>
    %c0_30 = arith.constant 0 : index
    %c0_31 = arith.constant 0 : index
    %28 = vector.load %arg1[%c0_30, %c0_31] : memref<128x128xbf16, #tpu.memory_space<vmem>>, vector<128x128xbf16>
    %cst_32 = arith.constant dense<0.000000e+00> : vector<128x128xf32>
    %29 = tpu.matmul %27, %28, %cst_32 {dimension_numbers = #tpu.dot_dimension_numbers<[1], [0], [0], [1], [0, 0, 1, 1], [], []>} : vector<128x128xbf16>, vector<128x128xbf16>, vector<128x128xf32> -> vector<128x128xf32>
    %30 = vector.broadcast %10 : vector<1x128xf32> to vector<128x128xf32>
    %31 = arith.addf %29, %30 : vector<128x128xf32>
    %cst_33 = arith.constant 0.000000e+00 : f32
    %32 = vector.broadcast %cst_33 : f32 to vector<128x128xf32>
    %33 = arith.maximumf %31, %32 : vector<128x128xf32>
    %c256_34 = arith.constant 256 : index
    %c0_35 = arith.constant 0 : index
    %34 = vector.load %arg14[%c256_34, %c0_35] : memref<528x128xf32, #tpu.memory_space<vmem>>, vector<128x128xf32>
    tpu.vector_store %arg14[%c256_34, %c0_35], %33 {strides = array<i32>} : memref<528x128xf32, #tpu.memory_space<vmem>>, vector<128x128xf32>,
    %c384 = arith.constant 384 : index
    %c0_36 = arith.constant 0 : index
    %35 = vector.load %arg0[%c384, %c0_36] : memref<512x128xbf16, #tpu.memory_space<vmem>>, vector<128x128xbf16>
    %c0_37 = arith.constant 0 : index
    %c0_38 = arith.constant 0 : index
    %36 = vector.load %arg1[%c0_37, %c0_38] : memref<128x128xbf16, #tpu.memory_space<vmem>>, vector<128x128xbf16>
    %cst_39 = arith.constant dense<0.000000e+00> : vector<128x128xf32>
    %37 = tpu.matmul %35, %36, %cst_39 {dimension_numbers = #tpu.dot_dimension_numbers<[1], [0], [0], [1], [0, 0, 1, 1], [], []>} : vector<128x128xbf16>, vector<128x128xbf16>, vector<128x128xf32> -> vector<128x128xf32>
    %38 = vector.broadcast %10 : vector<1x128xf32> to vector<128x128xf32>
    %39 = arith.addf %37, %38 : vector<128x128xf32>
    %cst_40 = arith.constant 0.000000e+00 : f32
    %40 = vector.broadcast %cst_40 : f32 to vector<128x128xf32>
    %41 = arith.maximumf %39, %40 : vector<128x128xf32>
    %c384_41 = arith.constant 384 : index
    %c0_42 = arith.constant 0 : index
    %42 = vector.load %arg14[%c384_41, %c0_42] : memref<528x128xf32, #tpu.memory_space<vmem>>, vector<128x128xf32>
    tpu.vector_store %arg14[%c384_41, %c0_42], %41 {strides = array<i32>} : memref<528x128xf32, #tpu.memory_space<vmem>>, vector<128x128xf32>,
    %c0_43 = arith.constant 0 : index
    %c0_44 = arith.constant 0 : index
    %43 = vector.load %arg14[%c0_43, %c0_44] : memref<528x128xf32, #tpu.memory_space<vmem>>, vector<128x128xf32>
    %c16 = arith.constant 16 : index
    %c0_45 = arith.constant 0 : index
    %44 = vector.load %arg14[%c16, %c0_45] : memref<528x128xf32, #tpu.memory_space<vmem>>, vector<128x128xf32>
    %45 = arith.maximumf %43, %44 : vector<128x128xf32>
    %c0_46 = arith.constant 0 : index
    %c0_47 = arith.constant 0 : index
    %46 = vector.load %arg15[%c0_46, %c0_47] : memref<512x128xf32, #tpu.memory_space<vmem>>, vector<128x128xf32>
    tpu.vector_store %arg15[%c0_46, %c0_47], %45 {strides = array<i32>} : memref<512x128xf32, #tpu.memory_space<vmem>>, vector<128x128xf32>,
    %c128_48 = arith.constant 128 : index
    %c0_49 = arith.constant 0 : index
    %47 = vector.load %arg14[%c128_48, %c0_49] : memref<528x128xf32, #tpu.memory_space<vmem>>, vector<128x128xf32>
    %c144 = arith.constant 144 : index
    %c0_50 = arith.constant 0 : index
    %48 = vector.load %arg14[%c144, %c0_50] : memref<528x128xf32, #tpu.memory_space<vmem>>, vector<128x128xf32>
    %49 = arith.maximumf %47, %48 : vector<128x128xf32>
    %c128_51 = arith.constant 128 : index
    %c0_52 = arith.constant 0 : index
    %50 = vector.load %arg15[%c128_51, %c0_52] : memref<512x128xf32, #tpu.memory_space<vmem>>, vector<128x128xf32>
    tpu.vector_store %arg15[%c128_51, %c0_52], %49 {strides = array<i32>} : memref<512x128xf32, #tpu.memory_space<vmem>>, vector<128x128xf32>,
    %c256_53 = arith.constant 256 : index
    %c0_54 = arith.constant 0 : index
    %51 = vector.load %arg14[%c256_53, %c0_54] : memref<528x128xf32, #tpu.memory_space<vmem>>, vector<128x128xf32>
    %c272 = arith.constant 272 : index
    %c0_55 = arith.constant 0 : index
    %52 = vector.load %arg14[%c272, %c0_55] : memref<528x128xf32, #tpu.memory_space<vmem>>, vector<128x128xf32>
    %53 = arith.maximumf %51, %52 : vector<128x128xf32>
    %c256_56 = arith.constant 256 : index
    %c0_57 = arith.constant 0 : index
    %54 = vector.load %arg15[%c256_56, %c0_57] : memref<512x128xf32, #tpu.memory_space<vmem>>, vector<128x128xf32>
    tpu.vector_store %arg15[%c256_56, %c0_57], %53 {strides = array<i32>} : memref<512x128xf32, #tpu.memory_space<vmem>>, vector<128x128xf32>,
    %c384_58 = arith.constant 384 : index
    %c0_59 = arith.constant 0 : index
    %55 = vector.load %arg14[%c384_58, %c0_59] : memref<528x128xf32, #tpu.memory_space<vmem>>, vector<128x128xf32>
    %c400 = arith.constant 400 : index
    %c0_60 = arith.constant 0 : index
    %56 = vector.load %arg14[%c400, %c0_60] : memref<528x128xf32, #tpu.memory_space<vmem>>, vector<128x128xf32>
    %57 = arith.maximumf %55, %56 : vector<128x128xf32>
    %c384_61 = arith.constant 384 : index
    %c0_62 = arith.constant 0 : index
    %58 = vector.load %arg15[%c384_61, %c0_62] : memref<512x128xf32, #tpu.memory_space<vmem>>, vector<128x128xf32>
    tpu.vector_store %arg15[%c384_61, %c0_62], %57 {strides = array<i32>} : memref<512x128xf32, #tpu.memory_space<vmem>>, vector<128x128xf32>,
    %c0_63 = arith.constant 0 : index
    %c0_64 = arith.constant 0 : index
    %59 = tpu.strided_load %arg15[%c0_63, %c0_64] {strides = array<i32: 2, 1>} : memref<512x128xf32, #tpu.memory_space<vmem>>, vector<8x128xf32>
    %c1 = arith.constant 1 : index
    %c0_65 = arith.constant 0 : index
    %60 = tpu.strided_load %arg15[%c1, %c0_65] {strides = array<i32: 2, 1>} : memref<512x128xf32, #tpu.memory_space<vmem>>, vector<8x128xf32>
    %61 = arith.maximumf %59, %60 : vector<8x128xf32>
    %62 = arith.truncf %61 : vector<8x128xf32> to vector<8x128xbf16>
    %c41 = arith.constant 41 : index
    %c0_66 = arith.constant 0 : index
    %63 = vector.load %arg16[%c41, %c0_66] : memref<560x128xbf16, #tpu.memory_space<vmem>>, vector<8x128xbf16>
    tpu.vector_store %arg16[%c41, %c0_66], %62 {strides = array<i32>} : memref<560x128xbf16, #tpu.memory_space<vmem>>, vector<8x128xbf16>,
    %c32 = arith.constant 32 : index
    %c0_67 = arith.constant 0 : index
    %64 = tpu.strided_load %arg15[%c32, %c0_67] {strides = array<i32: 2, 1>} : memref<512x128xf32, #tpu.memory_space<vmem>>, vector<8x128xf32>
    %c33 = arith.constant 33 : index
    %c0_68 = arith.constant 0 : index
    %65 = tpu.strided_load %arg15[%c33, %c0_68] {strides = array<i32: 2, 1>} : memref<512x128xf32, #tpu.memory_space<vmem>>, vector<8x128xf32>
    %66 = arith.maximumf %64, %65 : vector<8x128xf32>
    %67 = arith.truncf %66 : vector<8x128xf32> to vector<8x128xbf16>
    %c57 = arith.constant 57 : index
    %c0_69 = arith.constant 0 : index
    %68 = vector.load %arg16[%c57, %c0_69] : memref<560x128xbf16, #tpu.memory_space<vmem>>, vector<8x128xbf16>
    tpu.vector_store %arg16[%c57, %c0_69], %67 {strides = array<i32>} : memref<560x128xbf16, #tpu.memory_space<vmem>>, vector<8x128xbf16>,
    %c64 = arith.constant 64 : index
    %c0_70 = arith.constant 0 : index
    %69 = tpu.strided_load %arg15[%c64, %c0_70] {strides = array<i32: 2, 1>} : memref<512x128xf32, #tpu.memory_space<vmem>>, vector<8x128xf32>
    %c65 = arith.constant 65 : index
    %c0_71 = arith.constant 0 : index
    %70 = tpu.strided_load %arg15[%c65, %c0_71] {strides = array<i32: 2, 1>} : memref<512x128xf32, #tpu.memory_space<vmem>>, vector<8x128xf32>
    %71 = arith.maximumf %69, %70 : vector<8x128xf32>
    %72 = arith.truncf %71 : vector<8x128xf32> to vector<8x128xbf16>
    %c73 = arith.constant 73 : index
    %c0_72 = arith.constant 0 : index
    %73 = vector.load %arg16[%c73, %c0_72] : memref<560x128xbf16, #tpu.memory_space<vmem>>, vector<8x128xbf16>
    tpu.vector_store %arg16[%c73, %c0_72], %72 {strides = array<i32>} : memref<560x128xbf16, #tpu.memory_space<vmem>>, vector<8x128xbf16>,
    %c96 = arith.constant 96 : index
    %c0_73 = arith.constant 0 : index
    %74 = tpu.strided_load %arg15[%c96, %c0_73] {strides = array<i32: 2, 1>} : memref<512x128xf32, #tpu.memory_space<vmem>>, vector<8x128xf32>
    %c97 = arith.constant 97 : index
    %c0_74 = arith.constant 0 : index
    %75 = tpu.strided_load %arg15[%c97, %c0_74] {strides = array<i32: 2, 1>} : memref<512x128xf32, #tpu.memory_space<vmem>>, vector<8x128xf32>
    %76 = arith.maximumf %74, %75 : vector<8x128xf32>
    %77 = arith.truncf %76 : vector<8x128xf32> to vector<8x128xbf16>
    %c89 = arith.constant 89 : index
    %c0_75 = arith.constant 0 : index
    %78 = vector.load %arg16[%c89, %c0_75] : memref<560x128xbf16, #tpu.memory_space<vmem>>, vector<8x128xbf16>
    tpu.vector_store %arg16[%c89, %c0_75], %77 {strides = array<i32>} : memref<560x128xbf16, #tpu.memory_space<vmem>>, vector<8x128xbf16>,
    %c128_76 = arith.constant 128 : index
    %c0_77 = arith.constant 0 : index
    %79 = tpu.strided_load %arg15[%c128_76, %c0_77] {strides = array<i32: 2, 1>} : memref<512x128xf32, #tpu.memory_space<vmem>>, vector<8x128xf32>
    %c129 = arith.constant 129 : index
    %c0_78 = arith.constant 0 : index
    %80 = tpu.strided_load %arg15[%c129, %c0_78] {strides = array<i32: 2, 1>} : memref<512x128xf32, #tpu.memory_space<vmem>>, vector<8x128xf32>
    %81 = arith.maximumf %79, %80 : vector<8x128xf32>
    %82 = arith.truncf %81 : vector<8x128xf32> to vector<8x128xbf16>
    %c105 = arith.constant 105 : index
    %c0_79 = arith.constant 0 : index
    %83 = vector.load %arg16[%c105, %c0_79] : memref<560x128xbf16, #tpu.memory_space<vmem>>, vector<8x128xbf16>
    tpu.vector_store %arg16[%c105, %c0_79], %82 {strides = array<i32>} : memref<560x128xbf16, #tpu.memory_space<vmem>>, vector<8x128xbf16>,
    %c160 = arith.constant 160 : index
    %c0_80 = arith.constant 0 : index
    %84 = tpu.strided_load %arg15[%c160, %c0_80] {strides = array<i32: 2, 1>} : memref<512x128xf32, #tpu.memory_space<vmem>>, vector<8x128xf32>
    %c161 = arith.constant 161 : index
    %c0_81 = arith.constant 0 : index
    %85 = tpu.strided_load %arg15[%c161, %c0_81] {strides = array<i32: 2, 1>} : memref<512x128xf32, #tpu.memory_space<vmem>>, vector<8x128xf32>
    %86 = arith.maximumf %84, %85 : vector<8x128xf32>
    %87 = arith.truncf %86 : vector<8x128xf32> to vector<8x128xbf16>
    %c121 = arith.constant 121 : index
    %c0_82 = arith.constant 0 : index
    %88 = vector.load %arg16[%c121, %c0_82] : memref<560x128xbf16, #tpu.memory_space<vmem>>, vector<8x128xbf16>
    tpu.vector_store %arg16[%c121, %c0_82], %87 {strides = array<i32>} : memref<560x128xbf16, #tpu.memory_space<vmem>>, vector<8x128xbf16>,
    %c192 = arith.constant 192 : index
    %c0_83 = arith.constant 0 : index
    %89 = tpu.strided_load %arg15[%c192, %c0_83] {strides = array<i32: 2, 1>} : memref<512x128xf32, #tpu.memory_space<vmem>>, vector<8x128xf32>
    %c193 = arith.constant 193 : index
    %c0_84 = arith.constant 0 : index
    %90 = tpu.strided_load %arg15[%c193, %c0_84] {strides = array<i32: 2, 1>} : memref<512x128xf32, #tpu.memory_space<vmem>>, vector<8x128xf32>
    %91 = arith.maximumf %89, %90 : vector<8x128xf32>
    %92 = arith.truncf %91 : vector<8x128xf32> to vector<8x128xbf16>
    %c137 = arith.constant 137 : index
    %c0_85 = arith.constant 0 : index
    %93 = vector.load %arg16[%c137, %c0_85] : memref<560x128xbf16, #tpu.memory_space<vmem>>, vector<8x128xbf16>
    tpu.vector_store %arg16[%c137, %c0_85], %92 {strides = array<i32>} : memref<560x128xbf16, #tpu.memory_space<vmem>>, vector<8x128xbf16>,
    %c224 = arith.constant 224 : index
    %c0_86 = arith.constant 0 : index
    %94 = tpu.strided_load %arg15[%c224, %c0_86] {strides = array<i32: 2, 1>} : memref<512x128xf32, #tpu.memory_space<vmem>>, vector<8x128xf32>
    %c225 = arith.constant 225 : index
    %c0_87 = arith.constant 0 : index
    %95 = tpu.strided_load %arg15[%c225, %c0_87] {strides = array<i32: 2, 1>} : memref<512x128xf32, #tpu.memory_space<vmem>>, vector<8x128xf32>
    %96 = arith.maximumf %94, %95 : vector<8x128xf32>
    %97 = arith.truncf %96 : vector<8x128xf32> to vector<8x128xbf16>
    %c153 = arith.constant 153 : index
    %c0_88 = arith.constant 0 : index
    %98 = vector.load %arg16[%c153, %c0_88] : memref<560x128xbf16, #tpu.memory_space<vmem>>, vector<8x128xbf16>
    tpu.vector_store %arg16[%c153, %c0_88], %97 {strides = array<i32>} : memref<560x128xbf16, #tpu.memory_space<vmem>>, vector<8x128xbf16>,
    %c256_89 = arith.constant 256 : index
    %c0_90 = arith.constant 0 : index
    %99 = tpu.strided_load %arg15[%c256_89, %c0_90] {strides = array<i32: 2, 1>} : memref<512x128xf32, #tpu.memory_space<vmem>>, vector<8x128xf32>
    %c257 = arith.constant 257 : index
    %c0_91 = arith.constant 0 : index
    %100 = tpu.strided_load %arg15[%c257, %c0_91] {strides = array<i32: 2, 1>} : memref<512x128xf32, #tpu.memory_space<vmem>>, vector<8x128xf32>
    %101 = arith.maximumf %99, %100 : vector<8x128xf32>
    %102 = arith.truncf %101 : vector<8x128xf32> to vector<8x128xbf16>
    %c297 = arith.constant 297 : index
    %c0_92 = arith.constant 0 : index
    %103 = vector.load %arg16[%c297, %c0_92] : memref<560x128xbf16, #tpu.memory_space<vmem>>, vector<8x128xbf16>
    tpu.vector_store %arg16[%c297, %c0_92], %102 {strides = array<i32>} : memref<560x128xbf16, #tpu.memory_space<vmem>>, vector<8x128xbf16>,
    %c288 = arith.constant 288 : index
    %c0_93 = arith.constant 0 : index
    %104 = tpu.strided_load %arg15[%c288, %c0_93] {strides = array<i32: 2, 1>} : memref<512x128xf32, #tpu.memory_space<vmem>>, vector<8x128xf32>
    %c289 = arith.constant 289 : index
    %c0_94 = arith.constant 0 : index
    %105 = tpu.strided_load %arg15[%c289, %c0_94] {strides = array<i32: 2, 1>} : memref<512x128xf32, #tpu.memory_space<vmem>>, vector<8x128xf32>
    %106 = arith.maximumf %104, %105 : vector<8x128xf32>
    %107 = arith.truncf %106 : vector<8x128xf32> to vector<8x128xbf16>
    %c313 = arith.constant 313 : index
    %c0_95 = arith.constant 0 : index
    %108 = vector.load %arg16[%c313, %c0_95] : memref<560x128xbf16, #tpu.memory_space<vmem>>, vector<8x128xbf16>
    tpu.vector_store %arg16[%c313, %c0_95], %107 {strides = array<i32>} : memref<560x128xbf16, #tpu.memory_space<vmem>>, vector<8x128xbf16>,
    %c320 = arith.constant 320 : index
    %c0_96 = arith.constant 0 : index
    %109 = tpu.strided_load %arg15[%c320, %c0_96] {strides = array<i32: 2, 1>} : memref<512x128xf32, #tpu.memory_space<vmem>>, vector<8x128xf32>
    %c321 = arith.constant 321 : index
    %c0_97 = arith.constant 0 : index
    %110 = tpu.strided_load %arg15[%c321, %c0_97] {strides = array<i32: 2, 1>} : memref<512x128xf32, #tpu.memory_space<vmem>>, vector<8x128xf32>
    %111 = arith.maximumf %109, %110 : vector<8x128xf32>
    %112 = arith.truncf %111 : vector<8x128xf32> to vector<8x128xbf16>
    %c329 = arith.constant 329 : index
    %c0_98 = arith.constant 0 : index
    %113 = vector.load %arg16[%c329, %c0_98] : memref<560x128xbf16, #tpu.memory_space<vmem>>, vector<8x128xbf16>
    tpu.vector_store %arg16[%c329, %c0_98], %112 {strides = array<i32>} : memref<560x128xbf16, #tpu.memory_space<vmem>>, vector<8x128xbf16>,
    %c352 = arith.constant 352 : index
    %c0_99 = arith.constant 0 : index
    %114 = tpu.strided_load %arg15[%c352, %c0_99] {strides = array<i32: 2, 1>} : memref<512x128xf32, #tpu.memory_space<vmem>>, vector<8x128xf32>
    %c353 = arith.constant 353 : index
    %c0_100 = arith.constant 0 : index
    %115 = tpu.strided_load %arg15[%c353, %c0_100] {strides = array<i32: 2, 1>} : memref<512x128xf32, #tpu.memory_space<vmem>>, vector<8x128xf32>
    %116 = arith.maximumf %114, %115 : vector<8x128xf32>
    %117 = arith.truncf %116 : vector<8x128xf32> to vector<8x128xbf16>
    %c345 = arith.constant 345 : index
    %c0_101 = arith.constant 0 : index
    %118 = vector.load %arg16[%c345, %c0_101] : memref<560x128xbf16, #tpu.memory_space<vmem>>, vector<8x128xbf16>
    tpu.vector_store %arg16[%c345, %c0_101], %117 {strides = array<i32>} : memref<560x128xbf16, #tpu.memory_space<vmem>>, vector<8x128xbf16>,
    %c384_102 = arith.constant 384 : index
    %c0_103 = arith.constant 0 : index
    %119 = tpu.strided_load %arg15[%c384_102, %c0_103] {strides = array<i32: 2, 1>} : memref<512x128xf32, #tpu.memory_space<vmem>>, vector<8x128xf32>
    %c385 = arith.constant 385 : index
    %c0_104 = arith.constant 0 : index
    %120 = tpu.strided_load %arg15[%c385, %c0_104] {strides = array<i32: 2, 1>} : memref<512x128xf32, #tpu.memory_space<vmem>>, vector<8x128xf32>
    %121 = arith.maximumf %119, %120 : vector<8x128xf32>
    %122 = arith.truncf %121 : vector<8x128xf32> to vector<8x128xbf16>
    %c361 = arith.constant 361 : index
    %c0_105 = arith.constant 0 : index
    %123 = vector.load %arg16[%c361, %c0_105] : memref<560x128xbf16, #tpu.memory_space<vmem>>, vector<8x128xbf16>
    tpu.vector_store %arg16[%c361, %c0_105], %122 {strides = array<i32>} : memref<560x128xbf16, #tpu.memory_space<vmem>>, vector<8x128xbf16>,
    %c416 = arith.constant 416 : index
    %c0_106 = arith.constant 0 : index
    %124 = tpu.strided_load %arg15[%c416, %c0_106] {strides = array<i32: 2, 1>} : memref<512x128xf32, #tpu.memory_space<vmem>>, vector<8x128xf32>
    %c417 = arith.constant 417 : index
    %c0_107 = arith.constant 0 : index
    %125 = tpu.strided_load %arg15[%c417, %c0_107] {strides = array<i32: 2, 1>} : memref<512x128xf32, #tpu.memory_space<vmem>>, vector<8x128xf32>
    %126 = arith.maximumf %124, %125 : vector<8x128xf32>
    %127 = arith.truncf %126 : vector<8x128xf32> to vector<8x128xbf16>
    %c377 = arith.constant 377 : index
    %c0_108 = arith.constant 0 : index
    %128 = vector.load %arg16[%c377, %c0_108] : memref<560x128xbf16, #tpu.memory_space<vmem>>, vector<8x128xbf16>
    tpu.vector_store %arg16[%c377, %c0_108], %127 {strides = array<i32>} : memref<560x128xbf16, #tpu.memory_space<vmem>>, vector<8x128xbf16>,
    %c448 = arith.constant 448 : index
    %c0_109 = arith.constant 0 : index
    %129 = tpu.strided_load %arg15[%c448, %c0_109] {strides = array<i32: 2, 1>} : memref<512x128xf32, #tpu.memory_space<vmem>>, vector<8x128xf32>
    %c449 = arith.constant 449 : index
    %c0_110 = arith.constant 0 : index
    %130 = tpu.strided_load %arg15[%c449, %c0_110] {strides = array<i32: 2, 1>} : memref<512x128xf32, #tpu.memory_space<vmem>>, vector<8x128xf32>
    %131 = arith.maximumf %129, %130 : vector<8x128xf32>
    %132 = arith.truncf %131 : vector<8x128xf32> to vector<8x128xbf16>
    %c393 = arith.constant 393 : index
    %c0_111 = arith.constant 0 : index
    %133 = vector.load %arg16[%c393, %c0_111] : memref<560x128xbf16, #tpu.memory_space<vmem>>, vector<8x128xbf16>
    tpu.vector_store %arg16[%c393, %c0_111], %132 {strides = array<i32>} : memref<560x128xbf16, #tpu.memory_space<vmem>>, vector<8x128xbf16>,
    %c480 = arith.constant 480 : index
    %c0_112 = arith.constant 0 : index
    %134 = tpu.strided_load %arg15[%c480, %c0_112] {strides = array<i32: 2, 1>} : memref<512x128xf32, #tpu.memory_space<vmem>>, vector<8x128xf32>
    %c481 = arith.constant 481 : index
    %c0_113 = arith.constant 0 : index
    %135 = tpu.strided_load %arg15[%c481, %c0_113] {strides = array<i32: 2, 1>} : memref<512x128xf32, #tpu.memory_space<vmem>>, vector<8x128xf32>
    %136 = arith.maximumf %134, %135 : vector<8x128xf32>
    %137 = arith.truncf %136 : vector<8x128xf32> to vector<8x128xbf16>
    %c409 = arith.constant 409 : index
    %c0_114 = arith.constant 0 : index
    %138 = vector.load %arg16[%c409, %c0_114] : memref<560x128xbf16, #tpu.memory_space<vmem>>, vector<8x128xbf16>
    tpu.vector_store %arg16[%c409, %c0_114], %137 {strides = array<i32>} : memref<560x128xbf16, #tpu.memory_space<vmem>>, vector<8x128xbf16>,
    %c0_115 = arith.constant 0 : index
    %c0_116 = arith.constant 0 : index
    %139 = vector.load %arg4[%c0_115, %c0_116] : memref<1x128xf32, #tpu.memory_space<vmem>>, vector<1x128xf32>
    %c23 = arith.constant 23 : index
    %c0_117 = arith.constant 0 : index
    %140 = vector.load %arg16[%c23, %c0_117] : memref<560x128xbf16, #tpu.memory_space<vmem>>, vector<128x128xbf16>
    %c0_118 = arith.constant 0 : index
    %c0_119 = arith.constant 0 : index
    %c0_120 = arith.constant 0 : index
    %141 = vector.load %arg3[%c0_118, %c0_119, %c0_120] : memref<9x128x128xbf16, #tpu.memory_space<vmem>>, vector<1x128x128xbf16>
    %142 = vector.shape_cast %141 : vector<1x128x128xbf16> to vector<128x128xbf16>
    %cst_121 = arith.constant dense<0.000000e+00> : vector<128x128xf32>
    %143 = tpu.matmul %140, %142, %cst_121 {dimension_numbers = #tpu.dot_dimension_numbers<[1], [0], [0], [1], [0, 0, 1, 1], [], []>} : vector<128x128xbf16>, vector<128x128xbf16>, vector<128x128xf32> -> vector<128x128xf32>
    %c24 = arith.constant 24 : index
    %c0_122 = arith.constant 0 : index
    %144 = vector.load %arg16[%c24, %c0_122] : memref<560x128xbf16, #tpu.memory_space<vmem>>, vector<128x128xbf16>
    %c1_123 = arith.constant 1 : index
    %c0_124 = arith.constant 0 : index
    %c0_125 = arith.constant 0 : index
    %145 = vector.load %arg3[%c1_123, %c0_124, %c0_125] : memref<9x128x128xbf16, #tpu.memory_space<vmem>>, vector<1x128x128xbf16>
    %146 = vector.shape_cast %145 : vector<1x128x128xbf16> to vector<128x128xbf16>
    %cst_126 = arith.constant dense<0.000000e+00> : vector<128x128xf32>
    %147 = tpu.matmul %144, %146, %cst_126 {dimension_numbers = #tpu.dot_dimension_numbers<[1], [0], [0], [1], [0, 0, 1, 1], [], []>} : vector<128x128xbf16>, vector<128x128xbf16>, vector<128x128xf32> -> vector<128x128xf32>
    %148 = arith.addf %143, %147 : vector<128x128xf32>
    %c25 = arith.constant 25 : index
    %c0_127 = arith.constant 0 : index
    %149 = vector.load %arg16[%c25, %c0_127] : memref<560x128xbf16, #tpu.memory_space<vmem>>, vector<128x128xbf16>
    %c2 = arith.constant 2 : index
    %c0_128 = arith.constant 0 : index
    %c0_129 = arith.constant 0 : index
    %150 = vector.load %arg3[%c2, %c0_128, %c0_129] : memref<9x128x128xbf16, #tpu.memory_space<vmem>>, vector<1x128x128xbf16>
    %151 = vector.shape_cast %150 : vector<1x128x128xbf16> to vector<128x128xbf16>
    %cst_130 = arith.constant dense<0.000000e+00> : vector<128x128xf32>
    %152 = tpu.matmul %149, %151, %cst_130 {dimension_numbers = #tpu.dot_dimension_numbers<[1], [0], [0], [1], [0, 0, 1, 1], [], []>} : vector<128x128xbf16>, vector<128x128xbf16>, vector<128x128xf32> -> vector<128x128xf32>
    %153 = arith.addf %148, %152 : vector<128x128xf32>
    %c39 = arith.constant 39 : index
    %c0_131 = arith.constant 0 : index
    %154 = vector.load %arg16[%c39, %c0_131] : memref<560x128xbf16, #tpu.memory_space<vmem>>, vector<128x128xbf16>
    %c3 = arith.constant 3 : index
    %c0_132 = arith.constant 0 : index
    %c0_133 = arith.constant 0 : index
    %155 = vector.load %arg3[%c3, %c0_132, %c0_133] : memref<9x128x128xbf16, #tpu.memory_space<vmem>>, vector<1x128x128xbf16>
    %156 = vector.shape_cast %155 : vector<1x128x128xbf16> to vector<128x128xbf16>
    %cst_134 = arith.constant dense<0.000000e+00> : vector<128x128xf32>
    %157 = tpu.matmul %154, %156, %cst_134 {dimension_numbers = #tpu.dot_dimension_numbers<[1], [0], [0], [1], [0, 0, 1, 1], [], []>} : vector<128x128xbf16>, vector<128x128xbf16>, vector<128x128xf32> -> vector<128x128xf32>
    %158 = arith.addf %153, %157 : vector<128x128xf32>
    %c40 = arith.constant 40 : index
    %c0_135 = arith.constant 0 : index
    %159 = vector.load %arg16[%c40, %c0_135] : memref<560x128xbf16, #tpu.memory_space<vmem>>, vector<128x128xbf16>
    %c4 = arith.constant 4 : index
    %c0_136 = arith.constant 0 : index
    %c0_137 = arith.constant 0 : index
    %160 = vector.load %arg3[%c4, %c0_136, %c0_137] : memref<9x128x128xbf16, #tpu.memory_space<vmem>>, vector<1x128x128xbf16>
    %161 = vector.shape_cast %160 : vector<1x128x128xbf16> to vector<128x128xbf16>
    %cst_138 = arith.constant dense<0.000000e+00> : vector<128x128xf32>
    %162 = tpu.matmul %159, %161, %cst_138 {dimension_numbers = #tpu.dot_dimension_numbers<[1], [0], [0], [1], [0, 0, 1, 1], [], []>} : vector<128x128xbf16>, vector<128x128xbf16>, vector<128x128xf32> -> vector<128x128xf32>
    %163 = arith.addf %158, %162 : vector<128x128xf32>
    %c41_139 = arith.constant 41 : index
    %c0_140 = arith.constant 0 : index
    %164 = vector.load %arg16[%c41_139, %c0_140] : memref<560x128xbf16, #tpu.memory_space<vmem>>, vector<128x128xbf16>
    %c5 = arith.constant 5 : index
    %c0_141 = arith.constant 0 : index
    %c0_142 = arith.constant 0 : index
    %165 = vector.load %arg3[%c5, %c0_141, %c0_142] : memref<9x128x128xbf16, #tpu.memory_space<vmem>>, vector<1x128x128xbf16>
    %166 = vector.shape_cast %165 : vector<1x128x128xbf16> to vector<128x128xbf16>
    %cst_143 = arith.constant dense<0.000000e+00> : vector<128x128xf32>
    %167 = tpu.matmul %164, %166, %cst_143 {dimension_numbers = #tpu.dot_dimension_numbers<[1], [0], [0], [1], [0, 0, 1, 1], [], []>} : vector<128x128xbf16>, vector<128x128xbf16>, vector<128x128xf32> -> vector<128x128xf32>
    %168 = arith.addf %163, %167 : vector<128x128xf32>
    %c55 = arith.constant 55 : index
    %c0_144 = arith.constant 0 : index
    %169 = vector.load %arg16[%c55, %c0_144] : memref<560x128xbf16, #tpu.memory_space<vmem>>, vector<128x128xbf16>
    %c6 = arith.constant 6 : index
    %c0_145 = arith.constant 0 : index
    %c0_146 = arith.constant 0 : index
    %170 = vector.load %arg3[%c6, %c0_145, %c0_146] : memref<9x128x128xbf16, #tpu.memory_space<vmem>>, vector<1x128x128xbf16>
    %171 = vector.shape_cast %170 : vector<1x128x128xbf16> to vector<128x128xbf16>
    %cst_147 = arith.constant dense<0.000000e+00> : vector<128x128xf32>
    %172 = tpu.matmul %169, %171, %cst_147 {dimension_numbers = #tpu.dot_dimension_numbers<[1], [0], [0], [1], [0, 0, 1, 1], [], []>} : vector<128x128xbf16>, vector<128x128xbf16>, vector<128x128xf32> -> vector<128x128xf32>
    %173 = arith.addf %168, %172 : vector<128x128xf32>
    %c56 = arith.constant 56 : index
    %c0_148 = arith.constant 0 : index
    %174 = vector.load %arg16[%c56, %c0_148] : memref<560x128xbf16, #tpu.memory_space<vmem>>, vector<128x128xbf16>
    %c7 = arith.constant 7 : index
    %c0_149 = arith.constant 0 : index
    %c0_150 = arith.constant 0 : index
    %175 = vector.load %arg3[%c7, %c0_149, %c0_150] : memref<9x128x128xbf16, #tpu.memory_space<vmem>>, vector<1x128x128xbf16>
    %176 = vector.shape_cast %175 : vector<1x128x128xbf16> to vector<128x128xbf16>
    %cst_151 = arith.constant dense<0.000000e+00> : vector<128x128xf32>
    %177 = tpu.matmul %174, %176, %cst_151 {dimension_numbers = #tpu.dot_dimension_numbers<[1], [0], [0], [1], [0, 0, 1, 1], [], []>} : vector<128x128xbf16>, vector<128x128xbf16>, vector<128x128xf32> -> vector<128x128xf32>
    %178 = arith.addf %173, %177 : vector<128x128xf32>
    %c57_152 = arith.constant 57 : index
    %c0_153 = arith.constant 0 : index
    %179 = vector.load %arg16[%c57_152, %c0_153] : memref<560x128xbf16, #tpu.memory_space<vmem>>, vector<128x128xbf16>
    %c8 = arith.constant 8 : index
    %c0_154 = arith.constant 0 : index
    %c0_155 = arith.constant 0 : index
    %180 = vector.load %arg3[%c8, %c0_154, %c0_155] : memref<9x128x128xbf16, #tpu.memory_space<vmem>>, vector<1x128x128xbf16>
    %181 = vector.shape_cast %180 : vector<1x128x128xbf16> to vector<128x128xbf16>
    %cst_156 = arith.constant dense<0.000000e+00> : vector<128x128xf32>
    %182 = tpu.matmul %179, %181, %cst_156 {dimension_numbers = #tpu.dot_dimension_numbers<[1], [0], [0], [1], [0, 0, 1, 1], [], []>} : vector<128x128xbf16>, vector<128x128xbf16>, vector<128x128xf32> -> vector<128x128xf32>
    %183 = arith.addf %178, %182 : vector<128x128xf32>
    %184 = vector.broadcast %139 : vector<1x128xf32> to vector<128x128xf32>
    %185 = arith.addf %183, %184 : vector<128x128xf32>
    %cst_157 = arith.constant 0.000000e+00 : f32
    %186 = vector.broadcast %cst_157 : f32 to vector<128x128xf32>
    %187 = arith.maximumf %185, %186 : vector<128x128xf32>
    %c16_158 = arith.constant 16 : index
    %c0_159 = arith.constant 0 : index
    %188 = vector.load %arg14[%c16_158, %c0_159] : memref<528x128xf32, #tpu.memory_space<vmem>>, vector<128x128xf32>
    tpu.vector_store %arg14[%c16_158, %c0_159], %187 {strides = array<i32>} : memref<528x128xf32, #tpu.memory_space<vmem>>, vector<128x128xf32>,
    %c279 = arith.constant 279 : index
    %c0_160 = arith.constant 0 : index
    %189 = vector.load %arg16[%c279, %c0_160] : memref<560x128xbf16, #tpu.memory_space<vmem>>, vector<128x128xbf16>
    %c0_161 = arith.constant 0 : index
    %c0_162 = arith.constant 0 : index
    %c0_163 = arith.constant 0 : index
    %190 = vector.load %arg3[%c0_161, %c0_162, %c0_163] : memref<9x128x128xbf16, #tpu.memory_space<vmem>>, vector<1x128x128xbf16>
    %191 = vector.shape_cast %190 : vector<1x128x128xbf16> to vector<128x128xbf16>
    %cst_164 = arith.constant dense<0.000000e+00> : vector<128x128xf32>
    %192 = tpu.matmul %189, %191, %cst_164 {dimension_numbers = #tpu.dot_dimension_numbers<[1], [0], [0], [1], [0, 0, 1, 1], [], []>} : vector<128x128xbf16>, vector<128x128xbf16>, vector<128x128xf32> -> vector<128x128xf32>
    %c280 = arith.constant 280 : index
    %c0_165 = arith.constant 0 : index
    %193 = vector.load %arg16[%c280, %c0_165] : memref<560x128xbf16, #tpu.memory_space<vmem>>, vector<128x128xbf16>
    %c1_166 = arith.constant 1 : index
    %c0_167 = arith.constant 0 : index
    %c0_168 = arith.constant 0 : index
    %194 = vector.load %arg3[%c1_166, %c0_167, %c0_168] : memref<9x128x128xbf16, #tpu.memory_space<vmem>>, vector<1x128x128xbf16>
    %195 = vector.shape_cast %194 : vector<1x128x128xbf16> to vector<128x128xbf16>
    %cst_169 = arith.constant dense<0.000000e+00> : vector<128x128xf32>
    %196 = tpu.matmul %193, %195, %cst_169 {dimension_numbers = #tpu.dot_dimension_numbers<[1], [0], [0], [1], [0, 0, 1, 1], [], []>} : vector<128x128xbf16>, vector<128x128xbf16>, vector<128x128xf32> -> vector<128x128xf32>
    %197 = arith.addf %192, %196 : vector<128x128xf32>
    %c281 = arith.constant 281 : index
    %c0_170 = arith.constant 0 : index
    %198 = vector.load %arg16[%c281, %c0_170] : memref<560x128xbf16, #tpu.memory_space<vmem>>, vector<128x128xbf16>
    %c2_171 = arith.constant 2 : index
    %c0_172 = arith.constant 0 : index
    %c0_173 = arith.constant 0 : index
    %199 = vector.load %arg3[%c2_171, %c0_172, %c0_173] : memref<9x128x128xbf16, #tpu.memory_space<vmem>>, vector<1x128x128xbf16>
    %200 = vector.shape_cast %199 : vector<1x128x128xbf16> to vector<128x128xbf16>
    %cst_174 = arith.constant dense<0.000000e+00> : vector<128x128xf32>
    %201 = tpu.matmul %198, %200, %cst_174 {dimension_numbers = #tpu.dot_dimension_numbers<[1], [0], [0], [1], [0, 0, 1, 1], [], []>} : vector<128x128xbf16>, vector<128x128xbf16>, vector<128x128xf32> -> vector<128x128xf32>
    %202 = arith.addf %197, %201 : vector<128x128xf32>
    %c295 = arith.constant 295 : index
    %c0_175 = arith.constant 0 : index
    %203 = vector.load %arg16[%c295, %c0_175] : memref<560x128xbf16, #tpu.memory_space<vmem>>, vector<128x128xbf16>
    %c3_176 = arith.constant 3 : index
    %c0_177 = arith.constant 0 : index
    %c0_178 = arith.constant 0 : index
    %204 = vector.load %arg3[%c3_176, %c0_177, %c0_178] : memref<9x128x128xbf16, #tpu.memory_space<vmem>>, vector<1x128x128xbf16>
    %205 = vector.shape_cast %204 : vector<1x128x128xbf16> to vector<128x128xbf16>
    %cst_179 = arith.constant dense<0.000000e+00> : vector<128x128xf32>
    %206 = tpu.matmul %203, %205, %cst_179 {dimension_numbers = #tpu.dot_dimension_numbers<[1], [0], [0], [1], [0, 0, 1, 1], [], []>} : vector<128x128xbf16>, vector<128x128xbf16>, vector<128x128xf32> -> vector<128x128xf32>
    %207 = arith.addf %202, %206 : vector<128x128xf32>
    %c296 = arith.constant 296 : index
    %c0_180 = arith.constant 0 : index
    %208 = vector.load %arg16[%c296, %c0_180] : memref<560x128xbf16, #tpu.memory_space<vmem>>, vector<128x128xbf16>
    %c4_181 = arith.constant 4 : index
    %c0_182 = arith.constant 0 : index
    %c0_183 = arith.constant 0 : index
    %209 = vector.load %arg3[%c4_181, %c0_182, %c0_183] : memref<9x128x128xbf16, #tpu.memory_space<vmem>>, vector<1x128x128xbf16>
    %210 = vector.shape_cast %209 : vector<1x128x128xbf16> to vector<128x128xbf16>
    %cst_184 = arith.constant dense<0.000000e+00> : vector<128x128xf32>
    %211 = tpu.matmul %208, %210, %cst_184 {dimension_numbers = #tpu.dot_dimension_numbers<[1], [0], [0], [1], [0, 0, 1, 1], [], []>} : vector<128x128xbf16>, vector<128x128xbf16>, vector<128x128xf32> -> vector<128x128xf32>
    %212 = arith.addf %207, %211 : vector<128x128xf32>
    %c297_185 = arith.constant 297 : index
    %c0_186 = arith.constant 0 : index
    %213 = vector.load %arg16[%c297_185, %c0_186] : memref<560x128xbf16, #tpu.memory_space<vmem>>, vector<128x128xbf16>
    %c5_187 = arith.constant 5 : index
    %c0_188 = arith.constant 0 : index
    %c0_189 = arith.constant 0 : index
    %214 = vector.load %arg3[%c5_187, %c0_188, %c0_189] : memref<9x128x128xbf16, #tpu.memory_space<vmem>>, vector<1x128x128xbf16>
    %215 = vector.shape_cast %214 : vector<1x128x128xbf16> to vector<128x128xbf16>
    %cst_190 = arith.constant dense<0.000000e+00> : vector<128x128xf32>
    %216 = tpu.matmul %213, %215, %cst_190 {dimension_numbers = #tpu.dot_dimension_numbers<[1], [0], [0], [1], [0, 0, 1, 1], [], []>} : vector<128x128xbf16>, vector<128x128xbf16>, vector<128x128xf32> -> vector<128x128xf32>
    %217 = arith.addf %212, %216 : vector<128x128xf32>
    %c311 = arith.constant 311 : index
    %c0_191 = arith.constant 0 : index
    %218 = vector.load %arg16[%c311, %c0_191] : memref<560x128xbf16, #tpu.memory_space<vmem>>, vector<128x128xbf16>
    %c6_192 = arith.constant 6 : index
    %c0_193 = arith.constant 0 : index
    %c0_194 = arith.constant 0 : index
    %219 = vector.load %arg3[%c6_192, %c0_193, %c0_194] : memref<9x128x128xbf16, #tpu.memory_space<vmem>>, vector<1x128x128xbf16>
    %220 = vector.shape_cast %219 : vector<1x128x128xbf16> to vector<128x128xbf16>
    %cst_195 = arith.constant dense<0.000000e+00> : vector<128x128xf32>
    %221 = tpu.matmul %218, %220, %cst_195 {dimension_numbers = #tpu.dot_dimension_numbers<[1], [0], [0], [1], [0, 0, 1, 1], [], []>} : vector<128x128xbf16>, vector<128x128xbf16>, vector<128x128xf32> -> vector<128x128xf32>
    %222 = arith.addf %217, %221 : vector<128x128xf32>
    %c312 = arith.constant 312 : index
    %c0_196 = arith.constant 0 : index
    %223 = vector.load %arg16[%c312, %c0_196] : memref<560x128xbf16, #tpu.memory_space<vmem>>, vector<128x128xbf16>
    %c7_197 = arith.constant 7 : index
    %c0_198 = arith.constant 0 : index
    %c0_199 = arith.constant 0 : index
    %224 = vector.load %arg3[%c7_197, %c0_198, %c0_199] : memref<9x128x128xbf16, #tpu.memory_space<vmem>>, vector<1x128x128xbf16>
    %225 = vector.shape_cast %224 : vector<1x128x128xbf16> to vector<128x128xbf16>
    %cst_200 = arith.constant dense<0.000000e+00> : vector<128x128xf32>
    %226 = tpu.matmul %223, %225, %cst_200 {dimension_numbers = #tpu.dot_dimension_numbers<[1], [0], [0], [1], [0, 0, 1, 1], [], []>} : vector<128x128xbf16>, vector<128x128xbf16>, vector<128x128xf32> -> vector<128x128xf32>
    %227 = arith.addf %222, %226 : vector<128x128xf32>
    %c313_201 = arith.constant 313 : index
    %c0_202 = arith.constant 0 : index
    %228 = vector.load %arg16[%c313_201, %c0_202] : memref<560x128xbf16, #tpu.memory_space<vmem>>, vector<128x128xbf16>
    %c8_203 = arith.constant 8 : index
    %c0_204 = arith.constant 0 : index
    %c0_205 = arith.constant 0 : index
    %229 = vector.load %arg3[%c8_203, %c0_204, %c0_205] : memref<9x128x128xbf16, #tpu.memory_space<vmem>>, vector<1x128x128xbf16>
    %230 = vector.shape_cast %229 : vector<1x128x128xbf16> to vector<128x128xbf16>
    %cst_206 = arith.constant dense<0.000000e+00> : vector<128x128xf32>
    %231 = tpu.matmul %228, %230, %cst_206 {dimension_numbers = #tpu.dot_dimension_numbers<[1], [0], [0], [1], [0, 0, 1, 1], [], []>} : vector<128x128xbf16>, vector<128x128xbf16>, vector<128x128xf32> -> vector<128x128xf32>
    %232 = arith.addf %227, %231 : vector<128x128xf32>
    %233 = vector.broadcast %139 : vector<1x128xf32> to vector<128x128xf32>
    %234 = arith.addf %232, %233 : vector<128x128xf32>
    %cst_207 = arith.constant 0.000000e+00 : f32
    %235 = vector.broadcast %cst_207 : f32 to vector<128x128xf32>
    %236 = arith.maximumf %234, %235 : vector<128x128xf32>
    %c272_208 = arith.constant 272 : index
    %c0_209 = arith.constant 0 : index
    %237 = vector.load %arg14[%c272_208, %c0_209] : memref<528x128xf32, #tpu.memory_space<vmem>>, vector<128x128xf32>
    tpu.vector_store %arg14[%c272_208, %c0_209], %236 {strides = array<i32>} : memref<528x128xf32, #tpu.memory_space<vmem>>, vector<128x128xf32>,
    %c16_210 = arith.constant 16 : index
    %c0_211 = arith.constant 0 : index
    %238 = vector.load %arg14[%c16_210, %c0_211] : memref<528x128xf32, #tpu.memory_space<vmem>>, vector<128x128xf32>
    %c32_212 = arith.constant 32 : index
    %c0_213 = arith.constant 0 : index
    %239 = vector.load %arg14[%c32_212, %c0_213] : memref<528x128xf32, #tpu.memory_space<vmem>>, vector<128x128xf32>
    %240 = arith.maximumf %238, %239 : vector<128x128xf32>
    %c16_214 = arith.constant 16 : index
    %c0_215 = arith.constant 0 : index
    %241 = vector.load %arg15[%c16_214, %c0_215] : memref<512x128xf32, #tpu.memory_space<vmem>>, vector<128x128xf32>
    tpu.vector_store %arg15[%c16_214, %c0_215], %240 {strides = array<i32>} : memref<512x128xf32, #tpu.memory_space<vmem>>, vector<128x128xf32>,
    %c272_216 = arith.constant 272 : index
    %c0_217 = arith.constant 0 : index
    %242 = vector.load %arg14[%c272_216, %c0_217] : memref<528x128xf32, #tpu.memory_space<vmem>>, vector<128x128xf32>
    %c288_218 = arith.constant 288 : index
    %c0_219 = arith.constant 0 : index
    %243 = vector.load %arg14[%c288_218, %c0_219] : memref<528x128xf32, #tpu.memory_space<vmem>>, vector<128x128xf32>
    %244 = arith.maximumf %242, %243 : vector<128x128xf32>
    %c272_220 = arith.constant 272 : index
    %c0_221 = arith.constant 0 : index
    %245 = vector.load %arg15[%c272_220, %c0_221] : memref<512x128xf32, #tpu.memory_space<vmem>>, vector<128x128xf32>
    tpu.vector_store %arg15[%c272_220, %c0_221], %244 {strides = array<i32>} : memref<512x128xf32, #tpu.memory_space<vmem>>, vector<128x128xf32>,
    %c17 = arith.constant 17 : index
    %c0_222 = arith.constant 0 : index
    %246 = tpu.strided_load %arg15[%c17, %c0_222] {strides = array<i32: 2, 1>} : memref<512x128xf32, #tpu.memory_space<vmem>>, vector<4x128xf32>
    %c18 = arith.constant 18 : index
    %c0_223 = arith.constant 0 : index
    %247 = tpu.strided_load %arg15[%c18, %c0_223] {strides = array<i32: 2, 1>} : memref<512x128xf32, #tpu.memory_space<vmem>>, vector<4x128xf32>
    %248 = arith.maximumf %246, %247 : vector<4x128xf32>
    %249 = arith.truncf %248 : vector<4x128xf32> to vector<4x128xbf16>
    %c25_224 = arith.constant 25 : index
    %c0_225 = arith.constant 0 : index
    %250 = vector.load %arg17[%c25_224, %c0_225] : memref<160x128xbf16, #tpu.memory_space<vmem>>, vector<4x128xbf16>
    tpu.vector_store %arg17[%c25_224, %c0_225], %249 {strides = array<i32>} : memref<160x128xbf16, #tpu.memory_space<vmem>>, vector<4x128xbf16>,
    %c49 = arith.constant 49 : index
    %c0_226 = arith.constant 0 : index
    %251 = tpu.strided_load %arg15[%c49, %c0_226] {strides = array<i32: 2, 1>} : memref<512x128xf32, #tpu.memory_space<vmem>>, vector<4x128xf32>
    %c50 = arith.constant 50 : index
    %c0_227 = arith.constant 0 : index
    %252 = tpu.strided_load %arg15[%c50, %c0_227] {strides = array<i32: 2, 1>} : memref<512x128xf32, #tpu.memory_space<vmem>>, vector<4x128xf32>
    %253 = arith.maximumf %251, %252 : vector<4x128xf32>
    %254 = arith.truncf %253 : vector<4x128xf32> to vector<4x128xbf16>
    %c33_228 = arith.constant 33 : index
    %c0_229 = arith.constant 0 : index
    %255 = vector.load %arg17[%c33_228, %c0_229] : memref<160x128xbf16, #tpu.memory_space<vmem>>, vector<4x128xbf16>
    tpu.vector_store %arg17[%c33_228, %c0_229], %254 {strides = array<i32>} : memref<160x128xbf16, #tpu.memory_space<vmem>>, vector<4x128xbf16>,
    %c81 = arith.constant 81 : index
    %c0_230 = arith.constant 0 : index
    %256 = tpu.strided_load %arg15[%c81, %c0_230] {strides = array<i32: 2, 1>} : memref<512x128xf32, #tpu.memory_space<vmem>>, vector<4x128xf32>
    %c82 = arith.constant 82 : index
    %c0_231 = arith.constant 0 : index
    %257 = tpu.strided_load %arg15[%c82, %c0_231] {strides = array<i32: 2, 1>} : memref<512x128xf32, #tpu.memory_space<vmem>>, vector<4x128xf32>
    %258 = arith.maximumf %256, %257 : vector<4x128xf32>
    %259 = arith.truncf %258 : vector<4x128xf32> to vector<4x128xbf16>
    %c41_232 = arith.constant 41 : index
    %c0_233 = arith.constant 0 : index
    %260 = vector.load %arg17[%c41_232, %c0_233] : memref<160x128xbf16, #tpu.memory_space<vmem>>, vector<4x128xbf16>
    tpu.vector_store %arg17[%c41_232, %c0_233], %259 {strides = array<i32>} : memref<160x128xbf16, #tpu.memory_space<vmem>>, vector<4x128xbf16>,
    %c113 = arith.constant 113 : index
    %c0_234 = arith.constant 0 : index
    %261 = tpu.strided_load %arg15[%c113, %c0_234] {strides = array<i32: 2, 1>} : memref<512x128xf32, #tpu.memory_space<vmem>>, vector<4x128xf32>
    %c114 = arith.constant 114 : index
    %c0_235 = arith.constant 0 : index
    %262 = tpu.strided_load %arg15[%c114, %c0_235] {strides = array<i32: 2, 1>} : memref<512x128xf32, #tpu.memory_space<vmem>>, vector<4x128xf32>
    %263 = arith.maximumf %261, %262 : vector<4x128xf32>
    %264 = arith.truncf %263 : vector<4x128xf32> to vector<4x128xbf16>
    %c49_236 = arith.constant 49 : index
    %c0_237 = arith.constant 0 : index
    %265 = vector.load %arg17[%c49_236, %c0_237] : memref<160x128xbf16, #tpu.memory_space<vmem>>, vector<4x128xbf16>
    tpu.vector_store %arg17[%c49_236, %c0_237], %264 {strides = array<i32>} : memref<160x128xbf16, #tpu.memory_space<vmem>>, vector<4x128xbf16>,
    %c273 = arith.constant 273 : index
    %c0_238 = arith.constant 0 : index
    %266 = tpu.strided_load %arg15[%c273, %c0_238] {strides = array<i32: 2, 1>} : memref<512x128xf32, #tpu.memory_space<vmem>>, vector<4x128xf32>
    %c274 = arith.constant 274 : index
    %c0_239 = arith.constant 0 : index
    %267 = tpu.strided_load %arg15[%c274, %c0_239] {strides = array<i32: 2, 1>} : memref<512x128xf32, #tpu.memory_space<vmem>>, vector<4x128xf32>
    %268 = arith.maximumf %266, %267 : vector<4x128xf32>
    %269 = arith.truncf %268 : vector<4x128xf32> to vector<4x128xbf16>
    %c89_240 = arith.constant 89 : index
    %c0_241 = arith.constant 0 : index
    %270 = vector.load %arg17[%c89_240, %c0_241] : memref<160x128xbf16, #tpu.memory_space<vmem>>, vector<4x128xbf16>
    tpu.vector_store %arg17[%c89_240, %c0_241], %269 {strides = array<i32>} : memref<160x128xbf16, #tpu.memory_space<vmem>>, vector<4x128xbf16>,
    %c305 = arith.constant 305 : index
    %c0_242 = arith.constant 0 : index
    %271 = tpu.strided_load %arg15[%c305, %c0_242] {strides = array<i32: 2, 1>} : memref<512x128xf32, #tpu.memory_space<vmem>>, vector<4x128xf32>
    %c306 = arith.constant 306 : index
    %c0_243 = arith.constant 0 : index
    %272 = tpu.strided_load %arg15[%c306, %c0_243] {strides = array<i32: 2, 1>} : memref<512x128xf32, #tpu.memory_space<vmem>>, vector<4x128xf32>
    %273 = arith.maximumf %271, %272 : vector<4x128xf32>
    %274 = arith.truncf %273 : vector<4x128xf32> to vector<4x128xbf16>
    %c97_244 = arith.constant 97 : index
    %c0_245 = arith.constant 0 : index
    %275 = vector.load %arg17[%c97_244, %c0_245] : memref<160x128xbf16, #tpu.memory_space<vmem>>, vector<4x128xbf16>
    tpu.vector_store %arg17[%c97_244, %c0_245], %274 {strides = array<i32>} : memref<160x128xbf16, #tpu.memory_space<vmem>>, vector<4x128xbf16>,
    %c337 = arith.constant 337 : index
    %c0_246 = arith.constant 0 : index
    %276 = tpu.strided_load %arg15[%c337, %c0_246] {strides = array<i32: 2, 1>} : memref<512x128xf32, #tpu.memory_space<vmem>>, vector<4x128xf32>
    %c338 = arith.constant 338 : index
    %c0_247 = arith.constant 0 : index
    %277 = tpu.strided_load %arg15[%c338, %c0_247] {strides = array<i32: 2, 1>} : memref<512x128xf32, #tpu.memory_space<vmem>>, vector<4x128xf32>
    %278 = arith.maximumf %276, %277 : vector<4x128xf32>
    %279 = arith.truncf %278 : vector<4x128xf32> to vector<4x128xbf16>
    %c105_248 = arith.constant 105 : index
    %c0_249 = arith.constant 0 : index
    %280 = vector.load %arg17[%c105_248, %c0_249] : memref<160x128xbf16, #tpu.memory_space<vmem>>, vector<4x128xbf16>
    tpu.vector_store %arg17[%c105_248, %c0_249], %279 {strides = array<i32>} : memref<160x128xbf16, #tpu.memory_space<vmem>>, vector<4x128xbf16>,
    %c369 = arith.constant 369 : index
    %c0_250 = arith.constant 0 : index
    %281 = tpu.strided_load %arg15[%c369, %c0_250] {strides = array<i32: 2, 1>} : memref<512x128xf32, #tpu.memory_space<vmem>>, vector<4x128xf32>
    %c370 = arith.constant 370 : index
    %c0_251 = arith.constant 0 : index
    %282 = tpu.strided_load %arg15[%c370, %c0_251] {strides = array<i32: 2, 1>} : memref<512x128xf32, #tpu.memory_space<vmem>>, vector<4x128xf32>
    %283 = arith.maximumf %281, %282 : vector<4x128xf32>
    %284 = arith.truncf %283 : vector<4x128xf32> to vector<4x128xbf16>
    %c113_252 = arith.constant 113 : index
    %c0_253 = arith.constant 0 : index
    %285 = vector.load %arg17[%c113_252, %c0_253] : memref<160x128xbf16, #tpu.memory_space<vmem>>, vector<4x128xbf16>
    tpu.vector_store %arg17[%c113_252, %c0_253], %284 {strides = array<i32>} : memref<160x128xbf16, #tpu.memory_space<vmem>>, vector<4x128xbf16>,
    %c0_254 = arith.constant 0 : index
    %c0_255 = arith.constant 0 : index
    %286 = vector.load %arg6[%c0_254, %c0_255] : memref<1x128xf32, #tpu.memory_space<vmem>>, vector<1x128xf32>
    %c7_256 = arith.constant 7 : index
    %c0_257 = arith.constant 0 : index
    %287 = vector.load %arg17[%c7_256, %c0_257] : memref<160x128xbf16, #tpu.memory_space<vmem>>, vector<128x128xbf16>
    %c0_258 = arith.constant 0 : index
    %c0_259 = arith.constant 0 : index
    %c0_260 = arith.constant 0 : index
    %288 = vector.load %arg5[%c0_258, %c0_259, %c0_260] : memref<9x128x128xbf16, #tpu.memory_space<vmem>>, vector<1x128x128xbf16>
    %289 = vector.shape_cast %288 : vector<1x128x128xbf16> to vector<128x128xbf16>
    %cst_261 = arith.constant dense<0.000000e+00> : vector<128x128xf32>
    %290 = tpu.matmul %287, %289, %cst_261 {dimension_numbers = #tpu.dot_dimension_numbers<[1], [0], [0], [1], [0, 0, 1, 1], [], []>} : vector<128x128xbf16>, vector<128x128xbf16>, vector<128x128xf32> -> vector<128x128xf32>
    %c8_262 = arith.constant 8 : index
    %c0_263 = arith.constant 0 : index
    %291 = vector.load %arg17[%c8_262, %c0_263] : memref<160x128xbf16, #tpu.memory_space<vmem>>, vector<128x128xbf16>
    %c1_264 = arith.constant 1 : index
    %c0_265 = arith.constant 0 : index
    %c0_266 = arith.constant 0 : index
    %292 = vector.load %arg5[%c1_264, %c0_265, %c0_266] : memref<9x128x128xbf16, #tpu.memory_space<vmem>>, vector<1x128x128xbf16>
    %293 = vector.shape_cast %292 : vector<1x128x128xbf16> to vector<128x128xbf16>
    %cst_267 = arith.constant dense<0.000000e+00> : vector<128x128xf32>
    %294 = tpu.matmul %291, %293, %cst_267 {dimension_numbers = #tpu.dot_dimension_numbers<[1], [0], [0], [1], [0, 0, 1, 1], [], []>} : vector<128x128xbf16>, vector<128x128xbf16>, vector<128x128xf32> -> vector<128x128xf32>
    %295 = arith.addf %290, %294 : vector<128x128xf32>
    %c9 = arith.constant 9 : index
    %c0_268 = arith.constant 0 : index
    %296 = vector.load %arg17[%c9, %c0_268] : memref<160x128xbf16, #tpu.memory_space<vmem>>, vector<128x128xbf16>
    %c2_269 = arith.constant 2 : index
    %c0_270 = arith.constant 0 : index
    %c0_271 = arith.constant 0 : index
    %297 = vector.load %arg5[%c2_269, %c0_270, %c0_271] : memref<9x128x128xbf16, #tpu.memory_space<vmem>>, vector<1x128x128xbf16>
    %298 = vector.shape_cast %297 : vector<1x128x128xbf16> to vector<128x128xbf16>
    %cst_272 = arith.constant dense<0.000000e+00> : vector<128x128xf32>
    %299 = tpu.matmul %296, %298, %cst_272 {dimension_numbers = #tpu.dot_dimension_numbers<[1], [0], [0], [1], [0, 0, 1, 1], [], []>} : vector<128x128xbf16>, vector<128x128xbf16>, vector<128x128xf32> -> vector<128x128xf32>
    %300 = arith.addf %295, %299 : vector<128x128xf32>
    %c15 = arith.constant 15 : index
    %c0_273 = arith.constant 0 : index
    %301 = vector.load %arg17[%c15, %c0_273] : memref<160x128xbf16, #tpu.memory_space<vmem>>, vector<128x128xbf16>
    %c3_274 = arith.constant 3 : index
    %c0_275 = arith.constant 0 : index
    %c0_276 = arith.constant 0 : index
    %302 = vector.load %arg5[%c3_274, %c0_275, %c0_276] : memref<9x128x128xbf16, #tpu.memory_space<vmem>>, vector<1x128x128xbf16>
    %303 = vector.shape_cast %302 : vector<1x128x128xbf16> to vector<128x128xbf16>
    %cst_277 = arith.constant dense<0.000000e+00> : vector<128x128xf32>
    %304 = tpu.matmul %301, %303, %cst_277 {dimension_numbers = #tpu.dot_dimension_numbers<[1], [0], [0], [1], [0, 0, 1, 1], [], []>} : vector<128x128xbf16>, vector<128x128xbf16>, vector<128x128xf32> -> vector<128x128xf32>
    %305 = arith.addf %300, %304 : vector<128x128xf32>
    %c16_278 = arith.constant 16 : index
    %c0_279 = arith.constant 0 : index
    %306 = vector.load %arg17[%c16_278, %c0_279] : memref<160x128xbf16, #tpu.memory_space<vmem>>, vector<128x128xbf16>
    %c4_280 = arith.constant 4 : index
    %c0_281 = arith.constant 0 : index
    %c0_282 = arith.constant 0 : index
    %307 = vector.load %arg5[%c4_280, %c0_281, %c0_282] : memref<9x128x128xbf16, #tpu.memory_space<vmem>>, vector<1x128x128xbf16>
    %308 = vector.shape_cast %307 : vector<1x128x128xbf16> to vector<128x128xbf16>
    %cst_283 = arith.constant dense<0.000000e+00> : vector<128x128xf32>
    %309 = tpu.matmul %306, %308, %cst_283 {dimension_numbers = #tpu.dot_dimension_numbers<[1], [0], [0], [1], [0, 0, 1, 1], [], []>} : vector<128x128xbf16>, vector<128x128xbf16>, vector<128x128xf32> -> vector<128x128xf32>
    %310 = arith.addf %305, %309 : vector<128x128xf32>
    %c17_284 = arith.constant 17 : index
    %c0_285 = arith.constant 0 : index
    %311 = vector.load %arg17[%c17_284, %c0_285] : memref<160x128xbf16, #tpu.memory_space<vmem>>, vector<128x128xbf16>
    %c5_286 = arith.constant 5 : index
    %c0_287 = arith.constant 0 : index
    %c0_288 = arith.constant 0 : index
    %312 = vector.load %arg5[%c5_286, %c0_287, %c0_288] : memref<9x128x128xbf16, #tpu.memory_space<vmem>>, vector<1x128x128xbf16>
    %313 = vector.shape_cast %312 : vector<1x128x128xbf16> to vector<128x128xbf16>
    %cst_289 = arith.constant dense<0.000000e+00> : vector<128x128xf32>
    %314 = tpu.matmul %311, %313, %cst_289 {dimension_numbers = #tpu.dot_dimension_numbers<[1], [0], [0], [1], [0, 0, 1, 1], [], []>} : vector<128x128xbf16>, vector<128x128xbf16>, vector<128x128xf32> -> vector<128x128xf32>
    %315 = arith.addf %310, %314 : vector<128x128xf32>
    %c23_290 = arith.constant 23 : index
    %c0_291 = arith.constant 0 : index
    %316 = vector.load %arg17[%c23_290, %c0_291] : memref<160x128xbf16, #tpu.memory_space<vmem>>, vector<128x128xbf16>
    %c6_292 = arith.constant 6 : index
    %c0_293 = arith.constant 0 : index
    %c0_294 = arith.constant 0 : index
    %317 = vector.load %arg5[%c6_292, %c0_293, %c0_294] : memref<9x128x128xbf16, #tpu.memory_space<vmem>>, vector<1x128x128xbf16>
    %318 = vector.shape_cast %317 : vector<1x128x128xbf16> to vector<128x128xbf16>
    %cst_295 = arith.constant dense<0.000000e+00> : vector<128x128xf32>
    %319 = tpu.matmul %316, %318, %cst_295 {dimension_numbers = #tpu.dot_dimension_numbers<[1], [0], [0], [1], [0, 0, 1, 1], [], []>} : vector<128x128xbf16>, vector<128x128xbf16>, vector<128x128xf32> -> vector<128x128xf32>
    %320 = arith.addf %315, %319 : vector<128x128xf32>
    %c24_296 = arith.constant 24 : index
    %c0_297 = arith.constant 0 : index
    %321 = vector.load %arg17[%c24_296, %c0_297] : memref<160x128xbf16, #tpu.memory_space<vmem>>, vector<128x128xbf16>
    %c7_298 = arith.constant 7 : index
    %c0_299 = arith.constant 0 : index
    %c0_300 = arith.constant 0 : index
    %322 = vector.load %arg5[%c7_298, %c0_299, %c0_300] : memref<9x128x128xbf16, #tpu.memory_space<vmem>>, vector<1x128x128xbf16>
    %323 = vector.shape_cast %322 : vector<1x128x128xbf16> to vector<128x128xbf16>
    %cst_301 = arith.constant dense<0.000000e+00> : vector<128x128xf32>
    %324 = tpu.matmul %321, %323, %cst_301 {dimension_numbers = #tpu.dot_dimension_numbers<[1], [0], [0], [1], [0, 0, 1, 1], [], []>} : vector<128x128xbf16>, vector<128x128xbf16>, vector<128x128xf32> -> vector<128x128xf32>
    %325 = arith.addf %320, %324 : vector<128x128xf32>
    %c25_302 = arith.constant 25 : index
    %c0_303 = arith.constant 0 : index
    %326 = vector.load %arg17[%c25_302, %c0_303] : memref<160x128xbf16, #tpu.memory_space<vmem>>, vector<128x128xbf16>
    %c8_304 = arith.constant 8 : index
    %c0_305 = arith.constant 0 : index
    %c0_306 = arith.constant 0 : index
    %327 = vector.load %arg5[%c8_304, %c0_305, %c0_306] : memref<9x128x128xbf16, #tpu.memory_space<vmem>>, vector<1x128x128xbf16>
    %328 = vector.shape_cast %327 : vector<1x128x128xbf16> to vector<128x128xbf16>
    %cst_307 = arith.constant dense<0.000000e+00> : vector<128x128xf32>
    %329 = tpu.matmul %326, %328, %cst_307 {dimension_numbers = #tpu.dot_dimension_numbers<[1], [0], [0], [1], [0, 0, 1, 1], [], []>} : vector<128x128xbf16>, vector<128x128xbf16>, vector<128x128xf32> -> vector<128x128xf32>
    %330 = arith.addf %325, %329 : vector<128x128xf32>
    %331 = vector.broadcast %286 : vector<1x128xf32> to vector<128x128xf32>
    %332 = arith.addf %330, %331 : vector<128x128xf32>
    %cst_308 = arith.constant 0.000000e+00 : f32
    %333 = vector.broadcast %cst_308 : f32 to vector<128x128xf32>
    %334 = arith.maximumf %332, %333 : vector<128x128xf32>
    %c0_309 = arith.constant 0 : index
    %c0_310 = arith.constant 0 : index
    %335 = vector.load %arg14[%c0_309, %c0_310] : memref<528x128xf32, #tpu.memory_space<vmem>>, vector<128x128xf32>
    tpu.vector_store %arg14[%c0_309, %c0_310], %334 {strides = array<i32>} : memref<528x128xf32, #tpu.memory_space<vmem>>, vector<128x128xf32>,
    %c0_311 = arith.constant 0 : index
    %c0_312 = arith.constant 0 : index
    %336 = vector.load %arg14[%c0_311, %c0_312] : memref<528x128xf32, #tpu.memory_space<vmem>>, vector<128x128xf32>
    %c8_313 = arith.constant 8 : index
    %c0_314 = arith.constant 0 : index
    %337 = vector.load %arg14[%c8_313, %c0_314] : memref<528x128xf32, #tpu.memory_space<vmem>>, vector<128x128xf32>
    %338 = arith.maximumf %336, %337 : vector<128x128xf32>
    %c0_315 = arith.constant 0 : index
    %c0_316 = arith.constant 0 : index
    %339 = vector.load %arg15[%c0_315, %c0_316] : memref<512x128xf32, #tpu.memory_space<vmem>>, vector<128x128xf32>
    tpu.vector_store %arg15[%c0_315, %c0_316], %338 {strides = array<i32>} : memref<512x128xf32, #tpu.memory_space<vmem>>, vector<128x128xf32>,
    %c9_317 = arith.constant 9 : index
    %c0_318 = arith.constant 0 : index
    %340 = tpu.strided_load %arg15[%c9_317, %c0_318] {strides = array<i32: 2, 1>} : memref<512x128xf32, #tpu.memory_space<vmem>>, vector<2x128xf32>
    %c10 = arith.constant 10 : index
    %c0_319 = arith.constant 0 : index
    %341 = tpu.strided_load %arg15[%c10, %c0_319] {strides = array<i32: 2, 1>} : memref<512x128xf32, #tpu.memory_space<vmem>>, vector<2x128xf32>
    %342 = arith.maximumf %340, %341 : vector<2x128xf32>
    %343 = arith.truncf %342 : vector<2x128xf32> to vector<2x128xbf16>
    %c25_320 = arith.constant 25 : index
    %c0_321 = arith.constant 0 : index
    %344 = vector.load %arg18[%c25_320, %c0_321] : memref<160x128xbf16, #tpu.memory_space<vmem>>, vector<2x128xbf16>
    tpu.vector_store %arg18[%c25_320, %c0_321], %343 {strides = array<i32>} : memref<160x128xbf16, #tpu.memory_space<vmem>>, vector<2x128xbf16>,
    %c25_322 = arith.constant 25 : index
    %c0_323 = arith.constant 0 : index
    %345 = tpu.strided_load %arg15[%c25_322, %c0_323] {strides = array<i32: 2, 1>} : memref<512x128xf32, #tpu.memory_space<vmem>>, vector<2x128xf32>
    %c26 = arith.constant 26 : index
    %c0_324 = arith.constant 0 : index
    %346 = tpu.strided_load %arg15[%c26, %c0_324] {strides = array<i32: 2, 1>} : memref<512x128xf32, #tpu.memory_space<vmem>>, vector<2x128xf32>
    %347 = arith.maximumf %345, %346 : vector<2x128xf32>
    %348 = arith.truncf %347 : vector<2x128xf32> to vector<2x128xbf16>
    %c33_325 = arith.constant 33 : index
    %c0_326 = arith.constant 0 : index
    %349 = vector.load %arg18[%c33_325, %c0_326] : memref<160x128xbf16, #tpu.memory_space<vmem>>, vector<2x128xbf16>
    tpu.vector_store %arg18[%c33_325, %c0_326], %348 {strides = array<i32>} : memref<160x128xbf16, #tpu.memory_space<vmem>>, vector<2x128xbf16>,
    %c73_327 = arith.constant 73 : index
    %c0_328 = arith.constant 0 : index
    %350 = tpu.strided_load %arg15[%c73_327, %c0_328] {strides = array<i32: 2, 1>} : memref<512x128xf32, #tpu.memory_space<vmem>>, vector<2x128xf32>
    %c74 = arith.constant 74 : index
    %c0_329 = arith.constant 0 : index
    %351 = tpu.strided_load %arg15[%c74, %c0_329] {strides = array<i32: 2, 1>} : memref<512x128xf32, #tpu.memory_space<vmem>>, vector<2x128xf32>
    %352 = arith.maximumf %350, %351 : vector<2x128xf32>
    %353 = arith.truncf %352 : vector<2x128xf32> to vector<2x128xbf16>
    %c89_330 = arith.constant 89 : index
    %c0_331 = arith.constant 0 : index
    %354 = vector.load %arg18[%c89_330, %c0_331] : memref<160x128xbf16, #tpu.memory_space<vmem>>, vector<2x128xbf16>
    tpu.vector_store %arg18[%c89_330, %c0_331], %353 {strides = array<i32>} : memref<160x128xbf16, #tpu.memory_space<vmem>>, vector<2x128xbf16>,
    %c89_332 = arith.constant 89 : index
    %c0_333 = arith.constant 0 : index
    %355 = tpu.strided_load %arg15[%c89_332, %c0_333] {strides = array<i32: 2, 1>} : memref<512x128xf32, #tpu.memory_space<vmem>>, vector<2x128xf32>
    %c90 = arith.constant 90 : index
    %c0_334 = arith.constant 0 : index
    %356 = tpu.strided_load %arg15[%c90, %c0_334] {strides = array<i32: 2, 1>} : memref<512x128xf32, #tpu.memory_space<vmem>>, vector<2x128xf32>
    %357 = arith.maximumf %355, %356 : vector<2x128xf32>
    %358 = arith.truncf %357 : vector<2x128xf32> to vector<2x128xbf16>
    %c97_335 = arith.constant 97 : index
    %c0_336 = arith.constant 0 : index
    %359 = vector.load %arg18[%c97_335, %c0_336] : memref<160x128xbf16, #tpu.memory_space<vmem>>, vector<2x128xbf16>
    tpu.vector_store %arg18[%c97_335, %c0_336], %358 {strides = array<i32>} : memref<160x128xbf16, #tpu.memory_space<vmem>>, vector<2x128xbf16>,
    %c0_337 = arith.constant 0 : index
    %c0_338 = arith.constant 0 : index
    %360 = vector.load %arg8[%c0_337, %c0_338] : memref<1x128xf32, #tpu.memory_space<vmem>>, vector<1x128xf32>
    %c7_339 = arith.constant 7 : index
    %c0_340 = arith.constant 0 : index
    %361 = vector.load %arg18[%c7_339, %c0_340] : memref<160x128xbf16, #tpu.memory_space<vmem>>, vector<128x128xbf16>
    %c0_341 = arith.constant 0 : index
    %c0_342 = arith.constant 0 : index
    %c0_343 = arith.constant 0 : index
    %362 = vector.load %arg7[%c0_341, %c0_342, %c0_343] : memref<9x128x128xbf16, #tpu.memory_space<vmem>>, vector<1x128x128xbf16>
    %363 = vector.shape_cast %362 : vector<1x128x128xbf16> to vector<128x128xbf16>
    %cst_344 = arith.constant dense<0.000000e+00> : vector<128x128xf32>
    %364 = tpu.matmul %361, %363, %cst_344 {dimension_numbers = #tpu.dot_dimension_numbers<[1], [0], [0], [1], [0, 0, 1, 1], [], []>} : vector<128x128xbf16>, vector<128x128xbf16>, vector<128x128xf32> -> vector<128x128xf32>
    %c8_345 = arith.constant 8 : index
    %c0_346 = arith.constant 0 : index
    %365 = vector.load %arg18[%c8_345, %c0_346] : memref<160x128xbf16, #tpu.memory_space<vmem>>, vector<128x128xbf16>
    %c1_347 = arith.constant 1 : index
    %c0_348 = arith.constant 0 : index
    %c0_349 = arith.constant 0 : index
    %366 = vector.load %arg7[%c1_347, %c0_348, %c0_349] : memref<9x128x128xbf16, #tpu.memory_space<vmem>>, vector<1x128x128xbf16>
    %367 = vector.shape_cast %366 : vector<1x128x128xbf16> to vector<128x128xbf16>
    %cst_350 = arith.constant dense<0.000000e+00> : vector<128x128xf32>
    %368 = tpu.matmul %365, %367, %cst_350 {dimension_numbers = #tpu.dot_dimension_numbers<[1], [0], [0], [1], [0, 0, 1, 1], [], []>} : vector<128x128xbf16>, vector<128x128xbf16>, vector<128x128xf32> -> vector<128x128xf32>
    %369 = arith.addf %364, %368 : vector<128x128xf32>
    %c9_351 = arith.constant 9 : index
    %c0_352 = arith.constant 0 : index
    %370 = vector.load %arg18[%c9_351, %c0_352] : memref<160x128xbf16, #tpu.memory_space<vmem>>, vector<128x128xbf16>
    %c2_353 = arith.constant 2 : index
    %c0_354 = arith.constant 0 : index
    %c0_355 = arith.constant 0 : index
    %371 = vector.load %arg7[%c2_353, %c0_354, %c0_355] : memref<9x128x128xbf16, #tpu.memory_space<vmem>>, vector<1x128x128xbf16>
    %372 = vector.shape_cast %371 : vector<1x128x128xbf16> to vector<128x128xbf16>
    %cst_356 = arith.constant dense<0.000000e+00> : vector<128x128xf32>
    %373 = tpu.matmul %370, %372, %cst_356 {dimension_numbers = #tpu.dot_dimension_numbers<[1], [0], [0], [1], [0, 0, 1, 1], [], []>} : vector<128x128xbf16>, vector<128x128xbf16>, vector<128x128xf32> -> vector<128x128xf32>
    %374 = arith.addf %369, %373 : vector<128x128xf32>
    %c15_357 = arith.constant 15 : index
    %c0_358 = arith.constant 0 : index
    %375 = vector.load %arg18[%c15_357, %c0_358] : memref<160x128xbf16, #tpu.memory_space<vmem>>, vector<128x128xbf16>
    %c3_359 = arith.constant 3 : index
    %c0_360 = arith.constant 0 : index
    %c0_361 = arith.constant 0 : index
    %376 = vector.load %arg7[%c3_359, %c0_360, %c0_361] : memref<9x128x128xbf16, #tpu.memory_space<vmem>>, vector<1x128x128xbf16>
    %377 = vector.shape_cast %376 : vector<1x128x128xbf16> to vector<128x128xbf16>
    %cst_362 = arith.constant dense<0.000000e+00> : vector<128x128xf32>
    %378 = tpu.matmul %375, %377, %cst_362 {dimension_numbers = #tpu.dot_dimension_numbers<[1], [0], [0], [1], [0, 0, 1, 1], [], []>} : vector<128x128xbf16>, vector<128x128xbf16>, vector<128x128xf32> -> vector<128x128xf32>
    %379 = arith.addf %374, %378 : vector<128x128xf32>
    %c16_363 = arith.constant 16 : index
    %c0_364 = arith.constant 0 : index
    %380 = vector.load %arg18[%c16_363, %c0_364] : memref<160x128xbf16, #tpu.memory_space<vmem>>, vector<128x128xbf16>
    %c4_365 = arith.constant 4 : index
    %c0_366 = arith.constant 0 : index
    %c0_367 = arith.constant 0 : index
    %381 = vector.load %arg7[%c4_365, %c0_366, %c0_367] : memref<9x128x128xbf16, #tpu.memory_space<vmem>>, vector<1x128x128xbf16>
    %382 = vector.shape_cast %381 : vector<1x128x128xbf16> to vector<128x128xbf16>
    %cst_368 = arith.constant dense<0.000000e+00> : vector<128x128xf32>
    %383 = tpu.matmul %380, %382, %cst_368 {dimension_numbers = #tpu.dot_dimension_numbers<[1], [0], [0], [1], [0, 0, 1, 1], [], []>} : vector<128x128xbf16>, vector<128x128xbf16>, vector<128x128xf32> -> vector<128x128xf32>
    %384 = arith.addf %379, %383 : vector<128x128xf32>
    %c17_369 = arith.constant 17 : index
    %c0_370 = arith.constant 0 : index
    %385 = vector.load %arg18[%c17_369, %c0_370] : memref<160x128xbf16, #tpu.memory_space<vmem>>, vector<128x128xbf16>
    %c5_371 = arith.constant 5 : index
    %c0_372 = arith.constant 0 : index
    %c0_373 = arith.constant 0 : index
    %386 = vector.load %arg7[%c5_371, %c0_372, %c0_373] : memref<9x128x128xbf16, #tpu.memory_space<vmem>>, vector<1x128x128xbf16>
    %387 = vector.shape_cast %386 : vector<1x128x128xbf16> to vector<128x128xbf16>
    %cst_374 = arith.constant dense<0.000000e+00> : vector<128x128xf32>
    %388 = tpu.matmul %385, %387, %cst_374 {dimension_numbers = #tpu.dot_dimension_numbers<[1], [0], [0], [1], [0, 0, 1, 1], [], []>} : vector<128x128xbf16>, vector<128x128xbf16>, vector<128x128xf32> -> vector<128x128xf32>
    %389 = arith.addf %384, %388 : vector<128x128xf32>
    %c23_375 = arith.constant 23 : index
    %c0_376 = arith.constant 0 : index
    %390 = vector.load %arg18[%c23_375, %c0_376] : memref<160x128xbf16, #tpu.memory_space<vmem>>, vector<128x128xbf16>
    %c6_377 = arith.constant 6 : index
    %c0_378 = arith.constant 0 : index
    %c0_379 = arith.constant 0 : index
    %391 = vector.load %arg7[%c6_377, %c0_378, %c0_379] : memref<9x128x128xbf16, #tpu.memory_space<vmem>>, vector<1x128x128xbf16>
    %392 = vector.shape_cast %391 : vector<1x128x128xbf16> to vector<128x128xbf16>
    %cst_380 = arith.constant dense<0.000000e+00> : vector<128x128xf32>
    %393 = tpu.matmul %390, %392, %cst_380 {dimension_numbers = #tpu.dot_dimension_numbers<[1], [0], [0], [1], [0, 0, 1, 1], [], []>} : vector<128x128xbf16>, vector<128x128xbf16>, vector<128x128xf32> -> vector<128x128xf32>
    %394 = arith.addf %389, %393 : vector<128x128xf32>
    %c24_381 = arith.constant 24 : index
    %c0_382 = arith.constant 0 : index
    %395 = vector.load %arg18[%c24_381, %c0_382] : memref<160x128xbf16, #tpu.memory_space<vmem>>, vector<128x128xbf16>
    %c7_383 = arith.constant 7 : index
    %c0_384 = arith.constant 0 : index
    %c0_385 = arith.constant 0 : index
    %396 = vector.load %arg7[%c7_383, %c0_384, %c0_385] : memref<9x128x128xbf16, #tpu.memory_space<vmem>>, vector<1x128x128xbf16>
    %397 = vector.shape_cast %396 : vector<1x128x128xbf16> to vector<128x128xbf16>
    %cst_386 = arith.constant dense<0.000000e+00> : vector<128x128xf32>
    %398 = tpu.matmul %395, %397, %cst_386 {dimension_numbers = #tpu.dot_dimension_numbers<[1], [0], [0], [1], [0, 0, 1, 1], [], []>} : vector<128x128xbf16>, vector<128x128xbf16>, vector<128x128xf32> -> vector<128x128xf32>
    %399 = arith.addf %394, %398 : vector<128x128xf32>
    %c25_387 = arith.constant 25 : index
    %c0_388 = arith.constant 0 : index
    %400 = vector.load %arg18[%c25_387, %c0_388] : memref<160x128xbf16, #tpu.memory_space<vmem>>, vector<128x128xbf16>
    %c8_389 = arith.constant 8 : index
    %c0_390 = arith.constant 0 : index
    %c0_391 = arith.constant 0 : index
    %401 = vector.load %arg7[%c8_389, %c0_390, %c0_391] : memref<9x128x128xbf16, #tpu.memory_space<vmem>>, vector<1x128x128xbf16>
    %402 = vector.shape_cast %401 : vector<1x128x128xbf16> to vector<128x128xbf16>
    %cst_392 = arith.constant dense<0.000000e+00> : vector<128x128xf32>
    %403 = tpu.matmul %400, %402, %cst_392 {dimension_numbers = #tpu.dot_dimension_numbers<[1], [0], [0], [1], [0, 0, 1, 1], [], []>} : vector<128x128xbf16>, vector<128x128xbf16>, vector<128x128xf32> -> vector<128x128xf32>
    %404 = arith.addf %399, %403 : vector<128x128xf32>
    %405 = vector.broadcast %360 : vector<1x128xf32> to vector<128x128xf32>
    %406 = arith.addf %404, %405 : vector<128x128xf32>
    %cst_393 = arith.constant 0.000000e+00 : f32
    %407 = vector.broadcast %cst_393 : f32 to vector<128x128xf32>
    %408 = arith.maximumf %406, %407 : vector<128x128xf32>
    %c0_394 = arith.constant 0 : index
    %c0_395 = arith.constant 0 : index
    %409 = vector.load %arg14[%c0_394, %c0_395] : memref<528x128xf32, #tpu.memory_space<vmem>>, vector<128x128xf32>
    tpu.vector_store %arg14[%c0_394, %c0_395], %408 {strides = array<i32>} : memref<528x128xf32, #tpu.memory_space<vmem>>, vector<128x128xf32>,
    %c0_396 = arith.constant 0 : index
    %c0_397 = arith.constant 0 : index
    %410 = vector.load %arg14[%c0_396, %c0_397] : memref<528x128xf32, #tpu.memory_space<vmem>>, vector<128x128xf32>
    %c8_398 = arith.constant 8 : index
    %c0_399 = arith.constant 0 : index
    %411 = vector.load %arg14[%c8_398, %c0_399] : memref<528x128xf32, #tpu.memory_space<vmem>>, vector<128x128xf32>
    %412 = arith.maximumf %410, %411 : vector<128x128xf32>
    %c0_400 = arith.constant 0 : index
    %c0_401 = arith.constant 0 : index
    %413 = vector.load %arg15[%c0_400, %c0_401] : memref<512x128xf32, #tpu.memory_space<vmem>>, vector<128x128xf32>
    tpu.vector_store %arg15[%c0_400, %c0_401], %412 {strides = array<i32>} : memref<512x128xf32, #tpu.memory_space<vmem>>, vector<128x128xf32>,
    %c9_402 = arith.constant 9 : index
    %c0_403 = arith.constant 0 : index
    %414 = vector.load %arg15[%c9_402, %c0_403] : memref<512x128xf32, #tpu.memory_space<vmem>>, vector<1x128xf32>
    %c10_404 = arith.constant 10 : index
    %c0_405 = arith.constant 0 : index
    %415 = vector.load %arg15[%c10_404, %c0_405] : memref<512x128xf32, #tpu.memory_space<vmem>>, vector<1x128xf32>
    %416 = arith.maximumf %414, %415 : vector<1x128xf32>
    %417 = arith.truncf %416 : vector<1x128xf32> to vector<1x128xbf16>
    %c0_406 = arith.constant 0 : index
    %c0_407 = arith.constant 0 : index
    %418 = vector.load %arg19[%c0_406, %c0_407] : memref<8x128xbf16, #tpu.memory_space<vmem>>, vector<1x128xbf16>
    tpu.vector_store %arg19[%c0_406, %c0_407], %417 {strides = array<i32>} : memref<8x128xbf16, #tpu.memory_space<vmem>>, vector<1x128xbf16>,
    %c73_408 = arith.constant 73 : index
    %c0_409 = arith.constant 0 : index
    %419 = vector.load %arg15[%c73_408, %c0_409] : memref<512x128xf32, #tpu.memory_space<vmem>>, vector<1x128xf32>
    %c74_410 = arith.constant 74 : index
    %c0_411 = arith.constant 0 : index
    %420 = vector.load %arg15[%c74_410, %c0_411] : memref<512x128xf32, #tpu.memory_space<vmem>>, vector<1x128xf32>
    %421 = arith.maximumf %419, %420 : vector<1x128xf32>
    %422 = arith.truncf %421 : vector<1x128xf32> to vector<1x128xbf16>
    %c1_412 = arith.constant 1 : index
    %c0_413 = arith.constant 0 : index
    %423 = vector.load %arg19[%c1_412, %c0_413] : memref<8x128xbf16, #tpu.memory_space<vmem>>, vector<1x128xbf16>
    tpu.vector_store %arg19[%c1_412, %c0_413], %422 {strides = array<i32>} : memref<8x128xbf16, #tpu.memory_space<vmem>>, vector<1x128xbf16>,
    %c0_414 = arith.constant 0 : index
    %c0_415 = arith.constant 0 : index
    %424 = vector.load %arg19[%c0_414, %c0_415] : memref<8x128xbf16, #tpu.memory_space<vmem>>, vector<8x128xbf16>
    %c0_416 = arith.constant 0 : index
    %c0_417 = arith.constant 0 : index
    %425 = vector.load %arg9[%c0_416, %c0_417] : memref<128x512xbf16, #tpu.memory_space<vmem>>, vector<128x512xbf16>
    %cst_418 = arith.constant dense<0.000000e+00> : vector<8x512xf32>
    %426 = tpu.matmul %424, %425, %cst_418 {dimension_numbers = #tpu.dot_dimension_numbers<[1], [0], [0], [1], [0, 0, 1, 1], [], []>} : vector<8x128xbf16>, vector<128x512xbf16>, vector<8x512xf32> -> vector<8x512xf32>
    %c0_419 = arith.constant 0 : index
    %c0_420 = arith.constant 0 : index
    %427 = vector.load %arg10[%c0_419, %c0_420] : memref<1x512xf32, #tpu.memory_space<vmem>>, vector<1x512xf32>
    %428 = vector.broadcast %427 : vector<1x512xf32> to vector<8x512xf32>
    %429 = arith.addf %426, %428 : vector<8x512xf32>
    %cst_421 = arith.constant 0.000000e+00 : f32
    %430 = vector.broadcast %cst_421 : f32 to vector<8x512xf32>
    %431 = arith.maximumf %429, %430 : vector<8x512xf32>
    %432 = arith.truncf %431 : vector<8x512xf32> to vector<8x512xbf16>
    %c0_422 = arith.constant 0 : index
    %c0_423 = arith.constant 0 : index
    %433 = vector.load %arg11[%c0_422, %c0_423] : memref<512x128xbf16, #tpu.memory_space<vmem>>, vector<512x128xbf16>
    %cst_424 = arith.constant dense<0.000000e+00> : vector<8x128xf32>
    %434 = tpu.matmul %432, %433, %cst_424 {dimension_numbers = #tpu.dot_dimension_numbers<[1], [0], [0], [1], [0, 0, 1, 1], [], []>} : vector<8x512xbf16>, vector<512x128xbf16>, vector<8x128xf32> -> vector<8x128xf32>
    %c0_425 = arith.constant 0 : index
    %c0_426 = arith.constant 0 : index
    %435 = vector.load %arg12[%c0_425, %c0_426] : memref<1x128xf32, #tpu.memory_space<vmem>>, vector<1x128xf32>
    %436 = vector.broadcast %435 : vector<1x128xf32> to vector<8x128xf32>
    %437 = arith.addf %434, %436 : vector<8x128xf32>
    %c0_427 = arith.constant 0 : index
    %c0_428 = arith.constant 0 : index
    %438 = vector.load %arg13[%c0_427, %c0_428] : memref<8x128xf32, #tpu.memory_space<vmem>>, vector<8x128xf32>
    tpu.vector_store %arg13[%c0_427, %c0_428], %437 {strides = array<i32>} : memref<8x128xf32, #tpu.memory_space<vmem>>, vector<8x128xf32>,
    return
  }
}

</mosaic_0001>

<bundles_post_ra>
// kernel: vgg_forward.1
= control target key start
LH: loop header
LB: loop body
LE: loop exit
PB: predicated region body
PF: predicated region fallthrough
CT: control target
= control target key end

     0   :  { %18 = vsyncpa [#allocation9], 0  ;;  %s15213_s25 = smov [#allocation8]   ;;  %s18495_s0 = inlined_call_operand.vmem [shape: bf16[512,128], index: 0, kind: input, shape index: {}]   ;;  %s18496_s1 = inlined_call_operand.vmem [shape: bf16[128,128], index: 1, kind: input, shape index: {}]   ;;  %s18497_s2 = inlined_call_operand.vmem [shape: f32[1,128], index: 2, kind: input, shape index: {}]   ;;  %s18498_s3 = inlined_call_operand.vmem [shape: bf16[9,128,128], index: 3, kind: input, shape index: {}]   ;;  %s18499_s4 = inlined_call_operand.vmem [shape: f32[1,128], index: 4, kind: input, shape index: {}]   ;;  %s18500_s5 = inlined_call_operand.vmem [shape: bf16[9,128,128], index: 5, kind: input, shape index: {}]   ;;  %s18501_s6 = inlined_call_operand.vmem [shape: f32[1,128], index: 6, kind: input, shape index: {}]   ;;  %s18502_s7 = inlined_call_operand.vmem [shape: bf16[9,128,128], index: 7, kind: input, shape index: {}]   ;;  %s18503_s8 = inlined_call_operand.vmem [shape: f32[1,128], index: 8, kind: input, shape index: {}]   ;;  %s18504_s9 = inlined_call_operand.vmem [shape: bf16[128,512], index: 9, kind: input, shape index: {}]   ;;  %s18505_s10 = inlined_call_operand.vmem [shape: f32[1,512], index: 10, kind: input, shape index: {}]   ;;  %s18506_s11 = inlined_call_operand.hbm [shape: bf16[512,128], index: 11, kind: input, shape index: {}]   ;;  %s18507_s12 = inlined_call_operand.vmem [shape: f32[1,128], index: 12, kind: input, shape index: {}]   ;;  %s18508_s13 = inlined_call_operand.vmem [shape: f32[8,128], index: 13, kind: output, shape index: {}]  }
   0x1   :  { %s46_s26 = sshll.u32 %s15213_s25, 4  ;;  %s15189_s29 = scalar_lea.hbm %s18506_s11, 4096  ;;  %s47_s26 = int_to_ptr.vmem [resolvable:$true] %s46_s26 }
   0x2   :  { %p15190_p0 = scmp.ne.s32.totalorder %s18506_s11, %s15189_s29  ;;  %p15193_p1 = scmp.lt.u32.totalorder %s15189_s29, %s18506_s11 }
   0x4   :  { %p15195_p2 = pnand %p15193_p1, %p15190_p0 }
   0x6   :  { %15198 = shalt.err (!%p15195_p2)
}
   0x7   :  { %s15199_s17 = scalar_lea.vmem %s47_s26, 4096  ;;  %p15204_p4 = scmp.lt.s32.totalorder %s47_s26, %s47_s26 }
   0x8   :  { %p15200_p3 = scmp.ne.s32.totalorder %s47_s26, %s15199_s17  ;;  %p15205_p5 = scmp.lt.s32.totalorder %s15199_s17, %s15199_s17 }
   0xa   :  { %p15206_p6 = por %p15205_p5, %p15204_p4 }
   0xc   :  { %p15207_p7 = pnand %p15206_p6, %p15200_p3 }
   0xe   :  { %15210 = shalt.err (!%p15207_p7)
}
   0xf   :  { %s15214_s18 = smov 64   ;;  %s15215_s19 = smov 4  }
  0x10   :  { %52 = dma.hbm_to_vmem [thread:$0]  %s18506_s11, 4096, %s47_s26, [#allocation9], %s15214_s18, %s15214_s18, %s15215_s19  }
  0x11   :  { %15211 = dma.done.wait [#allocation9], 4096  }
  0x12   :  { %15212 = vsyncadd [#allocation9], 4294963200  ;;  %v15216_v0 = vmov 0   ;;  %v14752_v1 = vld [vmem:[%s18496_s1] sm:$0xff]   ;;  %v14754_v3 = vld [vmem:[%s18496_s1 + $0x8] sm:$0xff]   ;;  %vm1387_vm0 = vcmask 1040384  }
  0x13   :  { %59 = vst [vmem:[#allocation4] sm:$0xff] %v15216_v0  ;;  %60 = vst [vmem:[#allocation4 + $0x8] sm:$0xff] %v15216_v0  ;;  %v14753_v2 = vld [vmem:[%s18496_s1] sm:$0xff]   ;;  %12956 = vmatprep.subr.bf16.mxu0 %v14752_v1  ;;  %v14755_v4 = vld [vmem:[%s18496_s1 + $0x8] sm:$0xff]   ;;  %vm1388_vm1 = vsmask.f32 256 }
  0x14   :  { %61 = vst [vmem:[#allocation4 + $0x10] sm:$0xff] %v15216_v0  ;;  %62 = vst [vmem:[#allocation4 + $0x18] sm:$0xff] %v15216_v0  ;;  %12957 = vmatpush3.bf16.msra.mxu0 %v14752_v1  ;;  %12988 = vmatprep.subr.bf16.mxu1 %v14753_v2  ;;  %v14756_v5 = vld [vmem:[%s18496_s1 + $0x10] sm:$0xff]   ;;  %v14758_v7 = vld [vmem:[%s18496_s1 + $0x18] sm:$0xff]   ;;  %vm1382_vm3 = vsmask.f32 7954 }
  0x15   :  { %63 = vst [vmem:[#allocation4 + $0x20] sm:$0xff] %v15216_v0  ;;  %64 = vst [vmem:[#allocation4 + $0x28] sm:$0xff] %v15216_v0  ;;  %12958 = vmatprep.subr.bf16.mxu0 %v14754_v3  ;;  %12989 = vmatpush3.bf16.msra.mxu1 %v14753_v2  ;;  %v14757_v6 = vld [vmem:[%s18496_s1 + $0x10] sm:$0xff]   ;;  %v14759_v8 = vld [vmem:[%s18496_s1 + $0x18] sm:$0xff]   ;;  %vm1381_vm4 = vcmask 1047556   ;;  %vm1776_vm6 = vcmask 1043456  }
  0x16   :  { %65 = vst [vmem:[#allocation4 + $0x30] sm:$0xff] %v15216_v0  ;;  %66 = vst [vmem:[#allocation4 + $0x38] sm:$0xff] %v15216_v0  ;;  %12990 = vmatprep.subr.bf16.mxu1 %v14755_v4  ;;  %v14760_v9 = vld [vmem:[%s18496_s1 + $0x20] sm:$0xff]   ;;  %v14762_v12 = vld [vmem:[%s18496_s1 + $0x28] sm:$0xff]   ;;  %vm1947_vm7 = vsmask.f32 4352 }
  0x17   :  { %67 = vst [vmem:[#allocation4 + $0x40] sm:$0xff] %v15216_v0  ;;  %68 = vst [vmem:[#allocation4 + $0x48] sm:$0xff] %v15216_v0  ;;  %v14761_v10 = vld [vmem:[%s18496_s1 + $0x20] sm:$0xff]   ;;  %v14763_v13 = vld [vmem:[%s18496_s1 + $0x28] sm:$0xff]   ;;  %vm2199_vm8 = vsmask.f32 3328 }
  0x18   :  { %69 = vst [vmem:[#allocation4 + $0x50] sm:$0xff] %v15216_v0  ;;  %70 = vst [vmem:[#allocation4 + $0x58] sm:$0xff] %v15216_v0  ;;  %12959 = vmatpush3.bf16.msra.mxu0 %v14754_v3  ;;  %v14767_v11 = vld [vmem:[%s18495_s0] sm:$0xff]   ;;  %v14764_v15 = vld [vmem:[%s18496_s1 + $0x30] sm:$0xff]   ;;  %vm6190_vm9 = vcmask 1046532   ;;  %vm6210_vm13 = vcmask 1042432  }
  0x19   :  { %76 = vst [vmem:[#allocation4 + $0x88] sm:$0xff] %v15216_v0  ;;  %77 = vst [vmem:[#allocation4 + $0x90] sm:$0xff] %v15216_v0  ;;  %12960 = vmatprep.subr.bf16.mxu0 %v14756_v5  ;;  %12991 = vmatpush3.bf16.msra.mxu1 %v14755_v4  ;;  %v14771_v14 = vld [vmem:[%s18495_s0 + $0x40] sm:$0xff]   ;;  %v14765_v16 = vld [vmem:[%s18496_s1 + $0x30] sm:$0xff]   ;;  %vm6191_vm10 = vsmask.f32 6418 }
  0x1a   :  { %78 = vst [vmem:[#allocation4 + $0x98] sm:$0xff] %v15216_v0  ;;  %79 = vst [vmem:[#allocation4 + $0xa0] sm:$0xff] %v15216_v0  ;;  %12992 = vmatprep.subr.bf16.mxu1 %v14757_v6  ;;  %12972 = vmatprep.mubr.bf16.mxu0 %v14767_v11  ;;  %v14766_v17 = vld [vmem:[%s18496_s1 + $0x38] sm:$0xff]   ;;  %v14769_v19 = vld [vmem:[%s18495_s0 + $0x8] sm:$0xff]   ;;  %vm6211_vm11 = vsmask.f32 2306 }
  0x1b   :  { %80 = vst [vmem:[#allocation4 + $0xa8] sm:$0xff] %v15216_v0  ;;  %81 = vst [vmem:[#allocation4 + $0xb0] sm:$0xff] %v15216_v0  ;;  %13004 = vmatprep.mubr.bf16.mxu1 %v14771_v14  ;;  %v14768_v18 = vld [vmem:[%s18496_s1 + $0x38] sm:$0xff]   ;;  %v14770_v20 = vld [vmem:[%s18496_s1] sm:$0xff]   ;;  %vm7434_vm15 = vsmask.f32 7424 }
  0x1c   :  { %82 = vst [vmem:[#allocation4 + $0xb8] sm:$0xff] %v15216_v0  ;;  %83 = vst [vmem:[#allocation4 + $0xc0] sm:$0xff] %v15216_v0  ;;  %12961 = vmatpush3.bf16.msra.mxu0 %v14756_v5  ;;  %v14773_v21 = vld [vmem:[%s18496_s1] sm:$0xff]   ;;  %v14772_v22 = vld [vmem:[%s18495_s0 + $0x48] sm:$0xff]  }
  0x1d   :  { %84 = vst [vmem:[#allocation4 + $0xc8] sm:$0xff] %v15216_v0  ;;  %85 = vst [vmem:[#allocation4 + $0xd0] sm:$0xff] %v15216_v0  ;;  %12962 = vmatprep.subr.bf16.mxu0 %v14758_v7  ;;  %12993 = vmatpush3.bf16.msra.mxu1 %v14757_v6  ;;  %v14774_v23 = vld [vmem:[%s18496_s1 + $0x8] sm:$0xff]   ;;  %v14775_v24 = vld [vmem:[%s18495_s0 + $0x10] sm:$0xff]  }
  0x1e   :  { %86 = vst [vmem:[#allocation4 + $0xd8] sm:$0xff] %v15216_v0  ;;  %94 = vst [vmem:[#allocation5] sm:$0xff] %v15216_v0  ;;  %12994 = vmatprep.subr.bf16.mxu1 %v14759_v8  ;;  %v14776_v25 = vld [vmem:[%s18496_s1 + $0x8] sm:$0xff]   ;;  %v14779_v26 = vld [vmem:[%s18495_s0 + $0x50] sm:$0xff]  }
  0x1f   :  { %95 = vst [vmem:[#allocation5 + $0x8] sm:$0xff] %v15216_v0  ;;  %96 = vst [vmem:[#allocation5 + $0x10] sm:$0xff] %v15216_v0  ;;  %v14777_v27 = vld [vmem:[%s18495_s0 + $0x18] sm:$0xff]   ;;  %v14778_v28 = vld [vmem:[%s18496_s1 + $0x10] sm:$0xff]  }
  0x20   :  { %97 = vst [vmem:[#allocation5 + $0x18] sm:$0xff] %v15216_v0  ;;  %99 = vst [vmem:[#allocation5 + $0x28] sm:$0xff] %v15216_v0  ;;  %12963 = vmatpush3.bf16.msra.mxu0 %v14758_v7  ;;  %v14781_v29 = vld [vmem:[%s18496_s1 + $0x10] sm:$0xff]   ;;  %v14780_v30 = vld [vmem:[%s18495_s0 + $0x58] sm:$0xff]  }
  0x21   :  { %100 = vst [vmem:[#allocation5 + $0x30] sm:$0xff] %v15216_v0  ;;  %101 = vst [vmem:[#allocation5 + $0x38] sm:$0xff] %v15216_v0  ;;  %12964 = vmatprep.subr.bf16.mxu0 %v14760_v9  ;;  %12995 = vmatpush3.bf16.msra.mxu1 %v14759_v8  ;;  %v14782_v31 = vld [vmem:[%s18496_s1 + $0x18] sm:$0xff]   ;;  %v14783_v32 = vld [vmem:[%s18495_s0 + $0x20] sm:$0xff]  }
  0x22   :  { %102 = vst [vmem:[#allocation5 + $0x40] sm:$0xff] %v15216_v0  ;;  %103 = vst [vmem:[#allocation5 + $0x48] sm:$0xff] %v15216_v0  ;;  %12996 = vmatprep.subr.bf16.mxu1 %v14761_v10  ;;  %v14784_v33 = vld [vmem:[%s18496_s1 + $0x18] sm:$0xff]   ;;  %v14787_v34 = vld [vmem:[%s18495_s0 + $0x60] sm:$0xff]  }
  0x23   :  { %104 = vst [vmem:[#allocation6] sm:$0xff] %v15216_v0  ;;  %105 = vst [vmem:[#allocation6 + $0x8] sm:$0xff] %v15216_v0  ;;  %v14785_v35 = vld [vmem:[%s18495_s0 + $0x28] sm:$0xff]   ;;  %v14786_v36 = vld [vmem:[%s18496_s1 + $0x20] sm:$0xff]  }
  0x24   :  { %106 = vst [vmem:[#allocation6 + $0x10] sm:$0xff] %v15216_v0  ;;  %109 = vst [vmem:[#allocation6 + $0x28] sm:$0xff] %v15216_v0  ;;  %12965 = vmatpush3.bf16.msra.mxu0 %v14760_v9  ;;  %v14789_v37 = vld [vmem:[%s18496_s1 + $0x20] sm:$0xff]   ;;  %v14788_v38 = vld [vmem:[%s18495_s0 + $0x68] sm:$0xff]  }
  0x25   :  { %110 = vst [vmem:[#allocation6 + $0x30] sm:$0xff] %v15216_v0  ;;  %112 = vst [vmem:[#allocation6 + $0x40] sm:$0xff] %v15216_v0  ;;  %12966 = vmatprep.subr.bf16.mxu0 %v14762_v12  ;;  %12997 = vmatpush3.bf16.msra.mxu1 %v14761_v10  ;;  %v14790_v39 = vld [vmem:[%s18496_s1 + $0x28] sm:$0xff]   ;;  %v14791_v40 = vld [vmem:[%s18495_s0 + $0x30] sm:$0xff]  }
  0x26   :  { %113 = vst [vmem:[#allocation6 + $0x48] sm:$0xff] %v15216_v0  ;;  %114 = vst [vmem:[#allocation7] sm:$0xf] %v15216_v0  ;;  %12998 = vmatprep.subr.bf16.mxu1 %v14763_v13  ;;  %v14792_v41 = vld [vmem:[%s18496_s1 + $0x28] sm:$0xff]   ;;  %v14795_v42 = vld [vmem:[%s18495_s0 + $0x70] sm:$0xff]  }
  0x27   :  { %v14793_v43 = vld [vmem:[%s18495_s0 + $0x38] sm:$0xff]   ;;  %v14794_v44 = vld [vmem:[%s18496_s1 + $0x30] sm:$0xff]   ;;  %v14799_v48 = vld [vmem:[%s18495_s0 + $0x80] sm:$0xff]  }
  0x28   :  { %12967 = vmatpush3.bf16.msra.mxu0 %v14762_v12  ;;  %v14797_v45 = vld [vmem:[%s18496_s1 + $0x30] sm:$0xff]   ;;  %v14796_v46 = vld [vmem:[%s18495_s0 + $0x78] sm:$0xff]   ;;  %v14802_v50 = vld [vmem:[%s18495_s0 + $0xc0] sm:$0xff]  }
  0x29   :  { %12968 = vmatprep.subr.bf16.mxu0 %v14764_v15  ;;  %12999 = vmatpush3.bf16.msra.mxu1 %v14763_v13  ;;  %v14798_v47 = vld [vmem:[%s18496_s1 + $0x38] sm:$0xff]   ;;  %v14801_v51 = vld [vmem:[%s18495_s0 + $0x88] sm:$0xff]   ;;  %v14804_v53 = vld [vmem:[%s18495_s0 + $0x90] sm:$0xff]  }
  0x2a   :  { %13000 = vmatprep.subr.bf16.mxu1 %v14765_v16  ;;  %v14800_v49 = vld [vmem:[%s18496_s1 + $0x38] sm:$0xff]   ;;  %v14803_v52 = vld [vmem:[%s18495_s0 + $0xc8] sm:$0xff]   ;;  %v14806_v54 = vld [vmem:[%s18495_s0 + $0xd0] sm:$0xff]  }
  0x2b   :  { %v14805_v55 = vld [vmem:[%s18495_s0 + $0x98] sm:$0xff]   ;;  %v14808_v57 = vld [vmem:[%s18495_s0 + $0xa0] sm:$0xff]   ;;  %v14809_v59 = vld [vmem:[%s18495_s0 + $0xa8] sm:$0xff]  }
  0x2c   :  { %12969 = vmatpush3.bf16.msra.mxu0 %v14764_v15  ;;  %v14807_v56 = vld [vmem:[%s18495_s0 + $0xd8] sm:$0xff]   ;;  %v14810_v58 = vld [vmem:[%s18495_s0 + $0xe0] sm:$0xff]   ;;  %v14811_v60 = vld [vmem:[%s18495_s0 + $0xe8] sm:$0xff]  }
  0x2d   :  { %12970 = vmatprep.subr.bf16.mxu0 %v14766_v17  ;;  %13001 = vmatpush3.bf16.msra.mxu1 %v14765_v16  ;;  %v14812_v61 = vld [vmem:[%s18495_s0 + $0xb0] sm:$0xff]   ;;  %v14813_v63 = vld [vmem:[%s18495_s0 + $0xb8] sm:$0xff]   ;;  %v14816_v1 = vld [vmem:[%s18498_s3 + $0x40] sm:$0xff]  }
  0x2e   :  { %13002 = vmatprep.subr.bf16.mxu1 %v14768_v18  ;;  %v14814_v62 = vld [vmem:[%s18495_s0 + $0xf0] sm:$0xff]   ;;  %v14815_v0 = vld [vmem:[%s18495_s0 + $0xf8] sm:$0xff]   ;;  %v14817_v2 = vld [vmem:[%s18498_s3 + $0x48] sm:$0xff]  }
  0x2f   :  { %v14818_v3 = vld [vmem:[%s18498_s3 + $0x50] sm:$0xff]   ;;  %v14819_v4 = vld [vmem:[%s18498_s3 + $0x58] sm:$0xff]   ;;  %v14820_v5 = vld [vmem:[%s18498_s3 + $0x60] sm:$0xff]  }
  0x30   :  { %12971 = vmatpush3.bf16.msra.mxu0 %v14766_v17  ;;  %v14821_v6 = vld [vmem:[%s18498_s3 + $0x68] sm:$0xff]   ;;  %v14822_v7 = vld [vmem:[%s18498_s3 + $0x70] sm:$0xff]   ;;  %v14823_v8 = vld [vmem:[%s18498_s3 + $0x78] sm:$0xff]  }
  0x31   :  { %13003 = vmatpush3.bf16.msra.mxu1 %v14768_v18  ;;  %13020 = vmatprep.subr.bf16.mxu0 %v14770_v20  ;;  %v14824_v9 = vld [vmem:[%s18498_s3 + $0x40] sm:$0xff]   ;;  %v14825_v10 = vld [vmem:[%s18498_s3 + $0x48] sm:$0xff]   ;;  %v14827_v12 = vld [vmem:[%s18498_s3 + $0x50] sm:$0xff]  }
  0x32   :  { %13052 = vmatprep.subr.bf16.mxu1 %v14773_v21  ;;  %v14826_v11 = vld [vmem:[%s18498_s3] sm:$0xff]   ;;  %v14829_v13 = vld [vmem:[%s18498_s3 + $0x58] sm:$0xff]   ;;  %v14833_v15 = vld [vmem:[%s18498_s3 + $0x68] sm:$0xff]  }
  0x33   :  { %12973 = vmatmul.mubr.bf16.vlgmr.msra.gmra.mrb[0].mxu0 %v14769_v19  ;;  %v14831_v14 = vld [vmem:[%s18498_s3 + $0x60] sm:$0xff]   ;;  %v14835_v16 = vld [vmem:[%s18498_s3 + $0x70] sm:$0xff]   ;;  %v14837_v17 = vld [vmem:[%s18498_s3 + $0x78] sm:$0xff]  }
  0x34   :  { %13021 = vmatpush3.bf16.msra.mxu0 %v14770_v20  ;;  %13005 = vmatmul.mubr.bf16.vlgmr.msra.gmra.mrb[0].mxu1 %v14772_v22  ;;  %v14841_v18 = vld [vmem:[%s18498_s3] sm:$0xff]   ;;  %vm15585_vm2 = vmand %vm1387_vm0, %vm1388_vm1 }
  0x35   :  { %13022 = vmatprep.subr.bf16.mxu0 %v14774_v23  ;;  %13053 = vmatpush3.bf16.msra.mxu1 %v14773_v21  ;;  %v15548_v19 = vld [vmem:[%s18497_s2] ss:$0 sm:$0xff]  ;;  %vm15610_vm5 = vmand %vm1381_vm4, %vm1382_vm3  ;;  %vm8468_vm3 = vcmask 1045508   ;;  %vm8469_vm4 = vsmask.f32 5394 }
  0x36   :  { %12976 = vmatprep.mubr.bf16.mxu0 %v14775_v24  ;;  %13054 = vmatprep.subr.bf16.mxu1 %v14776_v25  ;;  %vm17228_vm12 = vmand %vm6190_vm9, %vm6191_vm10  ;;  %vm8488_vm9 = vcmask 1041408   ;;  %vm8489_vm10 = vsmask.f32 1282 }
  0x37   :  { %13008 = vmatprep.mubr.bf16.mxu1 %v14779_v26  ;;  %vm17272_vm14 = vmand %vm6210_vm13, %vm6211_vm11 }
  0x38   :  { %13023 = vmatpush3.bf16.msra.mxu0 %v14774_v23  ;;  %vm17891_vm11 = vmand %vm8488_vm9, %vm8489_vm10 }
  0x39   :  { %13024 = vmatprep.subr.bf16.mxu0 %v14778_v28  ;;  %13055 = vmatpush3.bf16.msra.mxu1 %v14776_v25 }
  0x3a   :  { %13056 = vmatprep.subr.bf16.mxu1 %v14781_v29 }
  0x3b   :  { %12977 = vmatmul.mubr.bf16.gmra.mrb[4].mxu0 %v14777_v27 }
  0x3c   :  { %13025 = vmatpush3.bf16.msra.mxu0 %v14778_v28  ;;  %13009 = vmatmul.mubr.bf16.gmra.mrb[4].mxu1 %v14780_v30 }
  0x3d   :  { %13026 = vmatprep.subr.bf16.mxu0 %v14782_v31  ;;  %13057 = vmatpush3.bf16.msra.mxu1 %v14781_v29 }
  0x3e   :  { %12980 = vmatprep.mubr.bf16.mxu0 %v14783_v32  ;;  %13058 = vmatprep.subr.bf16.mxu1 %v14784_v33 }
  0x3f   :  { %13012 = vmatprep.mubr.bf16.mxu1 %v14787_v34 }
  0x40   :  { %13027 = vmatpush3.bf16.msra.mxu0 %v14782_v31 }
  0x41   :  { %13028 = vmatprep.subr.bf16.mxu0 %v14786_v36  ;;  %13059 = vmatpush3.bf16.msra.mxu1 %v14784_v33 }
  0x42   :  { %13060 = vmatprep.subr.bf16.mxu1 %v14789_v37 }
  0x43   :  { %12981 = vmatmul.mubr.bf16.gmra.mrb[8].mxu0 %v14785_v35 }
  0x44   :  { %13029 = vmatpush3.bf16.msra.mxu0 %v14786_v36  ;;  %13013 = vmatmul.mubr.bf16.gmra.mrb[8].mxu1 %v14788_v38 }
  0x45   :  { %13030 = vmatprep.subr.bf16.mxu0 %v14790_v39  ;;  %13061 = vmatpush3.bf16.msra.mxu1 %v14789_v37 }
  0x46   :  { %12984 = vmatprep.mubr.bf16.mxu0 %v14791_v40  ;;  %13062 = vmatprep.subr.bf16.mxu1 %v14792_v41 }
  0x47   :  { %13016 = vmatprep.mubr.bf16.mxu1 %v14795_v42 }
  0x48   :  { %13031 = vmatpush3.bf16.msra.mxu0 %v14790_v39 }
  0x49   :  { %13032 = vmatprep.subr.bf16.mxu0 %v14794_v44  ;;  %13063 = vmatpush3.bf16.msra.mxu1 %v14792_v41 }
  0x4a   :  { %13064 = vmatprep.subr.bf16.mxu1 %v14797_v45 }
  0x4b   :  { %12985 = vmatmul.mubr.bf16.gmra.mrb[12].mxu0 %v14793_v43 }
  0x4c   :  { %13033 = vmatpush3.bf16.msra.mxu0 %v14794_v44  ;;  %13017 = vmatmul.mubr.bf16.gmra.mrb[12].mxu1 %v14796_v46 }
  0x4d   :  { %13034 = vmatprep.subr.bf16.mxu0 %v14798_v47  ;;  %13065 = vmatpush3.bf16.msra.mxu1 %v14797_v45 }
  0x4e   :  { %13036 = vmatprep.mubr.bf16.mxu0 %v14799_v48  ;;  %13066 = vmatprep.subr.bf16.mxu1 %v14800_v49 }
  0x4f   :  { %13068 = vmatprep.mubr.bf16.mxu1 %v14802_v50 }
  0x50   :  { %13035 = vmatpush3.bf16.msra.mxu0 %v14798_v47 }
  0x51   :  { %13067 = vmatpush3.bf16.msra.mxu1 %v14800_v49  ;;  %13084 = vmatprep.subr.bf16.mxu0 %v14816_v1 }
  0x52   :  { %13372 = vmatprep.subr.bf16.mxu1 %v14824_v9 }
  0x53   :  { %13037 = vmatmul.mubr.bf16.vlgmr.msra.gmra.mrb[16].mxu0 %v14801_v51 }
  0x54   :  { %13069 = vmatmul.mubr.bf16.vlgmr.msra.gmra.mrb[16].mxu1 %v14803_v52  ;;  %13040 = vmatprep.mubr.bf16.mxu0 %v14804_v53 }
  0x55   :  { %13072 = vmatprep.mubr.bf16.mxu1 %v14806_v54  ;;  %13085 = vmatpush3.bf16.msra.mxu0 %v14816_v1 }
  0x56   :  { %13086 = vmatprep.subr.bf16.mxu0 %v14817_v2  ;;  %13373 = vmatpush3.bf16.msra.mxu1 %v14824_v9 }
  0x57   :  { %13374 = vmatprep.subr.bf16.mxu1 %v14825_v10 }
  0x59   :  { %13087 = vmatpush3.bf16.msra.mxu0 %v14817_v2 }
  0x5a   :  { %13088 = vmatprep.subr.bf16.mxu0 %v14818_v3  ;;  %13375 = vmatpush3.bf16.msra.mxu1 %v14825_v10 }
  0x5b   :  { %13041 = vmatmul.mubr.bf16.gmra.mrb[20].mxu0 %v14805_v55  ;;  %13376 = vmatprep.subr.bf16.mxu1 %v14827_v12 }
  0x5c   :  { %13073 = vmatmul.mubr.bf16.gmra.mrb[20].mxu1 %v14807_v56  ;;  %13044 = vmatprep.mubr.bf16.mxu0 %v14808_v57 }
  0x5d   :  { %13076 = vmatprep.mubr.bf16.mxu1 %v14810_v58  ;;  %13089 = vmatpush3.bf16.msra.mxu0 %v14818_v3 }
  0x5e   :  { %13090 = vmatprep.subr.bf16.mxu0 %v14819_v4  ;;  %13377 = vmatpush3.bf16.msra.mxu1 %v14827_v12 }
  0x5f   :  { %13378 = vmatprep.subr.bf16.mxu1 %v14829_v13 }
  0x61   :  { %13091 = vmatpush3.bf16.msra.mxu0 %v14819_v4 }
  0x62   :  { %13092 = vmatprep.subr.bf16.mxu0 %v14820_v5  ;;  %13379 = vmatpush3.bf16.msra.mxu1 %v14829_v13 }
  0x63   :  { %13045 = vmatmul.mubr.bf16.gmra.mrb[24].mxu0 %v14809_v59  ;;  %13380 = vmatprep.subr.bf16.mxu1 %v14831_v14 }
  0x64   :  { %13077 = vmatmul.mubr.bf16.gmra.mrb[24].mxu1 %v14811_v60  ;;  %13048 = vmatprep.mubr.bf16.mxu0 %v14812_v61 }
  0x65   :  { %13080 = vmatprep.mubr.bf16.mxu1 %v14814_v62  ;;  %13093 = vmatpush3.bf16.msra.mxu0 %v14820_v5 }
  0x66   :  { %13094 = vmatprep.subr.bf16.mxu0 %v14821_v6  ;;  %13381 = vmatpush3.bf16.msra.mxu1 %v14831_v14 }
  0x67   :  { %13382 = vmatprep.subr.bf16.mxu1 %v14833_v15 }
  0x69   :  { %13095 = vmatpush3.bf16.msra.mxu0 %v14821_v6 }
  0x6a   :  { %13096 = vmatprep.subr.bf16.mxu0 %v14822_v7  ;;  %13383 = vmatpush3.bf16.msra.mxu1 %v14833_v15 }
  0x6b   :  { %13049 = vmatmul.mubr.bf16.gmra.mrb[28].mxu0 %v14813_v63  ;;  %13384 = vmatprep.subr.bf16.mxu1 %v14835_v16 }
  0x6c   :  { %13081 = vmatmul.mubr.bf16.gmra.mrb[28].mxu1 %v14815_v0 }
  0x6d   :  { %13097 = vmatpush3.bf16.msra.mxu0 %v14822_v7 }
  0x6e   :  { %13098 = vmatprep.subr.bf16.mxu0 %v14823_v8  ;;  %13385 = vmatpush3.bf16.msra.mxu1 %v14835_v16 }
  0x6f   :  { %13386 = vmatprep.subr.bf16.mxu1 %v14837_v17 }
  0x71   :  { %13099 = vmatpush3.bf16.msra.mxu0 %v14823_v8 }
  0x72   :  { %13116 = vmatprep.subr.bf16.mxu0 %v14826_v11  ;;  %13387 = vmatpush3.bf16.msra.mxu1 %v14837_v17 }
  0x73   :  { %13404 = vmatprep.subr.bf16.mxu1 %v14841_v18 }
 0x106   :  { %v12974_v20 = vpop.f32.mrb[0].mxu0 }
 0x107   :  { %v295_v21 = vadd.f32 %v12974_v20, %v15548_v19  ;;  %v286_v22 = vpop.f32.mrb[1].mxu0  ;;  %v13006_v23 = vpop.f32.mrb[0].mxu1 }
 0x108   :  { %v287_v24 = vadd.f32 %v15548_v19, %v286_v22  ;;  %v12975_v25 = vpop.f32.mrb[2].mxu0  ;;  %v15553_v26 = vadd.f32 %v13006_v23, %v15548_v19  ;;  %v543_v27 = vpop.f32.mrb[1].mxu1 }
 0x109   :  { %v351_v28 = vmax.f32 %v295_v21, 0.0  ;;  %v298_v29 = vadd.f32 %v12975_v25, %v15548_v19  ;;  %v289_v30 = vpop.f32.mrb[3].mxu0  ;;  %v544_v31 = vadd.f32 %v15548_v19, %v543_v27  ;;  %v13007_v32 = vpop.f32.mrb[2].mxu1 }
 0x10a   :  { %18558 = vst [vmem:[#allocation11_spill] sm:$0xff] %v15553_v26  ;;  %v349_v33 = vmax.f32 %v287_v24, 0.0  ;;  %v290_v34 = vadd.f32 %v15548_v19, %v289_v30  ;;  %v18512_v35 = vmax.f32 %v15553_v26, 0.0  ;;  %v15560_v36 = vadd.f32 %v13007_v32, %v15548_v19  ;;  %v546_v37 = vpop.f32.mrb[3].mxu1 }
 0x10b   :  { %v352_v38 = vmax.f32 %v298_v29, 0.0  ;;  %v606_v39 = vmax.f32 %v544_v31, 0.0  ;;  %v547_v40 = vadd.f32 %v15548_v19, %v546_v37 }
 0x10c   :  { %18559 = vst [vmem:[#allocation12_spill] sm:$0xff] %v15560_v36  ;;  %v1170_v41 = vmax.f32 %v349_v33, %v351_v28  ;;  %v350_v42 = vmax.f32 %v290_v34, 0.0  ;;  %v18511_v43 = vmax.f32 %v15560_v36, 0.0 }
 0x10d   :  { %v1220_v44 = vmax.f32 %v606_v39, %v18512_v35  ;;  %v607_v45 = vmax.f32 %v547_v40, 0.0  ;;  %v14857_v35 = vld [vmem:[%s18498_s3 + $0x80] sm:$0xff]  }
 0x10e   :  { %1186 = vst [vmem:[#allocation3] sm:$0xff] %v1170_v41  ;;  %v1171_v46 = vmax.f32 %v350_v42, %v352_v38  ;;  %v12978_v47 = vpop.f32.mrb[4].mxu0 }
 0x10f   :  { %v311_v48 = vadd.f32 %v12978_v47, %v15548_v19  ;;  %v302_v49 = vpop.f32.mrb[5].mxu0  ;;  %1236 = vst [vmem:[#allocation3 + $0x80] sm:$0xff] %v1220_v44  ;;  %v1221_v50 = vmax.f32 %v607_v45, %v18511_v43  ;;  %v13010_v51 = vpop.f32.mrb[4].mxu1  ;;  %v18560_v47 = vmov 0 }
 0x110   :  { %1187 = vst [vmem:[#allocation3 + $0x8] sm:$0xff] %v1171_v46  ;;  %v303_v52 = vadd.f32 %v15548_v19, %v302_v49  ;;  %v12979_v53 = vpop.f32.mrb[6].mxu0  ;;  %v568_v54 = vadd.f32 %v13010_v51, %v15548_v19  ;;  %v559_v55 = vpop.f32.mrb[5].mxu1  ;;  %v18561_v47 = vsel %vm15585_vm2, 4294967295, %v18560_v47 }
 0x111   :  { %v355_v56 = vmax.f32 %v311_v48, 0.0  ;;  %v314_v57 = vadd.f32 %v12979_v53, %v15548_v19  ;;  %v305_v58 = vpop.f32.mrb[7].mxu0  ;;  %1237 = vst [vmem:[#allocation3 + $0x88] sm:$0xff] %v1221_v50  ;;  %v560_v59 = vadd.f32 %v15548_v19, %v559_v55  ;;  %v13011_v60 = vpop.f32.mrb[6].mxu1  ;;  %18562 = vst [vmem:[#allocation13_spill] sm:$0xff] %v18561_v47 }
 0x112   :  { %v353_v61 = vmax.f32 %v303_v52, 0.0  ;;  %v306_v62 = vadd.f32 %v15548_v19, %v305_v58  ;;  %v612_v63 = vmax.f32 %v568_v54, 0.0  ;;  %v571_v0 = vadd.f32 %v13011_v60, %v15548_v19  ;;  %v562_v1 = vpop.f32.mrb[7].mxu1  ;;  %v1390_v50 = vld [vmem:[#allocation4 + $0x18] sm:$0x1] }
 0x113   :  { %v356_v2 = vmax.f32 %v314_v57, 0.0  ;;  %v610_v3 = vmax.f32 %v560_v59, 0.0  ;;  %v563_v4 = vadd.f32 %v15548_v19, %v562_v1 }
 0x114   :  { %v1174_v5 = vmax.f32 %v353_v61, %v355_v56  ;;  %v354_v6 = vmax.f32 %v306_v62, 0.0  ;;  %v613_v7 = vmax.f32 %v571_v0, 0.0 }
 0x115   :  { %v1224_v8 = vmax.f32 %v610_v3, %v612_v63  ;;  %v611_v9 = vmax.f32 %v563_v4, 0.0  ;;  %v15593_v63 = vld [vmem:[#allocation4 + $0x8] sm:$0xf0] }
 0x116   :  { %1190 = vst [vmem:[#allocation3 + $0x20] sm:$0xff] %v1174_v5  ;;  %v1175_v10 = vmax.f32 %v354_v6, %v356_v2  ;;  %v12982_v11 = vpop.f32.mrb[8].mxu0 }
 0x117   :  { %v1366_v12 = vld [vmem:[#allocation3] ss:$2 sm:$0xff]  ;;  %v1368_v13 = vld [vmem:[#allocation3 + $0x1] ss:$2 sm:$0xff]  ;;  %v327_v14 = vadd.f32 %v12982_v11, %v15548_v19  ;;  %1240 = vst [vmem:[#allocation3 + $0xa0] sm:$0xff] %v1224_v8  ;;  %v318_v15 = vpop.f32.mrb[9].mxu0  ;;  %v1225_v16 = vmax.f32 %v611_v9, %v613_v7 }
 0x118   :  { %v13014_v17 = vpop.f32.mrb[8].mxu1  ;;  %v1369_v18 = vmax.f32 %v1366_v12, %v1368_v13  ;;  %1191 = vst [vmem:[#allocation3 + $0x28] sm:$0xff] %v1175_v10  ;;  %v1460_v20 = vld [vmem:[#allocation3 + $0x80] ss:$2 sm:$0xff]  ;;  %v319_v21 = vadd.f32 %v15548_v19, %v318_v15  ;;  %v12983_v22 = vpop.f32.mrb[10].mxu0 }
 0x119   :  { %v584_v23 = vadd.f32 %v13014_v17, %v15548_v19  ;;  %v575_v24 = vpop.f32.mrb[9].mxu1  ;;  %v359_v25 = vmax.f32 %v327_v14, 0.0  ;;  %v330_v27 = vadd.f32 %v12983_v22, %v15548_v19  ;;  %1241 = vst [vmem:[#allocation3 + $0xa8] sm:$0xff] %v1225_v16  ;;  %v321_v28 = vpop.f32.mrb[11].mxu0  ;;  %v1462_v32 = vld [vmem:[#allocation3 + $0x81] ss:$2 sm:$0xff] }
 0x11a   :  { %v576_v29 = vadd.f32 %v15548_v19, %v575_v24  ;;  %v13015_v30 = vpop.f32.mrb[10].mxu1  ;;  %v1370_v31 = vpack.c.bf16 %v1369_v18, %v1369_v18  ;;  %v357_v33 = vmax.f32 %v319_v21, 0.0  ;;  %v322_v34 = vadd.f32 %v15548_v19, %v321_v28  ;;  %v1384_v21 = vld [vmem:[#allocation4 + $0x10] sm:$0xf0] }
 0x11b   :  { %v616_v37 = vmax.f32 %v584_v23, 0.0  ;;  %v578_v38 = vpop.f32.mrb[11].mxu1  ;;  %v360_v39 = vmax.f32 %v330_v27, 0.0  ;;  %v587_v41 = vadd.f32 %v13015_v30, %v15548_v19  ;;  %v1463_v48 = vmax.f32 %v1460_v20, %v1462_v32 }
 0x11c   :  { %v614_v40 = vmax.f32 %v576_v29, 0.0  ;;  %v1372_v42 = vshrl.u32 %v1370_v31, 16  ;;  %v1375_v44 = vshll.u32 %v1370_v31, 16  ;;  %v1178_v45 = vmax.f32 %v357_v33, %v359_v25 }
 0x11d   :  { %v358_v46 = vmax.f32 %v322_v34, 0.0  ;;  %v617_v56 = vmax.f32 %v587_v41, 0.0  ;;  %v579_v57 = vadd.f32 %v15548_v19, %v578_v38  ;;  %v15598_v1 = vpack.c.bf16 %v1463_v48, %v1463_v48 }
 0x11e   :  { %v1228_v49 = vmax.f32 %v614_v40, %v616_v37  ;;  %v15589_v51 = vrot.slane %v1372_v42, 3  ;;  %1194 = vst [vmem:[#allocation3 + $0x40] sm:$0xff] %v1178_v45  ;;  %v12986_v53 = vpop.f32.mrb[12].mxu0  ;;  %v1377_v59 = vrot.slane %v1375_v44, 4  ;;  %v1777_v22 = vrot.slane %v15593_v63, 4 }
 0x11f   :  { %v1179_v52 = vmax.f32 %v358_v46, %v360_v39  ;;  %v1394_v54 = vld [vmem:[#allocation3 + $0x20] ss:$2 sm:$0xff]  ;;  %v1396_v55 = vld [vmem:[#allocation3 + $0x21] ss:$2 sm:$0xff]  ;;  %v343_v58 = vadd.f32 %v12986_v53, %v15548_v19  ;;  %v334_v61 = vpop.f32.mrb[13].mxu0  ;;  %v13018_v62 = vpop.f32.mrb[12].mxu1 }
 0x120   :  { %1244 = vst [vmem:[#allocation3 + $0xc0] sm:$0xff] %v1228_v49  ;;  %v1397_v60 = vmax.f32 %v1394_v54, %v1396_v55  ;;  %v1391_v0 = vsel %vm15585_vm2, %v15589_v51, %v1390_v50  ;;  %v615_v2 = vmax.f32 %v579_v57, 0.0  ;;  %v12987_v4 = vpop.f32.mrb[14].mxu0  ;;  %v591_v5 = vpop.f32.mrb[13].mxu1  ;;  %v335_v7 = vadd.f32 %v15548_v19, %v334_v61  ;;  %v1482_v57 = vld [vmem:[#allocation3 + $0xa0] ss:$2 sm:$0xff] }
 0x121   :  { %1195 = vst [vmem:[#allocation3 + $0x48] sm:$0xff] %v1179_v52  ;;  %v363_v3 = vmax.f32 %v343_v58, 0.0  ;;  %1392 = vst [vmem:[#allocation4 + $0x18] sm:$0x1] %v1391_v0  ;;  %v346_v8 = vadd.f32 %v12987_v4, %v15548_v19  ;;  %v337_v9 = vpop.f32.mrb[15].mxu0  ;;  %v600_v10 = vadd.f32 %v13018_v62, %v15548_v19  ;;  %v13019_v11 = vpop.f32.mrb[14].mxu1  ;;  %v1378_v18 = vor.u32 %v1377_v59, %v15589_v51 }
 0x122   :  { %v1398_v6 = vpack.c.bf16 %v1397_v60, %v1397_v60  ;;  %v1229_v12 = vmax.f32 %v615_v2, %v617_v56  ;;  %v338_v13 = vadd.f32 %v15548_v19, %v337_v9  ;;  %v594_v14 = vpop.f32.mrb[15].mxu1  ;;  %v361_v16 = vmax.f32 %v335_v7, 0.0  ;;  %v1484_v62 = vld [vmem:[#allocation3 + $0xa1] ss:$2 sm:$0xff] }
 0x123   :  { %v364_v17 = vmax.f32 %v346_v8, 0.0  ;;  %v1466_v23 = vshrl.u32 %v15598_v1, 16  ;;  %v620_v25 = vmax.f32 %v600_v10, 0.0  ;;  %v592_v27 = vadd.f32 %v15548_v19, %v591_v5 }
 0x124   :  { %v1400_v15 = vshrl.u32 %v1398_v6, 16  ;;  %1245 = vst [vmem:[#allocation3 + $0xc8] sm:$0xff] %v1229_v12  ;;  %v362_v20 = vmax.f32 %v338_v13, 0.0  ;;  %v1182_v24 = vmax.f32 %v361_v16, %v363_v3  ;;  %v1403_v31 = vshll.u32 %v1398_v6, 16 }
 0x125   :  { %v603_v33 = vadd.f32 %v13019_v11, %v15548_v19  ;;  %v618_v34 = vmax.f32 %v592_v27, 0.0  ;;  %v595_v37 = vadd.f32 %v15548_v19, %v594_v14  ;;  %v1385_v45 = vsel %vm15610_vm5, %v1378_v18, %v1384_v21 }
 0x126   :  { %v13038_v28 = vpop.f32.mrb[16].mxu0  ;;  %v15614_v30 = vrot.slane %v1400_v15, 3  ;;  %v1183_v32 = vmax.f32 %v362_v20, %v364_v17  ;;  %1198 = vst [vmem:[#allocation3 + $0x60] sm:$0xff] %v1182_v24  ;;  %1386 = vst [vmem:[#allocation4 + $0x10] sm:$0xf0] %v1385_v45  ;;  %v1405_v61 = vrot.slane %v1403_v31, 4  ;;  %v1485_v17 = vmax.f32 %v1482_v57, %v1484_v62 }
 0x127   :  { %v809_v38 = vadd.f32 %v13038_v28, %v15548_v19  ;;  %v800_v39 = vpop.f32.mrb[17].mxu0  ;;  %v13070_v40 = vpop.f32.mrb[16].mxu1  ;;  %v621_v41 = vmax.f32 %v603_v33, 0.0  ;;  %v1232_v48 = vmax.f32 %v618_v34, %v620_v25  ;;  %v619_v49 = vmax.f32 %v595_v37, 0.0 }
 0x128   :  { %1199 = vst [vmem:[#allocation3 + $0x68] sm:$0xff] %v1183_v32  ;;  %v801_v42 = vadd.f32 %v15548_v19, %v800_v39  ;;  %v13039_v44 = vpop.f32.mrb[18].mxu0  ;;  %v1057_v46 = vpop.f32.mrb[17].mxu1  ;;  %v15625_v59 = vadd.f32 %v13070_v40, %v15548_v19  ;;  %v1469_v3 = vshll.u32 %v15598_v1, 16  ;;  %v1406_v25 = vor.u32 %v1405_v61, %v15614_v30  ;;  %v1409_v39 = vld [vmem:[#allocation4 + $0x18] sm:$0xf0] }
 0x129   :  { %v803_v50 = vpop.f32.mrb[19].mxu0  ;;  %v13071_v51 = vpop.f32.mrb[18].mxu1  ;;  %v865_v52 = vmax.f32 %v809_v38, 0.0  ;;  %v812_v54 = vadd.f32 %v13039_v44, %v15548_v19  ;;  %1248 = vst [vmem:[#allocation3 + $0xe0] sm:$0xff] %v1232_v48  ;;  %v1233_v58 = vmax.f32 %v619_v49, %v621_v41  ;;  %v1058_v60 = vadd.f32 %v15548_v19, %v1057_v46 }
 0x12a   :  { %v863_v53 = vmax.f32 %v801_v42, 0.0  ;;  %v804_v55 = vadd.f32 %v15548_v19, %v803_v50  ;;  %v1060_v56 = vpop.f32.mrb[19].mxu1  ;;  %18565 = vst [vmem:[#allocation14_spill] sm:$0xff] %v15625_v59  ;;  %v18510_v6 = vmax.f32 %v15625_v59, 0.0  ;;  %v15632_v10 = vadd.f32 %v13071_v51, %v15548_v19 }
 0x12b   :  { %v866_v2 = vmax.f32 %v812_v54, 0.0  ;;  %1249 = vst [vmem:[#allocation3 + $0xe8] sm:$0xff] %v1233_v58  ;;  %v1120_v7 = vmax.f32 %v1058_v60, 0.0  ;;  %v1061_v24 = vadd.f32 %v15548_v19, %v1060_v56  ;;  %v15646_v37 = vrot.slane %v1466_v23, 3  ;;  %v1504_v46 = vld [vmem:[#allocation3 + $0xc0] ss:$2 sm:$0xff] }
 0x12c   :  { %v1270_v0 = vmax.f32 %v863_v53, %v865_v52  ;;  %v864_v4 = vmax.f32 %v804_v55, 0.0  ;;  %18566 = vst [vmem:[#allocation15_spill] sm:$0xff] %v15632_v10  ;;  %v18509_v38 = vmax.f32 %v15632_v10, 0.0  ;;  %v15654_v45 = vrot.slane %v1469_v3, 4  ;;  %v1506_v48 = vld [vmem:[#allocation3 + $0xc1] ss:$2 sm:$0xff] }
 0x12d   :  { %v1334_v15 = vmax.f32 %v1120_v7, %v18510_v6  ;;  %v15637_v20 = vld [vmem:[#allocation4 + $0x10] sm:$0xff]  ;;  %v1121_v1 = vmax.f32 %v1061_v24, 0.0  ;;  %v15658_v50 = vpack.c.bf16 %v1485_v17, %v1485_v17  ;;  %v1416_v53 = vld [vmem:[#allocation3 + $0x40] ss:$2 sm:$0xff]  ;;  %v1418_v54 = vld [vmem:[#allocation3 + $0x41] ss:$2 sm:$0xff]  ;;  %v1507_v62 = vmax.f32 %v1504_v46, %v1506_v48 }
 0x12e   :  { %v13042_v5 = vpop.f32.mrb[20].mxu0  ;;  %1286 = vst [vmem:[#allocation3 + $0x100] sm:$0xff] %v1270_v0  ;;  %v1271_v12 = vmax.f32 %v864_v4, %v866_v2  ;;  %v1778_v28 = vrot.slane %v15637_v20, 4  ;;  %v16581_v36 = vld [vmem:[#allocation4 + $0x10] sm:$0xf0] }
 0x12f   :  { %v825_v8 = vadd.f32 %v13042_v5, %v15548_v19  ;;  %v816_v9 = vpop.f32.mrb[21].mxu0  ;;  %v13074_v11 = vpop.f32.mrb[20].mxu1  ;;  %1350 = vst [vmem:[#allocation3 + $0x180] sm:$0xff] %v1334_v15  ;;  %v1335_v55 = vmax.f32 %v1121_v1, %v18509_v38 }
 0x130   :  { %v817_v13 = vadd.f32 %v15548_v19, %v816_v9  ;;  %v13043_v14 = vpop.f32.mrb[22].mxu0  ;;  %v1073_v16 = vpop.f32.mrb[21].mxu1  ;;  %1287 = vst [vmem:[#allocation3 + $0x108] sm:$0xff] %v1271_v12  ;;  %v1779_v40 = vsel %vm1776_vm6, %v1777_v22, %v1778_v28  ;;  %v1082_v23 = vadd.f32 %v13074_v11, %v15548_v19  ;;  %v1410_v22 = vsel %vm15610_vm5, %v1406_v25, %v1409_v39 }
 0x131   :  { %v869_v18 = vmax.f32 %v825_v8, 0.0  ;;  %v819_v21 = vpop.f32.mrb[23].mxu0  ;;  %v13075_v27 = vpop.f32.mrb[22].mxu1  ;;  %v828_v32 = vadd.f32 %v13043_v14, %v15548_v19  ;;  %13100 = vmatprep.mubr.bf16.mxu0 %v1779_v40  ;;  %v1074_v49 = vadd.f32 %v15548_v19, %v1073_v16  ;;  %1411 = vst [vmem:[#allocation4 + $0x18] sm:$0xf0] %v1410_v22  ;;  %1351 = vst [vmem:[#allocation3 + $0x188] sm:$0xff] %v1335_v55 }
 0x132   :  { %v867_v31 = vmax.f32 %v817_v13, 0.0  ;;  %v820_v33 = vadd.f32 %v15548_v19, %v819_v21  ;;  %v1076_v34 = vpop.f32.mrb[23].mxu1  ;;  %v1085_v52 = vadd.f32 %v13075_v27, %v15548_v19  ;;  %v1126_v56 = vmax.f32 %v1082_v23, 0.0  ;;  %v1440_v22 = vld [vmem:[#allocation3 + $0x61] ss:$2 sm:$0xff] }
 0x133   :  { %v870_v42 = vmax.f32 %v828_v32, 0.0  ;;  %v1124_v58 = vmax.f32 %v1074_v49, 0.0  ;;  %v1077_v4 = vadd.f32 %v15548_v19, %v1076_v34  ;;  %v1488_v14 = vshrl.u32 %v15658_v50, 16  ;;  %v1412_v49 = vld [vmem:[#allocation4 + $0x20] sm:$0x1] }
 0x134   :  { %v1274_v41 = vmax.f32 %v867_v31, %v869_v18  ;;  %v868_v44 = vmax.f32 %v820_v33, 0.0  ;;  %v1127_v2 = vmax.f32 %v1085_v52, 0.0  ;;  %v1472_v31 = vor.u32 %v15654_v45, %v15646_v37 }
 0x135   :  { %v1338_v11 = vmax.f32 %v1124_v58, %v1126_v56  ;;  %v1125_v21 = vmax.f32 %v1077_v4, 0.0  ;;  %v1419_v32 = vmax.f32 %v1416_v53, %v1418_v54  ;;  %v1508_v33 = vpack.c.bf16 %v1507_v62, %v1507_v62 }
 0x136   :  { %1290 = vst [vmem:[#allocation3 + $0x120] sm:$0xff] %v1274_v41  ;;  %v1275_v51 = vmax.f32 %v868_v44, %v870_v42  ;;  %v13046_v63 = vpop.f32.mrb[24].mxu0  ;;  %v15676_v42 = vrot.slane %v1488_v14, 3  ;;  %v1491_v44 = vshll.u32 %v15658_v50, 16 }
 0x137   :  { %v841_v57 = vadd.f32 %v13046_v63, %v15548_v19  ;;  %v832_v60 = vpop.f32.mrb[25].mxu0  ;;  %v13078_v61 = vpop.f32.mrb[24].mxu1  ;;  %v1548_v7 = vld [vmem:[#allocation3 + $0x100] ss:$2 sm:$0xff]  ;;  %v1550_v8 = vld [vmem:[#allocation3 + $0x101] ss:$2 sm:$0xff]  ;;  %v1339_v40 = vmax.f32 %v1125_v21, %v1127_v2  ;;  %v1420_v58 = vpack.c.bf16 %v1419_v32, %v1419_v32 }
 0x138   :  { %1291 = vst [vmem:[#allocation3 + $0x128] sm:$0xff] %v1275_v51  ;;  %v833_v0 = vadd.f32 %v15548_v19, %v832_v60  ;;  %v13047_v3 = vpop.f32.mrb[26].mxu0  ;;  %v1089_v5 = vpop.f32.mrb[25].mxu1  ;;  %v1551_v15 = vmax.f32 %v1548_v7, %v1550_v8  ;;  %1354 = vst [vmem:[#allocation3 + $0x1a0] sm:$0xff] %v1338_v11  ;;  %v1098_v25 = vadd.f32 %v13078_v61, %v15548_v19  ;;  %v15679_v46 = vld [vmem:[#allocation4 + $0x18] sm:$0xff]  ;;  %v14828_v51 = vld [vmem:[%s18498_s3 + $0x8] sm:$0xff]  }
 0x139   :  { %v873_v9 = vmax.f32 %v841_v57, 0.0  ;;  %v844_v12 = vadd.f32 %v13047_v3, %v15548_v19  ;;  %v835_v13 = vpop.f32.mrb[27].mxu0  ;;  %v13079_v17 = vpop.f32.mrb[26].mxu1  ;;  %v1090_v1 = vadd.f32 %v15548_v19, %v1089_v5  ;;  %v1438_v63 = vld [vmem:[#allocation3 + $0x60] ss:$2 sm:$0xff]  ;;  %v1780_v54 = vrot.slane %v15679_v46, 4 }
 0x13a   :  { %v871_v16 = vmax.f32 %v833_v0, 0.0  ;;  %v836_v24 = vadd.f32 %v15548_v19, %v835_v13  ;;  %v1092_v27 = vpop.f32.mrb[27].mxu1  ;;  %v15674_v39 = vpack.c.bf16 %v1551_v15, %v1551_v15  ;;  %v1130_v48 = vmax.f32 %v1098_v25, 0.0  ;;  %1355 = vst [vmem:[#allocation3 + $0x1a8] sm:$0xff] %v1339_v40  ;;  %v1636_v0 = vld [vmem:[#allocation3 + $0x180] ss:$2 sm:$0xff] }
 0x13b   :  { %v874_v18 = vmax.f32 %v844_v12, 0.0  ;;  %v1101_v55 = vadd.f32 %v13079_v17, %v15548_v19  ;;  %v1093_v56 = vadd.f32 %v15548_v19, %v1092_v27  ;;  %v1510_v60 = vshrl.u32 %v1508_v33, 16  ;;  %v1638_v2 = vld [vmem:[#allocation3 + $0x181] ss:$2 sm:$0xff] }
 0x13c   :  { %v1278_v34 = vmax.f32 %v871_v16, %v873_v9  ;;  %v872_v41 = vmax.f32 %v836_v24, 0.0  ;;  %v1513_v61 = vshll.u32 %v1508_v33, 16  ;;  %v1554_v3 = vshrl.u32 %v15674_v39, 16  ;;  %v15184_v21 = vld [vmem:[%s18498_s3] sm:$0xff]  }
 0x13d   :  { %v1781_v4 = vsel %vm1776_vm6, %v1778_v28, %v1780_v54  ;;  %v1128_v5 = vmax.f32 %v1090_v1, 0.0  ;;  %v1131_v7 = vmax.f32 %v1101_v55, 0.0  ;;  %v1557_v11 = vshll.u32 %v15674_v39, 16 }
 0x13e   :  { %1294 = vst [vmem:[#allocation3 + $0x140] sm:$0xff] %v1278_v34  ;;  %v13050_v23 = vpop.f32.mrb[28].mxu0  ;;  %v1279_v50 = vmax.f32 %v872_v41, %v874_v18  ;;  %v1639_v12 = vmax.f32 %v1636_v0, %v1638_v2  ;;  %13101 = vmatmul.mubr.bf16.vlgmr.msra.gmra.mrb[32].mxu0 %v1781_v4  ;;  %v1129_v13 = vmax.f32 %v1093_v56, 0.0  ;;  %v1413_v28 = vsel %vm15585_vm2, %v15614_v30, %v1412_v49  ;;  %v14830_v34 = vld [vmem:[%s18498_s3 + $0x10] sm:$0xff]  }
 0x13f   :  { %v1570_v52 = vld [vmem:[#allocation3 + $0x120] ss:$2 sm:$0xff]  ;;  %v1572_v53 = vld [vmem:[#allocation3 + $0x121] ss:$2 sm:$0xff]  ;;  %v848_v57 = vpop.f32.mrb[29].mxu0  ;;  %v13082_v9 = vpop.f32.mrb[28].mxu1  ;;  %v857_v14 = vadd.f32 %v13050_v23, %v15548_v19  ;;  %v1342_v18 = vmax.f32 %v1128_v5, %v1130_v48  ;;  %13117 = vmatpush3.bf16.msra.mxu0 %v15184_v21  ;;  %v1441_v27 = vmax.f32 %v1438_v63, %v1440_v22 }
 0x140   :  { %v1573_v62 = vmax.f32 %v1570_v52, %v1572_v53  ;;  %1295 = vst [vmem:[#allocation3 + $0x148] sm:$0xff] %v1279_v50  ;;  %v13051_v8 = vpop.f32.mrb[30].mxu0  ;;  %v1105_v16 = vpop.f32.mrb[29].mxu1  ;;  %v15704_v25 = vrot.slane %v1491_v44, 4  ;;  %v1343_v32 = vmax.f32 %v1129_v13, %v1131_v7  ;;  %1414 = vst [vmem:[#allocation4 + $0x20] sm:$0x1] %v1413_v28  ;;  %13118 = vmatprep.subr.bf16.mxu0 %v14828_v51 }
 0x141   :  { %v851_v15 = vpop.f32.mrb[31].mxu0  ;;  %v13083_v24 = vpop.f32.mrb[30].mxu1  ;;  %v15709_v39 = vrot.slane %v1510_v60, 3  ;;  %v15711_v30 = vrot.slane %v1513_v61, 4  ;;  %1358 = vst [vmem:[#allocation3 + $0x1c0] sm:$0xff] %v1342_v18  ;;  %v1422_v40 = vshrl.u32 %v1420_v58, 16  ;;  %v849_v1 = vadd.f32 %v15548_v19, %v848_v57 }
 0x142   :  { %v15696_v17 = vpack.c.bf16 %v1573_v62, %v1573_v62  ;;  %v1108_v33 = vpop.f32.mrb[31].mxu1  ;;  %v1425_v41 = vshll.u32 %v1420_v58, 16  ;;  %v15713_v48 = vrot.slane %v1554_v3, 3  ;;  %1359 = vst [vmem:[#allocation3 + $0x1c8] sm:$0xff] %v1343_v32  ;;  %v877_v44 = vmax.f32 %v857_v14, 0.0  ;;  %v14832_v50 = vld [vmem:[%s18498_s3 + $0x18] sm:$0xff]  }
 0x143   :  { %v860_v23 = vadd.f32 %v13051_v8, %v15548_v19  ;;  %v15717_v49 = vrot.slane %v1557_v11, 4  ;;  %v1640_v22 = vpack.c.bf16 %v1639_v12, %v1639_v12  ;;  %v15720_v52 = vrot.slane %v1422_v40, 3  ;;  %v1431_v53 = vld [vmem:[#allocation4 + $0x20] sm:$0xf0]  ;;  %13119 = vmatpush3.bf16.msra.mxu0 %v14828_v51  ;;  %v1434_v28 = vld [vmem:[#allocation4 + $0x28] sm:$0x1] }
 0x144   :  { %v1576_v63 = vshrl.u32 %v15696_v17, 16  ;;  %v1494_v55 = vor.u32 %v15704_v25, %v15676_v42  ;;  %v1427_v58 = vrot.slane %v1425_v41, 4  ;;  %v875_v60 = vmax.f32 %v849_v1, 0.0  ;;  %13120 = vmatprep.subr.bf16.mxu0 %v14830_v34  ;;  %v1658_v40 = vld [vmem:[#allocation3 + $0x1a0] ss:$2 sm:$0xff] }
 0x145   :  { %v852_v61 = vadd.f32 %v15548_v19, %v851_v15  ;;  %v15728_v62 = vpack.c.bf16 %v1441_v27, %v1441_v27  ;;  %v1579_v0 = vshll.u32 %v15696_v17, 16  ;;  %v878_v51 = vmax.f32 %v860_v23, 0.0  ;;  %v1660_v41 = vld [vmem:[#allocation3 + $0x1a1] ss:$2 sm:$0xff]  ;;  %v1478_v23 = vld [vmem:[#allocation4 + $0x38] sm:$0x1] }
 0x146   :  { %v1428_v3 = vor.u32 %v1427_v58, %v15720_v52  ;;  %v1282_v4 = vmax.f32 %v875_v60, %v877_v44  ;;  %v1114_v7 = vadd.f32 %v13082_v9, %v15548_v19  ;;  %v1642_v8 = vshrl.u32 %v1640_v22, 16  ;;  %v14834_v9 = vld [vmem:[%s18498_s3 + $0x20] sm:$0xff]   ;;  %v1563_v58 = vld [vmem:[#allocation4 + $0x90] sm:$0xf0] }
 0x147   :  { %v1592_v56 = vld [vmem:[#allocation3 + $0x140] ss:$2 sm:$0xff]  ;;  %v1594_v57 = vld [vmem:[#allocation3 + $0x141] ss:$2 sm:$0xff]  ;;  %v876_v5 = vmax.f32 %v852_v61, 0.0  ;;  %v1645_v11 = vshll.u32 %v1640_v22, 16  ;;  %v1106_v13 = vadd.f32 %v15548_v19, %v1105_v16  ;;  %13121 = vmatpush3.bf16.msra.mxu0 %v14830_v34  ;;  %v1117_v18 = vadd.f32 %v13083_v24, %v15548_v19 }
 0x148   :  { %v1595_v2 = vmax.f32 %v1592_v56, %v1594_v57  ;;  %v1432_v14 = vsel %vm15610_vm5, %v1428_v3, %v1431_v53  ;;  %1298 = vst [vmem:[#allocation3 + $0x160] sm:$0xff] %v1282_v4  ;;  %v1134_v17 = vmax.f32 %v1114_v7, 0.0  ;;  %13122 = vmatprep.subr.bf16.mxu0 %v14832_v50  ;;  %v1560_v21 = vor.u32 %v15717_v49, %v15713_v48  ;;  %v1475_v34 = vld [vmem:[#allocation4 + $0x30] sm:$0xf0]  ;;  %v15748_v22 = vld [vmem:[%s18498_s3 + $0x28] sm:$0xff]  }
 0x149   :  { %v1283_v15 = vmax.f32 %v876_v5, %v878_v51  ;;  %v15742_v27 = vrot.slane %v1576_v63, 3  ;;  %1433 = vst [vmem:[#allocation4 + $0x20] sm:$0xf0] %v1432_v14  ;;  %v1132_v44 = vmax.f32 %v1106_v13, 0.0  ;;  %v1135_v24 = vmax.f32 %v1117_v18, 0.0 }
 0x14a   :  { %v1596_v12 = vpack.c.bf16 %v1595_v2, %v1595_v2  ;;  %v1109_v1 = vadd.f32 %v15548_v19, %v1108_v33  ;;  %v15750_v49 = vrot.slane %v1579_v0, 4  ;;  %v15752_v63 = vrot.slane %v1642_v8, 3  ;;  %v1497_v57 = vld [vmem:[#allocation4 + $0x38] sm:$0xf0]  ;;  %v1500_v60 = vld [vmem:[#allocation4 + $0x40] sm:$0x1] }
 0x14b   :  { %1299 = vst [vmem:[#allocation3 + $0x168] sm:$0xff] %v1283_v15  ;;  %v15754_v53 = vrot.slane %v1645_v11, 4  ;;  %13123 = vmatpush3.bf16.msra.mxu0 %v14832_v50  ;;  %v1680_v61 = vld [vmem:[#allocation3 + $0x1c0] ss:$2 sm:$0xff]  ;;  %v1682_v19 = vld [vmem:[#allocation3 + $0x1c1] ss:$2 sm:$0xff]  ;;  %v1346_v33 = vmax.f32 %v1132_v44, %v1134_v17  ;;  %v1516_v0 = vor.u32 %v15711_v30, %v15709_v39  ;;  %v1435_v4 = vsel %vm15585_vm2, %v15720_v52, %v1434_v28 }
 0x14c   :  { %v1598_v16 = vshrl.u32 %v1596_v12, 16  ;;  %v1601_v32 = vshll.u32 %v1596_v12, 16  ;;  %v1133_v2 = vmax.f32 %v1109_v1, 0.0  ;;  %v1456_v51 = vld [vmem:[#allocation4 + $0x30] sm:$0x1]  ;;  %13124 = vmatprep.subr.bf16.mxu0 %v14834_v9  ;;  %v1444_v50 = vshrl.u32 %v15728_v62, 16 }
 0x14d   :  { %v1519_v5 = vld [vmem:[#allocation4 + $0x40] sm:$0xf0]  ;;  %v1522_v7 = vld [vmem:[#allocation4 + $0x48] sm:$0x1]  ;;  %1362 = vst [vmem:[#allocation3 + $0x1e0] sm:$0xff] %v1346_v33  ;;  %v1447_v11 = vshll.u32 %v15728_v62, 16  ;;  %v1476_v30 = vsel %vm15610_vm5, %v1472_v31, %v1475_v34  ;;  %v1582_v12 = vor.u32 %v15750_v49, %v15742_v27  ;;  %v1661_v13 = vmax.f32 %v1658_v40, %v1660_v41 }
 0x14e   :  { %v15756_v56 = vrot.slane %v1598_v16, 3  ;;  %v15760_v3 = vrot.slane %v1601_v32, 4  ;;  %v1347_v8 = vmax.f32 %v1133_v2, %v1135_v24  ;;  %1436 = vst [vmem:[#allocation4 + $0x28] sm:$0x1] %v1435_v4  ;;  %v1446_v52 = vrot.slane %v1444_v50, 3  ;;  %v14838_v28 = vld [vmem:[%s18498_s3 + $0x30] sm:$0xff]  }
 0x14f   :  { %v1453_v14 = vld [vmem:[#allocation4 + $0x28] sm:$0xf0]  ;;  %1477 = vst [vmem:[#allocation4 + $0x30] sm:$0xf0] %v1476_v30  ;;  %v1479_v15 = vsel %vm15585_vm2, %v15646_v37, %v1478_v23  ;;  %13125 = vmatpush3.bf16.msra.mxu0 %v14834_v9  ;;  %v1566_v17 = vld [vmem:[#allocation4 + $0x98] sm:$0x1]  ;;  %v1498_v31 = vsel %vm15610_vm5, %v1494_v55, %v1497_v57  ;;  %v1564_v18 = vsel %vm15610_vm5, %v1560_v21, %v1563_v58 }
 0x150   :  { %v15777_v62 = vld [vmem:[#allocation4 + $0x20] sm:$0xff]  ;;  %1363 = vst [vmem:[#allocation3 + $0x1e8] sm:$0xff] %v1347_v8  ;;  %v1449_v45 = vrot.slane %v1447_v11, 4  ;;  %1480 = vst [vmem:[#allocation4 + $0x38] sm:$0x1] %v1479_v15  ;;  %v1501_v37 = vsel %vm15585_vm2, %v15676_v42, %v1500_v60  ;;  %13126 = vmatprep.subr.bf16.mxu0 %v15748_v22  ;;  %v1604_v25 = vor.u32 %v15760_v3, %v15756_v56  ;;  %v14839_v23 = vld [vmem:[%s18498_s3 + $0x38] sm:$0xff]  }
 0x151   :  { %v1585_v9 = vld [vmem:[#allocation4 + $0x98] sm:$0xf0]  ;;  %v1683_v16 = vmax.f32 %v1680_v61, %v1682_v19  ;;  %v1782_v55 = vrot.slane %v15777_v62, 4  ;;  %v1457_v21 = vsel %vm15585_vm2, %v1446_v52, %v1456_v51  ;;  %1499 = vst [vmem:[#allocation4 + $0x38] sm:$0xf0] %v1498_v31  ;;  %v1520_v44 = vsel %vm15610_vm5, %v1516_v0, %v1519_v5  ;;  %v15839_v11 = vld [vmem:[%s18498_s3 + $0x80] sm:$0xff]  }
 0x152   :  { %v1614_v32 = vld [vmem:[#allocation3 + $0x160] ss:$2 sm:$0xff]  ;;  %1565 = vst [vmem:[#allocation4 + $0x90] sm:$0xf0] %v1564_v18  ;;  %1502 = vst [vmem:[#allocation4 + $0x40] sm:$0x1] %v1501_v37  ;;  %v1450_v41 = vor.u32 %v1449_v45, %v1446_v52  ;;  %v1523_v24 = vsel %vm15585_vm2, %v15709_v39, %v1522_v7  ;;  %v1567_v1 = vsel %vm15585_vm2, %v15713_v48, %v1566_v17 }
 0x153   :  { %v15798_v42 = vld [vmem:[#allocation4 + $0x88] sm:$0xf0]  ;;  %v1588_v34 = vld [vmem:[#allocation4 + $0xa0] sm:$0x1]  ;;  %1458 = vst [vmem:[#allocation4 + $0x30] sm:$0x1] %v1457_v21  ;;  %v1648_v57 = vor.u32 %v15754_v53, %v15752_v63  ;;  %v1783_v58 = vsel %vm1776_vm6, %v1780_v54, %v1782_v55  ;;  %13127 = vmatpush3.bf16.msra.mxu0 %v15748_v22  ;;  %v1586_v39 = vsel %vm15610_vm5, %v1582_v12, %v1585_v9 }
 0x154   :  { %v1616_v40 = vld [vmem:[#allocation3 + $0x161] ss:$2 sm:$0xff]  ;;  %1521 = vst [vmem:[#allocation4 + $0x40] sm:$0xf0] %v1520_v44  ;;  %1524 = vst [vmem:[#allocation4 + $0x48] sm:$0x1] %v1523_v24  ;;  %v1662_v48 = vpack.c.bf16 %v1661_v13, %v1661_v13  ;;  %13104 = vmatprep.mubr.bf16.mxu0 %v1783_v58  ;;  %v1454_v53 = vsel %vm15610_vm5, %v1450_v41, %v1453_v14  ;;  %13128 = vmatprep.subr.bf16.mxu0 %v14838_v28 }
 0x155   :  { %v1607_v49 = vld [vmem:[#allocation4 + $0xa0] sm:$0xf0]  ;;  %v1617_v60 = vmax.f32 %v1614_v32, %v1616_v40  ;;  %1568 = vst [vmem:[#allocation4 + $0x98] sm:$0x1] %v1567_v1  ;;  %1587 = vst [vmem:[#allocation4 + $0x98] sm:$0xf0] %v1586_v39  ;;  %v1589_v54 = vsel %vm15585_vm2, %v15742_v27, %v1588_v34  ;;  %v1684_v2 = vpack.c.bf16 %v1683_v16, %v1683_v16 }
 0x156   :  { %v1610_v61 = vld [vmem:[#allocation4 + $0xa8] sm:$0x1]  ;;  %v1651_v19 = vld [vmem:[#allocation4 + $0xb0] sm:$0xf0]  ;;  %1455 = vst [vmem:[#allocation4 + $0x28] sm:$0xf0] %v1454_v53  ;;  %v1608_v22 = vsel %vm15610_vm5, %v1604_v25, %v1607_v49 }
 0x157   :  { %v1618_v33 = vpack.c.bf16 %v1617_v60, %v1617_v60  ;;  %v3959_v51 = vrot.slane %v15798_v42, 4  ;;  %1590 = vst [vmem:[#allocation4 + $0xa0] sm:$0x1] %v1589_v54  ;;  %1609 = vst [vmem:[#allocation4 + $0xa0] sm:$0xf0] %v1608_v22  ;;  %13129 = vmatpush3.bf16.msra.mxu0 %v14838_v28  ;;  %v1611_v4 = vsel %vm15585_vm2, %v15756_v56, %v1610_v61  ;;  %v1664_v5 = vshrl.u32 %v1662_v48, 16 }
 0x158   :  { %v1652_v50 = vsel %vm15610_vm5, %v1648_v57, %v1651_v19  ;;  %v1667_v27 = vshll.u32 %v1662_v48, 16  ;;  %v1724_v8 = vld [vmem:[#allocation4 + $0x8] sm:$0xf8]  ;;  %13130 = vmatprep.subr.bf16.mxu0 %v14839_v23  ;;  %1612 = vst [vmem:[#allocation4 + $0xa8] sm:$0x1] %v1611_v4  ;;  %v1686_v13 = vshrl.u32 %v1684_v2, 16 }
 0x159   :  { %v1620_v0 = vshrl.u32 %v1618_v33, 16  ;;  %v1623_v3 = vshll.u32 %v1618_v33, 16  ;;  %v15834_v7 = vld [vmem:[#allocation4 + $0x90] sm:$0xff]  ;;  %1653 = vst [vmem:[#allocation4 + $0xb0] sm:$0xf0] %v1652_v50  ;;  %v1689_v52 = vshll.u32 %v1684_v2, 16 }
 0x15a   :  { %v3960_v56 = vrot.slane %v15834_v7, 4  ;;  %v15842_v14 = vld [vmem:[#allocation4 + $0x30] sm:$0xff]  ;;  %v1949_v45 = vshrl.u32 %v1724_v8, 16  ;;  %v15847_v31 = vrot.slane %v1664_v5, 3  ;;  %v1669_v18 = vrot.slane %v1667_v27, 4  ;;  %v14843_v1 = vld [vmem:[%s18498_s3 + $0x8] sm:$0xff]  }
 0x15b   :  { %v1622_v30 = vrot.slane %v1620_v0, 3  ;;  %v1625_v12 = vrot.slane %v1623_v3, 4  ;;  %13131 = vmatpush3.bf16.msra.mxu0 %v14839_v23  ;;  %v1786_v16 = vrot.slane %v15842_v14, 4  ;;  %v1952_v32 = vshll.u32 %v1724_v8, 16  ;;  %v1629_v34 = vld [vmem:[#allocation4 + $0xa8] sm:$0xf0] }
 0x15c   :  { %v3961_v15 = vsel %vm1776_vm6, %v3959_v51, %v3960_v56  ;;  %v15845_v17 = vld [vmem:[#allocation4 + $0x98] sm:$0xff]  ;;  %13148 = vmatprep.subr.bf16.mxu0 %v15839_v11  ;;  %v15857_v40 = vrot.slane %v1686_v13, 3  ;;  %v1691_v41 = vrot.slane %v1689_v52, 4  ;;  %v1632_v57 = vld [vmem:[#allocation4 + $0xb0] sm:$0x1]  ;;  %v1670_v48 = vor.u32 %v1669_v18, %v15847_v31  ;;  %v15185_v61 = vld [vmem:[%s18498_s3] sm:$0xff]  }
 0x15d   :  { %v1626_v37 = vor.u32 %v1625_v12, %v1622_v30  ;;  %v15849_v28 = vld [vmem:[#allocation4 + $0x28] sm:$0xff]  ;;  %13388 = vmatprep.mubr.bf16.mxu1 %v3961_v15  ;;  %v3962_v9 = vrot.slane %v15845_v17, 4  ;;  %v1654_v58 = vld [vmem:[#allocation4 + $0xb8] sm:$0x1]  ;;  %v1673_v19 = vld [vmem:[#allocation4 + $0xb8] sm:$0xf0]  ;;  %v1633_v3 = vsel %vm15585_vm2, %v1622_v30, %v1632_v57 }
 0x15e   :  { %v1784_v25 = vrot.slane %v15849_v28, 4  ;;  %v15855_v21 = vld [vmem:[#allocation4 + $0xa0] sm:$0xff]  ;;  %v15877_v33 = vld [vmem:[#allocation4 + $0x38] sm:$0xff]  ;;  %v15881_v22 = vrot.slane %v1949_v45, 3  ;;  %v15883_v2 = vrot.slane %v1952_v32, 4  ;;  %v14845_v51 = vld [vmem:[%s18498_s3 + $0x10] sm:$0xff]   ;;  %v1692_v0 = vor.u32 %v1691_v41, %v15857_v40 }
 0x15f   :  { %v3963_v44 = vsel %vm1776_vm6, %v3960_v56, %v3962_v9  ;;  %v3964_v24 = vrot.slane %v15855_v21, 4  ;;  %v1526_v60 = vld [vmem:[#allocation3 + $0xe0] ss:$2 sm:$0xff]  ;;  %v1528_v39 = vld [vmem:[#allocation3 + $0xe1] ss:$2 sm:$0xff]  ;;  %v1957_v27 = vshrl.u32 %v15637_v20, 16  ;;  %v1655_v56 = vsel %vm15585_vm2, %v15752_v63, %v1654_v58 }
 0x160   :  { %v1785_v23 = vsel %vm1776_vm6, %v1782_v55, %v1784_v25  ;;  %v1787_v49 = vsel %vm1776_vm6, %v1784_v25, %v1786_v16  ;;  %13389 = vmatmul.mubr.bf16.vlgmr.msra.gmra.mrb[32].mxu1 %v3963_v44  ;;  %v1630_v55 = vsel %vm15610_vm5, %v1626_v37, %v1629_v34  ;;  %v15879_v54 = vld [vmem:[#allocation4 + $0x40] sm:$0xff]  ;;  %v1529_v5 = vmax.f32 %v1526_v60, %v1528_v39  ;;  %v14847_v12 = vld [vmem:[%s18498_s3 + $0x18] sm:$0xff]   ;;  %v1698_v15 = vld [vmem:[#allocation4 + $0xc8] sm:$0x1] }
 0x161   :  { %13105 = vmatmul.mubr.bf16.gmra.mrb[36].mxu0 %v1785_v23  ;;  %v3965_v53 = vsel %vm1776_vm6, %v3962_v9, %v3964_v24  ;;  %13405 = vmatpush3.bf16.msra.mxu1 %v15185_v61  ;;  %1631 = vst [vmem:[#allocation4 + $0xa8] sm:$0xf0] %v1630_v55  ;;  %v1676_v4 = vld [vmem:[#allocation4 + $0xc0] sm:$0x1]  ;;  %v1695_v50 = vld [vmem:[#allocation4 + $0xc0] sm:$0xf0]  ;;  %v1674_v52 = vsel %vm15610_vm5, %v1670_v48, %v1673_v19 }
 0x162   :  { %13108 = vmatprep.mubr.bf16.mxu0 %v1787_v49  ;;  %13392 = vmatprep.mubr.bf16.mxu1 %v3965_v53  ;;  %v1960_v8 = vshll.u32 %v15637_v20, 16  ;;  %1634 = vst [vmem:[#allocation4 + $0xb0] sm:$0x1] %v1633_v3  ;;  %v1788_v13 = vrot.slane %v15877_v33, 4  ;;  %v1790_v30 = vrot.slane %v15879_v54, 4  ;;  %v1677_v45 = vsel %vm15585_vm2, %v15847_v31, %v1676_v4  ;;  %v14849_v58 = vld [vmem:[%s18498_s3 + $0x20] sm:$0xff]  }
 0x163   :  { %13406 = vmatprep.subr.bf16.mxu1 %v14843_v1  ;;  %1656 = vst [vmem:[#allocation4 + $0xb8] sm:$0x1] %v1655_v56  ;;  %1675 = vst [vmem:[#allocation4 + $0xb8] sm:$0xf0] %v1674_v52  ;;  %v1696_v18 = vsel %vm15610_vm5, %v1692_v0, %v1695_v50  ;;  %v1530_v63 = vpack.c.bf16 %v1529_v5, %v1529_v5  ;;  %v3908_v9 = vld [vmem:[#allocation4 + $0x88] sm:$0xf8] }
 0x164   :  { %v1789_v37 = vsel %vm1776_vm6, %v1786_v16, %v1788_v13  ;;  %1678 = vst [vmem:[#allocation4 + $0xc0] sm:$0x1] %v1677_v45  ;;  %1697 = vst [vmem:[#allocation4 + $0xc0] sm:$0xf0] %v1696_v18  ;;  %v1791_v25 = vsel %vm1776_vm6, %v1788_v13, %v1790_v30  ;;  %v15910_v32 = vld [vmem:[#allocation4 + $0x48] sm:$0xf]  ;;  %v1699_v16 = vsel %vm15585_vm2, %v15857_v40, %v1698_v15 }
 0x165   :  { %13407 = vmatpush3.bf16.msra.mxu1 %v14843_v1  ;;  %v1959_v34 = vrot.slane %v1957_v27, 3  ;;  %v1962_v31 = vrot.slane %v1960_v8, 4  ;;  %1700 = vst [vmem:[#allocation4 + $0xc8] sm:$0x1] %v1699_v16  ;;  %v1955_v1 = vor.u32 %v15883_v2, %v15881_v22  ;;  %v1966_v23 = vshrl.u32 %v15679_v46, 16  ;;  %v14851_v50 = vld [vmem:[%s18498_s3 + $0x28] sm:$0xff]  }
 0x166   :  { %13408 = vmatprep.subr.bf16.mxu1 %v14845_v51  ;;  %v1969_v49 = vshll.u32 %v15679_v46, 16  ;;  %v4130_v40 = vshrl.u32 %v3908_v9, 16  ;;  %v1792_v60 = vrot.slane %v15910_v32, 4  ;;  %v1975_v39 = vshrl.u32 %v15777_v62, 16  ;;  %v14861_v20 = vld [vmem:[%s18498_s3 + $0x90] sm:$0xff]  }
 0x167   :  { %v1532_v61 = vshrl.u32 %v1530_v63, 16  ;;  %v1963_v55 = vor.u32 %v1962_v31, %v1959_v34  ;;  %v1978_v19 = vshll.u32 %v15777_v62, 16  ;;  %v4133_v22 = vshll.u32 %v3908_v9, 16  ;;  %v14853_v31 = vld [vmem:[%s18498_s3 + $0x30] sm:$0xff]  }
 0x168   :  { %v15916_v41 = vld [vmem:[#allocation4 + $0xa8] sm:$0xff]  ;;  %v1535_v2 = vshll.u32 %v1530_v63, 16  ;;  %v1968_v3 = vrot.slane %v1966_v23, 3  ;;  %v1793_v5 = vsel %vm1776_vm6, %v1790_v30, %v1792_v60  ;;  %v4138_v56 = vshrl.u32 %v15834_v7, 16 }
 0x169   :  { %13109 = vmatmul.mubr.bf16.gmra.mrb[40].mxu0 %v1789_v37  ;;  %13409 = vmatpush3.bf16.msra.mxu1 %v14845_v51  ;;  %v3966_v44 = vrot.slane %v15916_v41, 4  ;;  %v15926_v57 = vld [vmem:[#allocation4 + $0xb0] sm:$0xff]  ;;  %v4141_v13 = vshll.u32 %v15834_v7, 16  ;;  %v1964_v52 = vsel %vm1947_vm7, %v1955_v1, %v1963_v55  ;;  %v1980_v15 = vrot.slane %v1978_v19, 4 }
 0x16a   :  { %13112 = vmatprep.mubr.bf16.mxu0 %v1791_v25  ;;  %13410 = vmatprep.subr.bf16.mxu1 %v14847_v12  ;;  %v3968_v53 = vrot.slane %v15926_v57, 4  ;;  %v15939_v0 = vld [vmem:[#allocation4 + $0xb8] sm:$0xff]  ;;  %v15960_v63 = vrot.slane %v1532_v61, 3  ;;  %v15962_v30 = vrot.slane %v1535_v2, 4  ;;  %v4132_v37 = vrot.slane %v4130_v40, 3 }
 0x16b   :  { %v3967_v48 = vsel %vm1776_vm6, %v3964_v24, %v3966_v44  ;;  %v1971_v24 = vrot.slane %v1969_v49, 4  ;;  %v15945_v4 = vld [vmem:[#allocation4 + $0xc0] sm:$0xff]  ;;  %v3970_v45 = vrot.slane %v15939_v0, 4  ;;  %v4135_v9 = vrot.slane %v4133_v22, 4 }
 0x16c   :  { %13393 = vmatmul.mubr.bf16.gmra.mrb[36].mxu1 %v3967_v48  ;;  %v3969_v51 = vsel %vm1776_vm6, %v3966_v44, %v3968_v53  ;;  %v3972_v18 = vrot.slane %v15945_v4, 4  ;;  %v1984_v25 = vshrl.u32 %v15849_v28, 16  ;;  %v18517_v34 = vshll.u32 %v15849_v28, 16  ;;  %v15977_v48 = vld [vmem:[#allocation4 + $0xc8] sm:$0xf] }
 0x16d   :  { %13411 = vmatpush3.bf16.msra.mxu1 %v14847_v12  ;;  %13396 = vmatprep.mubr.bf16.mxu1 %v3969_v51  ;;  %v1977_v12 = vrot.slane %v1975_v39, 3  ;;  %v1972_v16 = vor.u32 %v1971_v24, %v1968_v3  ;;  %v3971_v44 = vsel %vm1776_vm6, %v3968_v53, %v3970_v45  ;;  %v4140_v1 = vrot.slane %v4138_v56, 3  ;;  %v14842_v53 = vld [vmem:[%s18498_s3 + $0x88] sm:$0xff]  }
 0x16e   :  { %13412 = vmatprep.subr.bf16.mxu1 %v14849_v58  ;;  %v3973_v60 = vsel %vm1776_vm6, %v3970_v45, %v3972_v18  ;;  %v1538_v61 = vor.u32 %v15962_v30, %v15960_v63  ;;  %v4136_v22 = vor.u32 %v4135_v9, %v4132_v37  ;;  %v1986_v2 = vrot.slane %v1984_v25, 3 }
 0x16f   :  { %v15974_v40 = vor.u32 %v1980_v15, %v1977_v12  ;;  %v1989_v51 = vrot.slane %v18517_v34, 4  ;;  %v18515_v3 = vshrl.u32 %v15842_v14, 16  ;;  %v18513_v24 = vshll.u32 %v15842_v14, 16 }
 0x170   :  { %v3974_v12 = vrot.slane %v15977_v48, 4  ;;  %v18516_v15 = vshll.u32 %v15845_v17, 16  ;;  %v18519_v37 = vshrl.u32 %v15855_v21, 16  ;;  %v18518_v9 = vshll.u32 %v15855_v21, 16 }
 0x171   :  { %13113 = vmatmul.mubr.bf16.gmra.mrb[44].mxu0 %v1793_v5  ;;  %13413 = vmatpush3.bf16.msra.mxu1 %v14849_v58  ;;  %v4143_v58 = vrot.slane %v4141_v13, 4  ;;  %v1973_v5 = vsel %vm1947_vm7, %v1963_v55, %v1972_v16  ;;  %v1982_v45 = vsel %vm1947_vm7, %v1972_v16, %v15974_v40  ;;  %v1541_v55 = vld [vmem:[#allocation4 + $0x48] sm:$0xf0]  ;;  %v2002_v38 = vshrl.u32 %v15877_v33, 16  ;;  %v14844_v16 = vld [vmem:[%s18498_s3 + $0x90] sm:$0xff]  }
 0x172   :  { %13132 = vmatprep.mubr.bf16.mxu0 %v1964_v52  ;;  %13414 = vmatprep.subr.bf16.mxu1 %v14851_v50  ;;  %v18514_v52 = vshrl.u32 %v15845_v17, 16  ;;  %v2005_v6 = vshll.u32 %v15877_v33, 16  ;;  %v3975_v43 = vsel %vm1776_vm6, %v3972_v18, %v3974_v12  ;;  %v4161_v18 = vrot.slane %v18518_v9, 4 }
 0x173   :  { %v4144_v30 = vor.u32 %v4143_v58, %v4140_v1  ;;  %v1995_v1 = vrot.slane %v18515_v3, 3  ;;  %v1998_v58 = vrot.slane %v18513_v24, 4  ;;  %v1542_v12 = vsel %vm15610_vm5, %v1538_v61, %v1541_v55  ;;  %v15186_v3 = vld [vmem:[#allocation4 + $0x8] sm:$0xf0] }
 0x174   :  { %13397 = vmatmul.mubr.bf16.gmra.mrb[40].mxu1 %v3971_v44  ;;  %v1702_v44 = vld [vmem:[#allocation3 + $0x1e0] ss:$2 sm:$0xff]  ;;  %1543 = vst [vmem:[#allocation4 + $0x48] sm:$0xf0] %v1542_v12  ;;  %v2007_v9 = vrot.slane %v2005_v6, 4  ;;  %v18523_v55 = vshll.u32 %v15916_v41, 16 }
 0x175   :  { %13400 = vmatprep.mubr.bf16.mxu1 %v3973_v60  ;;  %13415 = vmatpush3.bf16.msra.mxu1 %v14851_v50  ;;  %v14855_v50 = vld [vmem:[%s18498_s3 + $0x38] sm:$0xff]   ;;  %v1704_v60 = vld [vmem:[#allocation3 + $0x1e1] ss:$2 sm:$0xff]  ;;  %v4145_v24 = vsel %vm1947_vm7, %v4136_v22, %v4144_v30  ;;  %v1999_v34 = vor.u32 %v1998_v58, %v1995_v1  ;;  %v2004_v22 = vrot.slane %v2002_v38, 3  ;;  %v2023_v12 = vshll.u32 %v15910_v32, 16 }
 0x176   :  { %13416 = vmatprep.subr.bf16.mxu1 %v14853_v31  ;;  %v14848_v58 = vld [vmem:[%s18498_s3 + $0xa0] sm:$0xff]   ;;  %v4380_v62 = vshrl.u32 %v15798_v42, 16  ;;  %v18568_v7 = vshrl.u32 %v15842_v14, 16  ;;  %v18569_v29 = vshll.u32 %v15842_v14, 16  ;;  %v2228_v14 = vrot.slane %v2002_v38, 4  ;;  %v14871_v38 = vld [vmem:[%s18498_s3 + $0xb8] sm:$0xff]  }
 0x179   :  { %13133 = vmatmul.mubr.bf16.vlgmr.msra.gmra.mrb[32].mxu0 %v1973_v5  ;;  %v1990_v5 = vor.u32 %v1989_v51, %v1986_v2  ;;  %13417 = vmatpush3.bf16.msra.mxu1 %v14853_v31  ;;  %v4149_v2 = vrot.slane %v18514_v52, 3  ;;  %v4152_v51 = vrot.slane %v18516_v15, 4  ;;  %v4158_v31 = vrot.slane %v18519_v37, 3 }
 0x17a   :  { %13136 = vmatprep.mubr.bf16.mxu0 %v1982_v45  ;;  %13149 = vmatpush3.bf16.msra.mxu0 %v15839_v11  ;;  %v18521_v45 = vshrl.u32 %v15879_v54, 16  ;;  %v18520_v11 = vshll.u32 %v15879_v54, 16  ;;  %v1705_v52 = vmax.f32 %v1702_v44, %v1704_v60  ;;  %v2201_v15 = vshrl.u32 %v15186_v3, 16 }
 0x17b   :  { %13150 = vmatprep.subr.bf16.mxu0 %v14842_v53  ;;  %13418 = vmatprep.subr.bf16.mxu1 %v14855_v50  ;;  %v2204_v37 = vshll.u32 %v15186_v3, 16  ;;  %v1991_v61 = vsel %vm1947_vm7, %v15974_v40, %v1990_v5  ;;  %v2000_v44 = vsel %vm1947_vm7, %v1990_v5, %v1999_v34  ;;  %v4162_v3 = vor.u32 %v4161_v18, %v4158_v31  ;;  %v2181_v33 = vld [vmem:[#allocation4 + $0x48] sm:$0x1f] }
 0x17c   :  { %13401 = vmatmul.mubr.bf16.gmra.mrb[44].mxu1 %v3975_v43  ;;  %v14846_v43 = vld [vmem:[%s18498_s3 + $0x98] sm:$0xff]   ;;  %v2013_v60 = vrot.slane %v18521_v45, 3  ;;  %v2016_v1 = vrot.slane %v18520_v11, 4  ;;  %v16044_v40 = vrot.slane %v2201_v15, 4  ;;  %v4174_v5 = vshrl.u32 %v15926_v57, 16 }
 0x17d   :  { %13420 = vmatprep.mubr.bf16.mxu1 %v4145_v24  ;;  %13419 = vmatpush3.bf16.msra.mxu1 %v14855_v50  ;;  %v18522_v24 = vshrl.u32 %v15916_v41, 16  ;;  %v1706_v50 = vpack.c.bf16 %v1705_v52, %v1705_v52  ;;  %v14859_v52 = vld [vmem:[%s18498_s3 + $0x88] sm:$0xff]   ;;  %v2008_v18 = vor.u32 %v2007_v9, %v2004_v22  ;;  %v16064_v11 = vrot.slane %v2204_v37, 5 }
 0x17e   :  { %13151 = vmatpush3.bf16.msra.mxu0 %v14842_v53  ;;  %v4153_v53 = vor.u32 %v4152_v51, %v4149_v2  ;;  %13436 = vmatprep.subr.bf16.mxu1 %v14857_v35  ;;  %v2020_v2 = vshrl.u32 %v15910_v32, 16  ;;  %v4177_v51 = vshll.u32 %v15926_v57, 16  ;;  %v4176_v37 = vrot.slane %v4174_v5, 3  ;;  %v14868_v57 = vld [vmem:[%s18498_s3 + $0xf0] sm:$0xff]  }
 0x17f   :  { %13152 = vmatprep.subr.bf16.mxu0 %v14844_v16  ;;  %v4167_v15 = vrot.slane %v18522_v24, 3  ;;  %v1711_v45 = vshll.u32 %v1706_v50, 16  ;;  %v2208_v24 = vrot.slane %v1957_v27, 4  ;;  %v2009_v9 = vsel %vm1947_vm7, %v1999_v34, %v2008_v18 }
 0x180   :  { %v4154_v31 = vsel %vm1947_vm7, %v4144_v30, %v4153_v53  ;;  %v4163_v32 = vsel %vm1947_vm7, %v4153_v53, %v4162_v3  ;;  %v1708_v30 = vshrl.u32 %v1706_v50, 16  ;;  %v4179_v22 = vrot.slane %v4177_v51, 4 }
 0x181   :  { %13137 = vmatmul.mubr.bf16.gmra.mrb[36].mxu0 %v1991_v61  ;;  %v2017_v61 = vor.u32 %v2016_v1, %v2013_v60  ;;  %v2022_v53 = vrot.slane %v2020_v2, 3  ;;  %v2025_v60 = vrot.slane %v2023_v12, 4  ;;  %v4183_v27 = vshrl.u32 %v15939_v0, 16 }
 0x182   :  { %13140 = vmatprep.mubr.bf16.mxu0 %v2000_v44  ;;  %13153 = vmatpush3.bf16.msra.mxu0 %v14844_v16  ;;  %v4170_v16 = vrot.slane %v18523_v55, 4  ;;  %v14850_v44 = vld [vmem:[%s18498_s3 + $0xa8] sm:$0xff]   ;;  %v2209_v55 = vrot.slane %v1960_v8, 5  ;;  %v4192_v34 = vshrl.u32 %v15945_v4, 16  ;;  %v4195_v1 = vshll.u32 %v15945_v4, 16 }
 0x183   :  { %13154 = vmatprep.subr.bf16.mxu0 %v14846_v43  ;;  %v2018_v8 = vsel %vm1947_vm7, %v2008_v18, %v2017_v61  ;;  %v16084_v50 = vrot.slane %v1708_v30, 3  ;;  %v2207_v2 = vor.u32 %v16064_v11, %v16044_v40  ;;  %v16088_v12 = vrot.slane %v1711_v45, 4 }
 0x184   :  { %13421 = vmatmul.mubr.bf16.vlgmr.msra.gmra.mrb[32].mxu1 %v4154_v31  ;;  %v14852_v31 = vld [vmem:[%s18498_s3 + $0xb0] sm:$0xff]   ;;  %v4180_v18 = vor.u32 %v4179_v22, %v4176_v37  ;;  %v2213_v45 = vrot.slane %v1969_v49, 5  ;;  %v4194_v46 = vrot.slane %v4192_v34, 3  ;;  %v4197_v49 = vrot.slane %v4195_v1, 4 }
 0x185   :  { %13424 = vmatprep.mubr.bf16.mxu1 %v4163_v32  ;;  %13437 = vmatpush3.bf16.msra.mxu1 %v14857_v35  ;;  %v4186_v35 = vshll.u32 %v15939_v0, 16  ;;  %v2026_v32 = vor.u32 %v2025_v60, %v2022_v53  ;;  %v4201_v30 = vshrl.u32 %v15977_v48, 16  ;;  %v1714_v37 = vor.u32 %v16088_v12, %v16084_v50  ;;  %v14879_v0 = vld [vmem:[%s18498_s3 + $0xd8] sm:$0xff]  }
 0x186   :  { %13155 = vmatpush3.bf16.msra.mxu0 %v14846_v43  ;;  %13438 = vmatprep.subr.bf16.mxu1 %v14859_v52  ;;  %v4171_v43 = vor.u32 %v4170_v16, %v4167_v15  ;;  %v16093_v15 = vor.u32 %v2209_v55, %v2208_v24  ;;  %v2212_v16 = vrot.slane %v1966_v23, 4  ;;  %v4185_v24 = vrot.slane %v4183_v27, 3  ;;  %v14854_v23 = vld [vmem:[%s18498_s3 + $0xb8] sm:$0xff]  }
 0x187   :  { %13156 = vmatprep.subr.bf16.mxu0 %v14848_v58  ;;  %v4188_v40 = vrot.slane %v4186_v35, 4  ;;  %v2027_v22 = vsel %vm1947_vm7, %v2017_v61, %v2026_v32  ;;  %v4198_v53 = vor.u32 %v4197_v49, %v4194_v46  ;;  %v4383_v60 = vshll.u32 %v15798_v42, 16  ;;  %v1544_v61 = vld [vmem:[#allocation4 + $0x50] sm:$0x1] }
 0x188   :  { %v4172_v11 = vsel %vm1947_vm7, %v4162_v3, %v4171_v43  ;;  %v4181_v55 = vsel %vm1947_vm7, %v4171_v43, %v4180_v18  ;;  %v2216_v3 = vrot.slane %v1975_v39, 4  ;;  %v14865_v39 = vld [vmem:[%s18498_s3 + $0xa0] sm:$0xff]   ;;  %v2414_v43 = vld [vmem:[#allocation4 + $0x10] sm:$0xf8]  ;;  %v4203_v32 = vrot.slane %v4201_v30, 3 }
 0x189   :  { %13141 = vmatmul.mubr.bf16.gmra.mrb[40].mxu0 %v2009_v9  ;;  %13439 = vmatpush3.bf16.msra.mxu1 %v14859_v52  ;;  %v2217_v52 = vrot.slane %v1978_v19, 5  ;;  %v4204_v9 = vshll.u32 %v15977_v48, 16  ;;  %v2211_v19 = vsel %vm2199_vm8, %v2207_v2, %v16093_v15  ;;  %v14856_v48 = vld [vmem:[%s18498_s3 + $0xc0] sm:$0xff]   ;;  %v14867_v2 = vld [vmem:[%s18498_s3 + $0xa8] sm:$0xff]   ;;  %v18567_v49 = vshll.u32 %v15849_v28, 16 }
 0x18a   :  { %13144 = vmatprep.mubr.bf16.mxu0 %v2018_v8  ;;  %13157 = vmatpush3.bf16.msra.mxu0 %v14848_v58  ;;  %v14863_v58 = vld [vmem:[%s18498_s3 + $0x98] sm:$0xff]   ;;  %v2214_v8 = vor.u32 %v2213_v45, %v2212_v16  ;;  %v1545_v16 = vsel %vm15585_vm2, %v15960_v63, %v1544_v61  ;;  %v14869_v63 = vld [vmem:[%s18498_s3 + $0xb0] sm:$0xff]   ;;  %v18570_v61 = vshrl.u32 %v15879_v54, 16 }
 0x18b   :  { %13158 = vmatprep.subr.bf16.mxu0 %v14850_v44  ;;  %13440 = vmatprep.subr.bf16.mxu1 %v14861_v20  ;;  %v16134_v12 = vor.u32 %v2217_v52, %v2216_v3  ;;  %1546 = vst [vmem:[#allocation4 + $0x50] sm:$0x1] %v1545_v16  ;;  %v2221_v3 = vrot.slane %v18567_v49, 5  ;;  %v2225_v52 = vrot.slane %v18569_v29, 5  ;;  %v18575_v49 = vshll.u32 %v15855_v21, 16 }
 0x18c   :  { %13425 = vmatmul.mubr.bf16.gmra.mrb[36].mxu1 %v4172_v11  ;;  %v4206_v11 = vrot.slane %v4204_v9, 4  ;;  %v2444_v9 = vshll.u32 %v2414_v43, 16 }
 0x18d   :  { %13428 = vmatprep.mubr.bf16.mxu1 %v4181_v55  ;;  %13441 = vmatpush3.bf16.msra.mxu1 %v14861_v20  ;;  %v1717_v20 = vld [vmem:[#allocation4 + $0xc8] sm:$0xf0]  ;;  %v4387_v55 = vrot.slane %v4138_v56, 4  ;;  %v2220_v56 = vrot.slane %v1984_v25, 4  ;;  %v2215_v25 = vsel %vm2199_vm8, %v16093_v15, %v2214_v8  ;;  %v2219_v28 = vsel %vm2199_vm8, %v2214_v8, %v16134_v12 }
 0x18e   :  { %13159 = vmatpush3.bf16.msra.mxu0 %v14850_v44  ;;  %13442 = vmatprep.subr.bf16.mxu1 %v14863_v58  ;;  %v4189_v44 = vor.u32 %v4188_v40, %v4185_v24  ;;  %v16139_v24 = vld [vmem:[#allocation4 + $0x18] sm:$0xff]  ;;  %v4385_v40 = vrot.slane %v4383_v60, 5  ;;  %v1718_v46 = vsel %vm15610_vm5, %v1714_v37, %v1717_v20  ;;  %v4207_v30 = vor.u32 %v4206_v11, %v4203_v32  ;;  %vm17883_vm5 = vmand %vm8468_vm3, %vm8469_vm4 }
 0x18f   :  { %13160 = vmatprep.subr.bf16.mxu0 %v14852_v31  ;;  %1719 = vst [vmem:[#allocation4 + $0xc8] sm:$0xf0] %v1718_v46  ;;  %v2449_v37 = vshrl.u32 %v16139_v24, 16  ;;  %v2229_v15 = vrot.slane %v2005_v6, 5  ;;  %v18571_v20 = vshll.u32 %v15879_v54, 16  ;;  %v2446_v32 = vrot.slane %v2444_v9, 4 }
 0x190   :  { %v4190_v42 = vsel %vm1947_vm7, %v4180_v18, %v4189_v44  ;;  %v4199_v45 = vsel %vm1947_vm7, %v4189_v44, %v4198_v53  ;;  %v4388_v18 = vrot.slane %v4141_v13, 5  ;;  %v2224_v13 = vrot.slane %v18568_v7, 4  ;;  %v14860_v44 = vld [vmem:[%s18498_s3 + $0xd0] sm:$0xff]  }
 0x191   :  { %13145 = vmatmul.mubr.bf16.gmra.mrb[44].mxu0 %v2027_v22  ;;  %13443 = vmatpush3.bf16.msra.mxu1 %v14863_v58  ;;  %v14858_v58 = vld [vmem:[%s18498_s3 + $0xc8] sm:$0xff]   ;;  %v2452_v22 = vshll.u32 %v16139_v24, 16  ;;  %v2233_v8 = vrot.slane %v18571_v20, 5  ;;  %v4208_v6 = vsel %vm1947_vm7, %v4198_v53, %v4207_v30  ;;  %v2451_v11 = vrot.slane %v2449_v37, 3  ;;  %v16210_v7 = vld [vmem:[#allocation4 + $0x30] sm:$0xff] }
 0x192   :  { %13161 = vmatpush3.bf16.msra.mxu0 %v14852_v31  ;;  %13164 = vmatprep.mubr.bf16.mxu0 %v2211_v19  ;;  %v4382_v31 = vrot.slane %v4380_v62, 4  ;;  %v16172_v19 = vor.u32 %v4388_v18, %v4387_v55  ;;  %v2226_v60 = vor.u32 %v2225_v52, %v2224_v13  ;;  %v18573_v53 = vshll.u32 %v15845_v17, 16  ;;  %v16204_v18 = vld [vmem:[#allocation4 + $0x28] sm:$0xff] }
 0x193   :  { %13162 = vmatprep.subr.bf16.mxu0 %v14854_v23  ;;  %13444 = vmatprep.subr.bf16.mxu1 %v14865_v39  ;;  %v2454_v54 = vrot.slane %v2452_v22, 4  ;;  %v18574_v46 = vshrl.u32 %v15855_v21, 16  ;;  %v2240_v13 = vshll.u32 %v2181_v33, 16  ;;  %v14873_v21 = vld [vmem:[%s18498_s3 + $0xc0] sm:$0xff]  }
 0x194   :  { %13429 = vmatmul.mubr.bf16.gmra.mrb[40].mxu1 %v4190_v42  ;;  %v4386_v62 = vor.u32 %v4385_v40, %v4382_v31  ;;  %v16191_v42 = vld [vmem:[#allocation4 + $0x20] sm:$0xff]  ;;  %v18572_v31 = vshrl.u32 %v15845_v17, 16  ;;  %v4392_v16 = vrot.slane %v18573_v53, 5  ;;  %v2230_v40 = vor.u32 %v2229_v15, %v2228_v14 }
 0x195   :  { %13432 = vmatprep.mubr.bf16.mxu1 %v4199_v45  ;;  %13445 = vmatpush3.bf16.msra.mxu1 %v14865_v39  ;;  %v2222_v39 = vor.u32 %v2221_v3, %v2220_v56  ;;  %v14862_v45 = vld [vmem:[%s18498_s3 + $0xd8] sm:$0xff]   ;;  %v4395_v56 = vrot.slane %v18574_v46, 4  ;;  %v4396_v3 = vrot.slane %v18575_v49, 5  ;;  %v2237_v17 = vshrl.u32 %v2181_v33, 16  ;;  %v1720_v33 = vld [vmem:[#allocation4 + $0xd0] sm:$0x1] }
 0x196   :  { %13163 = vmatpush3.bf16.msra.mxu0 %v14854_v23  ;;  %v2441_v23 = vshrl.u32 %v2414_v43, 16  ;;  %13446 = vmatprep.subr.bf16.mxu1 %v14867_v2  ;;  %v2232_v43 = vrot.slane %v18570_v61, 4  ;;  %v4391_v55 = vrot.slane %v18572_v31, 4  ;;  %v2461_v29 = vshll.u32 %v16191_v42, 16  ;;  %v14866_v31 = vld [vmem:[%s18498_s3 + $0xe8] sm:$0xff]  }
 0x197   :  { %13180 = vmatprep.subr.bf16.mxu0 %v14856_v48  ;;  %v2223_v52 = vsel %vm2199_vm8, %v16134_v12, %v2222_v39  ;;  %v16223_v9 = vor.u32 %v2454_v54, %v2451_v11  ;;  %v14864_v12 = vld [vmem:[%s18498_s3 + $0xe0] sm:$0xff]   ;;  %v2467_v14 = vshrl.u32 %v16204_v18, 16  ;;  %v2470_v15 = vshll.u32 %v16204_v18, 16 }
 0x198   :  { %v16221_v30 = vor.u32 %v2233_v8, %v2232_v43  ;;  %v2239_v61 = vrot.slane %v2237_v17, 4  ;;  %v2242_v43 = vrot.slane %v2240_v13, 5  ;;  %v14875_v8 = vld [vmem:[%s18498_s3 + $0xc8] sm:$0xff]   ;;  %v18577_v11 = vshll.u32 %v15916_v41, 16 }
 0x199   :  { %13165 = vmatmul.mubr.bf16.vlgmr.msra.gmra.mrb[32].mxu0 %v2215_v25  ;;  %13447 = vmatpush3.bf16.msra.mxu1 %v14867_v2  ;;  %v4390_v2 = vsel %vm2199_vm8, %v4386_v62, %v16172_v19  ;;  %v2231_v25 = vsel %vm2199_vm8, %v2226_v60, %v2230_v40  ;;  %v16225_v62 = vld [vmem:[#allocation4 + $0x38] sm:$0xff]  ;;  %v2472_v46 = vrot.slane %v2470_v15, 4  ;;  %v4403_v13 = vrot.slane %v4174_v5, 4 }
 0x19a   :  { %13168 = vmatprep.mubr.bf16.mxu0 %v2219_v28  ;;  %13181 = vmatpush3.bf16.msra.mxu0 %v14856_v48  ;;  %v2443_v48 = vrot.slane %v2441_v23, 3  ;;  %v2227_v23 = vsel %vm2199_vm8, %v2222_v39, %v2226_v60  ;;  %v4393_v28 = vor.u32 %v4392_v16, %v4391_v55  ;;  %v16232_v39 = vor.u32 %v4396_v3, %v4395_v56 }
 0x19b   :  { %13182 = vmatprep.subr.bf16.mxu0 %v14858_v58  ;;  %13448 = vmatprep.subr.bf16.mxu1 %v14869_v63  ;;  %v2476_v60 = vshrl.u32 %v16210_v7, 16  ;;  %v2485_v54 = vshrl.u32 %v16225_v62, 16  ;;  %v2488_v16 = vshll.u32 %v16225_v62, 16  ;;  %v2243_v3 = vor.u32 %v2242_v43, %v2239_v61 }
 0x19c   :  { %13433 = vmatmul.mubr.bf16.gmra.mrb[44].mxu1 %v4208_v6  ;;  %v2479_v6 = vshll.u32 %v16210_v7, 16  ;;  %v4394_v53 = vsel %vm2199_vm8, %v16172_v19, %v4393_v28  ;;  %v4398_v56 = vsel %vm2199_vm8, %v4393_v28, %v16232_v39  ;;  %v16272_v19 = vld [vmem:[#allocation4 + $0x48] sm:$0xff]  ;;  %v1721_v61 = vsel %vm15585_vm2, %v16084_v50, %v1720_v33 }
 0x19d   :  { %13452 = vmatprep.mubr.bf16.mxu1 %v4390_v2  ;;  %13449 = vmatpush3.bf16.msra.mxu1 %v14869_v63  ;;  %v2447_v63 = vor.u32 %v2446_v32, %v2443_v48  ;;  %v18576_v48 = vshrl.u32 %v15916_v41, 16  ;;  %v2235_v2 = vsel %vm2199_vm8, %v2230_v40, %v16221_v30  ;;  %v16260_v41 = vld [vmem:[#allocation4 + $0x40] sm:$0xff]  ;;  %v2469_v40 = vrot.slane %v2467_v14, 3  ;;  %1722 = vst [vmem:[#allocation4 + $0xd0] sm:$0x1] %v1721_v61 }
 0x19e   :  { %13183 = vmatpush3.bf16.msra.mxu0 %v14858_v58  ;;  %v2458_v58 = vshrl.u32 %v16191_v42, 16  ;;  %13450 = vmatprep.subr.bf16.mxu1 %v14871_v38  ;;  %v16270_v49 = vrot.slane %v2476_v60, 3  ;;  %v16289_v28 = vrot.slane %v2485_v54, 3  ;;  %v16299_v5 = vrot.slane %v2488_v16, 4  ;;  %v16378_v61 = vld [vmem:[#allocation4 + $0xa0] sm:$0xff] }
 0x19f   :  { %13184 = vmatprep.subr.bf16.mxu0 %v14860_v44  ;;  %v4399_v32 = vrot.slane %v18576_v48, 4  ;;  %v16255_v55 = vsel %vm1947_vm7, %v2447_v63, %v16223_v9  ;;  %v4407_v43 = vrot.slane %v4183_v27, 4  ;;  %v4408_v50 = vrot.slane %v4186_v35, 5 }
 0x1a0   :  { %v2460_v20 = vrot.slane %v2458_v58, 3  ;;  %v2929_v33 = vrot.slane %v2452_v22, 5  ;;  %v2506_v35 = vshll.u32 %v16272_v19, 16  ;;  %v2244_v22 = vsel %vm2199_vm8, %v16221_v30, %v2243_v3 }
 0x1a1   :  { %13169 = vmatmul.mubr.bf16.gmra.mrb[36].mxu0 %v2223_v52  ;;  %13451 = vmatpush3.bf16.msra.mxu1 %v14871_v38  ;;  %v4400_v38 = vrot.slane %v18577_v11, 5  ;;  %v4404_v52 = vrot.slane %v4177_v51, 5  ;;  %v2494_v51 = vshrl.u32 %v16260_v41, 16  ;;  %v2932_v11 = vrot.slane %v2458_v58, 4  ;;  %v14870_v58 = vld [vmem:[%s18498_s3 + $0xf8] sm:$0xff]  }
 0x1a2   :  { %13172 = vmatprep.mubr.bf16.mxu0 %v2227_v23  ;;  %13185 = vmatpush3.bf16.msra.mxu0 %v14860_v44  ;;  %v2463_v44 = vrot.slane %v2461_v29, 4  ;;  %v16285_v23 = vrot.slane %v2479_v6, 4  ;;  %v4412_v30 = vrot.slane %v4195_v1, 5  ;;  %v2940_v4 = vrot.slane %v2476_v60, 4 }
 0x1a3   :  { %13186 = vmatprep.subr.bf16.mxu0 %v14862_v45  ;;  %13468 = vmatprep.subr.bf16.mxu1 %v14873_v21  ;;  %v4401_v63 = vor.u32 %v4400_v38, %v4399_v32  ;;  %v16319_v48 = vor.u32 %v4404_v52, %v4403_v13  ;;  %v16329_v32 = vld [vmem:[#allocation4 + $0x90] sm:$0xf8]  ;;  %v2933_v38 = vrot.slane %v2461_v29, 5  ;;  %v2473_v1 = vor.u32 %v2472_v46, %v2469_v40  ;;  %v14872_v40 = vld [vmem:[%s18498_s3 + $0x100] sm:$0xff]  }
 0x1a4   :  { %13453 = vmatmul.mubr.bf16.vlgmr.msra.gmra.mrb[32].mxu1 %v4394_v53  ;;  %v16274_v17 = vor.u32 %v2463_v44, %v2460_v20  ;;  %v16305_v20 = vld [vmem:[#allocation4 + $0x98] sm:$0xff]  ;;  %v2928_v44 = vrot.slane %v2449_v37, 4  ;;  %v4411_v37 = vrot.slane %v4192_v34, 4  ;;  %v2944_v60 = vrot.slane %v2485_v54, 4 }
 0x1a5   :  { %13456 = vmatprep.mubr.bf16.mxu1 %v4398_v56  ;;  %13469 = vmatpush3.bf16.msra.mxu1 %v14873_v21  ;;  %v2497_v21 = vshll.u32 %v16260_v41, 16  ;;  %v4406_v34 = vsel %vm2199_vm8, %v4401_v63, %v16319_v48  ;;  %v4627_v29 = vshrl.u32 %v16305_v20, 16  ;;  %v16349_v53 = vor.u32 %v2933_v38, %v2932_v11 }
 0x1a6   :  { %13187 = vmatpush3.bf16.msra.mxu0 %v14862_v45  ;;  %v14877_v45 = vld [vmem:[%s18498_s3 + $0xd0] sm:$0xff]   ;;  %13470 = vmatprep.subr.bf16.mxu1 %v14875_v8  ;;  %v16317_v27 = vsel %vm1947_vm7, %v16223_v9, %v16274_v17  ;;  %v16331_v9 = vor.u32 %v2929_v33, %v2928_v44  ;;  %v2941_v56 = vrot.slane %v2479_v6, 5  ;;  %v14881_v6 = vld [vmem:[%s18498_s3 + $0xe0] sm:$0xff]   ;;  %v16371_v46 = vor.u32 %v4412_v30, %v4411_v37  ;;  %v16395_v37 = vld [vmem:[#allocation4 + $0xa8] sm:$0xff] }
 0x1a7   :  { %13188 = vmatprep.subr.bf16.mxu0 %v14864_v12  ;;  %18578 = vst [vmem:[#allocation16_spill] sm:$0xff] %v16349_v53  ;;  %v4619_v52 = vshrl.u32 %v16329_v32, 16  ;;  %v4622_v54 = vshll.u32 %v16329_v32, 16  ;;  %v2948_v44 = vrot.slane %v2494_v51, 4 }
 0x1a8   :  { %v16361_v13 = vsel %vm2199_vm8, %v16331_v9, %v16349_v53 }
 0x1a9   :  { %13173 = vmatmul.mubr.bf16.gmra.mrb[40].mxu0 %v2231_v25  ;;  %v2503_v25 = vshrl.u32 %v16272_v19, 16  ;;  %13471 = vmatpush3.bf16.msra.mxu1 %v14875_v8  ;;  %v2936_v8 = vrot.slane %v2467_v14, 4  ;;  %v4409_v14 = vor.u32 %v4408_v50, %v4407_v43  ;;  %v2945_v50 = vrot.slane %v2488_v16, 5 }
 0x1aa   :  { %13176 = vmatprep.mubr.bf16.mxu0 %v2235_v2  ;;  %13189 = vmatpush3.bf16.msra.mxu0 %v14864_v12  ;;  %v4362_v12 = vld [vmem:[#allocation4 + $0xc8] sm:$0x1f]  ;;  %v4402_v2 = vsel %vm2199_vm8, %v16232_v39, %v4401_v63  ;;  %v2937_v39 = vrot.slane %v2470_v15, 5  ;;  %v16374_v63 = vor.u32 %v2941_v56, %v2940_v4  ;;  %v2949_v16 = vrot.slane %v2497_v21, 5 }
 0x1ab   :  { %13190 = vmatprep.subr.bf16.mxu0 %v14866_v31  ;;  %13472 = vmatprep.subr.bf16.mxu1 %v14877_v45  ;;  %v4416_v3 = vshrl.u32 %v4362_v12, 16  ;;  %v2946_v11 = vor.u32 %v2945_v50, %v2944_v60  ;;  %v2952_v38 = vrot.slane %v2503_v25, 4  ;;  %v4639_v56 = vshll.u32 %v16378_v61, 16  ;;  %v14885_v50 = vld [vmem:[%s18498_s3 + $0xf0] sm:$0xff]  }
 0x1ac   :  { %13457 = vmatmul.mubr.bf16.gmra.mrb[36].mxu1 %v4402_v2  ;;  %v2938_v15 = vor.u32 %v2937_v39, %v2936_v8  ;;  %v14874_v2 = vld [vmem:[%s18498_s3 + $0x108] sm:$0xff]   ;;  %v16414_v8 = vor.u32 %v2949_v16, %v2948_v44  ;;  %v4624_v39 = vrot.slane %v4622_v54, 4  ;;  %v16447_v44 = vld [vmem:[#allocation4 + $0xb0] sm:$0xff] }
 0x1ad   :  { %13460 = vmatprep.mubr.bf16.mxu1 %v4406_v34  ;;  %13473 = vmatpush3.bf16.msra.mxu1 %v14877_v45  ;;  %v4419_v45 = vshll.u32 %v4362_v12, 16  ;;  %v4418_v32 = vrot.slane %v4416_v3, 4  ;;  %v4410_v34 = vsel %vm2199_vm8, %v16319_v48, %v4409_v14  ;;  %v16422_v4 = vsel %vm2199_vm8, %v16374_v63, %v2946_v11 }
 0x1ae   :  { %13191 = vmatpush3.bf16.msra.mxu0 %v14866_v31  ;;  %v4630_v31 = vshll.u32 %v16305_v20, 16  ;;  %13474 = vmatprep.subr.bf16.mxu1 %v14879_v0  ;;  %v16382_v43 = vsel %vm2199_vm8, %v16349_v53, %v2938_v15  ;;  %v16399_v12 = vsel %vm2199_vm8, %v2938_v15, %v16374_v63  ;;  %v4636_v48 = vshrl.u32 %v16378_v61, 16 }
 0x1af   :  { %13192 = vmatprep.subr.bf16.mxu0 %v14868_v57  ;;  %v4421_v30 = vrot.slane %v4419_v45, 5  ;;  %v16428_v3 = vsel %vm2199_vm8, %v2946_v11, %v16414_v8  ;;  %v4645_v45 = vshrl.u32 %v16395_v37, 16 }
 0x1b0   :  { %v4632_v33 = vrot.slane %v4630_v31, 4  ;;  %v4638_v16 = vrot.slane %v4636_v48, 3 }
 0x1b1   :  { %13177 = vmatmul.mubr.bf16.gmra.mrb[44].mxu0 %v2244_v22  ;;  %v16405_v22 = vor.u32 %v16285_v23, %v16270_v49  ;;  %13475 = vmatpush3.bf16.msra.mxu1 %v14879_v0  ;;  %v2953_v49 = vrot.slane %v2506_v35, 5  ;;  %v4414_v23 = vsel %vm2199_vm8, %v4409_v14, %v16371_v46  ;;  %v4621_v0 = vrot.slane %v4619_v52, 3 }
 0x1b2   :  { %13193 = vmatpush3.bf16.msra.mxu0 %v14868_v57  ;;  %13196 = vmatprep.mubr.bf16.mxu0 %v16255_v55  ;;  %v14883_v57 = vld [vmem:[%s18498_s3 + $0xe8] sm:$0xff]   ;;  %v4629_v55 = vrot.slane %v4627_v29, 3  ;;  %v2474_v14 = vsel %vm1947_vm7, %v16274_v17, %v2473_v1  ;;  %v16442_v52 = vor.u32 %v16299_v5, %v16289_v28  ;;  %v4422_v54 = vor.u32 %v4421_v30, %v4418_v32 }
 0x1b3   :  { %13194 = vmatprep.subr.bf16.mxu0 %v14870_v58  ;;  %13476 = vmatprep.subr.bf16.mxu1 %v14881_v6  ;;  %v2483_v15 = vsel %vm1947_vm7, %v2473_v1, %v16405_v22  ;;  %v4625_v28 = vor.u32 %v4624_v39, %v4621_v0  ;;  %v4648_v5 = vshll.u32 %v16395_v37, 16  ;;  %v4641_v32 = vrot.slane %v4639_v56, 4 }
 0x1b4   :  { %13461 = vmatmul.mubr.bf16.gmra.mrb[40].mxu1 %v4410_v34  ;;  %v16436_v60 = vor.u32 %v4632_v33, %v4629_v55  ;;  %v14876_v55 = vld [vmem:[%s18498_s3 + $0x110] sm:$0xff]   ;;  %v2499_v33 = vrot.slane %v2497_v21, 4  ;;  %v5108_v34 = vrot.slane %v4636_v48, 4  ;;  %v4423_v30 = vsel %vm2199_vm8, %v16371_v46, %v4422_v54  ;;  %v14887_v21 = vld [vmem:[%s18498_s3 + $0xf8] sm:$0xff]  }
 0x1b5   :  { %13464 = vmatprep.mubr.bf16.mxu1 %v4414_v23  ;;  %13477 = vmatpush3.bf16.msra.mxu1 %v14881_v6  ;;  %v5104_v6 = vrot.slane %v4627_v29, 4  ;;  %v4647_v29 = vrot.slane %v4645_v45, 3  ;;  %v16477_v23 = vld [vmem:[#allocation4 + $0xc0] sm:$0xff]  ;;  %v4650_v0 = vrot.slane %v4648_v5, 4  ;;  %v5112_v48 = vrot.slane %v4645_v45, 4  ;;  %v14878_v54 = vld [vmem:[%s18498_s3 + $0x118] sm:$0xff]  }
 0x1b6   :  { %13195 = vmatpush3.bf16.msra.mxu0 %v14870_v58  ;;  %v16430_v58 = vor.u32 %v2953_v49, %v2952_v38  ;;  %13478 = vmatprep.subr.bf16.mxu1 %v14883_v57  ;;  %v4634_v11 = vsel %vm1947_vm7, %v4625_v28, %v16436_v60  ;;  %v4654_v38 = vshrl.u32 %v16447_v44, 16  ;;  %v4657_v49 = vshll.u32 %v16447_v44, 16 }
 0x1b7   :  { %13212 = vmatprep.subr.bf16.mxu0 %v14872_v40  ;;  %v2492_v46 = vsel %vm1947_vm7, %v16405_v22, %v16442_v52  ;;  %v18526_v45 = vshrl.u32 %v16477_v23, 16  ;;  %v2505_v39 = vrot.slane %v2503_v25, 3  ;;  %v4651_v25 = vor.u32 %v4650_v0, %v4647_v29 }
 0x1b8   :  { %v16452_v1 = vsel %vm2199_vm8, %v16414_v8, %v16430_v58 }
 0x1b9   :  { %13197 = vmatmul.mubr.bf16.vlgmr.msra.gmra.mrb[32].mxu0 %v16317_v27  ;;  %v2496_v27 = vrot.slane %v2494_v51, 3  ;;  %v5105_v51 = vrot.slane %v4630_v31, 5  ;;  %13479 = vmatpush3.bf16.msra.mxu1 %v14883_v57  ;;  %v5109_v57 = vrot.slane %v4639_v56, 5  ;;  %v5124_v0 = vrot.slane %v18526_v45, 4 }
 0x1ba   :  { %13200 = vmatprep.mubr.bf16.mxu0 %v2474_v14  ;;  %13213 = vmatpush3.bf16.msra.mxu0 %v14872_v40  ;;  %v16464_v40 = vld [vmem:[#allocation4 + $0xb8] sm:$0xff]  ;;  %v5113_v14 = vrot.slane %v4648_v5, 5  ;;  %v14891_v5 = vld [vmem:[%s18498_s3 + $0x108] sm:$0xff]  }
 0x1bb   :  { %13214 = vmatprep.subr.bf16.mxu0 %v14874_v2  ;;  %13480 = vmatprep.subr.bf16.mxu1 %v14885_v50  ;;  %v16479_v31 = vor.u32 %v5105_v51, %v5104_v6  ;;  %v16488_v28 = vor.u32 %v2499_v33, %v2496_v27  ;;  %v16491_v56 = vor.u32 %v5109_v57, %v5108_v34  ;;  %v16495_v6 = vld [vmem:[#allocation4 + $0xc8] sm:$0xff]  ;;  %v2508_v27 = vrot.slane %v2506_v35, 4  ;;  %v16501_v33 = vld [vmem:[#allocation4 + $0x50] sm:$0xf] }
 0x1bc   :  { %13465 = vmatmul.mubr.bf16.gmra.mrb[44].mxu1 %v4423_v30  ;;  %v5114_v51 = vor.u32 %v5113_v14, %v5112_v48  ;;  %v5116_v30 = vrot.slane %v4654_v38, 4  ;;  %v5117_v34 = vrot.slane %v4657_v49, 5  ;;  %v18581_v57 = vshrl.u32 %v16464_v40, 16  ;;  %v14880_v14 = vld [vmem:[%s18498_s3 + $0x120] sm:$0xff]  }
 0x1bd   :  { %18579 = vst [vmem:[#allocation17_spill] sm:$0xff] %v16488_v28  ;;  %13484 = vmatprep.mubr.bf16.mxu1 %v4634_v11  ;;  %13481 = vmatpush3.bf16.msra.mxu1 %v14885_v50  ;;  %v14889_v50 = vld [vmem:[%s18498_s3 + $0x100] sm:$0xff]   ;;  %v16509_v11 = vsel %vm2199_vm8, %v16479_v31, %v16491_v56  ;;  %v2515_v29 = vshll.u32 %v16501_v33, 16  ;;  %v2509_v10 = vor.u32 %v2508_v27, %v2505_v39  ;;  %v14882_v27 = vld [vmem:[%s18498_s3 + $0x128] sm:$0xff]   ;;  %v18584_v59 = vshrl.u32 %v16464_v40, 16 }
 0x1be   :  { %13215 = vmatpush3.bf16.msra.mxu0 %v14874_v2  ;;  %v4666_v2 = vshll.u32 %v16464_v40, 16  ;;  %13482 = vmatprep.subr.bf16.mxu1 %v14887_v21  ;;  %v16515_v35 = vsel %vm2199_vm8, %v16491_v56, %v5114_v51  ;;  %v5120_v48 = vrot.slane %v18581_v57, 4  ;;  %v18582_v57 = vshll.u32 %v16477_v23, 16 }
 0x1bf   :  { %13216 = vmatprep.subr.bf16.mxu0 %v14876_v55 }
 0x1c0   :  { %v5125_v47 = vrot.slane %v18582_v57, 5  ;;  %v4656_v57 = vrot.slane %v4654_v38, 3 }
 0x1c1   :  { %13201 = vmatmul.mubr.bf16.gmra.mrb[36].mxu0 %v2483_v15  ;;  %v16511_v15 = vor.u32 %v4641_v32, %v4638_v16  ;;  %v5121_v16 = vrot.slane %v4666_v2, 5  ;;  %v2512_v32 = vshrl.u32 %v16501_v33, 16  ;;  %13483 = vmatpush3.bf16.msra.mxu1 %v14887_v21 }
 0x1c2   :  { %13204 = vmatprep.mubr.bf16.mxu0 %v2492_v46  ;;  %13217 = vmatpush3.bf16.msra.mxu0 %v14876_v55  ;;  %v4684_v46 = vshll.u32 %v16495_v6, 16  ;;  %v16524_v55 = vor.u32 %v5117_v34, %v5116_v30  ;;  %v16544_v39 = vor.u32 %v5125_v47, %v5124_v0  ;;  %v2501_v47 = vsel %vm1947_vm7, %v16442_v52, %v16488_v28 }
 0x1c3   :  { %18580 = vst [vmem:[#allocation18_spill] sm:$0xff] %v16511_v15  ;;  %13218 = vmatprep.subr.bf16.mxu0 %v14878_v54  ;;  %13500 = vmatprep.subr.bf16.mxu1 %v14889_v50  ;;  %v5122_v34 = vor.u32 %v5121_v16, %v5120_v48  ;;  %v4643_v21 = vsel %vm1947_vm7, %v16436_v60, %v16511_v15  ;;  %v18583_v48 = vshrl.u32 %v16495_v6, 16  ;;  %v2514_v38 = vrot.slane %v2512_v32, 3 }
 0x1c4   :  { %v16537_v30 = vsel %vm2199_vm8, %v5114_v51, %v16524_v55  ;;  %v4652_v45 = vsel %vm1947_vm7, %v16511_v15, %v4651_v25  ;;  %13485 = vmatmul.mubr.bf16.vlgmr.msra.gmra.mrb[32].mxu1 %v4643_v21  ;;  %v4659_v51 = vrot.slane %v4657_v49, 4  ;;  %v5129_v16 = vrot.slane %v4684_v46, 5 }
 0x1c5   :  { %v5128_v60 = vrot.slane %v18583_v48, 4  ;;  %v2517_v0 = vrot.slane %v2515_v29, 4  ;;  %13488 = vmatprep.mubr.bf16.mxu1 %v4652_v45  ;;  %13501 = vmatpush3.bf16.msra.mxu1 %v14889_v50  ;;  %v16560_v21 = vsel %vm2199_vm8, %v5122_v34, %v16544_v39  ;;  %v2510_v49 = vsel %vm1947_vm7, %v16488_v28, %v2509_v10  ;;  %v14893_v48 = vld [vmem:[%s18498_s3 + $0x110] sm:$0xff]  }
 0x1c6   :  { %13219 = vmatpush3.bf16.msra.mxu0 %v14878_v54  ;;  %v16551_v54 = vsel %vm2199_vm8, %v16524_v55, %v5122_v34  ;;  %13502 = vmatprep.subr.bf16.mxu1 %v14891_v5  ;;  %v4665_v52 = vrot.slane %v18584_v59, 3  ;;  %v4668_v32 = vrot.slane %v4666_v2, 4  ;;  %v14884_v45 = vld [vmem:[%s18498_s3 + $0x130] sm:$0xff]   ;;  %v16574_v50 = vor.u32 %v4659_v51, %v4656_v57 }
 0x1c7   :  { %13220 = vmatprep.subr.bf16.mxu0 %v14880_v14  ;;  %v16569_v29 = vor.u32 %v5129_v16, %v5128_v60  ;;  %v2717_v59 = vrot.slane %v16139_v24, 4  ;;  %v18587_v51 = vshrl.u32 %v16477_v23, 16  ;;  %v18588_v16 = vshll.u32 %v16477_v23, 16 }
 0x1c8   :  { %18586 = vst [vmem:[#allocation20_spill] sm:$0xff] %v16574_v50  ;;  %v4669_v2 = vor.u32 %v4668_v32, %v4665_v52  ;;  %v4661_v57 = vsel %vm1947_vm7, %v4651_v25, %v16574_v50  ;;  %v2716_v24 = vrot.slane %v16581_v36, 4  ;;  %v18589_v25 = vshrl.u32 %v16495_v6, 16 }
 0x1c9   :  { %13205 = vmatmul.mubr.bf16.gmra.mrb[40].mxu0 %v2501_v47  ;;  %18585 = vst [vmem:[#allocation19_spill] sm:$0xff] %v16569_v29  ;;  %v16579_v34 = vsel %vm2199_vm8, %v16544_v39, %v16569_v29  ;;  %v2518_v47 = vor.u32 %v2517_v0, %v2514_v38  ;;  %13503 = vmatpush3.bf16.msra.mxu1 %v14891_v5  ;;  %v4674_v60 = vrot.slane %v18587_v51, 3  ;;  %v4677_v38 = vrot.slane %v18588_v16, 4  ;;  %v16593_v0 = vld [vmem:[#allocation4 + $0xd0] sm:$0xf]  ;;  %v14886_v5 = vld [vmem:[%s18498_s3 + $0x138] sm:$0xff]  }
 0x1ca   :  { %13208 = vmatprep.mubr.bf16.mxu0 %v2510_v49  ;;  %13221 = vmatpush3.bf16.msra.mxu0 %v14880_v14  ;;  %v14895_v14 = vld [vmem:[%s18498_s3 + $0x118] sm:$0xff]   ;;  %v4683_v49 = vrot.slane %v18589_v25, 3  ;;  %v4686_v52 = vrot.slane %v4684_v46, 4  ;;  %v2718_v51 = vsel %vm1776_vm6, %v2716_v24, %v2717_v59  ;;  %v14897_v16 = vld [vmem:[%s18498_s3 + $0x120] sm:$0xff]   ;;  %v4693_v26 = vshll.u32 %v16593_v0, 16 }
 0x1cb   :  { %13222 = vmatprep.subr.bf16.mxu0 %v14882_v27  ;;  %13504 = vmatprep.subr.bf16.mxu1 %v14893_v48  ;;  %v2519_v32 = vsel %vm1947_vm7, %v2509_v10, %v2518_v47  ;;  %v16610_v25 = vor.u32 %v4677_v38, %v4674_v60  ;;  %v14888_v10 = vld [vmem:[%s18498_s3 + $0x140] sm:$0xff]   ;;  %v16618_v47 = vrot.slane %v16191_v42, 4  ;;  %v2721_v24 = vrot.slane %v16204_v18, 4  ;;  %v16628_v42 = vld [vmem:[#allocation4 + $0x38] sm:$0xff]  ;;  %v14890_v18 = vld [vmem:[%s18498_s3 + $0x148] sm:$0xff]  }
 0x1cc   :  { %13489 = vmatmul.mubr.bf16.gmra.mrb[36].mxu1 %v4661_v57  ;;  %v4690_v57 = vshrl.u32 %v16593_v0, 16  ;;  %v4687_v46 = vor.u32 %v4686_v52, %v4683_v49  ;;  %v4695_v38 = vrot.slane %v4693_v26, 4  ;;  %v16635_v26 = vld [vmem:[#allocation4 + $0x48] sm:$0xff] }
 0x1cd   :  { %13505 = vmatpush3.bf16.msra.mxu1 %v14893_v48  ;;  %18590 = vst [vmem:[#allocation21_spill] sm:$0xff] %v16610_v25  ;;  %v16615_v48 = vld [vmem:[#allocation4 + $0x28] sm:$0xff]  ;;  %18591 = vst [vmem:[#allocation22_spill] sm:$0xff] %v16618_v47 }
 0x1ce   :  { %13223 = vmatpush3.bf16.msra.mxu0 %v14882_v27  ;;  %v4670_v27 = vsel %vm1947_vm7, %v16574_v50, %v4669_v2  ;;  %13506 = vmatprep.subr.bf16.mxu1 %v14895_v14  ;;  %v4692_v60 = vrot.slane %v4690_v57, 3  ;;  %v18530_v49 = vshrl.u32 %v16615_v48, 16  ;;  %18592 = vst [vmem:[#allocation23_spill] sm:$0xff] %v16635_v26  ;;  %v14901_v57 = vld [vmem:[%s18498_s3 + $0x130] sm:$0xff]   ;;  %v18600_v50 = vshll.u32 %v16635_v26, 16 }
 0x1cf   :  { %13224 = vmatprep.subr.bf16.mxu0 %v14884_v45  ;;  %13492 = vmatprep.mubr.bf16.mxu1 %v4670_v27  ;;  %v4679_v27 = vsel %vm1947_vm7, %v4669_v2, %v16610_v25  ;;  %v2720_v2 = vsel %vm1776_vm6, %v2717_v59, %v16618_v47  ;;  %v16649_v59 = vld [vmem:[#allocation4 + $0x50] sm:$0xff] }
 0x1d0   :  { %v18604_v15 = vshll.u32 %v16649_v59, 16 }
 0x1d1   :  { %13209 = vmatmul.mubr.bf16.gmra.mrb[44].mxu0 %v2519_v32  ;;  %13507 = vmatpush3.bf16.msra.mxu1 %v14895_v14  ;;  %v4688_v14 = vsel %vm1947_vm7, %v16610_v25, %v4687_v46  ;;  %v16642_v32 = vrot.slane %v16210_v7, 4  ;;  %v16673_v25 = vld [vmem:[#allocation4 + $0xa8] sm:$0xff] }
 0x1d2   :  { %13225 = vmatpush3.bf16.msra.mxu0 %v14884_v45  ;;  %13228 = vmatprep.mubr.bf16.mxu0 %v2718_v51  ;;  %v14899_v45 = vld [vmem:[%s18498_s3 + $0x128] sm:$0xff]   ;;  %v4696_v51 = vor.u32 %v4695_v38, %v4692_v60  ;;  %v3652_v60 = vrot.slane %v18530_v49, 4  ;;  %v18594_v38 = vshll.u32 %v16615_v48, 16  ;;  %v16679_v49 = vld [vmem:[#allocation4 + $0xb8] sm:$0xff]  ;;  %v18547_v28 = vshrl.u32 %v16673_v25, 16 }
 0x1d3   :  { %13226 = vmatprep.subr.bf16.mxu0 %v14886_v5  ;;  %13508 = vmatprep.subr.bf16.mxu1 %v14897_v16  ;;  %18593 = vst [vmem:[#allocation24_spill] sm:$0xff] %v16642_v32  ;;  %v2724_v52 = vsel %vm1776_vm6, %v2721_v24, %v16642_v32  ;;  %v3673_v29 = vrot.slane %v18604_v15, 5  ;;  %v18550_v15 = vshll.u32 %v16679_v49, 16 }
 0x1d4   :  { %13493 = vmatmul.mubr.bf16.gmra.mrb[40].mxu1 %v4679_v27 }
 0x1d5   :  { %13496 = vmatprep.mubr.bf16.mxu1 %v4688_v14  ;;  %13509 = vmatpush3.bf16.msra.mxu1 %v14897_v16  ;;  %v16651_v14 = vld [vmem:[#allocation4 + $0x90] sm:$0xf0] }
 0x1d6   :  { %13227 = vmatpush3.bf16.msra.mxu0 %v14886_v5  ;;  %v2722_v5 = vsel %vm1776_vm6, %v16618_v47, %v2721_v24  ;;  %13510 = vmatprep.subr.bf16.mxu1 %v14899_v45  ;;  %v4893_v47 = vrot.slane %v16651_v14, 4  ;;  %v14903_v24 = vld [vmem:[%s18498_s3 + $0x138] sm:$0xff]  }
 0x1d7   :  { %13244 = vmatprep.subr.bf16.mxu0 %v14888_v10 }
 0x1d9   :  { %13229 = vmatmul.mubr.bf16.vlgmr.msra.gmra.mrb[32].mxu0 %v2720_v2  ;;  %v3653_v2 = vrot.slane %v18594_v38, 5  ;;  %13511 = vmatpush3.bf16.msra.mxu1 %v14899_v45  ;;  %v4697_v38 = vsel %vm1947_vm7, %v4687_v46, %v4696_v51  ;;  %v18596_v45 = vshll.u32 %v16628_v42, 16 }
 0x1da   :  { %13232 = vmatprep.mubr.bf16.mxu0 %v2722_v5  ;;  %13245 = vmatpush3.bf16.msra.mxu0 %v14888_v10  ;;  %v14892_v10 = vld [vmem:[%s18498_s3 + $0x150] sm:$0xff]   ;;  %v18595_v5 = vshrl.u32 %v16628_v42, 16 }
 0x1db   :  { %13246 = vmatprep.subr.bf16.mxu0 %v14890_v18  ;;  %v3654_v27 = vor.u32 %v3653_v2, %v3652_v60  ;;  %13512 = vmatprep.subr.bf16.mxu1 %v14901_v57  ;;  %v3661_v7 = vrot.slane %v18596_v45, 5  ;;  %v18599_v60 = vshrl.u32 %v16635_v26, 16  ;;  %v18601_v45 = vrot.slane %v16225_v62, 4 }
 0x1dc   :  { %v3660_v16 = vrot.slane %v18595_v5, 4  ;;  %v3669_v5 = vrot.slane %v18600_v50, 5  ;;  %13497 = vmatmul.mubr.bf16.gmra.mrb[44].mxu1 %v4697_v38  ;;  %v18603_v26 = vshrl.u32 %v16649_v59, 16 }
 0x1dd   :  { %v16683_v46 = vsel %vm2199_vm8, %v16349_v53, %v3654_v27  ;;  %v16687_v51 = vsel %vm2199_vm8, %v3654_v27, %v16374_v63  ;;  %v3668_v2 = vrot.slane %v18599_v60, 4  ;;  %v18602_v27 = vrot.slane %v16305_v20, 4  ;;  %v16706_v53 = vld [vmem:[#allocation4 + $0xc8] sm:$0xff]  ;;  %13513 = vmatpush3.bf16.msra.mxu1 %v14901_v57 }
 0x1de   :  { %13247 = vmatpush3.bf16.msra.mxu0 %v14890_v18  ;;  %18597 = vst [vmem:[#allocation25_spill] sm:$0xff] %v16683_v46  ;;  %18598 = vst [vmem:[#allocation26_spill] sm:$0xff] %v16687_v51  ;;  %v2726_v18 = vsel %vm1776_vm6, %v16642_v32, %v18601_v45  ;;  %v14894_v46 = vld [vmem:[%s18498_s3 + $0x158] sm:$0xff]   ;;  %v16704_v60 = vrot.slane %v16378_v61, 4  ;;  %v3662_v50 = vor.u32 %v3661_v7, %v3660_v16  ;;  %v16709_v45 = vld [vmem:[#allocation4 + $0xd0] sm:$0xff]  ;;  %v3672_v38 = vrot.slane %v18603_v26, 4 }
 0x1df   :  { %13248 = vmatprep.subr.bf16.mxu0 %v14892_v10  ;;  %v4895_v51 = vsel %vm1776_vm6, %v4893_v47, %v18602_v27  ;;  %v3670_v32 = vor.u32 %v3669_v5, %v3668_v2  ;;  %13514 = vmatprep.subr.bf16.mxu1 %v14903_v24  ;;  %v14905_v61 = vld [vmem:[%s18498_s3 + $0x140] sm:$0xff]   ;;  %v18548_v47 = vshll.u32 %v16673_v25, 16  ;;  %v18549_v57 = vshrl.u32 %v16679_v49, 16 }
 0x1e0   :  { %13516 = vmatprep.mubr.bf16.mxu1 %v4895_v51  ;;  %v16722_v16 = vsel %vm2199_vm8, %v16374_v63, %v3662_v50  ;;  %v16726_v26 = vsel %vm2199_vm8, %v3662_v50, %v16414_v8  ;;  %v16734_v51 = vor.u32 %v3673_v29, %v3672_v38  ;;  %v14896_v63 = vld [vmem:[%s18498_s3 + $0x160] sm:$0xff]   ;;  %v4898_v2 = vrot.slane %v16395_v37, 4 }
 0x1e1   :  { %13233 = vmatmul.mubr.bf16.gmra.mrb[36].mxu0 %v2724_v52  ;;  %v18551_v52 = vshrl.u32 %v16706_v53, 16  ;;  %v16732_v7 = vsel %vm2199_vm8, %v16414_v8, %v3670_v32  ;;  %v5392_v5 = vshll.u32 %v16706_v53, 16  ;;  %13515 = vmatpush3.bf16.msra.mxu1 %v14903_v24  ;;  %v5825_v27 = vrot.slane %v18547_v28, 4 }
 0x1e2   :  { %13236 = vmatprep.mubr.bf16.mxu0 %v2726_v18  ;;  %13249 = vmatpush3.bf16.msra.mxu0 %v14892_v10  ;;  %18605 = vst [vmem:[#allocation27_spill] sm:$0xff] %v16734_v51  ;;  %v5398_v10 = vshrl.u32 %v16709_v45, 16  ;;  %v16743_v18 = vrot.slane %v16260_v41, 4  ;;  %v16748_v29 = vsel %vm2199_vm8, %v3670_v32, %v16734_v51  ;;  %v2729_v50 = vrot.slane %v16272_v19, 4  ;;  %v14907_v41 = vld [vmem:[%s18498_s3 + $0x148] sm:$0xff]  }
 0x1e3   :  { %13250 = vmatprep.subr.bf16.mxu0 %v14894_v46  ;;  %18606 = vst [vmem:[#allocation28_spill] sm:$0xff] %v16748_v29  ;;  %v2921_v37 = vshrl.u32 %v16581_v36, 16  ;;  %v2924_v38 = vshll.u32 %v16581_v36, 16  ;;  %13532 = vmatprep.subr.bf16.mxu1 %v14905_v61  ;;  %v5826_v24 = vrot.slane %v18548_v47, 5  ;;  %v18607_v32 = vrot.slane %v16305_v20, 4  ;;  %v14898_v47 = vld [vmem:[%s18498_s3 + $0x168] sm:$0xff]  }
 0x1e4   :  { %v5833_v19 = vrot.slane %v18549_v57, 4  ;;  %v5834_v36 = vrot.slane %v18550_v15, 5  ;;  %v5841_v8 = vrot.slane %v18551_v52, 4  ;;  %v4899_v20 = vsel %vm1776_vm6, %v16704_v60, %v4898_v2 }
 0x1e5   :  { %v4897_v28 = vsel %vm1776_vm6, %v18607_v32, %v16704_v60  ;;  %v5842_v32 = vrot.slane %v5392_v5, 5  ;;  %v5845_v57 = vrot.slane %v5398_v10, 4  ;;  %v18608_v15 = vrot.slane %v16225_v62, 4 }
 0x1e6   :  { %13251 = vmatpush3.bf16.msra.mxu0 %v14894_v46  ;;  %13517 = vmatmul.mubr.bf16.vlgmr.msra.gmra.mrb[32].mxu1 %v4897_v28  ;;  %v5827_v46 = vor.u32 %v5826_v24, %v5825_v27  ;;  %v5835_v51 = vor.u32 %v5834_v36, %v5833_v19  ;;  %v18609_v28 = vshll.u32 %v16709_v45, 16  ;;  %v2730_v27 = vsel %vm1776_vm6, %v16743_v18, %v2729_v50  ;;  %v14909_v24 = vld [vmem:[%s18498_s3 + $0x150] sm:$0xff]  }
 0x1e7   :  { %13252 = vmatprep.subr.bf16.mxu0 %v14896_v63  ;;  %v2728_v52 = vsel %vm1776_vm6, %v18608_v15, %v16743_v18  ;;  %13520 = vmatprep.mubr.bf16.mxu1 %v4899_v20  ;;  %v5843_v19 = vor.u32 %v5842_v32, %v5841_v8  ;;  %v14900_v36 = vld [vmem:[%s18498_s3 + $0x170] sm:$0xff]   ;;  %v2923_v20 = vrot.slane %v2921_v37, 4  ;;  %v4902_v8 = vrot.slane %v16464_v40, 4  ;;  %v14911_v37 = vld [vmem:[%s18498_s3 + $0x158] sm:$0xff]  }
 0x1e8   :  { %13533 = vmatpush3.bf16.msra.mxu1 %v14905_v61  ;;  %v5846_v29 = vrot.slane %v18609_v28, 5  ;;  %v16792_v62 = vsel %vm2199_vm8, %v16491_v56, %v5827_v46  ;;  %v16796_v61 = vsel %vm2199_vm8, %v5827_v46, %v16524_v55  ;;  %v16800_v15 = vsel %vm2199_vm8, %v16524_v55, %v5835_v51 }
 0x1e9   :  { %13237 = vmatmul.mubr.bf16.gmra.mrb[40].mxu0 %v2728_v52  ;;  %13534 = vmatprep.subr.bf16.mxu1 %v14907_v41  ;;  %v16804_v52 = vsel %vm2199_vm8, %v5835_v51, %v16544_v39  ;;  %v2926_v28 = vrot.slane %v2924_v38, 5  ;;  %v16810_v46 = vrot.slane %v16447_v44, 4  ;;  %v2731_v55 = vrot.slane %v16501_v33, 4 }
 0x1ea   :  { %13240 = vmatprep.mubr.bf16.mxu0 %v2730_v27  ;;  %13253 = vmatpush3.bf16.msra.mxu0 %v14896_v63  ;;  %v16812_v63 = vor.u32 %v5846_v29, %v5845_v57  ;;  %v16817_v51 = vsel %vm2199_vm8, %v16544_v39, %v5843_v19  ;;  %v14902_v39 = vld [vmem:[%s18498_s3 + $0x178] sm:$0xff]   ;;  %v16841_v38 = vrot.slane %v16477_v23, 4  ;;  %v5097_v32 = vshrl.u32 %v16651_v14, 16 }
 0x1eb   :  { %13254 = vmatprep.subr.bf16.mxu0 %v14898_v47  ;;  %v4901_v33 = vsel %vm1776_vm6, %v4898_v2, %v16810_v46  ;;  %v2927_v57 = vor.u32 %v2926_v28, %v2923_v20  ;;  %v4903_v40 = vsel %vm1776_vm6, %v16810_v46, %v4902_v8  ;;  %v2732_v29 = vsel %vm1776_vm6, %v2729_v50, %v2731_v55  ;;  %v14913_v2 = vld [vmem:[%s18498_s3 + $0x160] sm:$0xff]   ;;  %v14908_v28 = vld [vmem:[%s18498_s3 + $0x190] sm:$0xff]   ;;  %v14919_v55 = vld [vmem:[%s18498_s3 + $0x178] sm:$0xff]  }
 0x1ec   :  { %13535 = vmatpush3.bf16.msra.mxu1 %v14907_v41  ;;  %v16825_v44 = vsel %vm2199_vm8, %v5843_v19, %v16812_v63  ;;  %v14904_v50 = vld [vmem:[%s18498_s3 + $0x180] sm:$0xff]   ;;  %v4906_v41 = vrot.slane %v16495_v6, 4  ;;  %v5100_v27 = vshll.u32 %v16651_v14, 16  ;;  %v4905_v23 = vsel %vm1776_vm6, %v4902_v8, %v16841_v38  ;;  %v14917_v14 = vld [vmem:[%s18498_s3 + $0x170] sm:$0xff]  }
 0x1ed   :  { %13536 = vmatprep.subr.bf16.mxu1 %v14909_v24  ;;  %v5099_v19 = vrot.slane %v5097_v32, 4  ;;  %v4908_v20 = vrot.slane %v16593_v0, 4 }
 0x1ee   :  { %13255 = vmatpush3.bf16.msra.mxu0 %v14898_v47  ;;  %13521 = vmatmul.mubr.bf16.gmra.mrb[36].mxu1 %v4901_v33  ;;  %v2931_v47 = vsel %vm2199_vm8, %v2927_v57, %v16331_v9  ;;  %v14915_v9 = vld [vmem:[%s18498_s3 + $0x168] sm:$0xff]   ;;  %v4907_v6 = vsel %vm1776_vm6, %v16841_v38, %v4906_v41  ;;  %v14921_v33 = vld [vmem:[%s18498_s3 + $0x180] sm:$0xff]  }
 0x1ef   :  { %13256 = vmatprep.subr.bf16.mxu0 %v14900_v36  ;;  %13524 = vmatprep.mubr.bf16.mxu1 %v4903_v40  ;;  %v4909_v8 = vsel %vm1776_vm6, %v4906_v41, %v4908_v20  ;;  %v14912_v57 = vld [vmem:[%s18498_s3 + $0x1a0] sm:$0xff]   ;;  %v3134_v40 = vld [vmem:[#allocation4 + $0x18] sm:$0xf8]  ;;  %v14925_v41 = vld [vmem:[%s18498_s3 + $0x190] sm:$0xff]  }
 0x1f0   :  { %13537 = vmatpush3.bf16.msra.mxu1 %v14909_v24  ;;  %v14906_v24 = vld [vmem:[%s18498_s3 + $0x188] sm:$0xff]  }
 0x1f1   :  { %13241 = vmatmul.mubr.bf16.gmra.mrb[44].mxu0 %v2732_v29  ;;  %13538 = vmatprep.subr.bf16.mxu1 %v14911_v37  ;;  %v3161_v29 = vshrl.u32 %v3134_v40, 16 }
 0x1f2   :  { %13257 = vmatpush3.bf16.msra.mxu0 %v14900_v36  ;;  %13260 = vmatprep.mubr.bf16.mxu0 %v2931_v47  ;;  %v5102_v36 = vrot.slane %v5100_v27, 5  ;;  %v3164_v47 = vshll.u32 %v3134_v40, 16 }
 0x1f3   :  { %13258 = vmatprep.subr.bf16.mxu0 %v14902_v39 }
 0x1f4   :  { %13539 = vmatpush3.bf16.msra.mxu1 %v14911_v37  ;;  %v2902_v37 = vld [vmem:[#allocation4 + $0x50] sm:$0x1f]  ;;  %v3166_v32 = vrot.slane %v3164_v47, 4 }
 0x1f5   :  { %13540 = vmatprep.subr.bf16.mxu1 %v14913_v2 }
 0x1f6   :  { %13259 = vmatpush3.bf16.msra.mxu0 %v14902_v39  ;;  %13525 = vmatmul.mubr.bf16.gmra.mrb[40].mxu1 %v4905_v23  ;;  %v2957_v39 = vshrl.u32 %v2902_v37, 16  ;;  %v5079_v23 = vld [vmem:[#allocation4 + $0xd0] sm:$0x1f] }
 0x1f7   :  { %13276 = vmatprep.subr.bf16.mxu0 %v14904_v50  ;;  %13528 = vmatprep.mubr.bf16.mxu1 %v4907_v6  ;;  %v18610_v6 = vshrl.u32 %v16615_v48, 16 }
 0x1f8   :  { %13541 = vmatpush3.bf16.msra.mxu1 %v14913_v2  ;;  %v2959_v2 = vrot.slane %v2957_v39, 4 }
 0x1f9   :  { %13261 = vmatmul.mubr.bf16.vlgmr.msra.gmra.mrb[32].mxu0 %v16361_v13  ;;  %13542 = vmatprep.subr.bf16.mxu1 %v14915_v9  ;;  %v5103_v13 = vor.u32 %v5102_v36, %v5099_v19  ;;  %v18611_v19 = vshll.u32 %v16615_v48, 16 }
 0x1fa   :  { %13264 = vmatprep.mubr.bf16.mxu0 %v16382_v43  ;;  %13277 = vmatpush3.bf16.msra.mxu0 %v14904_v50  ;;  %v14910_v43 = vld [vmem:[%s18498_s3 + $0x198] sm:$0xff]  }
 0x1fb   :  { %13278 = vmatprep.subr.bf16.mxu0 %v14906_v24  ;;  %v5107_v0 = vsel %vm2199_vm8, %v5103_v13, %v16479_v31  ;;  %v2960_v31 = vshll.u32 %v2902_v37, 16  ;;  %v3183_v36 = vrot.slane %v18611_v19, 4  ;;  %v5310_v13 = vld [vmem:[#allocation4 + $0x98] sm:$0xf8] }
 0x1fc   :  { %13543 = vmatpush3.bf16.msra.mxu1 %v14915_v9  ;;  %v3163_v9 = vrot.slane %v3161_v29, 3  ;;  %v18618_v19 = vld [vmem:[#allocation23_spill] sm:$0xff] }
 0x1fd   :  { %13544 = vmatprep.subr.bf16.mxu1 %v14917_v14  ;;  %v2962_v50 = vrot.slane %v2960_v31, 5  ;;  %v18612_v31 = vshrl.u32 %v16628_v42, 16 }
 0x1fe   :  { %13279 = vmatpush3.bf16.msra.mxu0 %v14906_v24  ;;  %13529 = vmatmul.mubr.bf16.gmra.mrb[44].mxu1 %v4909_v8  ;;  %v14931_v8 = vld [vmem:[%s18498_s3 + $0x1a8] sm:$0xff]  }
 0x1ff   :  { %13280 = vmatprep.subr.bf16.mxu0 %v14908_v28  ;;  %13548 = vmatprep.mubr.bf16.mxu1 %v5107_v0  ;;  %v2963_v27 = vor.u32 %v2962_v50, %v2959_v2  ;;  %v5339_v0 = vshll.u32 %v5310_v13, 16  ;;  %v3198_v40 = vrot.slane %v18612_v31, 3 }
 0x200   :  { %13545 = vmatpush3.bf16.msra.mxu1 %v14917_v14  ;;  %v3180_v14 = vrot.slane %v18610_v6, 3 }
 0x201   :  { %13265 = vmatmul.mubr.bf16.gmra.mrb[36].mxu0 %v16399_v12  ;;  %13546 = vmatprep.subr.bf16.mxu1 %v14919_v55  ;;  %v14923_v12 = vld [vmem:[%s18498_s3 + $0x188] sm:$0xff]   ;;  %v2964_v24 = vsel %vm2199_vm8, %v16430_v58, %v2963_v27  ;;  %v5133_v58 = vshrl.u32 %v5079_v23, 16  ;;  %v18615_v27 = vshrl.u32 %v16673_v25, 16 }
 0x202   :  { %13268 = vmatprep.mubr.bf16.mxu0 %v16422_v4  ;;  %13281 = vmatpush3.bf16.msra.mxu0 %v14908_v28  ;;  %v14914_v4 = vld [vmem:[%s18498_s3 + $0x1a8] sm:$0xff]   ;;  %v5136_v28 = vshll.u32 %v5079_v23, 16  ;;  %v14926_v23 = vld [vmem:[%s18498_s3 + $0x1d8] sm:$0xff]  }
 0x203   :  { %13282 = vmatprep.subr.bf16.mxu0 %v14910_v43  ;;  %v5135_v37 = vrot.slane %v5133_v58, 4 }
 0x204   :  { %13547 = vmatpush3.bf16.msra.mxu1 %v14919_v55  ;;  %v3184_v55 = vor.u32 %v3183_v36, %v3180_v14  ;;  %v18619_v36 = vshrl.u32 %v18618_v19, 16 }
 0x205   :  { %13564 = vmatprep.subr.bf16.mxu1 %v14921_v33 }
 0x206   :  { %13283 = vmatpush3.bf16.msra.mxu0 %v14910_v43  ;;  %v5336_v43 = vshrl.u32 %v5310_v13, 16  ;;  %v3185_v39 = vsel %vm1947_vm7, %v16274_v17, %v3184_v55 }
 0x207   :  { %13284 = vmatprep.subr.bf16.mxu0 %v14912_v57  ;;  %13549 = vmatmul.mubr.bf16.vlgmr.msra.gmra.mrb[32].mxu1 %v16509_v11  ;;  %v14916_v11 = vld [vmem:[%s18498_s3 + $0x1b0] sm:$0xff]  }
 0x208   :  { %13552 = vmatprep.mubr.bf16.mxu1 %v16515_v35  ;;  %13565 = vmatpush3.bf16.msra.mxu1 %v14921_v33  ;;  %v3167_v35 = vor.u32 %v3166_v32, %v3163_v9  ;;  %v5138_v33 = vrot.slane %v5136_v28, 5  ;;  %v5338_v47 = vrot.slane %v5336_v43, 3  ;;  %v18614_v9 = vld [vmem:[#allocation19_spill] sm:$0xff]  ;;  %v18621_v28 = vld [vmem:[#allocation17_spill] sm:$0xff] }
 0x209   :  { %13269 = vmatmul.mubr.bf16.gmra.mrb[40].mxu0 %v16428_v3  ;;  %13566 = vmatprep.subr.bf16.mxu1 %v14923_v12  ;;  %v14927_v3 = vld [vmem:[%s18498_s3 + $0x198] sm:$0xff]  }
 0x20a   :  { %13272 = vmatprep.mubr.bf16.mxu0 %v16452_v1  ;;  %13285 = vmatpush3.bf16.msra.mxu0 %v14912_v57  ;;  %v14918_v1 = vld [vmem:[%s18498_s3 + $0x1b8] sm:$0xff]   ;;  %v3176_v20 = vsel %vm1947_vm7, %v3167_v35, %v16274_v17  ;;  %v14922_v57 = vld [vmem:[%s18498_s3 + $0x1c8] sm:$0xff]   ;;  %v5341_v17 = vrot.slane %v5339_v0, 4  ;;  %v5139_v2 = vor.u32 %v5138_v33, %v5135_v37  ;;  %v18616_v35 = vshll.u32 %v16673_v25, 16  ;;  %v14928_v33 = vld [vmem:[%s18498_s3 + $0x1e0] sm:$0xff]  }
 0x20b   :  { %13286 = vmatprep.subr.bf16.mxu0 %v14914_v4  ;;  %v16971_v0 = vld [vmem:[#allocation4 + $0x58] sm:$0xf] }
 0x20c   :  { %13567 = vmatpush3.bf16.msra.mxu1 %v14923_v12  ;;  %v3194_v12 = vsel %vm1947_vm7, %v3184_v55, %v16405_v22  ;;  %v5140_v32 = vsel %vm2199_vm8, %v18614_v9, %v5139_v2  ;;  %v3235_v31 = vshll.u32 %v16971_v0, 16 }
 0x20d   :  { %13568 = vmatprep.subr.bf16.mxu1 %v14925_v41 }
 0x20e   :  { %13287 = vmatpush3.bf16.msra.mxu0 %v14914_v4  ;;  %v18613_v4 = vshll.u32 %v16628_v42, 16  ;;  %v3237_v9 = vrot.slane %v3235_v31, 4  ;;  %v14936_v31 = vld [vmem:[%s18498_s3 + $0x200] sm:$0xff]  }
 0x20f   :  { %13288 = vmatprep.subr.bf16.mxu0 %v14916_v11  ;;  %13553 = vmatmul.mubr.bf16.gmra.mrb[36].mxu1 %v16537_v30  ;;  %v14929_v30 = vld [vmem:[%s18498_s3 + $0x1a0] sm:$0xff]  }
 0x210   :  { %13556 = vmatprep.mubr.bf16.mxu1 %v16551_v54  ;;  %13569 = vmatpush3.bf16.msra.mxu1 %v14925_v41  ;;  %v14920_v54 = vld [vmem:[%s18498_s3 + $0x1c0] sm:$0xff]   ;;  %v3201_v29 = vrot.slane %v18613_v4, 4  ;;  %v5342_v41 = vor.u32 %v5341_v17, %v5338_v47  ;;  %v18625_v17 = vshrl.u32 %v16679_v49, 16 }
 0x211   :  { %13273 = vmatmul.mubr.bf16.gmra.mrb[44].mxu0 %v2964_v24  ;;  %13570 = vmatprep.subr.bf16.mxu1 %v14927_v3  ;;  %v18617_v24 = vld [vmem:[#allocation18_spill] sm:$0xff] }
 0x212   :  { %13289 = vmatpush3.bf16.msra.mxu0 %v14916_v11  ;;  %13292 = vmatprep.mubr.bf16.mxu0 %v3176_v20  ;;  %v3202_v50 = vor.u32 %v3201_v29, %v3198_v40  ;;  %v14935_v11 = vld [vmem:[%s18498_s3 + $0x1b8] sm:$0xff]   ;;  %v5351_v6 = vsel %vm1947_vm7, %v5342_v41, %v18617_v24  ;;  %v3216_v20 = vrot.slane %v18619_v36, 3  ;;  %v14930_v29 = vld [vmem:[%s18498_s3 + $0x1e8] sm:$0xff]   ;;  %v5373_v2 = vrot.slane %v18625_v17, 3 }
 0x213   :  { %13290 = vmatprep.subr.bf16.mxu0 %v14918_v1  ;;  %v14938_v17 = vld [vmem:[%s18498_s3 + $0x208] sm:$0xff]  }
 0x214   :  { %13571 = vmatpush3.bf16.msra.mxu1 %v14927_v3  ;;  %v5355_v3 = vrot.slane %v18615_v27, 3  ;;  %v3203_v14 = vsel %vm1947_vm7, %v16405_v22, %v3202_v50  ;;  %v3212_v13 = vsel %vm1947_vm7, %v3202_v50, %v18621_v28  ;;  %v14937_v22 = vld [vmem:[%s18498_s3 + $0x1c0] sm:$0xff]   ;;  %v14941_v27 = vld [vmem:[%s18498_s3 + $0x1d0] sm:$0xff]  }
 0x215   :  { %13572 = vmatprep.subr.bf16.mxu1 %v14929_v30 }
 0x216   :  { %13291 = vmatpush3.bf16.msra.mxu0 %v14918_v1  ;;  %v5358_v1 = vrot.slane %v18616_v35, 4 }
 0x217   :  { %13308 = vmatprep.subr.bf16.mxu0 %v14920_v54  ;;  %13557 = vmatmul.mubr.bf16.gmra.mrb[40].mxu1 %v16560_v21  ;;  %v14933_v21 = vld [vmem:[%s18498_s3 + $0x1b0] sm:$0xff]  }
 0x218   :  { %13560 = vmatprep.mubr.bf16.mxu1 %v16579_v34  ;;  %13573 = vmatpush3.bf16.msra.mxu1 %v14929_v30  ;;  %v14924_v34 = vld [vmem:[%s18498_s3 + $0x1d0] sm:$0xff]   ;;  %v18620_v30 = vshll.u32 %v18618_v19, 16  ;;  %v5359_v37 = vor.u32 %v5358_v1, %v5355_v3 }
 0x219   :  { %13293 = vmatmul.mubr.bf16.vlgmr.msra.gmra.mrb[32].mxu0 %v3185_v39  ;;  %13574 = vmatprep.subr.bf16.mxu1 %v14931_v8  ;;  %v3232_v39 = vshrl.u32 %v16971_v0, 16  ;;  %v14932_v3 = vld [vmem:[%s18498_s3 + $0x1f0] sm:$0xff]  }
 0x21a   :  { %13296 = vmatprep.mubr.bf16.mxu0 %v3194_v12  ;;  %13309 = vmatpush3.bf16.msra.mxu0 %v14920_v54  ;;  %v3219_v58 = vrot.slane %v18620_v30, 4  ;;  %v18622_v54 = vshrl.u32 %v16649_v59, 16  ;;  %v14939_v12 = vld [vmem:[%s18498_s3 + $0x1c8] sm:$0xff]   ;;  %v5360_v4 = vsel %vm1947_vm7, %v18617_v24, %v5359_v37  ;;  %v14943_v24 = vld [vmem:[%s18498_s3 + $0x1d8] sm:$0xff]  }
 0x21b   :  { %13310 = vmatprep.subr.bf16.mxu0 %v14922_v57 }
 0x21c   :  { %13575 = vmatpush3.bf16.msra.mxu1 %v14931_v8  ;;  %v3225_v55 = vrot.slane %v18622_v54, 3  ;;  %v18623_v8 = vshll.u32 %v16649_v59, 16  ;;  %v5400_v54 = vrot.slane %v5398_v10, 3 }
 0x21d   :  { %13576 = vmatprep.subr.bf16.mxu1 %v14933_v21 }
 0x21e   :  { %13311 = vmatpush3.bf16.msra.mxu0 %v14922_v57  ;;  %v3228_v43 = vrot.slane %v18623_v8, 4  ;;  %v3220_v57 = vor.u32 %v3219_v58, %v3216_v20  ;;  %v5394_v20 = vrot.slane %v5392_v5, 4  ;;  %v14934_v58 = vld [vmem:[%s18498_s3 + $0x1f8] sm:$0xff]  }
 0x21f   :  { %13312 = vmatprep.subr.bf16.mxu0 %v14924_v34  ;;  %13561 = vmatmul.mubr.bf16.gmra.mrb[44].mxu1 %v5140_v32 }
 0x220   :  { %13577 = vmatpush3.bf16.msra.mxu1 %v14933_v21  ;;  %13580 = vmatprep.mubr.bf16.mxu1 %v5351_v6  ;;  %v3229_v40 = vor.u32 %v3228_v43, %v3225_v55  ;;  %v18624_v21 = vld [vmem:[#allocation20_spill] sm:$0xff]  ;;  %v3221_v41 = vsel %vm1947_vm7, %v18621_v28, %v3220_v57  ;;  %v18628_v28 = vld [vmem:[#allocation21_spill] sm:$0xff]  ;;  %v18629_v55 = vshll.u32 %v16709_v45, 16  ;;  %v17025_v43 = vld [vmem:[#allocation4 + $0xd8] sm:$0xf] }
 0x221   :  { %13297 = vmatmul.mubr.bf16.gmra.mrb[36].mxu0 %v3203_v14  ;;  %13578 = vmatprep.subr.bf16.mxu1 %v14935_v11  ;;  %v5369_v47 = vsel %vm1947_vm7, %v5359_v37, %v18624_v21  ;;  %v18627_v14 = vshrl.u32 %v16706_v53, 16 }
 0x222   :  { %13300 = vmatprep.mubr.bf16.mxu0 %v3212_v13  ;;  %13313 = vmatpush3.bf16.msra.mxu0 %v14924_v34  ;;  %v18626_v34 = vshll.u32 %v16679_v49, 16  ;;  %v3230_v32 = vsel %vm1947_vm7, %v3220_v57, %v3229_v40  ;;  %v5403_v8 = vrot.slane %v18629_v55, 4  ;;  %v5407_v57 = vshrl.u32 %v17025_v43, 16 }
 0x223   :  { %13314 = vmatprep.subr.bf16.mxu0 %v14926_v23  ;;  %v5391_v36 = vrot.slane %v18627_v14, 3 }
 0x224   :  { %13579 = vmatpush3.bf16.msra.mxu1 %v14935_v11  ;;  %v5376_v50 = vrot.slane %v18626_v34, 4  ;;  %v3234_v11 = vrot.slane %v3232_v39, 3  ;;  %v5410_v39 = vshll.u32 %v17025_v43, 16  ;;  %v18631_v34 = vld [vmem:[#allocation24_spill] sm:$0xff] }
 0x225   :  { %13596 = vmatprep.subr.bf16.mxu1 %v14937_v22  ;;  %v5395_v10 = vor.u32 %v5394_v20, %v5391_v36  ;;  %v14952_v36 = vld [vmem:[%s18498_s3 + $0x200] sm:$0xff]   ;;  %v5613_v20 = vrot.slane %v16673_v25, 4  ;;  %v14946_v25 = vld [vmem:[%s18498_s3 + $0x228] sm:$0xff]  }
 0x226   :  { %13315 = vmatpush3.bf16.msra.mxu0 %v14926_v23  ;;  %v5377_v35 = vor.u32 %v5376_v50, %v5373_v2  ;;  %v3238_v1 = vor.u32 %v3237_v9, %v3234_v11  ;;  %v17004_v23 = vld [vmem:[#allocation4 + $0x18] sm:$0xf0] }
 0x227   :  { %13316 = vmatprep.subr.bf16.mxu0 %v14928_v33  ;;  %13581 = vmatmul.mubr.bf16.vlgmr.msra.gmra.mrb[32].mxu1 %v5360_v4  ;;  %v3436_v30 = vrot.slane %v17004_v23, 4  ;;  %v14947_v4 = vld [vmem:[%s18498_s3 + $0x1e8] sm:$0xff]   ;;  %v17055_v9 = vld [vmem:[#allocation4 + $0x98] sm:$0xf0]  ;;  %v3641_v55 = vshrl.u32 %v17004_v23, 16 }
 0x228   :  { %13584 = vmatprep.mubr.bf16.mxu1 %v5369_v47  ;;  %13597 = vmatpush3.bf16.msra.mxu1 %v14937_v22  ;;  %v5378_v6 = vsel %vm1947_vm7, %v18624_v21, %v5377_v35  ;;  %v5387_v13 = vsel %vm1947_vm7, %v5377_v35, %v18628_v28  ;;  %v3239_v5 = vsel %vm1947_vm7, %v3229_v40, %v3238_v1  ;;  %v18630_v22 = vld [vmem:[#allocation22_spill] sm:$0xff]  ;;  %v5409_v21 = vrot.slane %v5407_v57, 3 }
 0x229   :  { %13301 = vmatmul.mubr.bf16.gmra.mrb[40].mxu0 %v3221_v41  ;;  %13598 = vmatprep.subr.bf16.mxu1 %v14939_v12  ;;  %v3438_v37 = vsel %vm1776_vm6, %v3436_v30, %v18630_v22  ;;  %v5404_v40 = vor.u32 %v5403_v8, %v5400_v54  ;;  %v5412_v47 = vrot.slane %v5410_v39, 4  ;;  %v14949_v41 = vld [vmem:[%s18498_s3 + $0x1f0] sm:$0xff]   ;;  %v14951_v35 = vld [vmem:[%s18498_s3 + $0x1f8] sm:$0xff]   ;;  %v14944_v30 = vld [vmem:[%s18498_s3 + $0x220] sm:$0xff]   ;;  %v5614_v54 = vsel %vm1776_vm6, %v16704_v60, %v5613_v20 }
 0x22a   :  { %13304 = vmatprep.mubr.bf16.mxu0 %v3230_v32  ;;  %13317 = vmatpush3.bf16.msra.mxu0 %v14928_v33  ;;  %v14945_v33 = vld [vmem:[%s18498_s3 + $0x1e0] sm:$0xff]   ;;  %v14940_v32 = vld [vmem:[%s18498_s3 + $0x210] sm:$0xff]  }
 0x22b   :  { %13318 = vmatprep.subr.bf16.mxu0 %v14930_v29  ;;  %v5413_v11 = vor.u32 %v5412_v47, %v5409_v21  ;;  %v14957_v21 = vld [vmem:[%s18498_s3 + $0x228] sm:$0xff]   ;;  %v5814_v47 = vshrl.u32 %v17055_v9, 16 }
 0x22c   :  { %13599 = vmatpush3.bf16.msra.mxu1 %v14939_v12  ;;  %v3439_v12 = vrot.slane %v16615_v48, 4  ;;  %v5405_v48 = vsel %vm1947_vm7, %v5395_v10, %v5404_v40 }
 0x22d   :  { %13600 = vmatprep.subr.bf16.mxu1 %v14941_v27  ;;  %v5414_v1 = vsel %vm1947_vm7, %v5404_v40, %v5413_v11  ;;  %v18632_v40 = vld [vmem:[#allocation16_spill] sm:$0xff]  ;;  %v5625_v11 = vrot.slane %v17025_v43, 4 }
 0x22e   :  { %13319 = vmatpush3.bf16.msra.mxu0 %v14930_v29  ;;  %v5396_v29 = vsel %vm1947_vm7, %v18628_v28, %v5395_v10  ;;  %v3440_v2 = vsel %vm1776_vm6, %v18630_v22, %v3439_v12  ;;  %v3442_v50 = vsel %vm1776_vm6, %v3439_v12, %v18631_v34  ;;  %v3449_v28 = vrot.slane %v16649_v59, 4  ;;  %v14955_v10 = vld [vmem:[%s18498_s3 + $0x218] sm:$0xff]  }
 0x22f   :  { %13320 = vmatprep.subr.bf16.mxu0 %v14932_v3  ;;  %13585 = vmatmul.mubr.bf16.gmra.mrb[36].mxu1 %v5378_v6  ;;  %v5616_v59 = vsel %vm1776_vm6, %v5613_v20, %v16810_v46  ;;  %v3643_v22 = vrot.slane %v3641_v55, 4 }
 0x230   :  { %13588 = vmatprep.mubr.bf16.mxu1 %v5387_v13  ;;  %13601 = vmatpush3.bf16.msra.mxu1 %v14941_v27  ;;  %v3443_v27 = vrot.slane %v16628_v42, 4  ;;  %v14953_v13 = vld [vmem:[%s18498_s3 + $0x208] sm:$0xff]  }
 0x231   :  { %13305 = vmatmul.mubr.bf16.gmra.mrb[44].mxu0 %v3239_v5  ;;  %13602 = vmatprep.subr.bf16.mxu1 %v14943_v24  ;;  %v14954_v5 = vld [vmem:[%s18498_s3 + $0x210] sm:$0xff]  }
 0x232   :  { %13321 = vmatpush3.bf16.msra.mxu0 %v14932_v3  ;;  %13324 = vmatprep.mubr.bf16.mxu0 %v3438_v37  ;;  %v5610_v3 = vrot.slane %v17055_v9, 4  ;;  %v3444_v42 = vsel %vm1776_vm6, %v18631_v34, %v3443_v27  ;;  %v3446_v14 = vsel %vm1776_vm6, %v3443_v27, %v16743_v18  ;;  %v5816_v34 = vrot.slane %v5814_v47, 4 }
 0x233   :  { %13322 = vmatprep.subr.bf16.mxu0 %v14934_v58 }
 0x234   :  { %13603 = vmatpush3.bf16.msra.mxu1 %v14943_v24  ;;  %v14942_v24 = vld [vmem:[%s18498_s3 + $0x218] sm:$0xff]   ;;  %v5612_v6 = vsel %vm1776_vm6, %v5610_v3, %v16704_v60 }
 0x235   :  { %13604 = vmatprep.subr.bf16.mxu1 %v14945_v33  ;;  %v3622_v3 = vld [vmem:[#allocation4 + $0x58] sm:$0x1f] }
 0x236   :  { %13323 = vmatpush3.bf16.msra.mxu0 %v14934_v58  ;;  %v3447_v58 = vrot.slane %v18618_v19, 4  ;;  %v3644_v19 = vshll.u32 %v17004_v23, 16  ;;  %v14948_v23 = vld [vmem:[%s18498_s3 + $0x230] sm:$0xff]   ;;  %v3677_v43 = vshrl.u32 %v3622_v3, 16 }
 0x237   :  { %13340 = vmatprep.subr.bf16.mxu0 %v14936_v31  ;;  %13589 = vmatmul.mubr.bf16.gmra.mrb[40].mxu1 %v5396_v29  ;;  %v5623_v29 = vrot.slane %v16709_v45, 4  ;;  %v18633_v45 = vld [vmem:[#allocation25_spill] sm:$0xff] }
 0x238   :  { %13592 = vmatprep.mubr.bf16.mxu1 %v5405_v48  ;;  %13605 = vmatpush3.bf16.msra.mxu1 %v14945_v33  ;;  %v3448_v8 = vsel %vm1776_vm6, %v16743_v18, %v3447_v58  ;;  %v3450_v60 = vsel %vm1776_vm6, %v3447_v58, %v3449_v28  ;;  %v3646_v37 = vrot.slane %v3644_v19, 5  ;;  %v5617_v18 = vrot.slane %v16679_v49, 4  ;;  %v14966_v58 = vld [vmem:[%s18500_s5 + $0x70] sm:$0xff]  }
 0x239   :  { %13325 = vmatmul.mubr.bf16.vlgmr.msra.gmra.mrb[32].mxu0 %v3440_v2  ;;  %13606 = vmatprep.subr.bf16.mxu1 %v14947_v4  ;;  %v3451_v33 = vrot.slane %v16971_v0, 4  ;;  %v14958_v2 = vld [vmem:[%s18498_s3 + $0x230] sm:$0xff]  }
 0x23a   :  { %13328 = vmatprep.mubr.bf16.mxu0 %v3442_v50  ;;  %13341 = vmatpush3.bf16.msra.mxu0 %v14936_v31  ;;  %v5618_v57 = vsel %vm1776_vm6, %v16810_v46, %v5617_v18  ;;  %v3647_v39 = vor.u32 %v3646_v37, %v3643_v22  ;;  %v14950_v31 = vld [vmem:[%s18498_s3 + $0x238] sm:$0xff]   ;;  %v5620_v49 = vsel %vm1776_vm6, %v5617_v18, %v16841_v38  ;;  %v14956_v46 = vld [vmem:[%s18498_s3 + $0x220] sm:$0xff]  }
 0x23b   :  { %13342 = vmatprep.subr.bf16.mxu0 %v14938_v17  ;;  %v3452_v0 = vsel %vm1776_vm6, %v3449_v28, %v3451_v33  ;;  %v14967_v28 = vld [vmem:[%s18500_s5 + $0x78] sm:$0xff]  }
 0x23c   :  { %13607 = vmatpush3.bf16.msra.mxu1 %v14947_v4  ;;  %v3651_v12 = vsel %vm2199_vm8, %v3647_v39, %v18632_v40  ;;  %v5621_v4 = vrot.slane %v16706_v53, 4 }
 0x23d   :  { %13608 = vmatprep.subr.bf16.mxu1 %v14949_v41 }
 0x23e   :  { %13343 = vmatpush3.bf16.msra.mxu0 %v14938_v17  ;;  %v5817_v17 = vshll.u32 %v17055_v9, 16  ;;  %v5622_v48 = vsel %vm1776_vm6, %v16841_v38, %v5621_v4  ;;  %v5624_v53 = vsel %vm1776_vm6, %v5621_v4, %v5623_v29  ;;  %v14959_v9 = vld [vmem:[%s18498_s3 + $0x238] sm:$0xff]  }
 0x23f   :  { %13344 = vmatprep.subr.bf16.mxu0 %v14940_v32  ;;  %13593 = vmatmul.mubr.bf16.gmra.mrb[44].mxu1 %v5414_v1  ;;  %v3679_v1 = vrot.slane %v3677_v43, 4 }
 0x240   :  { %13609 = vmatpush3.bf16.msra.mxu1 %v14949_v41  ;;  %13612 = vmatprep.mubr.bf16.mxu1 %v5612_v6  ;;  %v5819_v50 = vrot.slane %v5817_v17, 5  ;;  %v18634_v41 = vld [vmem:[#allocation26_spill] sm:$0xff] }
 0x241   :  { %13329 = vmatmul.mubr.bf16.gmra.mrb[36].mxu0 %v3444_v42  ;;  %13610 = vmatprep.subr.bf16.mxu1 %v14951_v35  ;;  %v18636_v42 = vld [vmem:[#allocation27_spill] sm:$0xff] }
 0x242   :  { %13332 = vmatprep.mubr.bf16.mxu0 %v3446_v14  ;;  %13345 = vmatpush3.bf16.msra.mxu0 %v14940_v32  ;;  %v5820_v38 = vor.u32 %v5819_v50, %v5816_v34  ;;  %v5626_v32 = vsel %vm1776_vm6, %v5623_v29, %v5625_v11 }
 0x243   :  { %13346 = vmatprep.subr.bf16.mxu0 %v14942_v24 }
 0x244   :  { %13611 = vmatpush3.bf16.msra.mxu1 %v14951_v35  ;;  %v5824_v27 = vsel %vm2199_vm8, %v5820_v38, %v16491_v56  ;;  %v3680_v35 = vshll.u32 %v3622_v3, 16  ;;  %v18635_v56 = vld [vmem:[#allocation28_spill] sm:$0xff] }
 0x245   :  { %13628 = vmatprep.subr.bf16.mxu1 %v14952_v36 }
 0x246   :  { %13347 = vmatpush3.bf16.msra.mxu0 %v14942_v24  ;;  %v3682_v24 = vrot.slane %v3680_v35, 5 }
 0x247   :  { %13348 = vmatprep.subr.bf16.mxu0 %v14944_v30  ;;  %13613 = vmatmul.mubr.bf16.vlgmr.msra.gmra.mrb[32].mxu1 %v5614_v54  ;;  %v17192_v54 = vld [vmem:[%s18499_s4] ss:$0 sm:$0xff] }
 0x248   :  { %13616 = vmatprep.mubr.bf16.mxu1 %v5616_v59  ;;  %13629 = vmatpush3.bf16.msra.mxu1 %v14952_v36  ;;  %v3683_v6 = vor.u32 %v3682_v24, %v3679_v1 }
 0x249   :  { %13333 = vmatmul.mubr.bf16.gmra.mrb[40].mxu0 %v3448_v8  ;;  %13630 = vmatprep.subr.bf16.mxu1 %v14953_v13 }
 0x24a   :  { %13336 = vmatprep.mubr.bf16.mxu0 %v3450_v60  ;;  %13349 = vmatpush3.bf16.msra.mxu0 %v14944_v30  ;;  %v14965_v30 = vld [vmem:[%s18500_s5 + $0x68] sm:$0xff]  }
 0x24b   :  { %13350 = vmatprep.subr.bf16.mxu0 %v14946_v25 }
 0x24c   :  { %13631 = vmatpush3.bf16.msra.mxu1 %v14953_v13  ;;  %v17186_v13 = vld [vmem:[%s18500_s5] sm:$0xff]  }
 0x24d   :  { %13632 = vmatprep.subr.bf16.mxu1 %v14954_v5 }
 0x24e   :  { %13351 = vmatpush3.bf16.msra.mxu0 %v14946_v25 }
 0x24f   :  { %13352 = vmatprep.subr.bf16.mxu0 %v14948_v23  ;;  %13617 = vmatmul.mubr.bf16.gmra.mrb[36].mxu1 %v5618_v57 }
 0x250   :  { %13620 = vmatprep.mubr.bf16.mxu1 %v5620_v49  ;;  %13633 = vmatpush3.bf16.msra.mxu1 %v14954_v5 }
 0x251   :  { %13337 = vmatmul.mubr.bf16.gmra.mrb[44].mxu0 %v3452_v0  ;;  %13634 = vmatprep.subr.bf16.mxu1 %v14955_v10 }
 0x252   :  { %13353 = vmatpush3.bf16.msra.mxu0 %v14948_v23  ;;  %13356 = vmatprep.mubr.bf16.mxu0 %v3651_v12 }
 0x253   :  { %13354 = vmatprep.subr.bf16.mxu0 %v14950_v31 }
 0x254   :  { %13635 = vmatpush3.bf16.msra.mxu1 %v14955_v10 }
 0x255   :  { %13636 = vmatprep.subr.bf16.mxu1 %v14956_v46 }
 0x256   :  { %13355 = vmatpush3.bf16.msra.mxu0 %v14950_v31 }
 0x257   :  { %13621 = vmatmul.mubr.bf16.gmra.mrb[40].mxu1 %v5622_v48 }
 0x258   :  { %13624 = vmatprep.mubr.bf16.mxu1 %v5624_v53  ;;  %13637 = vmatpush3.bf16.msra.mxu1 %v14956_v46 }
 0x259   :  { %13357 = vmatmul.mubr.bf16.vlgmr.msra.gmra.mrb[32].mxu0 %v18633_v45  ;;  %13638 = vmatprep.subr.bf16.mxu1 %v14957_v21 }
 0x25a   :  { %13360 = vmatprep.mubr.bf16.mxu0 %v18634_v41 }
 0x25c   :  { %13639 = vmatpush3.bf16.msra.mxu1 %v14957_v21 }
 0x25d   :  { %13640 = vmatprep.subr.bf16.mxu1 %v14958_v2 }
 0x25f   :  { %13625 = vmatmul.mubr.bf16.gmra.mrb[44].mxu1 %v5626_v32 }
 0x260   :  { %13641 = vmatpush3.bf16.msra.mxu1 %v14958_v2  ;;  %13644 = vmatprep.mubr.bf16.mxu1 %v5824_v27 }
 0x261   :  { %13361 = vmatmul.mubr.bf16.gmra.mrb[36].mxu0 %v16722_v16  ;;  %13642 = vmatprep.subr.bf16.mxu1 %v14959_v9  ;;  %v5796_v16 = vld [vmem:[#allocation4 + $0xd8] sm:$0x1f] }
 0x262   :  { %13364 = vmatprep.mubr.bf16.mxu0 %v16726_v26  ;;  %v3684_v26 = vsel %vm2199_vm8, %v18636_v42, %v3683_v6  ;;  %v5850_v14 = vshrl.u32 %v5796_v16, 16 }
 0x264   :  { %13643 = vmatpush3.bf16.msra.mxu1 %v14959_v9  ;;  %v5852_v36 = vrot.slane %v5850_v14, 4 }
 0x267   :  { %13645 = vmatmul.mubr.bf16.vlgmr.msra.gmra.mrb[32].mxu1 %v16792_v62  ;;  %v5853_v62 = vshll.u32 %v5796_v16, 16 }
 0x268   :  { %13648 = vmatprep.mubr.bf16.mxu1 %v16796_v61 }
 0x269   :  { %13365 = vmatmul.mubr.bf16.gmra.mrb[40].mxu0 %v16732_v7  ;;  %v5855_v20 = vrot.slane %v5853_v62, 5 }
 0x26a   :  { %13368 = vmatprep.mubr.bf16.mxu0 %v18635_v56 }
 0x26b   :  { %v5856_v7 = vor.u32 %v5855_v20, %v5852_v36 }
 0x26d   :  { %v5857_v61 = vsel %vm2199_vm8, %v16812_v63, %v5856_v7  ;;  %v14963_v63 = vld [vmem:[%s18500_s5 + $0x58] sm:$0xff]  }
 0x26f   :  { %13649 = vmatmul.mubr.bf16.gmra.mrb[36].mxu1 %v16800_v15  ;;  %v14960_v15 = vld [vmem:[%s18500_s5 + $0x40] sm:$0xff]  }
 0x270   :  { %13652 = vmatprep.mubr.bf16.mxu1 %v16804_v52  ;;  %13660 = vmatprep.subr.bf16.mxu0 %v14960_v15  ;;  %v14961_v52 = vld [vmem:[%s18500_s5 + $0x48] sm:$0xff]  }
 0x271   :  { %13369 = vmatmul.mubr.bf16.gmra.mrb[44].mxu0 %v3684_v26 }
 0x272   :  { %13661 = vmatpush3.bf16.msra.mxu0 %v14960_v15 }
 0x273   :  { %13662 = vmatprep.subr.bf16.mxu0 %v14961_v52 }
 0x276   :  { %13663 = vmatpush3.bf16.msra.mxu0 %v14961_v52 }
 0x277   :  { %13653 = vmatmul.mubr.bf16.gmra.mrb[40].mxu1 %v16817_v51  ;;  %v14962_v51 = vld [vmem:[%s18500_s5 + $0x50] sm:$0xff]  }
 0x278   :  { %13656 = vmatprep.mubr.bf16.mxu1 %v16825_v44  ;;  %13664 = vmatprep.subr.bf16.mxu0 %v14962_v51  ;;  %v14964_v44 = vld [vmem:[%s18500_s5 + $0x60] sm:$0xff]  }
 0x27a   :  { %13665 = vmatpush3.bf16.msra.mxu0 %v14962_v51 }
 0x27b   :  { %13666 = vmatprep.subr.bf16.mxu0 %v14963_v63 }
 0x27e   :  { %13667 = vmatpush3.bf16.msra.mxu0 %v14963_v63 }
 0x27f   :  { %13657 = vmatmul.mubr.bf16.gmra.mrb[44].mxu1 %v5857_v61  ;;  %13668 = vmatprep.subr.bf16.mxu0 %v14964_v44 }
 0x282   :  { %13669 = vmatpush3.bf16.msra.mxu0 %v14964_v44 }
 0x283   :  { %13670 = vmatprep.subr.bf16.mxu0 %v14965_v30 }
 0x286   :  { %13671 = vmatpush3.bf16.msra.mxu0 %v14965_v30 }
 0x287   :  { %13672 = vmatprep.subr.bf16.mxu0 %v14966_v58 }
 0x28a   :  { %13673 = vmatpush3.bf16.msra.mxu0 %v14966_v58 }
 0x28b   :  { %13674 = vmatprep.subr.bf16.mxu0 %v14967_v28 }
 0x28e   :  { %13675 = vmatpush3.bf16.msra.mxu0 %v14967_v28 }
 0x28f   :  { %13692 = vmatprep.subr.bf16.mxu0 %v17186_v13 }
 0x32c   :  { %v13358_v25 = vpop.f32.mrb[32].mxu0 }
 0x32d   :  { %v3862_v55 = vadd.f32 %v13358_v25, %v17192_v54  ;;  %v3775_v19 = vpop.f32.mrb[33].mxu0 }
 0x32e   :  { %v3860_v59 = vadd.f32 %v17192_v54, %v3775_v19  ;;  %v13359_v8 = vpop.f32.mrb[34].mxu0 }
 0x32f   :  { %v3878_v60 = vmax.f32 %v3862_v55, 0.0  ;;  %v3863_v5 = vadd.f32 %v13359_v8, %v17192_v54  ;;  %v3778_v23 = vpop.f32.mrb[35].mxu0 }
 0x330   :  { %v3876_v22 = vmax.f32 %v3860_v59, 0.0  ;;  %v3861_v37 = vadd.f32 %v17192_v54, %v3778_v23  ;;  %v6193_v23 = vld [vmem:[#allocation5 + $0x8] sm:$0x70] }
 0x331   :  { %v3879_v18 = vmax.f32 %v3863_v5, 0.0 }
 0x332   :  { %v6093_v33 = vmax.f32 %v3876_v22, %v3878_v60  ;;  %v3877_v10 = vmax.f32 %v3861_v37, 0.0 }
 0x334   :  { %6109 = vst [vmem:[#allocation3 + $0x10] sm:$0xff] %v6093_v33  ;;  %v6094_v57 = vmax.f32 %v3877_v10, %v3879_v18  ;;  %v13362_v39 = vpop.f32.mrb[36].mxu0 }
 0x335   :  { %v3866_v31 = vadd.f32 %v13362_v39, %v17192_v54  ;;  %v3791_v49 = vpop.f32.mrb[37].mxu0 }
 0x336   :  { %6110 = vst [vmem:[#allocation3 + $0x18] sm:$0xff] %v6094_v57  ;;  %v3864_v0 = vadd.f32 %v17192_v54, %v3791_v49  ;;  %v13363_v40 = vpop.f32.mrb[38].mxu0 }
 0x337   :  { %v3882_v12 = vmax.f32 %v3866_v31, 0.0  ;;  %v3867_v46 = vadd.f32 %v13363_v40, %v17192_v54  ;;  %v3794_v4 = vpop.f32.mrb[39].mxu0 }
 0x338   :  { %v3880_v29 = vmax.f32 %v3864_v0, 0.0  ;;  %v3865_v21 = vadd.f32 %v17192_v54, %v3794_v4 }
 0x339   :  { %v3883_v47 = vmax.f32 %v3867_v46, 0.0 }
 0x33a   :  { %v6097_v17 = vmax.f32 %v3880_v29, %v3882_v12  ;;  %v3881_v48 = vmax.f32 %v3865_v21, 0.0  ;;  %v13646_v53 = vpop.f32.mrb[32].mxu1 }
 0x33b   :  { %v17203_v45 = vadd.f32 %v13646_v53, %v17192_v54  ;;  %v5948_v2 = vpop.f32.mrb[33].mxu1  ;;  %v6176_v34 = vld [vmem:[#allocation3 + $0x11] ss:$2 sm:$0xf] }
 0x33c   :  { %6113 = vst [vmem:[#allocation3 + $0x30] sm:$0xff] %v6097_v17  ;;  %v6098_v50 = vmax.f32 %v3881_v48, %v3883_v47  ;;  %v13366_v41 = vpop.f32.mrb[40].mxu0  ;;  %v6027_v11 = vadd.f32 %v17192_v54, %v5948_v2  ;;  %v13647_v38 = vpop.f32.mrb[34].mxu1 }
 0x33d   :  { %v6178_v9 = vld [vmem:[#allocation3 + $0x12] ss:$2 sm:$0xf]  ;;  %v3870_v32 = vadd.f32 %v13366_v41, %v17192_v54  ;;  %v3807_v27 = vpop.f32.mrb[41].mxu0  ;;  %v6045_v3 = vmax.f32 %v17203_v45, 0.0  ;;  %v17209_v43 = vadd.f32 %v13647_v38, %v17192_v54  ;;  %v5951_v35 = vpop.f32.mrb[35].mxu1 }
 0x33e   :  { %v6179_v1 = vmax.f32 %v6176_v34, %v6178_v9  ;;  %6114 = vst [vmem:[#allocation3 + $0x38] sm:$0xff] %v6098_v50  ;;  %v3868_v24 = vadd.f32 %v17192_v54, %v3807_v27  ;;  %v13367_v56 = vpop.f32.mrb[42].mxu0  ;;  %v6043_v6 = vmax.f32 %v6027_v11, 0.0  ;;  %v6028_v16 = vadd.f32 %v17192_v54, %v5951_v35  ;;  %v18640_v41 = vld [vmem:[#allocation11_spill] sm:$0xff] }
 0x33f   :  { %v3886_v42 = vmax.f32 %v3870_v32, 0.0  ;;  %v3871_v26 = vadd.f32 %v13367_v56, %v17192_v54  ;;  %v3810_v14 = vpop.f32.mrb[43].mxu0  ;;  %v6046_v62 = vmax.f32 %v17209_v43, 0.0  ;;  %v18641_v11 = vmax.f32 %v18640_v41, 0.0 }
 0x340   :  { %v6180_v36 = vpack.c.bf16 %v6179_v1, %v6179_v1  ;;  %v3884_v20 = vmax.f32 %v3868_v24, 0.0  ;;  %v3869_v7 = vadd.f32 %v17192_v54, %v3810_v14  ;;  %v6143_v61 = vmax.f32 %v6043_v6, %v6045_v3  ;;  %v17252_v6 = vld [vmem:[#allocation5] sm:$0xf0] }
 0x341   :  { %v3887_v15 = vmax.f32 %v3871_v26, 0.0  ;;  %v6044_v52 = vmax.f32 %v6028_v16, 0.0  ;;  %v18642_v26 = vld [vmem:[#allocation12_spill] sm:$0xff] }
 0x342   :  { %v6182_v51 = vshrl.u32 %v6180_v36, 16  ;;  %v6185_v63 = vshll.u32 %v6180_v36, 16  ;;  %v6101_v44 = vmax.f32 %v3884_v20, %v3886_v42  ;;  %v3885_v30 = vmax.f32 %v3869_v7, 0.0  ;;  %6159 = vst [vmem:[#allocation3 + $0x110] sm:$0xff] %v6143_v61  ;;  %v13650_v58 = vpop.f32.mrb[36].mxu1 }
 0x343   :  { %v6197_v28 = vld [vmem:[#allocation3 + $0x31] ss:$2 sm:$0xf]  ;;  %v6144_v25 = vmax.f32 %v6044_v52, %v6046_v62  ;;  %v17221_v55 = vadd.f32 %v13650_v58, %v17192_v54  ;;  %v5964_v19 = vpop.f32.mrb[37].mxu1  ;;  %v18643_v14 = vmax.f32 %v18642_v26, 0.0 }
 0x344   :  { %v6184_v59 = vrot.slane %v6182_v51, 3  ;;  %v6187_v8 = vrot.slane %v6185_v63, 4  ;;  %6117 = vst [vmem:[#allocation3 + $0x50] sm:$0xff] %v6101_v44  ;;  %v6102_v60 = vmax.f32 %v3885_v30, %v3887_v15  ;;  %v13370_v5 = vpop.f32.mrb[44].mxu0  ;;  %v6031_v22 = vadd.f32 %v17192_v54, %v5964_v19  ;;  %v13651_v37 = vpop.f32.mrb[38].mxu1 }
 0x345   :  { %v6199_v18 = vld [vmem:[#allocation3 + $0x32] ss:$2 sm:$0xf]  ;;  %v3874_v33 = vadd.f32 %v13370_v5, %v17192_v54  ;;  %v3823_v10 = vpop.f32.mrb[45].mxu0  ;;  %6160 = vst [vmem:[#allocation3 + $0x118] sm:$0xff] %v6144_v25  ;;  %v6049_v57 = vmax.f32 %v17221_v55, 0.0  ;;  %v17233_v31 = vadd.f32 %v13651_v37, %v17192_v54 }
 0x346   :  { %v5967_v49 = vpop.f32.mrb[39].mxu1  ;;  %v6188_v0 = vor.u32 %v6187_v8, %v6184_v59  ;;  %v6200_v40 = vmax.f32 %v6197_v28, %v6199_v18  ;;  %6118 = vst [vmem:[#allocation3 + $0x58] sm:$0xff] %v6102_v60  ;;  %v3872_v12 = vadd.f32 %v17192_v54, %v3823_v10  ;;  %v13371_v46 = vpop.f32.mrb[46].mxu0  ;;  %v6047_v4 = vmax.f32 %v6031_v22, 0.0  ;;  %v6213_v37 = vld [vmem:[#allocation5 + $0x10] sm:$0x7] }
 0x347   :  { %v17236_v29 = vmax.f32 %v3874_v33, 0.0  ;;  %v3875_v21 = vadd.f32 %v13371_v46, %v17192_v54  ;;  %v3826_v47 = vpop.f32.mrb[47].mxu0  ;;  %v6050_v17 = vmax.f32 %v17233_v31, 0.0  ;;  %v6032_v48 = vadd.f32 %v17192_v54, %v5967_v49 }
 0x348   :  { %v6201_v53 = vpack.c.bf16 %v6200_v40, %v6200_v40  ;;  %v3888_v2 = vmax.f32 %v3872_v12, 0.0  ;;  %v3873_v34 = vadd.f32 %v17192_v54, %v3826_v47  ;;  %v6194_v50 = vsel %vm17228_vm12, %v6188_v0, %v6193_v23 }
 0x349   :  { %18639 = vst [vmem:[#allocation19_spill] sm:$0xff] %v17236_v29  ;;  %v6107_v38 = vmax.f32 %v17236_v29, %v18641_v11  ;;  %v3891_v9 = vmax.f32 %v3875_v21, 0.0  ;;  %6195 = vst [vmem:[#allocation5 + $0x8] sm:$0x70] %v6194_v50  ;;  %v6145_v32 = vmax.f32 %v6045_v3, %v6047_v4  ;;  %v6147_v27 = vmax.f32 %v6047_v4, %v6049_v57  ;;  %v6231_v50 = vld [vmem:[#allocation5 + $0x10] sm:$0x70] }
 0x34a   :  { %v6203_v35 = vshrl.u32 %v6201_v53, 16  ;;  %v6105_v1 = vmax.f32 %v3888_v2, %v17236_v29  ;;  %v3889_v24 = vmax.f32 %v3873_v34, 0.0  ;;  %v6252_v56 = vld [vmem:[#allocation3 + $0x111] ss:$2 sm:$0xf]  ;;  %v13654_v16 = vpop.f32.mrb[40].mxu1 }
 0x34b   :  { %v6217_v42 = vld [vmem:[#allocation3 + $0x51] ss:$2 sm:$0xf]  ;;  %6123 = vst [vmem:[#allocation3 + $0x80] sm:$0xff] %v6107_v38  ;;  %v6108_v36 = vmax.f32 %v3891_v9, %v18643_v14  ;;  %6161 = vst [vmem:[#allocation3 + $0x120] sm:$0xff] %v6145_v32  ;;  %v6048_v45 = vmax.f32 %v6032_v48, 0.0  ;;  %v17257_v3 = vadd.f32 %v13654_v16, %v17192_v54 }
 0x34c   :  { %6163 = vst [vmem:[#allocation3 + $0x130] sm:$0xff] %v6147_v27  ;;  %v5980_v20 = vpop.f32.mrb[41].mxu1  ;;  %v6205_v7 = vrot.slane %v6203_v35, 7  ;;  %v6206_v61 = vshll.u32 %v6201_v53, 16  ;;  %6121 = vst [vmem:[#allocation3 + $0x70] sm:$0xff] %v6105_v1  ;;  %v6106_v15 = vmax.f32 %v3889_v24, %v3891_v9  ;;  %v6374_v22 = vrot.slane %v17252_v6, 4 }
 0x34d   :  { %v6254_v52 = vld [vmem:[#allocation3 + $0x112] ss:$2 sm:$0xf]  ;;  %v6035_v51 = vadd.f32 %v17192_v54, %v5980_v20  ;;  %v13655_v63 = vpop.f32.mrb[42].mxu1  ;;  %6124 = vst [vmem:[#allocation3 + $0x88] sm:$0xff] %v6108_v36  ;;  %v6146_v58 = vmax.f32 %v6046_v62, %v6048_v45  ;;  %v6148_v28 = vmax.f32 %v6048_v45, %v6050_v17  ;;  %v6053_v25 = vmax.f32 %v17257_v3, 0.0 }
 0x34e   :  { %v6219_v44 = vld [vmem:[#allocation3 + $0x52] ss:$2 sm:$0xf]  ;;  %v6255_v30 = vmax.f32 %v6252_v56, %v6254_v52  ;;  %v5983_v19 = vpop.f32.mrb[43].mxu1  ;;  %v6208_v59 = vor.u32 %v6206_v61, %v6205_v7  ;;  %6122 = vst [vmem:[#allocation3 + $0x78] sm:$0xff] %v6106_v15  ;;  %v17266_v5 = vadd.f32 %v13655_v63, %v17192_v54 }
 0x34f   :  { %v6220_v8 = vmax.f32 %v6217_v42, %v6219_v44  ;;  %v6051_v60 = vmax.f32 %v6035_v51, 0.0  ;;  %6162 = vst [vmem:[#allocation3 + $0x128] sm:$0xff] %v6146_v58  ;;  %6164 = vst [vmem:[#allocation3 + $0x138] sm:$0xff] %v6148_v28  ;;  %v6036_v43 = vadd.f32 %v17192_v54, %v5983_v19  ;;  %v6266_v11 = vld [vmem:[#allocation5 + $0x28] sm:$0x70]  ;;  %v18646_v44 = vld [vmem:[#allocation14_spill] sm:$0xff] }
 0x350   :  { %v6256_v23 = vpack.c.bf16 %v6255_v30, %v6255_v30  ;;  %v17276_v33 = vld [vmem:[#allocation5 + $0x8] sm:$0xff]  ;;  %v6054_v0 = vmax.f32 %v17266_v5, 0.0  ;;  %v6214_v53 = vsel %vm17272_vm14, %v6208_v59, %v6213_v37  ;;  %v18647_v30 = vmax.f32 %v18646_v44, 0.0 }
 0x351   :  { %v6221_v18 = vpack.c.bf16 %v6220_v8, %v6220_v8  ;;  %v6149_v10 = vmax.f32 %v6049_v57, %v6051_v60  ;;  %v6151_v49 = vmax.f32 %v6051_v60, %v6053_v25  ;;  %v6375_v46 = vrot.slane %v17276_v33, 4  ;;  %6215 = vst [vmem:[#allocation5 + $0x10] sm:$0x7] %v6214_v53  ;;  %v18648_v60 = vld [vmem:[#allocation15_spill] sm:$0xff]  ;;  %v6283_v53 = vld [vmem:[#allocation5 + $0x30] sm:$0x7] }
 0x352   :  { %v6258_v40 = vshrl.u32 %v6256_v23, 16  ;;  %v6261_v12 = vshll.u32 %v6256_v23, 16  ;;  %v6052_v4 = vmax.f32 %v6036_v43, 0.0  ;;  %v13658_v48 = vpop.f32.mrb[44].mxu1  ;;  %v17295_v26 = vshrl.u32 %v17276_v33, 16 }
 0x353   :  { %v6223_v21 = vshrl.u32 %v6221_v18, 16  ;;  %v6226_v47 = vshll.u32 %v6221_v18, 16  ;;  %6165 = vst [vmem:[#allocation3 + $0x140] sm:$0xff] %v6149_v10  ;;  %6167 = vst [vmem:[#allocation3 + $0x150] sm:$0xff] %v6151_v49  ;;  %v6376_v2 = vsel %vm1776_vm6, %v6374_v22, %v6375_v46  ;;  %v5996_v41 = vpop.f32.mrb[45].mxu1  ;;  %v6041_v1 = vadd.f32 %v13658_v48, %v17192_v54 }
 0x354   :  { %v6260_v55 = vrot.slane %v6258_v40, 3  ;;  %v6263_v57 = vrot.slane %v6261_v12, 4  ;;  %v6150_v34 = vmax.f32 %v6050_v17, %v6052_v4  ;;  %v6235_v32 = vld [vmem:[#allocation3 + $0x71] ss:$2 sm:$0xf]  ;;  %13676 = vmatprep.mubr.bf16.mxu0 %v6376_v2  ;;  %v6152_v35 = vmax.f32 %v6052_v4, %v6054_v0  ;;  %v13659_v24 = vpop.f32.mrb[46].mxu1 }
 0x355   :  { %v6225_v38 = vrot.slane %v6223_v21, 3  ;;  %v6228_v9 = vrot.slane %v6226_v47, 4  ;;  %v6270_v27 = vld [vmem:[#allocation3 + $0x131] ss:$2 sm:$0xf]  ;;  %v6039_v42 = vadd.f32 %v17192_v54, %v5996_v41  ;;  %v6042_v31 = vadd.f32 %v13659_v24, %v17192_v54  ;;  %v5999_v17 = vpop.f32.mrb[47].mxu1 }
 0x356   :  { %v6237_v56 = vld [vmem:[#allocation3 + $0x72] ss:$2 sm:$0xf]  ;;  %v6264_v16 = vor.u32 %v6263_v57, %v6260_v55  ;;  %6166 = vst [vmem:[#allocation3 + $0x148] sm:$0xff] %v6150_v34  ;;  %6168 = vst [vmem:[#allocation3 + $0x158] sm:$0xff] %v6152_v35  ;;  %v6057_v20 = vmax.f32 %v6041_v1, 0.0  ;;  %v6040_v7 = vadd.f32 %v17192_v54, %v5999_v17 }
 0x357   :  { %v6229_v14 = vor.u32 %v6228_v9, %v6225_v38  ;;  %v6238_v36 = vmax.f32 %v6235_v32, %v6237_v56  ;;  %v6272_v45 = vld [vmem:[#allocation3 + $0x132] ss:$2 sm:$0xf]  ;;  %v6055_v15 = vmax.f32 %v6039_v42, 0.0  ;;  %v6058_v52 = vmax.f32 %v6042_v31, 0.0  ;;  %v14969_v32 = vld [vmem:[%s18500_s5 + $0x8] sm:$0xff]  }
 0x358   :  { %v6273_v61 = vmax.f32 %v6270_v27, %v6272_v45  ;;  %v6267_v51 = vsel %vm17228_vm12, %v6264_v16, %v6266_v11  ;;  %v6157_v58 = vmax.f32 %v6057_v20, %v18647_v30  ;;  %v6056_v19 = vmax.f32 %v6040_v7, 0.0  ;;  %v6248_v12 = vld [vmem:[#allocation5 + $0x18] sm:$0x7]  ;;  %v6301_v31 = vld [vmem:[#allocation5 + $0x30] sm:$0x70]  ;;  %v17342_v45 = vld [vmem:[#allocation4] sm:$0xff] }
 0x359   :  { %v6239_v63 = vpack.c.bf16 %v6238_v36, %v6238_v36  ;;  %v6232_v28 = vsel %vm17228_vm12, %v6229_v14, %v6231_v50  ;;  %6268 = vst [vmem:[#allocation5 + $0x28] sm:$0x70] %v6267_v51  ;;  %v6153_v54 = vmax.f32 %v6053_v25, %v6055_v15  ;;  %v6155_v8 = vmax.f32 %v6055_v15, %v6057_v20  ;;  %v14970_v36 = vld [vmem:[%s18500_s5 + $0x10] sm:$0xff]  }
 0x35a   :  { %v6274_v59 = vpack.c.bf16 %v6273_v61, %v6273_v61  ;;  %6233 = vst [vmem:[#allocation5 + $0x10] sm:$0x70] %v6232_v28  ;;  %v18649_v5 = vmax.f32 %v18648_v60, 0.0  ;;  %6173 = vst [vmem:[#allocation3 + $0x180] sm:$0xff] %v6157_v58  ;;  %v6154_v43 = vmax.f32 %v6054_v0, %v6056_v19  ;;  %v6156_v37 = vmax.f32 %v6056_v19, %v6058_v52  ;;  %v6318_v60 = vld [vmem:[#allocation5 + $0x38] sm:$0x7] }
 0x35b   :  { %v6241_v22 = vshrl.u32 %v6239_v63, 16  ;;  %v6287_v10 = vld [vmem:[#allocation3 + $0x151] ss:$2 sm:$0xf]  ;;  %6169 = vst [vmem:[#allocation3 + $0x160] sm:$0xff] %v6153_v54  ;;  %6171 = vst [vmem:[#allocation3 + $0x170] sm:$0xff] %v6155_v8 }
 0x35c   :  { %v6158_v23 = vmax.f32 %v6058_v52, %v18649_v5  ;;  %v6276_v18 = vshrl.u32 %v6274_v59, 16  ;;  %v6244_v40 = vshll.u32 %v6239_v63, 16  ;;  %6170 = vst [vmem:[#allocation3 + $0x168] sm:$0xff] %v6154_v43  ;;  %6172 = vst [vmem:[#allocation3 + $0x178] sm:$0xff] %v6156_v37  ;;  %v17309_v3 = vshll.u32 %v17276_v33, 16  ;;  %v14971_v8 = vld [vmem:[%s18500_s5 + $0x18] sm:$0xff]  }
 0x35d   :  { %v6243_v49 = vrot.slane %v6241_v22, 7  ;;  %v7032_v25 = vrot.slane %v17295_v26, 7  ;;  %v6279_v21 = vshll.u32 %v6274_v59, 16  ;;  %v6289_v47 = vld [vmem:[#allocation3 + $0x152] ss:$2 sm:$0xf] }
 0x35e   :  { %6174 = vst [vmem:[#allocation3 + $0x188] sm:$0xff] %v6158_v23  ;;  %v6278_v4 = vrot.slane %v6276_v18, 7  ;;  %v6290_v48 = vmax.f32 %v6287_v10, %v6289_v47  ;;  %v17345_v20 = vrot.slane %v17342_v45, 4  ;;  %v7440_v44 = vrot.slane %v17309_v3, 1  ;;  %v6322_v23 = vld [vmem:[#allocation5] sm:$0xf8] }
 0x35f   :  { %v6246_v0 = vor.u32 %v6244_v40, %v6243_v49  ;;  %v17315_v55 = vor.u32 %v7032_v25, %v17309_v3 }
 0x360   :  { %v6281_v57 = vor.u32 %v6279_v21, %v6278_v4  ;;  %v6291_v2 = vpack.c.bf16 %v6290_v48, %v6290_v48  ;;  %v17333_v42 = vld [vmem:[#allocation5 + $0x28] sm:$0xff]  ;;  %v7441_v40 = vor.u32 %v7440_v44, %v17295_v26 }
 0x361   :  { %v17317_v34 = vld [vmem:[#allocation5 + $0x10] sm:$0xff]  ;;  %v6249_v50 = vsel %vm17272_vm14, %v6246_v0, %v6248_v12  ;;  %v6383_v7 = vrot.slane %v17333_v42, 4  ;;  %v17357_v63 = vshrl.u32 %v17333_v42, 16  ;;  %v17391_v49 = vshll.u32 %v17333_v42, 16  ;;  %v14972_v4 = vld [vmem:[%s18500_s5 + $0x20] sm:$0xff]  }
 0x362   :  { %v17322_v41 = vrot.slane %v17317_v34, 4  ;;  %6250 = vst [vmem:[#allocation5 + $0x18] sm:$0x7] %v6249_v50  ;;  %v6284_v11 = vsel %vm17272_vm14, %v6281_v57, %v6283_v53  ;;  %v6293_v38 = vshrl.u32 %v6291_v2, 16  ;;  %v6296_v9 = vshll.u32 %v6291_v2, 16 }
 0x363   :  { %6285 = vst [vmem:[#allocation5 + $0x30] sm:$0x7] %v6284_v11  ;;  %v6305_v35 = vld [vmem:[#allocation3 + $0x171] ss:$2 sm:$0xf]  ;;  %v17361_v28 = vshll.u32 %v17317_v34, 16  ;;  %v17374_v54 = vsel %vm1776_vm6, %v17345_v20, %v6383_v7 }
 0x364   :  { %v6378_v27 = vsel %vm1776_vm6, %v6375_v46, %v17322_v41  ;;  %v6307_v1 = vld [vmem:[#allocation3 + $0x172] ss:$2 sm:$0xf]  ;;  %v6295_v24 = vrot.slane %v6293_v38, 3  ;;  %v6298_v56 = vrot.slane %v6296_v9, 4  ;;  %v17340_v46 = vshrl.u32 %v17317_v34, 16 }
 0x365   :  { %13677 = vmatmul.mubr.bf16.vlgmr.msra.gmra.mrb[48].mxu0 %v6378_v27  ;;  %v6308_v16 = vmax.f32 %v6305_v35, %v6307_v1  ;;  %v7044_v18 = vrot.slane %v17357_v63, 7  ;;  %v7445_v12 = vrot.slane %v17361_v28, 1  ;;  %v6545_v0 = vshrl.u32 %v6322_v23, 16  ;;  %v14973_v38 = vld [vmem:[%s18500_s5 + $0x28] sm:$0xff]   ;;  %v17425_v9 = vld [vmem:[#allocation5 + $0x40] sm:$0xf] }
 0x366   :  { %13693 = vmatpush3.bf16.msra.mxu0 %v17186_v13  ;;  %v6299_v17 = vor.u32 %v6298_v56, %v6295_v24  ;;  %v7035_v39 = vrot.slane %v17340_v46, 7  ;;  %v6548_v57 = vshll.u32 %v6322_v23, 16  ;;  %v6555_v56 = vrot.slane %v17295_v26, 3 }
 0x367   :  { %v6309_v14 = vpack.c.bf16 %v6308_v16, %v6308_v16  ;;  %13694 = vmatprep.subr.bf16.mxu0 %v14969_v32  ;;  %v17409_v48 = vor.u32 %v7044_v18, %v17391_v49  ;;  %v17432_v35 = vsel %vm7434_vm15, %v7441_v40, %v7445_v12  ;;  %v6547_v1 = vrot.slane %v6545_v0, 3 }
 0x368   :  { %v6302_v15 = vsel %vm17228_vm12, %v6299_v17, %v6301_v31  ;;  %v7036_v43 = vor.u32 %v7035_v39, %v17361_v28  ;;  %v6550_v24 = vrot.slane %v6548_v57, 4  ;;  %v6558_v16 = vrot.slane %v17309_v3, 4  ;;  %v14976_v57 = vld [vmem:[%s18500_s5 + $0x80] sm:$0xff]  }
 0x369   :  { %v6311_v61 = vshrl.u32 %v6309_v14, 16  ;;  %v17348_v13 = vld [vmem:[#allocation5 + $0x18] sm:$0xff]  ;;  %6303 = vst [vmem:[#allocation5 + $0x30] sm:$0x70] %v6302_v15  ;;  %v6314_v58 = vshll.u32 %v6309_v14, 16  ;;  %v6389_v17 = vrot.slane %v17425_v9, 4 }
 0x36a   :  { %v6379_v52 = vrot.slane %v17348_v13, 4  ;;  %13695 = vmatpush3.bf16.msra.mxu0 %v14969_v32  ;;  %v17354_v51 = vshrl.u32 %v17348_v13, 16  ;;  %v17382_v22 = vshll.u32 %v17348_v13, 16  ;;  %v17401_v21 = vsel %vm1388_vm1, %v7032_v25, %v7036_v43  ;;  %v14975_v43 = vld [vmem:[%s18500_s5 + $0x38] sm:$0xff]  }
 0x36b   :  { %v6313_v30 = vrot.slane %v6311_v61, 7  ;;  %13696 = vmatprep.subr.bf16.mxu0 %v14970_v36  ;;  %v7449_v25 = vor.u32 %v7445_v12, %v17340_v46  ;;  %v14974_v61 = vld [vmem:[%s18500_s5 + $0x30] sm:$0xff]  }
 0x36c   :  { %v17366_v19 = vsel %vm1776_vm6, %v17322_v41, %v6379_v52  ;;  %v17370_v59 = vsel %vm1776_vm6, %v6379_v52, %v17345_v20  ;;  %v18555_v37 = vrot.slane %v17354_v51, 7 }
 0x36d   :  { %v6316_v5 = vor.u32 %v6314_v58, %v6313_v30  ;;  %13680 = vmatprep.mubr.bf16.mxu0 %v17366_v19 }
 0x36e   :  { %13681 = vmatmul.mubr.bf16.gmra.mrb[52].mxu0 %v17370_v59  ;;  %v7039_v62 = vor.u32 %v18555_v37, %v17382_v22 }
 0x36f   :  { %13684 = vmatprep.mubr.bf16.mxu0 %v17374_v54  ;;  %13697 = vmatpush3.bf16.msra.mxu0 %v14970_v36  ;;  %v6319_v10 = vsel %vm17272_vm14, %v6316_v5, %v6318_v60  ;;  %v7453_v36 = vrot.slane %v17382_v22, 1 }
 0x370   :  { %13698 = vmatprep.subr.bf16.mxu0 %v14971_v8  ;;  %6320 = vst [vmem:[#allocation5 + $0x38] sm:$0x7] %v6319_v10  ;;  %v17406_v47 = vld [vmem:[#allocation5 + $0x30] sm:$0xff]  ;;  %v17416_v50 = vsel %vm1388_vm1, %v7035_v39, %v7039_v62  ;;  %v6551_v39 = vor.u32 %v6550_v24, %v6547_v1  ;;  %v6567_v10 = vrot.slane %v17361_v28, 4  ;;  %v6576_v62 = vrot.slane %v17382_v22, 4 }
 0x371   :  { %v6385_v53 = vrot.slane %v17406_v47, 4  ;;  %v17413_v2 = vshrl.u32 %v17406_v47, 16  ;;  %v17428_v32 = vshll.u32 %v17406_v47, 16  ;;  %v17455_v44 = vsel %vm7434_vm15, %v7449_v25, %v7453_v36 }
 0x372   :  { %v17458_v30 = vor.u32 %v7453_v36, %v17354_v51 }
 0x373   :  { %13699 = vmatpush3.bf16.msra.mxu0 %v14971_v8  ;;  %v17420_v11 = vsel %vm1776_vm6, %v6383_v7, %v6385_v53  ;;  %v7047_v27 = vrot.slane %v17413_v2, 7  ;;  %v6559_v8 = vor.u32 %v6558_v16, %v6555_v56  ;;  %v14977_v56 = vld [vmem:[%s18500_s5 + $0x88] sm:$0xff]  }
 0x374   :  { %13700 = vmatprep.subr.bf16.mxu0 %v14972_v4 }
 0x375   :  { %v7048_v14 = vor.u32 %v7047_v27, %v17428_v32  ;;  %v6560_v12 = vsel %vm1947_vm7, %v6551_v39, %v6559_v8  ;;  %v6594_v39 = vrot.slane %v17391_v49, 4 }
 0x376   :  { %13685 = vmatmul.mubr.bf16.gmra.mrb[56].mxu0 %v17420_v11 }
 0x377   :  { %13701 = vmatpush3.bf16.msra.mxu0 %v14972_v4  ;;  %v17437_v31 = vld [vmem:[#allocation5 + $0x38] sm:$0xff]  ;;  %v17452_v52 = vsel %vm1388_vm1, %v7044_v18, %v7048_v14  ;;  %v6564_v18 = vrot.slane %v17340_v46, 3  ;;  %v6573_v4 = vrot.slane %v17354_v51, 3 }
 0x378   :  { %13702 = vmatprep.subr.bf16.mxu0 %v14973_v38  ;;  %v17443_v7 = vrot.slane %v17437_v31, 4  ;;  %v17449_v15 = vshrl.u32 %v17437_v31, 16  ;;  %v17468_v5 = vshll.u32 %v17437_v31, 16 }
 0x379   :  { %v17489_v25 = vor.u32 %v6567_v10, %v6564_v18  ;;  %v6577_v24 = vor.u32 %v6576_v62, %v6573_v4  ;;  %v14979_v18 = vld [vmem:[%s18500_s5 + $0x98] sm:$0xff]  }
 0x37a   :  { %18650 = vst [vmem:[#allocation18_spill] sm:$0xff] %v17443_v7  ;;  %v17462_v58 = vsel %vm1776_vm6, %v6385_v53, %v17443_v7  ;;  %v6390_v60 = vsel %vm1776_vm6, %v17443_v7, %v6389_v17  ;;  %v18554_v23 = vrot.slane %v17449_v15, 7  ;;  %v18553_v53 = vrot.slane %v17391_v49, 1 }
 0x37b   :  { %13703 = vmatpush3.bf16.msra.mxu0 %v14973_v38  ;;  %13688 = vmatprep.mubr.bf16.mxu0 %v17462_v58  ;;  %v17492_v38 = vshll.u32 %v17342_v45, 16  ;;  %v6569_v16 = vsel %vm1947_vm7, %v6559_v8, %v17489_v25  ;;  %v17509_v36 = vsel %vm1947_vm7, %v17489_v25, %v6577_v24  ;;  %v14978_v8 = vld [vmem:[%s18500_s5 + $0x90] sm:$0xff]   ;;  %v6609_v62 = vrot.slane %v17449_v15, 3 }
 0x37c   :  { %13704 = vmatprep.subr.bf16.mxu0 %v14974_v61  ;;  %v7051_v40 = vor.u32 %v18554_v23, %v17468_v5  ;;  %v7473_v1 = vor.u32 %v18553_v53, %v17357_v63  ;;  %v6799_v53 = vshll.u32 %v17252_v6, 16  ;;  %v7485_v37 = vrot.slane %v17468_v5, 1 }
 0x37d   :  { %v6585_v14 = vrot.slane %v17492_v38, 4 }
 0x37e   :  { %13689 = vmatmul.mubr.bf16.gmra.mrb[60].mxu0 %v6390_v60  ;;  %v17483_v0 = vsel %vm1388_vm1, %v7047_v27, %v7051_v40  ;;  %v17498_v27 = vshrl.u32 %v17342_v45, 16  ;;  %v6600_v40 = vrot.slane %v17413_v2, 3  ;;  %v6801_v7 = vrot.slane %v6799_v53, 5 }
 0x37f   :  { %13705 = vmatpush3.bf16.msra.mxu0 %v14974_v61  ;;  %13708 = vmatprep.mubr.bf16.mxu0 %v6560_v12  ;;  %v6591_v61 = vrot.slane %v17357_v63, 3  ;;  %v6603_v12 = vrot.slane %v17428_v32, 4 }
 0x380   :  { %13706 = vmatprep.subr.bf16.mxu0 %v14975_v43  ;;  %v6582_v17 = vrot.slane %v17498_v27, 3 }
 0x382   :  { %v17517_v60 = vor.u32 %v6585_v14, %v6582_v17  ;;  %v6619_v17 = vshll.u32 %v17425_v9, 16 }
 0x383   :  { %13707 = vmatpush3.bf16.msra.mxu0 %v14975_v43  ;;  %v6595_v43 = vor.u32 %v6594_v39, %v6591_v61  ;;  %v6604_v61 = vor.u32 %v6603_v12, %v6600_v40  ;;  %v6796_v39 = vshrl.u32 %v17252_v6, 16 }
 0x384   :  { %13724 = vmatprep.subr.bf16.mxu0 %v14976_v57  ;;  %v17524_v10 = vsel %vm1947_vm7, %v6577_v24, %v17517_v60  ;;  %v14980_v24 = vld [vmem:[%s18500_s5 + $0xa0] sm:$0xff]  }
 0x385   :  { %v17531_v4 = vsel %vm1947_vm7, %v17517_v60, %v6595_v43  ;;  %v17555_v40 = vsel %vm1947_vm7, %v6595_v43, %v6604_v61  ;;  %v6798_v12 = vrot.slane %v6796_v39, 4 }
 0x386   :  { %13709 = vmatmul.mubr.bf16.vlgmr.msra.gmra.mrb[48].mxu0 %v6569_v16  ;;  %v6616_v16 = vshrl.u32 %v17425_v9, 16  ;;  %v14981_v9 = vld [vmem:[%s18500_s5 + $0xa8] sm:$0xff]  }
 0x387   :  { %13712 = vmatprep.mubr.bf16.mxu0 %v17509_v36  ;;  %13725 = vmatpush3.bf16.msra.mxu0 %v14976_v57  ;;  %v6612_v57 = vrot.slane %v17468_v5, 4  ;;  %v6802_v43 = vor.u32 %v6801_v7, %v6798_v12  ;;  %v6812_v7 = vrot.slane %v17382_v22, 5  ;;  %v6815_v22 = vrot.slane %v17498_v27, 4 }
 0x388   :  { %13726 = vmatprep.subr.bf16.mxu0 %v14977_v56  ;;  %v6618_v29 = vrot.slane %v6616_v16, 3 }
 0x38b   :  { %13727 = vmatpush3.bf16.msra.mxu0 %v14977_v56  ;;  %v7477_v56 = vrot.slane %v17428_v32, 1 }
 0x38c   :  { %13728 = vmatprep.subr.bf16.mxu0 %v14978_v8 }
 0x38d   :  { %v17543_v14 = vsel %vm7434_vm15, %v7473_v1, %v7477_v56  ;;  %v7481_v23 = vor.u32 %v7477_v56, %v17413_v2  ;;  %v6621_v1 = vrot.slane %v6619_v17, 4  ;;  %v17568_v56 = vor.u32 %v7485_v37, %v17449_v15 }
 0x38e   :  { %13713 = vmatmul.mubr.bf16.gmra.mrb[52].mxu0 %v17524_v10 }
 0x38f   :  { %13716 = vmatprep.mubr.bf16.mxu0 %v17531_v4  ;;  %13729 = vmatpush3.bf16.msra.mxu0 %v14978_v8  ;;  %v17548_v8 = vor.u32 %v6612_v57, %v6609_v62  ;;  %v17558_v6 = vsel %vm7434_vm15, %v7481_v23, %v7485_v37  ;;  %v6803_v62 = vrot.slane %v17295_v26, 4  ;;  %v6804_v57 = vrot.slane %v17309_v3, 5  ;;  %v14982_v23 = vld [vmem:[%s18500_s5 + $0xb0] sm:$0xff]   ;;  %v14983_v26 = vld [vmem:[%s18500_s5 + $0xb8] sm:$0xff]  }
 0x390   :  { %13730 = vmatprep.subr.bf16.mxu0 %v14979_v18  ;;  %v6622_v53 = vor.u32 %v6621_v1, %v6618_v29  ;;  %v6807_v37 = vrot.slane %v17340_v46, 4  ;;  %v6811_v29 = vrot.slane %v17354_v51, 4  ;;  %v14985_v46 = vld [vmem:[%s18500_s5 + $0xc8] sm:$0xff]   ;;  %v6816_v1 = vrot.slane %v17492_v38, 5 }
 0x391   :  { %v6805_v16 = vor.u32 %v6804_v57, %v6803_v62  ;;  %v6819_v62 = vrot.slane %v17357_v63, 4  ;;  %v6820_v57 = vrot.slane %v17391_v49, 5 }
 0x392   :  { %v6623_v3 = vsel %vm1947_vm7, %v17548_v8, %v6622_v53  ;;  %v17606_v53 = vor.u32 %v6816_v1, %v6815_v22 }
 0x393   :  { %13731 = vmatpush3.bf16.msra.mxu0 %v14979_v18  ;;  %v17563_v18 = vsel %vm1947_vm7, %v6604_v61, %v17548_v8  ;;  %v6806_v17 = vsel %vm2199_vm8, %v6802_v43, %v6805_v16  ;;  %v14984_v61 = vld [vmem:[%s18500_s5 + $0xc0] sm:$0xff]   ;;  %v6821_v43 = vor.u32 %v6820_v57, %v6819_v62 }
 0x394   :  { %13732 = vmatprep.subr.bf16.mxu0 %v14980_v24 }
 0x396   :  { %13717 = vmatmul.mubr.bf16.gmra.mrb[56].mxu0 %v17555_v40 }
 0x397   :  { %13720 = vmatprep.mubr.bf16.mxu0 %v17563_v18  ;;  %13733 = vmatpush3.bf16.msra.mxu0 %v14980_v24  ;;  %v6808_v24 = vrot.slane %v17361_v28, 5 }
 0x398   :  { %13734 = vmatprep.subr.bf16.mxu0 %v14981_v9 }
 0x399   :  { %v17587_v39 = vor.u32 %v6808_v24, %v6807_v37  ;;  %v17620_v37 = vsel %vm2199_vm8, %v17606_v53, %v6821_v43  ;;  %v6827_v24 = vrot.slane %v17449_v15, 4 }
 0x39b   :  { %13735 = vmatpush3.bf16.msra.mxu0 %v14981_v9  ;;  %v6813_v9 = vor.u32 %v6812_v7, %v6811_v29  ;;  %v6810_v28 = vsel %vm2199_vm8, %v6805_v16, %v17587_v39  ;;  %v14987_v16 = vld [vmem:[%s18500_s5 + $0xd8] sm:$0xff]  }
 0x39c   :  { %13736 = vmatprep.subr.bf16.mxu0 %v14982_v23  ;;  %v6777_v29 = vld [vmem:[#allocation5 + $0x40] sm:$0x1f] }
 0x39d   :  { %v17598_v12 = vsel %vm2199_vm8, %v17587_v39, %v6813_v9  ;;  %v17613_v63 = vsel %vm2199_vm8, %v6813_v9, %v17606_v53  ;;  %v6832_v7 = vshrl.u32 %v6777_v29, 16 }
 0x39e   :  { %13721 = vmatmul.mubr.bf16.gmra.mrb[60].mxu0 %v6623_v3  ;;  %v6824_v3 = vrot.slane %v17428_v32, 5 }
 0x39f   :  { %13737 = vmatpush3.bf16.msra.mxu0 %v14982_v23  ;;  %13740 = vmatprep.mubr.bf16.mxu0 %v6806_v17  ;;  %v14986_v23 = vld [vmem:[%s18500_s5 + $0xd0] sm:$0xff]   ;;  %v6828_v17 = vrot.slane %v17468_v5, 5  ;;  %v14989_v5 = vld [vmem:[%s18500_s5 + $0xe8] sm:$0xff]   ;;  %v6834_v22 = vrot.slane %v6832_v7, 4  ;;  %v14995_v7 = vld [vmem:[%s18500_s5 + $0x118] sm:$0xff]  }
 0x3a0   :  { %13738 = vmatprep.subr.bf16.mxu0 %v14983_v26 }
 0x3a1   :  { %v17628_v9 = vor.u32 %v6828_v17, %v6827_v24  ;;  %v14992_v17 = vld [vmem:[%s18500_s5 + $0x100] sm:$0xff]  }
 0x3a3   :  { %13739 = vmatpush3.bf16.msra.mxu0 %v14983_v26  ;;  %v6823_v26 = vrot.slane %v17413_v2, 4  ;;  %v14988_v2 = vld [vmem:[%s18500_s5 + $0xe0] sm:$0xff]  }
 0x3a4   :  { %13756 = vmatprep.subr.bf16.mxu0 %v14984_v61 }
 0x3a5   :  { %v6825_v32 = vor.u32 %v6824_v3, %v6823_v26  ;;  %v14991_v26 = vld [vmem:[%s18500_s5 + $0xf8] sm:$0xff]  }
 0x3a6   :  { %13741 = vmatmul.mubr.bf16.vlgmr.msra.gmra.mrb[48].mxu0 %v6810_v28 }
 0x3a7   :  { %13744 = vmatprep.mubr.bf16.mxu0 %v17598_v12  ;;  %13757 = vmatpush3.bf16.msra.mxu0 %v14984_v61  ;;  %v6835_v61 = vshll.u32 %v6777_v29, 16  ;;  %v17634_v28 = vsel %vm2199_vm8, %v6821_v43, %v6825_v32  ;;  %v17639_v62 = vsel %vm2199_vm8, %v6825_v32, %v17628_v9  ;;  %v14993_v29 = vld [vmem:[%s18500_s5 + $0x108] sm:$0xff]  }
 0x3a8   :  { %13758 = vmatprep.subr.bf16.mxu0 %v14985_v46 }
 0x3a9   :  { %v6837_v1 = vrot.slane %v6835_v61, 5  ;;  %v18651_v61 = vrot.slane %v17354_v51, 7  ;;  %v14998_v51 = vld [vmem:[%s18500_s5 + $0x130] sm:$0xff]  }
 0x3ab   :  { %13759 = vmatpush3.bf16.msra.mxu0 %v14985_v46  ;;  %v7009_v46 = vld [vmem:[#allocation5] sm:$0x80] }
 0x3ac   :  { %13760 = vmatprep.subr.bf16.mxu0 %v14986_v23  ;;  %v7029_v57 = vshrl.u32 %v7009_v46, 16  ;;  %v14996_v46 = vld [vmem:[%s18500_s5 + $0x120] sm:$0xff]  }
 0x3ae   :  { %13745 = vmatmul.mubr.bf16.gmra.mrb[52].mxu0 %v17613_v63  ;;  %v7031_v43 = vrot.slane %v7029_v57, 7  ;;  %v15007_v57 = vld [vmem:[%s18500_s5 + $0x178] sm:$0xff]  }
 0x3af   :  { %13748 = vmatprep.mubr.bf16.mxu0 %v17620_v37  ;;  %13761 = vmatpush3.bf16.msra.mxu0 %v14986_v23  ;;  %v14990_v23 = vld [vmem:[%s18500_s5 + $0xf0] sm:$0xff]  }
 0x3b0   :  { %13762 = vmatprep.subr.bf16.mxu0 %v14987_v16  ;;  %v7034_v24 = vsel %vm1388_vm1, %v7031_v43, %v17315_v55  ;;  %v14994_v55 = vld [vmem:[%s18500_s5 + $0x110] sm:$0xff]   ;;  %v15011_v43 = vld [vmem:[%s18500_s5 + $0x198] sm:$0xff]  }
 0x3b3   :  { %13763 = vmatpush3.bf16.msra.mxu0 %v14987_v16  ;;  %v6838_v16 = vor.u32 %v6837_v1, %v6834_v22  ;;  %v18652_v22 = vrot.slane %v17449_v15, 7  ;;  %v15003_v15 = vld [vmem:[%s18500_s5 + $0x158] sm:$0xff]  }
 0x3b4   :  { %13764 = vmatprep.subr.bf16.mxu0 %v14988_v2 }
 0x3b5   :  { %v6839_v3 = vsel %vm2199_vm8, %v17628_v9, %v6838_v16 }
 0x3b6   :  { %13749 = vmatmul.mubr.bf16.gmra.mrb[56].mxu0 %v17634_v28 }
 0x3b7   :  { %13752 = vmatprep.mubr.bf16.mxu0 %v17639_v62  ;;  %13765 = vmatpush3.bf16.msra.mxu0 %v14988_v2  ;;  %v7041_v2 = vrot.slane %v17498_v27, 7 }
 0x3b8   :  { %13766 = vmatprep.subr.bf16.mxu0 %v14989_v5 }
 0x3b9   :  { %v7042_v32 = vor.u32 %v7041_v2, %v17492_v38 }
 0x3bb   :  { %13767 = vmatpush3.bf16.msra.mxu0 %v14989_v5  ;;  %v14997_v5 = vld [vmem:[%s18500_s5 + $0x128] sm:$0xff]   ;;  %v7060_v1 = vsel %vm1388_vm1, %v18652_v22, %v7042_v32 }
 0x3bc   :  { %13768 = vmatprep.subr.bf16.mxu0 %v14990_v23 }
 0x3be   :  { %13753 = vmatmul.mubr.bf16.gmra.mrb[60].mxu0 %v6839_v3  ;;  %v7672_v3 = vld [vmem:[#allocation5 + $0x8] sm:$0xf8] }
 0x3bf   :  { %13769 = vmatpush3.bf16.msra.mxu0 %v14990_v23  ;;  %13772 = vmatprep.mubr.bf16.mxu0 %v7034_v24  ;;  %v15009_v23 = vld [vmem:[%s18500_s5 + $0x188] sm:$0xff]  }
 0x3c0   :  { %13770 = vmatprep.subr.bf16.mxu0 %v14991_v26 }
 0x3c3   :  { %13771 = vmatpush3.bf16.msra.mxu0 %v14991_v26 }
 0x3c4   :  { %13788 = vmatprep.subr.bf16.mxu0 %v14992_v17 }
 0x3c6   :  { %13773 = vmatmul.mubr.bf16.vlgmr.msra.gmra.mrb[48].mxu0 %v17401_v21  ;;  %v7043_v21 = vsel %vm1388_vm1, %v18651_v61, %v7042_v32 }
 0x3c7   :  { %13776 = vmatprep.mubr.bf16.mxu0 %v17416_v50  ;;  %13789 = vmatpush3.bf16.msra.mxu0 %v14992_v17  ;;  %v7046_v50 = vsel %vm1388_vm1, %v7041_v2, %v17409_v48  ;;  %v14999_v48 = vld [vmem:[%s18500_s5 + $0x138] sm:$0xff]   ;;  %v7692_v17 = vshrl.u32 %v7672_v3, 16 }
 0x3c8   :  { %13790 = vmatprep.subr.bf16.mxu0 %v14993_v29 }
 0x3c9   :  { %v7694_v32 = vrot.slane %v7692_v17, 3  ;;  %v15039_v17 = vld [vmem:[%s18502_s7 + $0x78] sm:$0xff]  }
 0x3cb   :  { %13791 = vmatpush3.bf16.msra.mxu0 %v14993_v29  ;;  %v7695_v29 = vshll.u32 %v7672_v3, 16 }
 0x3cc   :  { %13792 = vmatprep.subr.bf16.mxu0 %v14994_v55 }
 0x3ce   :  { %13777 = vmatmul.mubr.bf16.gmra.mrb[52].mxu0 %v7043_v21 }
 0x3cf   :  { %13780 = vmatprep.mubr.bf16.mxu0 %v7046_v50  ;;  %13793 = vmatpush3.bf16.msra.mxu0 %v14994_v55  ;;  %v15014_v55 = vld [vmem:[%s18500_s5 + $0x1b0] sm:$0xff]   ;;  %v15016_v50 = vld [vmem:[%s18500_s5 + $0x1c0] sm:$0xff]  }
 0x3d0   :  { %13794 = vmatprep.subr.bf16.mxu0 %v14995_v7 }
 0x3d3   :  { %13795 = vmatpush3.bf16.msra.mxu0 %v14995_v7  ;;  %v7697_v7 = vrot.slane %v7695_v29, 4  ;;  %v17877_v29 = vld [vmem:[%s18502_s7] sm:$0xff]  }
 0x3d4   :  { %13796 = vmatprep.subr.bf16.mxu0 %v14996_v46 }
 0x3d5   :  { %v7698_v21 = vor.u32 %v7697_v7, %v7694_v32 }
 0x3d6   :  { %13781 = vmatmul.mubr.bf16.gmra.mrb[56].mxu0 %v17452_v52  ;;  %v15000_v52 = vld [vmem:[%s18500_s5 + $0x140] sm:$0xff]  }
 0x3d7   :  { %13784 = vmatprep.mubr.bf16.mxu0 %v17483_v0  ;;  %13797 = vmatpush3.bf16.msra.mxu0 %v14996_v46  ;;  %v15001_v0 = vld [vmem:[%s18500_s5 + $0x148] sm:$0xff]  }
 0x3d8   :  { %13798 = vmatprep.subr.bf16.mxu0 %v14997_v5  ;;  %v15017_v46 = vld [vmem:[%s18500_s5 + $0x1c8] sm:$0xff]  }
 0x3db   :  { %13799 = vmatpush3.bf16.msra.mxu0 %v14997_v5  ;;  %v15019_v5 = vld [vmem:[%s18500_s5 + $0x1d8] sm:$0xff]  }
 0x3dc   :  { %13800 = vmatprep.subr.bf16.mxu0 %v14998_v51 }
 0x3de   :  { %13785 = vmatmul.mubr.bf16.gmra.mrb[60].mxu0 %v7060_v1 }
 0x3df   :  { %13801 = vmatpush3.bf16.msra.mxu0 %v14998_v51  ;;  %13804 = vmatprep.mubr.bf16.mxu0 %v17276_v33  ;;  %v15002_v33 = vld [vmem:[%s18500_s5 + $0x150] sm:$0xff]   ;;  %v17776_v51 = vld [vmem:[#allocation5 + $0x48] sm:$0xf] }
 0x3e0   :  { %13802 = vmatprep.subr.bf16.mxu0 %v14999_v48 }
 0x3e3   :  { %13803 = vmatpush3.bf16.msra.mxu0 %v14999_v48  ;;  %v15020_v48 = vld [vmem:[%s18500_s5 + $0x1e0] sm:$0xff]  }
 0x3e4   :  { %13820 = vmatprep.subr.bf16.mxu0 %v15000_v52 }
 0x3e6   :  { %13805 = vmatmul.mubr.bf16.vlgmr.msra.gmra.mrb[48].mxu0 %v17317_v34  ;;  %v15004_v34 = vld [vmem:[%s18500_s5 + $0x160] sm:$0xff]  }
 0x3e7   :  { %13808 = vmatprep.mubr.bf16.mxu0 %v17348_v13  ;;  %13821 = vmatpush3.bf16.msra.mxu0 %v15000_v52  ;;  %v15005_v13 = vld [vmem:[%s18500_s5 + $0x168] sm:$0xff]  }
 0x3e8   :  { %13822 = vmatprep.subr.bf16.mxu0 %v15001_v0 }
 0x3eb   :  { %13823 = vmatpush3.bf16.msra.mxu0 %v15001_v0  ;;  %v15022_v0 = vld [vmem:[%s18500_s5 + $0x1f0] sm:$0xff]  }
 0x3ec   :  { %13824 = vmatprep.subr.bf16.mxu0 %v15002_v33 }
 0x3ee   :  { %13809 = vmatmul.mubr.bf16.gmra.mrb[52].mxu0 %v17342_v45 }
 0x3ef   :  { %13812 = vmatprep.mubr.bf16.mxu0 %v17333_v42  ;;  %13825 = vmatpush3.bf16.msra.mxu0 %v15002_v33  ;;  %v15006_v42 = vld [vmem:[%s18500_s5 + $0x170] sm:$0xff]   ;;  %v7905_v33 = vld [vmem:[#allocation5 + $0x8] sm:$0xf0] }
 0x3f0   :  { %13826 = vmatprep.subr.bf16.mxu0 %v15003_v15 }
 0x3f3   :  { %13827 = vmatpush3.bf16.msra.mxu0 %v15003_v15 }
 0x3f4   :  { %13828 = vmatprep.subr.bf16.mxu0 %v15004_v34 }
 0x3f6   :  { %13813 = vmatmul.mubr.bf16.gmra.mrb[56].mxu0 %v17406_v47  ;;  %v15008_v47 = vld [vmem:[%s18500_s5 + $0x180] sm:$0xff]  }
 0x3f7   :  { %13816 = vmatprep.mubr.bf16.mxu0 %v17437_v31  ;;  %13829 = vmatpush3.bf16.msra.mxu0 %v15004_v34  ;;  %v7461_v31 = vrot.slane %v17492_v38, 1  ;;  %v7932_v34 = vrot.slane %v7905_v33, 4 }
 0x3f8   :  { %13830 = vmatprep.subr.bf16.mxu0 %v15005_v13 }
 0x3f9   :  { %v7462_v16 = vsel %vm7434_vm15, %v17458_v30, %v7461_v31  ;;  %v7465_v38 = vor.u32 %v7461_v31, %v17498_v27  ;;  %v15012_v30 = vld [vmem:[%s18500_s5 + $0x1a0] sm:$0xff]  }
 0x3fa   :  { %v7416_v27 = vld [vmem:[#allocation5 + $0x48] sm:$0x1] }
 0x3fb   :  { %13831 = vmatpush3.bf16.msra.mxu0 %v15005_v13  ;;  %v7499_v24 = vshll.u32 %v7416_v27, 16  ;;  %v15024_v13 = vld [vmem:[%s18500_s5 + $0x200] sm:$0xff]  }
 0x3fc   :  { %13832 = vmatprep.subr.bf16.mxu0 %v15006_v42 }
 0x3fd   :  { %v7501_v2 = vrot.slane %v7499_v24, 1 }
 0x3fe   :  { %13817 = vmatmul.mubr.bf16.gmra.mrb[60].mxu0 %v17342_v45 }
 0x3ff   :  { %13833 = vmatpush3.bf16.msra.mxu0 %v15006_v42  ;;  %13836 = vmatprep.mubr.bf16.mxu0 %v17432_v35  ;;  %v15010_v35 = vld [vmem:[%s18500_s5 + $0x190] sm:$0xff]   ;;  %v7502_v61 = vsel %vm7434_vm15, %v7465_v38, %v7501_v2  ;;  %v15027_v42 = vld [vmem:[%s18500_s5 + $0x218] sm:$0xff]  }
 0x400   :  { %13834 = vmatprep.subr.bf16.mxu0 %v15007_v57 }
 0x403   :  { %13835 = vmatpush3.bf16.msra.mxu0 %v15007_v57  ;;  %v8137_v57 = vshrl.u32 %v7905_v33, 16 }
 0x404   :  { %13852 = vmatprep.subr.bf16.mxu0 %v15008_v47 }
 0x406   :  { %13837 = vmatmul.mubr.bf16.vlgmr.msra.gmra.mrb[48].mxu0 %v17455_v44  ;;  %v18653_v44 = vrot.slane %v17391_v49, 1  ;;  %v15013_v49 = vld [vmem:[%s18500_s5 + $0x1a8] sm:$0xff]  }
 0x407   :  { %13840 = vmatprep.mubr.bf16.mxu0 %v7462_v16  ;;  %13853 = vmatpush3.bf16.msra.mxu0 %v15008_v47  ;;  %v8140_v47 = vshll.u32 %v7905_v33, 16  ;;  %v8139_v16 = vrot.slane %v8137_v57, 4 }
 0x408   :  { %13854 = vmatprep.subr.bf16.mxu0 %v15009_v23  ;;  %v7470_v26 = vsel %vm7434_vm15, %v7465_v38, %v18653_v44 }
 0x40b   :  { %13855 = vmatpush3.bf16.msra.mxu0 %v15009_v23  ;;  %v15030_v23 = vld [vmem:[%s18500_s5 + $0x230] sm:$0xff]  }
 0x40c   :  { %13856 = vmatprep.subr.bf16.mxu0 %v15010_v35 }
 0x40e   :  { %13841 = vmatmul.mubr.bf16.gmra.mrb[52].mxu0 %v7470_v26  ;;  %v8118_v26 = vld [vmem:[#allocation5 + $0x48] sm:$0x1f] }
 0x40f   :  { %13844 = vmatprep.mubr.bf16.mxu0 %v17543_v14  ;;  %13857 = vmatpush3.bf16.msra.mxu0 %v15010_v35  ;;  %v7494_v14 = vsel %vm7434_vm15, %v17568_v56, %v7461_v31  ;;  %v7702_v56 = vsel %vm1947_vm7, %v7698_v21, %v17489_v25  ;;  %v15018_v25 = vld [vmem:[%s18500_s5 + $0x1d0] sm:$0xff]   ;;  %v7947_v31 = vrot.slane %v17776_v51, 4  ;;  %v8142_v35 = vrot.slane %v8140_v47, 5 }
 0x410   :  { %13858 = vmatprep.subr.bf16.mxu0 %v15011_v43  ;;  %v8176_v27 = vshll.u32 %v8118_v26, 16 }
 0x411   :  { %v7948_v38 = vsel %vm1776_vm6, %v17345_v20, %v7947_v31 }
 0x412   :  { %v8178_v24 = vrot.slane %v8176_v27, 5 }
 0x413   :  { %13859 = vmatpush3.bf16.msra.mxu0 %v15011_v43  ;;  %v15031_v43 = vld [vmem:[%s18500_s5 + $0x238] sm:$0xff]  }
 0x414   :  { %13860 = vmatprep.subr.bf16.mxu0 %v15012_v30 }
 0x416   :  { %13845 = vmatmul.mubr.bf16.gmra.mrb[56].mxu0 %v17558_v6  ;;  %v15015_v6 = vld [vmem:[%s18500_s5 + $0x1b8] sm:$0xff]  }
 0x417   :  { %13848 = vmatprep.mubr.bf16.mxu0 %v7494_v14  ;;  %13861 = vmatpush3.bf16.msra.mxu0 %v15012_v30  ;;  %v8173_v30 = vshrl.u32 %v8118_v26, 16  ;;  %v12003_v14 = vld [vmem:[%s18501_s6] ss:$0 sm:$0xff] }
 0x418   :  { %13862 = vmatprep.subr.bf16.mxu0 %v15013_v49 }
 0x419   :  { %v8175_v3 = vrot.slane %v8173_v30, 4 }
 0x41b   :  { %13863 = vmatpush3.bf16.msra.mxu0 %v15013_v49  ;;  %v8179_v49 = vor.u32 %v8178_v24, %v8175_v3 }
 0x41c   :  { %13864 = vmatprep.subr.bf16.mxu0 %v15014_v55 }
 0x41e   :  { %13849 = vmatmul.mubr.bf16.gmra.mrb[60].mxu0 %v7502_v61 }
 0x41f   :  { %13865 = vmatpush3.bf16.msra.mxu0 %v15014_v55  ;;  %13868 = vmatprep.mubr.bf16.mxu0 %v7702_v56 }
 0x420   :  { %13866 = vmatprep.subr.bf16.mxu0 %v15015_v6 }
 0x423   :  { %13867 = vmatpush3.bf16.msra.mxu0 %v15015_v6 }
 0x424   :  { %13884 = vmatprep.subr.bf16.mxu0 %v15016_v50 }
 0x426   :  { %13869 = vmatmul.mubr.bf16.vlgmr.msra.gmra.mrb[48].mxu0 %v17509_v36  ;;  %v7728_v36 = vshrl.u32 %v17776_v51, 16 }
 0x427   :  { %13872 = vmatprep.mubr.bf16.mxu0 %v17524_v10  ;;  %13885 = vmatpush3.bf16.msra.mxu0 %v15016_v50  ;;  %v7731_v10 = vshll.u32 %v17776_v51, 16 }
 0x428   :  { %13886 = vmatprep.subr.bf16.mxu0 %v15017_v46  ;;  %v7730_v22 = vrot.slane %v7728_v36, 3 }
 0x429   :  { %v7733_v1 = vrot.slane %v7731_v10, 4 }
 0x42b   :  { %13887 = vmatpush3.bf16.msra.mxu0 %v15017_v46  ;;  %v7734_v52 = vor.u32 %v7733_v1, %v7730_v22 }
 0x42c   :  { %13888 = vmatprep.subr.bf16.mxu0 %v15018_v25 }
 0x42d   :  { %v7735_v15 = vsel %vm1947_vm7, %v17517_v60, %v7734_v52 }
 0x42e   :  { %13873 = vmatmul.mubr.bf16.gmra.mrb[52].mxu0 %v17531_v4  ;;  %v15021_v4 = vld [vmem:[%s18500_s5 + $0x1e8] sm:$0xff]  }
 0x42f   :  { %13876 = vmatprep.mubr.bf16.mxu0 %v17555_v40  ;;  %13889 = vmatpush3.bf16.msra.mxu0 %v15018_v25  ;;  %v7726_v40 = vsel %vm1947_vm7, %v17548_v8, %v17517_v60  ;;  %v7934_v8 = vsel %vm1776_vm6, %v7932_v34, %v17322_v41  ;;  %v15025_v60 = vld [vmem:[%s18500_s5 + $0x208] sm:$0xff]   ;;  %v15026_v41 = vld [vmem:[%s18500_s5 + $0x210] sm:$0xff]  }
 0x430   :  { %13890 = vmatprep.subr.bf16.mxu0 %v15019_v5 }
 0x433   :  { %13891 = vmatpush3.bf16.msra.mxu0 %v15019_v5 }
 0x434   :  { %13892 = vmatprep.subr.bf16.mxu0 %v15020_v48 }
 0x436   :  { %13877 = vmatmul.mubr.bf16.gmra.mrb[56].mxu0 %v17563_v18  ;;  %v15023_v18 = vld [vmem:[%s18500_s5 + $0x1f8] sm:$0xff]  }
 0x437   :  { %13880 = vmatprep.mubr.bf16.mxu0 %v7726_v40  ;;  %13893 = vmatpush3.bf16.msra.mxu0 %v15020_v48 }
 0x438   :  { %13894 = vmatprep.subr.bf16.mxu0 %v15021_v4 }
 0x43b   :  { %13895 = vmatpush3.bf16.msra.mxu0 %v15021_v4 }
 0x43c   :  { %13896 = vmatprep.subr.bf16.mxu0 %v15022_v0 }
 0x43e   :  { %13881 = vmatmul.mubr.bf16.gmra.mrb[60].mxu0 %v7735_v15 }
 0x43f   :  { %13897 = vmatpush3.bf16.msra.mxu0 %v15022_v0  ;;  %13900 = vmatprep.mubr.bf16.mxu0 %v7934_v8 }
 0x440   :  { %13898 = vmatprep.subr.bf16.mxu0 %v15023_v18 }
 0x443   :  { %13899 = vmatpush3.bf16.msra.mxu0 %v15023_v18 }
 0x444   :  { %13916 = vmatprep.subr.bf16.mxu0 %v15024_v13 }
 0x446   :  { %13901 = vmatmul.mubr.bf16.vlgmr.msra.gmra.mrb[48].mxu0 %v17366_v19  ;;  %v15028_v19 = vld [vmem:[%s18500_s5 + $0x220] sm:$0xff]  }
 0x447   :  { %13904 = vmatprep.mubr.bf16.mxu0 %v17370_v59  ;;  %13917 = vmatpush3.bf16.msra.mxu0 %v15024_v13  ;;  %v15029_v59 = vld [vmem:[%s18500_s5 + $0x228] sm:$0xff]  }
 0x448   :  { %13918 = vmatprep.subr.bf16.mxu0 %v15025_v60 }
 0x44b   :  { %13919 = vmatpush3.bf16.msra.mxu0 %v15025_v60 }
 0x44c   :  { %13920 = vmatprep.subr.bf16.mxu0 %v15026_v41 }
 0x44e   :  { %13905 = vmatmul.mubr.bf16.gmra.mrb[52].mxu0 %v17374_v54  ;;  %v18654_v54 = vld [vmem:[#allocation18_spill] sm:$0xff] }
 0x44f   :  { %13908 = vmatprep.mubr.bf16.mxu0 %v17420_v11  ;;  %13921 = vmatpush3.bf16.msra.mxu0 %v15026_v41  ;;  %v7946_v11 = vsel %vm1776_vm6, %v18654_v54, %v17345_v20 }
 0x450   :  { %13922 = vmatprep.subr.bf16.mxu0 %v15027_v42 }
 0x453   :  { %13923 = vmatpush3.bf16.msra.mxu0 %v15027_v42 }
 0x454   :  { %13924 = vmatprep.subr.bf16.mxu0 %v15028_v19 }
 0x456   :  { %13909 = vmatmul.mubr.bf16.gmra.mrb[56].mxu0 %v17462_v58  ;;  %v8143_v58 = vor.u32 %v8142_v35, %v8139_v16  ;;  %v8530_v35 = vld [vmem:[#allocation6] sm:$0xf8] }
 0x457   :  { %13912 = vmatprep.mubr.bf16.mxu0 %v7946_v11  ;;  %13925 = vmatpush3.bf16.msra.mxu0 %v15028_v19 }
 0x458   :  { %13926 = vmatprep.subr.bf16.mxu0 %v15029_v59  ;;  %v8147_v44 = vsel %vm2199_vm8, %v8143_v58, %v17587_v39  ;;  %v8171_v39 = vsel %vm2199_vm8, %v17628_v9, %v17606_v53  ;;  %v15034_v9 = vld [vmem:[%s18502_s7 + $0x50] sm:$0xff]  }
 0x45b   :  { %13927 = vmatpush3.bf16.msra.mxu0 %v15029_v59 }
 0x45c   :  { %13928 = vmatprep.subr.bf16.mxu0 %v15030_v23 }
 0x45e   :  { %13913 = vmatmul.mubr.bf16.gmra.mrb[60].mxu0 %v7948_v38  ;;  %v8471_v38 = vld [vmem:[#allocation6 + $0x8] sm:$0x30] }
 0x45f   :  { %13929 = vmatpush3.bf16.msra.mxu0 %v15030_v23  ;;  %13932 = vmatprep.mubr.bf16.mxu0 %v8147_v44 }
 0x460   :  { %13930 = vmatprep.subr.bf16.mxu0 %v15031_v43 }
 0x463   :  { %13931 = vmatpush3.bf16.msra.mxu0 %v15031_v43 }
 0x466   :  { %13933 = vmatmul.mubr.bf16.vlgmr.msra.gmra.mrb[48].mxu0 %v17598_v12  ;;  %v8180_v12 = vsel %vm2199_vm8, %v17606_v53, %v8179_v49  ;;  %v15036_v53 = vld [vmem:[%s18502_s7 + $0x60] sm:$0xff]  }
 0x467   :  { %13936 = vmatprep.mubr.bf16.mxu0 %v17613_v63  ;;  %v15032_v63 = vld [vmem:[%s18502_s7 + $0x40] sm:$0xff]  }
 0x468   :  { %13948 = vmatprep.subr.bf16.mxu1 %v15032_v63 }
 0x469   :  { %13949 = vmatpush3.bf16.msra.mxu1 %v15032_v63 }
 0x46e   :  { %13937 = vmatmul.mubr.bf16.gmra.mrb[52].mxu0 %v17620_v37  ;;  %v15033_v37 = vld [vmem:[%s18502_s7 + $0x48] sm:$0xff]  }
 0x46f   :  { %13940 = vmatprep.mubr.bf16.mxu0 %v17634_v28  ;;  %13950 = vmatprep.subr.bf16.mxu1 %v15033_v37  ;;  %v15037_v28 = vld [vmem:[%s18502_s7 + $0x68] sm:$0xff]  }
 0x470   :  { %13951 = vmatpush3.bf16.msra.mxu1 %v15033_v37 }
 0x471   :  { %13952 = vmatprep.subr.bf16.mxu1 %v15034_v9 }
 0x474   :  { %13953 = vmatpush3.bf16.msra.mxu1 %v15034_v9  ;;  %v17889_v9 = vld [vmem:[#allocation6] sm:$0xf0] }
 0x476   :  { %13941 = vmatmul.mubr.bf16.gmra.mrb[56].mxu0 %v17639_v62  ;;  %v15038_v62 = vld [vmem:[%s18502_s7 + $0x70] sm:$0xff]  }
 0x477   :  { %13944 = vmatprep.mubr.bf16.mxu0 %v8171_v39 }
 0x47e   :  { %13945 = vmatmul.mubr.bf16.gmra.mrb[60].mxu0 %v8180_v12 }
 0x47f   :  { %10930 = vmatprep.mubr.bf16.mxu0 %v17342_v45  ;;  %v15035_v45 = vld [vmem:[%s18502_s7 + $0x58] sm:$0xff]  }
 0x480   :  { %13954 = vmatprep.subr.bf16.mxu1 %v15035_v45 }
 0x481   :  { %13955 = vmatpush3.bf16.msra.mxu1 %v15035_v45 }
 0x482   :  { %13956 = vmatprep.subr.bf16.mxu1 %v15036_v53 }
 0x485   :  { %13957 = vmatpush3.bf16.msra.mxu1 %v15036_v53  ;;  %v8491_v53 = vld [vmem:[#allocation6 + $0x10] sm:$0x3] }
 0x486   :  { %13958 = vmatprep.subr.bf16.mxu1 %v15037_v28 }
 0x489   :  { %13959 = vmatpush3.bf16.msra.mxu1 %v15037_v28 }
 0x48a   :  { %13960 = vmatprep.subr.bf16.mxu1 %v15038_v62 }
 0x48d   :  { %13961 = vmatpush3.bf16.msra.mxu1 %v15038_v62  ;;  %v8582_v62 = vrot.slane %v17889_v9, 4 }
 0x48e   :  { %13962 = vmatprep.subr.bf16.mxu1 %v15039_v17 }
 0x491   :  { %13963 = vmatpush3.bf16.msra.mxu1 %v15039_v17 }
 0x492   :  { %13980 = vmatprep.subr.bf16.mxu1 %v17877_v29 }
 0x539   :  { %v13934_v2 = vpop.f32.mrb[48].mxu0 }
 0x53a   :  { %v8271_v55 = vpop.f32.mrb[49].mxu0  ;;  %v8358_v32 = vadd.f32 %v13934_v2, %v12003_v14 }
 0x53b   :  { %v13935_v7 = vpop.f32.mrb[50].mxu0 }
 0x53c   :  { %v8274_v61 = vpop.f32.mrb[51].mxu0  ;;  %v8374_v6 = vmax.f32 %v8358_v32, 0.0  ;;  %v8359_v50 = vadd.f32 %v13935_v7, %v12003_v14 }
 0x53d   :  { %v8357_v21 = vadd.f32 %v12003_v14, %v8274_v61 }
 0x53e   :  { %v8375_v48 = vmax.f32 %v8359_v50, 0.0 }
 0x53f   :  { %v8373_v56 = vmax.f32 %v8357_v21, 0.0 }
 0x541   :  { %v8422_v46 = vmax.f32 %v8373_v56, %v8374_v6  ;;  %v13938_v25 = vpop.f32.mrb[52].mxu0 }
 0x542   :  { %v8287_v5 = vpop.f32.mrb[53].mxu0 }
 0x543   :  { %8438 = vst [vmem:[#allocation3 + $0x8] sm:$0xff] %v8422_v46  ;;  %v8360_v51 = vadd.f32 %v12003_v14, %v8287_v5  ;;  %v13939_v36 = vpop.f32.mrb[54].mxu0 }
 0x544   :  { %v8290_v10 = vpop.f32.mrb[55].mxu0 }
 0x545   :  { %v8376_v22 = vmax.f32 %v8360_v51, 0.0 }
 0x547   :  { %v8424_v1 = vmax.f32 %v8375_v48, %v8376_v22 }
 0x549   :  { %8440 = vst [vmem:[#allocation3 + $0x18] sm:$0xff] %v8424_v1  ;;  %v13942_v4 = vpop.f32.mrb[56].mxu0  ;;  %v8509_v1 = vld [vmem:[#allocation6 + $0x28] sm:$0x30] }
 0x54a   :  { %v8454_v40 = vld [vmem:[#allocation3 + $0x9] ss:$2 sm:$0x3]  ;;  %v8456_v52 = vld [vmem:[#allocation3 + $0xa] ss:$2 sm:$0x3]  ;;  %v8366_v33 = vadd.f32 %v13942_v4, %v12003_v14 }
 0x54b   :  { %v8457_v0 = vmax.f32 %v8454_v40, %v8456_v52  ;;  %v8303_v15 = vpop.f32.mrb[57].mxu0 }
 0x54c   :  { %v13943_v34 = vpop.f32.mrb[58].mxu0  ;;  %v8382_v42 = vmax.f32 %v8366_v33, 0.0 }
 0x54d   :  { %v8458_v18 = vpack.c.bf16 %v8457_v0, %v8457_v0  ;;  %v8306_v8 = vpop.f32.mrb[59].mxu0  ;;  %v8367_v57 = vadd.f32 %v13943_v34, %v12003_v14  ;;  %v15041_v0 = vld [vmem:[%s18502_s7 + $0x8] sm:$0xff]  }
 0x54e   :  { %v8365_v13 = vadd.f32 %v12003_v14, %v8306_v8 }
 0x54f   :  { %v8460_v60 = vshrl.u32 %v8458_v18, 16  ;;  %v8463_v41 = vshll.u32 %v8458_v18, 16  ;;  %v8383_v24 = vmax.f32 %v8367_v57, 0.0 }
 0x550   :  { %v8475_v19 = vld [vmem:[#allocation3 + $0x19] ss:$2 sm:$0x3]  ;;  %v8477_v59 = vld [vmem:[#allocation3 + $0x1a] ss:$2 sm:$0x3] }
 0x551   :  { %v8462_v47 = vrot.slane %v8460_v60, 3  ;;  %v8465_v54 = vrot.slane %v8463_v41, 4  ;;  %v8478_v11 = vmax.f32 %v8475_v19, %v8477_v59  ;;  %v8381_v31 = vmax.f32 %v8365_v13, 0.0  ;;  %v13946_v23 = vpop.f32.mrb[60].mxu0  ;;  %v8526_v41 = vld [vmem:[#allocation6 + $0x30] sm:$0x3] }
 0x552   :  { %v8319_v16 = vpop.f32.mrb[61].mxu0 }
 0x553   :  { %v8479_v58 = vpack.c.bf16 %v8478_v11, %v8478_v11  ;;  %v8430_v43 = vmax.f32 %v8381_v31, %v8382_v42  ;;  %v8368_v44 = vadd.f32 %v12003_v14, %v8319_v16  ;;  %v13947_v26 = vpop.f32.mrb[62].mxu0  ;;  %v8466_v30 = vor.u32 %v8465_v54, %v8462_v47  ;;  %v15042_v47 = vld [vmem:[%s18502_s7 + $0x10] sm:$0xff]   ;;  %v15043_v31 = vld [vmem:[%s18502_s7 + $0x18] sm:$0xff]  }
 0x554   :  { %v8322_v27 = vpop.f32.mrb[63].mxu0  ;;  %v8753_v26 = vshrl.u32 %v8530_v35, 16 }
 0x555   :  { %v8481_v3 = vshrl.u32 %v8479_v58, 16  ;;  %8446 = vst [vmem:[#allocation3 + $0x48] sm:$0xff] %v8430_v43  ;;  %v8384_v39 = vmax.f32 %v8368_v44, 0.0  ;;  %v8472_v49 = vsel %vm17883_vm5, %v8466_v30, %v8471_v38  ;;  %v8484_v63 = vshll.u32 %v8479_v58, 16  ;;  %v15044_v58 = vld [vmem:[%s18502_s7 + $0x20] sm:$0xff]  }
 0x556   :  { %8473 = vst [vmem:[#allocation6 + $0x8] sm:$0x30] %v8472_v49  ;;  %v8756_v30 = vshll.u32 %v8530_v35, 16  ;;  %v15045_v49 = vld [vmem:[%s18502_s7 + $0x28] sm:$0xff]   ;;  %v15050_v35 = vld [vmem:[%s18502_s7 + $0x90] sm:$0xff]  }
 0x557   :  { %v8483_v12 = vrot.slane %v8481_v3, 7  ;;  %v8432_v37 = vmax.f32 %v8383_v24, %v8384_v39 }
 0x559   :  { %v8486_v28 = vor.u32 %v8484_v63, %v8483_v12  ;;  %8448 = vst [vmem:[#allocation3 + $0x58] sm:$0xff] %v8432_v37  ;;  %v17979_v12 = vld [vmem:[#allocation6 + $0x40] sm:$0xf] }
 0x55b   :  { %v8492_v17 = vsel %vm17891_vm11, %v8486_v28, %v8491_v53  ;;  %v8755_v53 = vrot.slane %v8753_v26, 3  ;;  %v8758_v28 = vrot.slane %v8756_v30, 4  ;;  %v15051_v26 = vld [vmem:[%s18502_s7 + $0x98] sm:$0xff]  }
 0x55c   :  { %v8495_v14 = vld [vmem:[#allocation3 + $0x49] ss:$2 sm:$0x3]  ;;  %v8497_v2 = vld [vmem:[#allocation3 + $0x4a] ss:$2 sm:$0x3] }
 0x55d   :  { %8493 = vst [vmem:[#allocation6 + $0x10] sm:$0x3] %v8492_v17  ;;  %v8498_v55 = vmax.f32 %v8495_v14, %v8497_v2  ;;  %v17898_v32 = vld [vmem:[#allocation6 + $0x8] sm:$0xff]  ;;  %v8597_v14 = vrot.slane %v17979_v12, 4 }
 0x55e   :  { %v8583_v7 = vrot.slane %v17898_v32, 4  ;;  %v17902_v21 = vshrl.u32 %v17898_v32, 16  ;;  %v17923_v18 = vshll.u32 %v17898_v32, 16 }
 0x55f   :  { %v8499_v61 = vpack.c.bf16 %v8498_v55, %v8498_v55 }
 0x560   :  { %v8513_v6 = vld [vmem:[#allocation3 + $0x59] ss:$2 sm:$0x3]  ;;  %v8515_v56 = vld [vmem:[#allocation3 + $0x5a] ss:$2 sm:$0x3]  ;;  %v8584_v50 = vsel %vm1776_vm6, %v8582_v62, %v8583_v7 }
 0x561   :  { %v8501_v46 = vshrl.u32 %v8499_v61, 16  ;;  %v8504_v25 = vshll.u32 %v8499_v61, 16  ;;  %v8516_v5 = vmax.f32 %v8513_v6, %v8515_v56  ;;  %13964 = vmatprep.mubr.bf16.mxu1 %v8584_v50  ;;  %v9240_v40 = vrot.slane %v17902_v21, 7  ;;  %v18006_v50 = vld [vmem:[#allocation4] sm:$0xff] }
 0x562   :  { %v8763_v62 = vrot.slane %v17902_v21, 3  ;;  %v8766_v17 = vrot.slane %v17923_v18, 4  ;;  %v8759_v6 = vor.u32 %v8758_v28, %v8755_v53  ;;  %v8824_v28 = vshrl.u32 %v17979_v12, 16 }
 0x563   :  { %v8503_v51 = vrot.slane %v8501_v46, 3  ;;  %v8506_v36 = vrot.slane %v8504_v25, 4  ;;  %v8517_v10 = vpack.c.bf16 %v8516_v5, %v8516_v5  ;;  %v17932_v19 = vor.u32 %v9240_v40, %v17923_v18 }
 0x564   :  { %v17905_v48 = vld [vmem:[#allocation6 + $0x10] sm:$0xff]  ;;  %v8767_v56 = vor.u32 %v8766_v17, %v8763_v62  ;;  %v18009_v46 = vshll.u32 %v18006_v50, 16  ;;  %v8598_v25 = vsel %vm1776_vm6, %v17345_v20, %v8597_v14  ;;  %v8827_v62 = vshll.u32 %v17979_v12, 16  ;;  %v15052_v17 = vld [vmem:[%s18502_s7 + $0xa0] sm:$0xff]   ;;  %v15053_v12 = vld [vmem:[%s18502_s7 + $0xa8] sm:$0xff]  }
 0x565   :  { %v17908_v22 = vrot.slane %v17905_v48, 4  ;;  %v17911_v4 = vshrl.u32 %v17905_v48, 16  ;;  %v8519_v52 = vshrl.u32 %v8517_v10, 16  ;;  %v8507_v33 = vor.u32 %v8506_v36, %v8503_v51  ;;  %v15047_v36 = vld [vmem:[%s18502_s7 + $0x38] sm:$0xff]  }
 0x566   :  { %v8522_v13 = vshll.u32 %v8517_v10, 16  ;;  %v17929_v42 = vshll.u32 %v17905_v48, 16  ;;  %v9647_v51 = vrot.slane %v17923_v18, 1  ;;  %v18021_v10 = vshrl.u32 %v18006_v50, 16 }
 0x567   :  { %v8586_v15 = vsel %vm1776_vm6, %v8583_v7, %v17908_v22  ;;  %v8588_v34 = vsel %vm1776_vm6, %v17908_v22, %v17345_v20  ;;  %v8521_v8 = vrot.slane %v8519_v52, 7  ;;  %v8510_v60 = vsel %vm17883_vm5, %v8507_v33, %v8509_v1  ;;  %v15046_v7 = vld [vmem:[%s18502_s7 + $0x30] sm:$0xff]  }
 0x568   :  { %13965 = vmatmul.mubr.bf16.vlgmr.msra.gmra.mrb[48].mxu1 %v8586_v15  ;;  %8511 = vst [vmem:[#allocation6 + $0x28] sm:$0x30] %v8510_v60  ;;  %v9243_v59 = vrot.slane %v17911_v4, 7  ;;  %v8772_v1 = vrot.slane %v17911_v4, 3  ;;  %v9648_v52 = vor.u32 %v9647_v51, %v17902_v21  ;;  %v8784_v33 = vrot.slane %v18009_v46, 4 }
 0x569   :  { %13968 = vmatprep.mubr.bf16.mxu1 %v8588_v34  ;;  %13981 = vmatpush3.bf16.msra.mxu1 %v17877_v29  ;;  %v8524_v57 = vor.u32 %v8522_v13, %v8521_v8  ;;  %v9652_v15 = vrot.slane %v17929_v42, 1  ;;  %v15048_v34 = vld [vmem:[%s18502_s7 + $0x80] sm:$0xff]   ;;  %v8829_v51 = vrot.slane %v8827_v62, 4  ;;  %v15058_v62 = vld [vmem:[%s18502_s7 + $0xd0] sm:$0xff]  }
 0x56a   :  { %13982 = vmatprep.subr.bf16.mxu1 %v15041_v0  ;;  %v9244_v29 = vor.u32 %v9243_v59, %v17929_v42 }
 0x56b   :  { %v8527_v54 = vsel %vm17891_vm11, %v8524_v57, %v8526_v41  ;;  %v18036_v13 = vsel %vm7434_vm15, %v9648_v52, %v9652_v15  ;;  %v18039_v60 = vor.u32 %v9652_v15, %v17911_v4  ;;  %v15049_v57 = vld [vmem:[%s18502_s7 + $0x88] sm:$0xff]   ;;  %v9011_v52 = vrot.slane %v17902_v21, 4  ;;  %v15055_v21 = vld [vmem:[%s18502_s7 + $0xb8] sm:$0xff]  }
 0x56c   :  { %8528 = vst [vmem:[#allocation6 + $0x30] sm:$0x3] %v8527_v54  ;;  %v17944_v11 = vsel %vm1388_vm1, %v9240_v40, %v9244_v29  ;;  %v8775_v40 = vrot.slane %v17929_v42, 4 }
 0x56d   :  { %13983 = vmatpush3.bf16.msra.mxu1 %v15041_v0  ;;  %v8781_v0 = vrot.slane %v18021_v10, 3 }
 0x56e   :  { %13984 = vmatprep.subr.bf16.mxu1 %v15042_v47  ;;  %v18033_v8 = vor.u32 %v8775_v40, %v8772_v1 }
 0x56f   :  { %v17950_v23 = vld [vmem:[#allocation6 + $0x28] sm:$0xff]  ;;  %v18041_v41 = vor.u32 %v8784_v33, %v8781_v0 }
 0x570   :  { %13969 = vmatmul.mubr.bf16.gmra.mrb[52].mxu1 %v17345_v20  ;;  %v17953_v16 = vrot.slane %v17950_v23, 4  ;;  %v17956_v38 = vshrl.u32 %v17950_v23, 16  ;;  %v17967_v27 = vshll.u32 %v17950_v23, 16  ;;  %v15054_v33 = vld [vmem:[%s18502_s7 + $0xb0] sm:$0xff]  }
 0x571   :  { %13985 = vmatpush3.bf16.msra.mxu1 %v15042_v47  ;;  %v8777_v47 = vsel %vm1947_vm7, %v8767_v56, %v18033_v8  ;;  %v18051_v29 = vsel %vm1947_vm7, %v18033_v8, %v18041_v41 }
 0x572   :  { %13986 = vmatprep.subr.bf16.mxu1 %v15043_v31  ;;  %v8592_v43 = vsel %vm1776_vm6, %v17345_v20, %v17953_v16  ;;  %v9252_v3 = vrot.slane %v17956_v38, 7  ;;  %v8799_v54 = vrot.slane %v17956_v38, 3 }
 0x573   :  { %13972 = vmatprep.mubr.bf16.mxu1 %v8592_v43  ;;  %v17964_v44 = vld [vmem:[#allocation6 + $0x30] sm:$0xff]  ;;  %v9676_v43 = vrot.slane %v17967_v27, 1 }
 0x574   :  { %v17971_v24 = vrot.slane %v17964_v44, 4  ;;  %v17974_v39 = vshrl.u32 %v17964_v44, 16  ;;  %v17982_v63 = vor.u32 %v9252_v3, %v17967_v27  ;;  %v17997_v2 = vshll.u32 %v17964_v44, 16 }
 0x575   :  { %13987 = vmatpush3.bf16.msra.mxu1 %v15043_v31  ;;  %v8802_v31 = vrot.slane %v17967_v27, 4  ;;  %v9680_v30 = vor.u32 %v9676_v43, %v17956_v38 }
 0x576   :  { %13988 = vmatprep.subr.bf16.mxu1 %v15044_v58  ;;  %v17987_v37 = vsel %vm1776_vm6, %v17953_v16, %v17971_v24  ;;  %v8596_v45 = vsel %vm1776_vm6, %v17971_v24, %v17345_v20  ;;  %v9255_v55 = vrot.slane %v17974_v39, 7  ;;  %v8768_v20 = vsel %vm1947_vm7, %v8759_v6, %v8767_v56 }
 0x577   :  { %v9684_v53 = vrot.slane %v17997_v2, 1  ;;  %v9007_v6 = vshll.u32 %v17889_v9, 16 }
 0x578   :  { %13973 = vmatmul.mubr.bf16.gmra.mrb[56].mxu1 %v17987_v37  ;;  %v9256_v61 = vor.u32 %v9255_v55, %v17997_v2 }
 0x579   :  { %13976 = vmatprep.mubr.bf16.mxu1 %v8596_v45  ;;  %13989 = vmatpush3.bf16.msra.mxu1 %v15044_v58  ;;  %v8803_v58 = vor.u32 %v8802_v31, %v8799_v54  ;;  %v18081_v14 = vsel %vm7434_vm15, %v9680_v30, %v9684_v53  ;;  %v18086_v56 = vor.u32 %v9684_v53, %v17974_v39  ;;  %v9009_v40 = vrot.slane %v9007_v6, 5 }
 0x57a   :  { %13990 = vmatprep.subr.bf16.mxu1 %v15045_v49  ;;  %v18014_v5 = vsel %vm1388_vm1, %v9252_v3, %v9256_v61  ;;  %v8808_v3 = vrot.slane %v17974_v39, 3  ;;  %v9004_v61 = vshrl.u32 %v17889_v9, 16  ;;  %v9019_v31 = vrot.slane %v18021_v10, 4 }
 0x57b   :  { %v18071_v45 = vsel %vm1947_vm7, %v18041_v41, %v8803_v58  ;;  %v9027_v53 = vrot.slane %v17956_v38, 4  ;;  %v9031_v38 = vrot.slane %v17974_v39, 4  ;;  %v9032_v6 = vrot.slane %v17997_v2, 5  ;;  %v15072_v39 = vld [vmem:[%s18502_s7 + $0x140] sm:$0xff]  }
 0x57c   :  { %v9006_v1 = vrot.slane %v9004_v61, 4  ;;  %v8985_v61 = vld [vmem:[#allocation6 + $0x40] sm:$0x1f] }
 0x57d   :  { %13991 = vmatpush3.bf16.msra.mxu1 %v15045_v49  ;;  %v8811_v49 = vrot.slane %v17997_v2, 4 }
 0x57e   :  { %13992 = vmatprep.subr.bf16.mxu1 %v15046_v7  ;;  %v9010_v15 = vor.u32 %v9009_v40, %v9006_v1  ;;  %v15060_v1 = vld [vmem:[%s18502_s7 + $0xe0] sm:$0xff]   ;;  %v9033_v40 = vor.u32 %v9032_v6, %v9031_v38  ;;  %v15079_v38 = vld [vmem:[%s18502_s7 + $0x178] sm:$0xff]   ;;  %v9660_v6 = vrot.slane %v18009_v46, 1 }
 0x580   :  { %13977 = vmatmul.mubr.bf16.gmra.mrb[60].mxu1 %v8598_v25  ;;  %v8826_v25 = vrot.slane %v8824_v28, 3  ;;  %v9028_v28 = vrot.slane %v17967_v27, 5  ;;  %v15085_v27 = vld [vmem:[%s18502_s7 + $0x1a8] sm:$0xff]  }
 0x581   :  { %13993 = vmatpush3.bf16.msra.mxu1 %v15046_v7  ;;  %13996 = vmatprep.mubr.bf16.mxu1 %v8768_v20  ;;  %v8812_v7 = vor.u32 %v8811_v49, %v8808_v3  ;;  %v9012_v20 = vrot.slane %v17923_v18, 5  ;;  %v9015_v18 = vrot.slane %v17911_v4, 4 }
 0x582   :  { %13994 = vmatprep.subr.bf16.mxu1 %v15047_v36  ;;  %v8830_v0 = vor.u32 %v8829_v51, %v8826_v25  ;;  %v9040_v51 = vshrl.u32 %v8985_v61, 16 }
 0x583   :  { %v18097_v9 = vsel %vm1947_vm7, %v8812_v7, %v18041_v41 }
 0x585   :  { %13995 = vmatpush3.bf16.msra.mxu1 %v15047_v36  ;;  %v18092_v36 = vsel %vm1947_vm7, %v8803_v58, %v8812_v7  ;;  %v15056_v58 = vld [vmem:[%s18502_s7 + $0xc0] sm:$0xff]   ;;  %v15059_v7 = vld [vmem:[%s18502_s7 + $0xd8] sm:$0xff]  }
 0x586   :  { %14012 = vmatprep.subr.bf16.mxu1 %v15048_v34 }
 0x588   :  { %13997 = vmatmul.mubr.bf16.vlgmr.msra.gmra.mrb[48].mxu1 %v8777_v47  ;;  %v9016_v47 = vrot.slane %v17929_v42, 5  ;;  %v15057_v42 = vld [vmem:[%s18502_s7 + $0xc8] sm:$0xff]  }
 0x589   :  { %14000 = vmatprep.mubr.bf16.mxu1 %v18051_v29  ;;  %14013 = vmatpush3.bf16.msra.mxu1 %v15048_v34  ;;  %v9013_v34 = vor.u32 %v9012_v20, %v9011_v52  ;;  %v9042_v52 = vrot.slane %v9040_v51, 4  ;;  %v9217_v20 = vld [vmem:[#allocation6] sm:$0x80]  ;;  %v9664_v51 = vor.u32 %v9660_v6, %v18021_v10 }
 0x58a   :  { %14014 = vmatprep.subr.bf16.mxu1 %v15049_v57 }
 0x58b   :  { %v9014_v54 = vsel %vm2199_vm8, %v9010_v15, %v9013_v34 }
 0x58d   :  { %14015 = vmatpush3.bf16.msra.mxu1 %v15049_v57  ;;  %v8831_v57 = vsel %vm1947_vm7, %v18041_v41, %v8830_v0  ;;  %v15061_v0 = vld [vmem:[%s18502_s7 + $0xe8] sm:$0xff]  }
 0x58e   :  { %14016 = vmatprep.subr.bf16.mxu1 %v15050_v35 }
 0x590   :  { %14001 = vmatmul.mubr.bf16.gmra.mrb[52].mxu1 %v18041_v41 }
 0x591   :  { %14004 = vmatprep.mubr.bf16.mxu1 %v18071_v45  ;;  %14017 = vmatpush3.bf16.msra.mxu1 %v15050_v35  ;;  %v9020_v35 = vrot.slane %v18009_v46, 5 }
 0x592   :  { %14018 = vmatprep.subr.bf16.mxu1 %v15051_v26 }
 0x593   :  { %v18120_v30 = vor.u32 %v9020_v35, %v9019_v31  ;;  %v9246_v35 = vrot.slane %v18021_v10, 7  ;;  %v15083_v10 = vld [vmem:[%s18502_s7 + $0x198] sm:$0xff]  }
 0x595   :  { %14019 = vmatpush3.bf16.msra.mxu1 %v15051_v26  ;;  %v18118_v26 = vor.u32 %v9016_v47, %v9015_v18  ;;  %v18161_v15 = vsel %vm2199_vm8, %v9033_v40, %v18120_v30  ;;  %v9254_v4 = vsel %vm1388_vm1, %v9246_v35, %v17982_v63  ;;  %v15070_v63 = vld [vmem:[%s18502_s7 + $0x130] sm:$0xff]  }
 0x596   :  { %14020 = vmatprep.subr.bf16.mxu1 %v15052_v17 }
 0x597   :  { %v9018_v3 = vsel %vm2199_vm8, %v9013_v34, %v18118_v26  ;;  %v18130_v49 = vsel %vm2199_vm8, %v18118_v26, %v18120_v30  ;;  %v9237_v34 = vshrl.u32 %v9217_v20, 16 }
 0x598   :  { %14005 = vmatmul.mubr.bf16.gmra.mrb[56].mxu1 %v18092_v36 }
 0x599   :  { %14008 = vmatprep.mubr.bf16.mxu1 %v18097_v9  ;;  %14021 = vmatpush3.bf16.msra.mxu1 %v15052_v17  ;;  %v9029_v17 = vor.u32 %v9028_v28, %v9027_v53  ;;  %v9239_v18 = vrot.slane %v9237_v34, 7  ;;  %v15066_v53 = vld [vmem:[%s18502_s7 + $0x110] sm:$0xff]  }
 0x59a   :  { %14022 = vmatprep.subr.bf16.mxu1 %v15053_v12 }
 0x59b   :  { %v18146_v25 = vsel %vm2199_vm8, %v18120_v30, %v9029_v17  ;;  %v9242_v31 = vsel %vm1388_vm1, %v9239_v18, %v17932_v19 }
 0x59d   :  { %14023 = vmatpush3.bf16.msra.mxu1 %v15053_v12  ;;  %v9043_v12 = vshll.u32 %v8985_v61, 16  ;;  %v15077_v61 = vld [vmem:[%s18502_s7 + $0x168] sm:$0xff]  }
 0x59e   :  { %14024 = vmatprep.subr.bf16.mxu1 %v15054_v33 }
 0x59f   :  { %v9045_v2 = vrot.slane %v9043_v12, 5  ;;  %v15081_v12 = vld [vmem:[%s18502_s7 + $0x188] sm:$0xff]  }
 0x5a0   :  { %14009 = vmatmul.mubr.bf16.gmra.mrb[60].mxu1 %v8831_v57 }
 0x5a1   :  { %14025 = vmatpush3.bf16.msra.mxu1 %v15054_v33  ;;  %14028 = vmatprep.mubr.bf16.mxu1 %v9014_v54  ;;  %v18156_v33 = vsel %vm2199_vm8, %v9029_v17, %v9033_v40  ;;  %v9046_v57 = vor.u32 %v9045_v2, %v9042_v52  ;;  %v15063_v54 = vld [vmem:[%s18502_s7 + $0xf8] sm:$0xff]   ;;  %v9677_v40 = vsel %vm7434_vm15, %v9664_v51, %v9676_v43  ;;  %v9624_v52 = vld [vmem:[#allocation6 + $0x48] sm:$0x1]  ;;  %v9879_v2 = vld [vmem:[#allocation6 + $0x8] sm:$0xf8] }
 0x5a2   :  { %14026 = vmatprep.subr.bf16.mxu1 %v15055_v21  ;;  %v9706_v20 = vshll.u32 %v9624_v52, 16  ;;  %v9902_v43 = vshll.u32 %v9879_v2, 16 }
 0x5a3   :  { %v9047_v47 = vsel %vm2199_vm8, %v18120_v30, %v9046_v57  ;;  %v15086_v57 = vld [vmem:[%s18502_s7 + $0x1b0] sm:$0xff]  }
 0x5a4   :  { %v9708_v34 = vrot.slane %v9706_v20, 1  ;;  %v9904_v18 = vrot.slane %v9902_v43, 4  ;;  %v15115_v20 = vld [vmem:[%s18504_s9 + $0x2c] ss:$16 sps:$4 sm:$0xff]   ;;  %v15118_v43 = vld [vmem:[%s18504_s9 + $0x44] ss:$16 sps:$4 sm:$0xff]  }
 0x5a5   :  { %14027 = vmatpush3.bf16.msra.mxu1 %v15055_v21  ;;  %v15062_v21 = vld [vmem:[%s18502_s7 + $0xf0] sm:$0xff]  }
 0x5a6   :  { %14044 = vmatprep.subr.bf16.mxu1 %v15056_v58 }
 0x5a8   :  { %14029 = vmatmul.mubr.bf16.vlgmr.msra.gmra.mrb[48].mxu1 %v9018_v3  ;;  %v15065_v3 = vld [vmem:[%s18502_s7 + $0x108] sm:$0xff]  }
 0x5a9   :  { %14032 = vmatprep.mubr.bf16.mxu1 %v18130_v49  ;;  %14045 = vmatpush3.bf16.msra.mxu1 %v15056_v58  ;;  %v15064_v58 = vld [vmem:[%s18502_s7 + $0x100] sm:$0xff]  }
 0x5aa   :  { %14046 = vmatprep.subr.bf16.mxu1 %v15057_v42 }
 0x5ad   :  { %14047 = vmatpush3.bf16.msra.mxu1 %v15057_v42  ;;  %v9247_v42 = vor.u32 %v9246_v35, %v18009_v46  ;;  %v9661_v46 = vsel %vm7434_vm15, %v18039_v60, %v9660_v6  ;;  %v15084_v60 = vld [vmem:[%s18502_s7 + $0x1a0] sm:$0xff]  }
 0x5ae   :  { %14048 = vmatprep.subr.bf16.mxu1 %v15058_v62 }
 0x5af   :  { %v9248_v19 = vsel %vm1388_vm1, %v9243_v59, %v9247_v42  ;;  %v9251_v28 = vsel %vm1388_vm1, %v9246_v35, %v9247_v42  ;;  %v15068_v59 = vld [vmem:[%s18502_s7 + $0x120] sm:$0xff]   ;;  %v9260_v17 = vsel %vm1388_vm1, %v9255_v55, %v9247_v42  ;;  %v15073_v55 = vld [vmem:[%s18502_s7 + $0x148] sm:$0xff]   ;;  %v15091_v42 = vld [vmem:[%s18502_s7 + $0x1d8] sm:$0xff]   ;;  %vm10678_vm1 = vsmask.f32 7938 }
 0x5b0   :  { %14033 = vmatmul.mubr.bf16.gmra.mrb[52].mxu1 %v18120_v30  ;;  %v15088_v35 = vld [vmem:[%s18502_s7 + $0x1c0] sm:$0xff]  }
 0x5b1   :  { %14036 = vmatprep.mubr.bf16.mxu1 %v18146_v25  ;;  %14049 = vmatpush3.bf16.msra.mxu1 %v15058_v62  ;;  %v15067_v62 = vld [vmem:[%s18502_s7 + $0x118] sm:$0xff]  }
 0x5b2   :  { %14050 = vmatprep.subr.bf16.mxu1 %v15059_v7 }
 0x5b5   :  { %14051 = vmatpush3.bf16.msra.mxu1 %v15059_v7  ;;  %v15071_v7 = vld [vmem:[%s18502_s7 + $0x138] sm:$0xff]  }
 0x5b6   :  { %14052 = vmatprep.subr.bf16.mxu1 %v15060_v1 }
 0x5b8   :  { %14037 = vmatmul.mubr.bf16.gmra.mrb[56].mxu1 %v18156_v33 }
 0x5b9   :  { %14040 = vmatprep.mubr.bf16.mxu1 %v18161_v15  ;;  %14053 = vmatpush3.bf16.msra.mxu1 %v15060_v1  ;;  %v9669_v1 = vsel %vm7434_vm15, %v9664_v51, %v9660_v6 }
 0x5ba   :  { %14054 = vmatprep.subr.bf16.mxu1 %v15061_v0 }
 0x5bd   :  { %14055 = vmatpush3.bf16.msra.mxu1 %v15061_v0  ;;  %v9899_v0 = vshrl.u32 %v9879_v2, 16 }
 0x5be   :  { %14056 = vmatprep.subr.bf16.mxu1 %v15062_v21 }
 0x5c0   :  { %14041 = vmatmul.mubr.bf16.gmra.mrb[60].mxu1 %v9047_v47  ;;  %v9709_v47 = vsel %vm7434_vm15, %v9664_v51, %v9708_v34  ;;  %v15121_v34 = vld [vmem:[%s18504_s9 + $0x4c] ss:$16 sps:$4 sm:$0xff]  }
 0x5c1   :  { %14057 = vmatpush3.bf16.msra.mxu1 %v15062_v21  ;;  %14060 = vmatprep.mubr.bf16.mxu1 %v9242_v31  ;;  %v9901_v21 = vrot.slane %v9899_v0, 3  ;;  %v15116_v0 = vld [vmem:[%s18504_s9 + $0x40] ss:$16 sps:$4 sm:$0xff]  }
 0x5c2   :  { %14058 = vmatprep.subr.bf16.mxu1 %v15063_v54 }
 0x5c5   :  { %14059 = vmatpush3.bf16.msra.mxu1 %v15063_v54  ;;  %v9905_v54 = vor.u32 %v9904_v18, %v9901_v21  ;;  %v15122_v21 = vld [vmem:[%s18504_s9 + $0x60] ss:$16 sps:$4 sm:$0xff]   ;;  %v15127_v18 = vld [vmem:[%s18504_s9 + $0x6c] ss:$16 sps:$4 sm:$0xff]  }
 0x5c6   :  { %14076 = vmatprep.subr.bf16.mxu1 %v15064_v58 }
 0x5c7   :  { %v9909_v31 = vsel %vm1947_vm7, %v9905_v54, %v18033_v8  ;;  %v15090_v8 = vld [vmem:[%s18502_s7 + $0x1d0] sm:$0xff]  }
 0x5c8   :  { %14061 = vmatmul.mubr.bf16.vlgmr.msra.gmra.mrb[48].mxu1 %v17944_v11  ;;  %v15069_v11 = vld [vmem:[%s18502_s7 + $0x128] sm:$0xff]   ;;  %v15130_v54 = vld [vmem:[%s18504_s9 + $0x84] ss:$16 sps:$4 sm:$0xff]  }
 0x5c9   :  { %14064 = vmatprep.mubr.bf16.mxu1 %v9248_v19  ;;  %14077 = vmatpush3.bf16.msra.mxu1 %v15064_v58  ;;  %v15089_v58 = vld [vmem:[%s18502_s7 + $0x1c8] sm:$0xff]  }
 0x5ca   :  { %14078 = vmatprep.subr.bf16.mxu1 %v15065_v3 }
 0x5cd   :  { %14079 = vmatpush3.bf16.msra.mxu1 %v15065_v3  ;;  %v18296_v3 = vld [vmem:[#allocation6 + $0x48] sm:$0xf] }
 0x5ce   :  { %14080 = vmatprep.subr.bf16.mxu1 %v15066_v53  ;;  %v9938_v19 = vshll.u32 %v18296_v3, 16 }
 0x5d0   :  { %14065 = vmatmul.mubr.bf16.gmra.mrb[52].mxu1 %v9251_v28 }
 0x5d1   :  { %14068 = vmatprep.mubr.bf16.mxu1 %v9254_v4  ;;  %14081 = vmatpush3.bf16.msra.mxu1 %v15066_v53  ;;  %v15092_v53 = vld [vmem:[%s18502_s7 + $0x1e0] sm:$0xff]   ;;  %v15094_v4 = vld [vmem:[%s18502_s7 + $0x1f0] sm:$0xff]  }
 0x5d2   :  { %14082 = vmatprep.subr.bf16.mxu1 %v15067_v62 }
 0x5d5   :  { %14083 = vmatpush3.bf16.msra.mxu1 %v15067_v62  ;;  %v9940_v62 = vrot.slane %v9938_v19, 4  ;;  %v15145_v19 = vld [vmem:[%s18504_s9 + $0xcc] ss:$16 sps:$4 sm:$0xff]  }
 0x5d6   :  { %14084 = vmatprep.subr.bf16.mxu1 %v15068_v59 }
 0x5d8   :  { %14069 = vmatmul.mubr.bf16.gmra.mrb[56].mxu1 %v18014_v5  ;;  %v15075_v5 = vld [vmem:[%s18502_s7 + $0x158] sm:$0xff]  }
 0x5d9   :  { %14072 = vmatprep.mubr.bf16.mxu1 %v9260_v17  ;;  %14085 = vmatpush3.bf16.msra.mxu1 %v15068_v59  ;;  %v10112_v59 = vld [vmem:[#allocation6 + $0x8] sm:$0xf0] }
 0x5da   :  { %14086 = vmatprep.subr.bf16.mxu1 %v15069_v11  ;;  %v10139_v17 = vrot.slane %v10112_v59, 4 }
 0x5dd   :  { %14087 = vmatpush3.bf16.msra.mxu1 %v15069_v11 }
 0x5de   :  { %14088 = vmatprep.subr.bf16.mxu1 %v15070_v63 }
 0x5e0   :  { %14073 = vmatmul.mubr.bf16.gmra.mrb[60].mxu1 %v9251_v28 }
 0x5e1   :  { %14089 = vmatpush3.bf16.msra.mxu1 %v15070_v63  ;;  %14092 = vmatprep.mubr.bf16.mxu1 %v17898_v32  ;;  %v15074_v32 = vld [vmem:[%s18502_s7 + $0x150] sm:$0xff]   ;;  %v10141_v63 = vsel %vm1776_vm6, %v10139_v17, %v17908_v22  ;;  %v18464_v17 = vld [vmem:[%s18503_s8] ss:$0 sm:$0xff] }
 0x5e2   :  { %14090 = vmatprep.subr.bf16.mxu1 %v15071_v7 }
 0x5e5   :  { %14091 = vmatpush3.bf16.msra.mxu1 %v15071_v7  ;;  %v15096_v7 = vld [vmem:[%s18502_s7 + $0x200] sm:$0xff]  }
 0x5e6   :  { %14108 = vmatprep.subr.bf16.mxu1 %v15072_v39 }
 0x5e8   :  { %14093 = vmatmul.mubr.bf16.vlgmr.msra.gmra.mrb[48].mxu1 %v17905_v48  ;;  %v15076_v48 = vld [vmem:[%s18502_s7 + $0x160] sm:$0xff]  }
 0x5e9   :  { %14109 = vmatpush3.bf16.msra.mxu1 %v15072_v39  ;;  %14096 = vmatprep.mubr.bf16.mxu1 %v18006_v50  ;;  %v10142_v39 = vrot.slane %v18006_v50, 4 }
 0x5ea   :  { %14110 = vmatprep.subr.bf16.mxu1 %v15073_v55 }
 0x5ed   :  { %14111 = vmatpush3.bf16.msra.mxu1 %v15073_v55  ;;  %v10143_v55 = vsel %vm1776_vm6, %v17908_v22, %v10142_v39  ;;  %v15100_v22 = vld [vmem:[%s18502_s7 + $0x220] sm:$0xff]  }
 0x5ee   :  { %14112 = vmatprep.subr.bf16.mxu1 %v15074_v32 }
 0x5f0   :  { %14097 = vmatmul.mubr.bf16.gmra.mrb[52].mxu1 %v18006_v50 }
 0x5f1   :  { %14100 = vmatprep.mubr.bf16.mxu1 %v17950_v23  ;;  %14113 = vmatpush3.bf16.msra.mxu1 %v15074_v32  ;;  %v15078_v23 = vld [vmem:[%s18502_s7 + $0x170] sm:$0xff]  }
 0x5f2   :  { %14114 = vmatprep.subr.bf16.mxu1 %v15075_v5  ;;  %v15098_v32 = vld [vmem:[%s18502_s7 + $0x210] sm:$0xff]  }
 0x5f5   :  { %14115 = vmatpush3.bf16.msra.mxu1 %v15075_v5  ;;  %v15099_v5 = vld [vmem:[%s18502_s7 + $0x218] sm:$0xff]  }
 0x5f6   :  { %14116 = vmatprep.subr.bf16.mxu1 %v15076_v48 }
 0x5f8   :  { %14101 = vmatmul.mubr.bf16.gmra.mrb[56].mxu1 %v17964_v44  ;;  %v15080_v44 = vld [vmem:[%s18502_s7 + $0x180] sm:$0xff]  }
 0x5f9   :  { %14117 = vmatpush3.bf16.msra.mxu1 %v15076_v48  ;;  %14104 = vmatprep.mubr.bf16.mxu1 %v18006_v50  ;;  %v10147_v48 = vsel %vm1776_vm6, %v10142_v39, %v17953_v16  ;;  %v10151_v16 = vsel %vm1776_vm6, %v17971_v24, %v10142_v39  ;;  %v15103_v24 = vld [vmem:[%s18502_s7 + $0x238] sm:$0xff]  }
 0x5fa   :  { %14118 = vmatprep.subr.bf16.mxu1 %v15077_v61 }
 0x5fd   :  { %14119 = vmatpush3.bf16.msra.mxu1 %v15077_v61  ;;  %v15101_v61 = vld [vmem:[%s18502_s7 + $0x228] sm:$0xff]  }
 0x5fe   :  { %14120 = vmatprep.subr.bf16.mxu1 %v15078_v23 }
 0x600   :  { %14105 = vmatmul.mubr.bf16.gmra.mrb[60].mxu1 %v18006_v50 }
 0x601   :  { %14121 = vmatpush3.bf16.msra.mxu1 %v15078_v23  ;;  %14124 = vmatprep.mubr.bf16.mxu1 %v18036_v13  ;;  %v15082_v13 = vld [vmem:[%s18502_s7 + $0x190] sm:$0xff]   ;;  %v10344_v23 = vshrl.u32 %v10112_v59, 16 }
 0x602   :  { %14122 = vmatprep.subr.bf16.mxu1 %v15079_v38 }
 0x605   :  { %14123 = vmatpush3.bf16.msra.mxu1 %v15079_v38  ;;  %v10347_v38 = vshll.u32 %v10112_v59, 16  ;;  %v15152_v59 = vld [vmem:[#allocation8 + $0x40] sm:$0xff]  }
 0x606   :  { %14140 = vmatprep.subr.bf16.mxu1 %v15080_v44 }
 0x607   :  { %v10349_v51 = vrot.slane %v10347_v38, 5 }
 0x608   :  { %14125 = vmatmul.mubr.bf16.vlgmr.msra.gmra.mrb[48].mxu1 %v9661_v46 }
 0x609   :  { %14141 = vmatpush3.bf16.msra.mxu1 %v15080_v44  ;;  %14128 = vmatprep.mubr.bf16.mxu1 %v9669_v1  ;;  %v10346_v44 = vrot.slane %v10344_v23, 4 }
 0x60a   :  { %14142 = vmatprep.subr.bf16.mxu1 %v15081_v12 }
 0x60d   :  { %14143 = vmatpush3.bf16.msra.mxu1 %v15081_v12 }
 0x60e   :  { %14144 = vmatprep.subr.bf16.mxu1 %v15082_v13 }
 0x610   :  { %14129 = vmatmul.mubr.bf16.gmra.mrb[52].mxu1 %v9677_v40 }
 0x611   :  { %14132 = vmatprep.mubr.bf16.mxu1 %v18081_v14  ;;  %14145 = vmatpush3.bf16.msra.mxu1 %v15082_v13  ;;  %v9693_v14 = vsel %vm7434_vm15, %v18086_v56, %v9660_v6  ;;  %v15087_v56 = vld [vmem:[%s18502_s7 + $0x1b8] sm:$0xff]   ;;  %v15102_v6 = vld [vmem:[%s18502_s7 + $0x230] sm:$0xff]  }
 0x612   :  { %14146 = vmatprep.subr.bf16.mxu1 %v15083_v10  ;;  %v10325_v13 = vld [vmem:[#allocation6 + $0x48] sm:$0x1f] }
 0x613   :  { %v10383_v40 = vshll.u32 %v10325_v13, 16 }
 0x615   :  { %14147 = vmatpush3.bf16.msra.mxu1 %v15083_v10  ;;  %v10380_v10 = vshrl.u32 %v10325_v13, 16  ;;  %v10385_v52 = vrot.slane %v10383_v40, 5 }
 0x616   :  { %14148 = vmatprep.subr.bf16.mxu1 %v15084_v60 }
 0x618   :  { %14133 = vmatmul.mubr.bf16.gmra.mrb[56].mxu1 %v9693_v14  ;;  %v15119_v14 = vld [vmem:[%s18504_s9 + $0x48] ss:$16 sps:$4 sm:$0xff]  }
 0x619   :  { %14149 = vmatpush3.bf16.msra.mxu1 %v15084_v60  ;;  %14136 = vmatprep.mubr.bf16.mxu1 %v9669_v1  ;;  %v10350_v1 = vor.u32 %v10349_v51, %v10346_v44  ;;  %v10382_v60 = vrot.slane %v10380_v10, 4 }
 0x61a   :  { %14150 = vmatprep.subr.bf16.mxu1 %v15085_v27 }
 0x61b   :  { %v10354_v46 = vsel %vm2199_vm8, %v10350_v1, %v18118_v26  ;;  %v10386_v26 = vor.u32 %v10385_v52, %v10382_v60 }
 0x61d   :  { %14151 = vmatpush3.bf16.msra.mxu1 %v15085_v27  ;;  %v10387_v2 = vsel %vm2199_vm8, %v18120_v30, %v10386_v26  ;;  %v15113_v27 = vld [vmem:[%s18504_s9 + $0x28] ss:$16 sps:$4 sm:$0xff]  }
 0x61e   :  { %14152 = vmatprep.subr.bf16.mxu1 %v15086_v57 }
 0x620   :  { %14137 = vmatmul.mubr.bf16.gmra.mrb[60].mxu1 %v9709_v47  ;;  %v15125_v47 = vld [vmem:[%s18504_s9 + $0x68] ss:$16 sps:$4 sm:$0xff]  }
 0x621   :  { %14153 = vmatpush3.bf16.msra.mxu1 %v15086_v57  ;;  %14156 = vmatprep.mubr.bf16.mxu1 %v9909_v31  ;;  %v15124_v57 = vld [vmem:[%s18504_s9 + $0x64] ss:$16 sps:$4 sm:$0xff]   ;;  %v15128_v31 = vld [vmem:[%s18504_s9 + $0x80] ss:$16 sps:$4 sm:$0xff]  }
 0x622   :  { %14154 = vmatprep.subr.bf16.mxu1 %v15087_v56 }
 0x625   :  { %14155 = vmatpush3.bf16.msra.mxu1 %v15087_v56  ;;  %v15133_v56 = vld [vmem:[%s18504_s9 + $0x8c] ss:$16 sps:$4 sm:$0xff]  }
 0x626   :  { %14172 = vmatprep.subr.bf16.mxu1 %v15088_v35 }
 0x628   :  { %14157 = vmatmul.mubr.bf16.vlgmr.msra.gmra.mrb[48].mxu1 %v18051_v29  ;;  %v9935_v29 = vshrl.u32 %v18296_v3, 16 }
 0x629   :  { %14173 = vmatpush3.bf16.msra.mxu1 %v15088_v35  ;;  %14160 = vmatprep.mubr.bf16.mxu1 %v18041_v41  ;;  %v15131_v35 = vld [vmem:[%s18504_s9 + $0x88] ss:$16 sps:$4 sm:$0xff]  }
 0x62a   :  { %14174 = vmatprep.subr.bf16.mxu1 %v15089_v58  ;;  %v9937_v28 = vrot.slane %v9935_v29, 3  ;;  %v15142_v29 = vld [vmem:[%s18504_s9 + $0xc4] ss:$16 sps:$4 sm:$0xff]  }
 0x62d   :  { %14175 = vmatpush3.bf16.msra.mxu1 %v15089_v58  ;;  %v15136_v58 = vld [vmem:[%s18504_s9 + $0xa4] ss:$16 sps:$4 sm:$0xff]  }
 0x62e   :  { %14176 = vmatprep.subr.bf16.mxu1 %v15090_v8 }
 0x630   :  { %14161 = vmatmul.mubr.bf16.gmra.mrb[52].mxu1 %v18071_v45  ;;  %v15093_v45 = vld [vmem:[%s18502_s7 + $0x1e8] sm:$0xff]  }
 0x631   :  { %14164 = vmatprep.mubr.bf16.mxu1 %v18092_v36  ;;  %14177 = vmatpush3.bf16.msra.mxu1 %v15090_v8  ;;  %v9941_v36 = vor.u32 %v9940_v62, %v9937_v28  ;;  %v15139_v8 = vld [vmem:[%s18504_s9 + $0xac] ss:$16 sps:$4 sm:$0xff]   ;;  %v15143_v28 = vld [vmem:[%s18504_s9 + $0xc8] ss:$16 sps:$4 sm:$0xff]   ;;  %v15148_v62 = vld [vmem:[%s18504_s9 + $0xe4] ss:$16 sps:$4 sm:$0xff]  }
 0x632   :  { %14178 = vmatprep.subr.bf16.mxu1 %v15091_v42 }
 0x633   :  { %v9942_v11 = vsel %vm1947_vm7, %v18041_v41, %v9941_v36  ;;  %v15146_v36 = vld [vmem:[%s18504_s9 + $0xe0] ss:$16 sps:$4 sm:$0xff]  }
 0x635   :  { %14179 = vmatpush3.bf16.msra.mxu1 %v15091_v42  ;;  %v15134_v42 = vld [vmem:[%s18504_s9 + $0xa0] ss:$16 sps:$4 sm:$0xff]  }
 0x636   :  { %14180 = vmatprep.subr.bf16.mxu1 %v15092_v53 }
 0x638   :  { %14165 = vmatmul.mubr.bf16.gmra.mrb[56].mxu1 %v18097_v9  ;;  %v15095_v9 = vld [vmem:[%s18502_s7 + $0x1f8] sm:$0xff]  }
 0x639   :  { %14181 = vmatpush3.bf16.msra.mxu1 %v15092_v53  ;;  %14168 = vmatprep.mubr.bf16.mxu1 %v18041_v41  ;;  %v15097_v41 = vld [vmem:[%s18502_s7 + $0x208] sm:$0xff]   ;;  %v15140_v53 = vld [vmem:[%s18504_s9 + $0xc0] ss:$16 sps:$4 sm:$0xff]  }
 0x63a   :  { %14182 = vmatprep.subr.bf16.mxu1 %v15093_v45 }
 0x63d   :  { %14183 = vmatpush3.bf16.msra.mxu1 %v15093_v45  ;;  %v15151_v45 = vld [vmem:[%s18504_s9 + $0xec] ss:$16 sps:$4 sm:$0xff]  }
 0x63e   :  { %14184 = vmatprep.subr.bf16.mxu1 %v15094_v4 }
 0x640   :  { %14169 = vmatmul.mubr.bf16.gmra.mrb[60].mxu1 %v9942_v11  ;;  %v15153_v11 = vld [vmem:[#allocation8 + $0xc0] sm:$0xff]  }
 0x641   :  { %14185 = vmatpush3.bf16.msra.mxu1 %v15094_v4  ;;  %14188 = vmatprep.mubr.bf16.mxu1 %v10141_v63  ;;  %v15149_v4 = vld [vmem:[%s18504_s9 + $0xe8] ss:$16 sps:$4 sm:$0xff]  }
 0x642   :  { %14186 = vmatprep.subr.bf16.mxu1 %v15095_v9 }
 0x645   :  { %14187 = vmatpush3.bf16.msra.mxu1 %v15095_v9 }
 0x646   :  { %14204 = vmatprep.subr.bf16.mxu1 %v15096_v7 }
 0x648   :  { %14189 = vmatmul.mubr.bf16.vlgmr.msra.gmra.mrb[48].mxu1 %v10143_v55 }
 0x649   :  { %14205 = vmatpush3.bf16.msra.mxu1 %v15096_v7  ;;  %14192 = vmatprep.mubr.bf16.mxu1 %v10142_v39 }
 0x64a   :  { %14206 = vmatprep.subr.bf16.mxu1 %v15097_v41 }
 0x64d   :  { %14207 = vmatpush3.bf16.msra.mxu1 %v15097_v41 }
 0x64e   :  { %14208 = vmatprep.subr.bf16.mxu1 %v15098_v32 }
 0x650   :  { %14193 = vmatmul.mubr.bf16.gmra.mrb[52].mxu1 %v10147_v48 }
 0x651   :  { %14196 = vmatprep.mubr.bf16.mxu1 %v17987_v37  ;;  %14209 = vmatpush3.bf16.msra.mxu1 %v15098_v32  ;;  %v10154_v37 = vrot.slane %v18296_v3, 4  ;;  %v15137_v3 = vld [vmem:[%s18504_s9 + $0xa8] ss:$16 sps:$4 sm:$0xff]  }
 0x652   :  { %14210 = vmatprep.subr.bf16.mxu1 %v15099_v5 }
 0x653   :  { %v10155_v12 = vsel %vm1776_vm6, %v10142_v39, %v10154_v37 }
 0x655   :  { %14211 = vmatpush3.bf16.msra.mxu1 %v15099_v5 }
 0x656   :  { %14212 = vmatprep.subr.bf16.mxu1 %v15100_v22 }
 0x658   :  { %14197 = vmatmul.mubr.bf16.gmra.mrb[56].mxu1 %v10151_v16 }
 0x659   :  { %14213 = vmatpush3.bf16.msra.mxu1 %v15100_v22  ;;  %14200 = vmatprep.mubr.bf16.mxu1 %v10142_v39 }
 0x65a   :  { %14214 = vmatprep.subr.bf16.mxu1 %v15101_v61 }
 0x65d   :  { %14215 = vmatpush3.bf16.msra.mxu1 %v15101_v61 }
 0x65e   :  { %14216 = vmatprep.subr.bf16.mxu1 %v15102_v6 }
 0x660   :  { %14201 = vmatmul.mubr.bf16.gmra.mrb[60].mxu1 %v10155_v12 }
 0x661   :  { %14217 = vmatpush3.bf16.msra.mxu1 %v15102_v6  ;;  %14220 = vmatprep.mubr.bf16.mxu1 %v10354_v46 }
 0x662   :  { %14218 = vmatprep.subr.bf16.mxu1 %v15103_v24 }
 0x665   :  { %14219 = vmatpush3.bf16.msra.mxu1 %v15103_v24 }
 0x668   :  { %14221 = vmatmul.mubr.bf16.vlgmr.msra.gmra.mrb[48].mxu1 %v18130_v49  ;;  %v15104_v49 = vld [vmem:[%s18504_s9] ss:$16 sps:$4 sm:$0xff]  }
 0x669   :  { %14224 = vmatprep.mubr.bf16.mxu1 %v18120_v30 }
 0x670   :  { %14225 = vmatmul.mubr.bf16.gmra.mrb[52].mxu1 %v18146_v25  ;;  %v15106_v25 = vld [vmem:[%s18504_s9 + $0x4] ss:$16 sps:$4 sm:$0xff]  }
 0x671   :  { %14228 = vmatprep.mubr.bf16.mxu1 %v18156_v33  ;;  %v15107_v33 = vld [vmem:[%s18504_s9 + $0x8] ss:$16 sps:$4 sm:$0xff]   ;;  %10898 = vmatprep.subr.bf16.mxu0 %v15106_v25 }
 0x672   :  { %10899 = vmatpush1.bf16.msra.mxu0 %v15104_v49 }
 0x678   :  { %14229 = vmatmul.mubr.bf16.gmra.mrb[56].mxu1 %v18161_v15  ;;  %v15109_v15 = vld [vmem:[%s18504_s9 + $0xc] ss:$16 sps:$4 sm:$0xff]  }
 0x679   :  { %14232 = vmatprep.mubr.bf16.mxu1 %v18120_v30  ;;  %10939 = vmatprep.subr.bf16.mxu1 %v15109_v15  ;;  %v15110_v30 = vld [vmem:[%s18504_s9 + $0x20] ss:$16 sps:$4 sm:$0xff]  }
 0x67a   :  { %10940 = vmatpush1.bf16.msra.mxu1 %v15107_v33 }
 0x67b   :  { %10941 = vmatprep.subr.bf16.mxu1 %v15115_v20 }
 0x67e   :  { %10942 = vmatpush1.bf16.msra.mxu1 %v15113_v27 }
 0x67f   :  { %10943 = vmatprep.subr.bf16.mxu1 %v15121_v34 }
 0x680   :  { %14233 = vmatmul.mubr.bf16.gmra.mrb[60].mxu1 %v10387_v2 }
 0x681   :  { %10971 = vmatprep.mubr.bf16.mxu1 %v18006_v50  ;;  %v15112_v50 = vld [vmem:[%s18504_s9 + $0x24] ss:$16 sps:$4 sm:$0xff]  }
 0x682   :  { %10900 = vmatprep.subr.bf16.mxu0 %v15112_v50  ;;  %10944 = vmatpush1.bf16.msra.mxu1 %v15119_v14 }
 0x683   :  { %10901 = vmatpush1.bf16.msra.mxu0 %v15110_v30  ;;  %10945 = vmatprep.subr.bf16.mxu1 %v15127_v18 }
 0x684   :  { %10902 = vmatprep.subr.bf16.mxu0 %v15118_v43 }
 0x686   :  { %10946 = vmatpush1.bf16.msra.mxu1 %v15125_v47 }
 0x687   :  { %10903 = vmatpush1.bf16.msra.mxu0 %v15116_v0  ;;  %10947 = vmatprep.subr.bf16.mxu1 %v15133_v56 }
 0x688   :  { %10904 = vmatprep.subr.bf16.mxu0 %v15124_v57  ;;  %v10664_v57 = vld [vmem:[#allocation7] sm:$0x1] }
 0x68a   :  { %10948 = vmatpush1.bf16.msra.mxu1 %v15131_v35 }
 0x68b   :  { %10905 = vmatpush1.bf16.msra.mxu0 %v15122_v21  ;;  %10949 = vmatprep.subr.bf16.mxu1 %v15139_v8 }
 0x68c   :  { %10906 = vmatprep.subr.bf16.mxu0 %v15130_v54 }
 0x68e   :  { %10950 = vmatpush1.bf16.msra.mxu1 %v15137_v3 }
 0x68f   :  { %10907 = vmatpush1.bf16.msra.mxu0 %v15128_v31  ;;  %10951 = vmatprep.subr.bf16.mxu1 %v15145_v19 }
 0x690   :  { %10908 = vmatprep.subr.bf16.mxu0 %v15136_v58 }
 0x692   :  { %10952 = vmatpush1.bf16.msra.mxu1 %v15143_v28 }
 0x693   :  { %10909 = vmatpush1.bf16.msra.mxu0 %v15134_v42  ;;  %10953 = vmatprep.subr.bf16.mxu1 %v15151_v45 }
 0x694   :  { %10910 = vmatprep.subr.bf16.mxu0 %v15142_v29 }
 0x696   :  { %10954 = vmatpush1.bf16.msra.mxu1 %v15149_v4 }
 0x697   :  { %10911 = vmatpush1.bf16.msra.mxu0 %v15140_v53  ;;  %12934 = vmatprep.subr.bf16.mxu1 %v15153_v11 }
 0x698   :  { %10912 = vmatprep.subr.bf16.mxu0 %v15148_v62 }
 0x69b   :  { %10913 = vmatpush1.bf16.msra.mxu0 %v15146_v36 }
 0x69c   :  { %12912 = vmatprep.subr.bf16.mxu0 %v15152_v59 }
 0x73b   :  { %v14222_v9 = vpop.f32.mrb[48].mxu1 }
 0x73c   :  { %v10565_v63 = vadd.f32 %v14222_v9, %v18464_v17  ;;  %v10478_v7 = vpop.f32.mrb[49].mxu1 }
 0x73d   :  { %v10563_v39 = vadd.f32 %v18464_v17, %v10478_v7  ;;  %v14223_v41 = vpop.f32.mrb[50].mxu1 }
 0x73e   :  { %v10566_v55 = vadd.f32 %v14223_v41, %v18464_v17  ;;  %v10481_v32 = vpop.f32.mrb[51].mxu1  ;;  %v10581_v48 = vmax.f32 %v10565_v63, 0.0 }
 0x73f   :  { %v10564_v5 = vadd.f32 %v18464_v17, %v10481_v32  ;;  %v10579_v61 = vmax.f32 %v10563_v39, 0.0 }
 0x740   :  { %v10582_v22 = vmax.f32 %v10566_v55, 0.0  ;;  %v18660_v55 = vld [vmem:[#allocation19_spill] sm:$0xff] }
 0x741   :  { %v10580_v23 = vmax.f32 %v10564_v5, 0.0 }
 0x742   :  { %v10630_v38 = vmax.f32 %v10581_v48, %v10582_v22 }
 0x743   :  { %v10628_v16 = vmax.f32 %v10579_v61, %v10580_v23  ;;  %v10629_v37 = vmax.f32 %v10580_v23, %v10581_v48  ;;  %v14226_v6 = vpop.f32.mrb[52].mxu1 }
 0x744   :  { %10646 = vst [vmem:[#allocation3 + $0x10] sm:$0xff] %v10630_v38  ;;  %v10569_v44 = vadd.f32 %v14226_v6, %v18464_v17  ;;  %v10494_v51 = vpop.f32.mrb[53].mxu1  ;;  %v15154_v6 = vld [vmem:[#allocation8] sm:$0xff]  }
 0x745   :  { %10644 = vst [vmem:[#allocation3] sm:$0xff] %v10628_v16  ;;  %10645 = vst [vmem:[#allocation3 + $0x8] sm:$0xff] %v10629_v37  ;;  %v10567_v12 = vadd.f32 %v18464_v17, %v10494_v51  ;;  %v14227_v1 = vpop.f32.mrb[54].mxu1  ;;  %v15156_v51 = vld [vmem:[#allocation8 + $0x48] sm:$0xff]  }
 0x746   :  { %v10570_v24 = vadd.f32 %v14227_v1, %v18464_v17  ;;  %v10497_v46 = vpop.f32.mrb[55].mxu1  ;;  %v10585_v40 = vmax.f32 %v10569_v44, 0.0  ;;  %v15155_v44 = vld [vmem:[#allocation8 + $0x80] sm:$0xff]  }
 0x747   :  { %v10583_v13 = vmax.f32 %v10567_v12, 0.0  ;;  %v10568_v10 = vadd.f32 %v18464_v17, %v10497_v46  ;;  %v15157_v12 = vld [vmem:[#allocation8 + $0xc8] sm:$0xff]  }
 0x748   :  { %v10586_v60 = vmax.f32 %v10570_v24, 0.0  ;;  %v15158_v24 = vld [vmem:[#allocation8 + $0x8] sm:$0xff]  }
 0x749   :  { %v10631_v52 = vmax.f32 %v10582_v22, %v10583_v13  ;;  %v10584_v26 = vmax.f32 %v10568_v10, 0.0  ;;  %v15159_v46 = vld [vmem:[#allocation8 + $0x88] sm:$0xff]   ;;  %v15161_v10 = vld [vmem:[#allocation8 + $0xd0] sm:$0xff]  }
 0x74a   :  { %v10634_v2 = vmax.f32 %v10585_v40, %v10586_v60 }
 0x74b   :  { %10647 = vst [vmem:[#allocation3 + $0x18] sm:$0xff] %v10631_v52  ;;  %v10632_v49 = vmax.f32 %v10583_v13, %v10584_v26  ;;  %v10633_v25 = vmax.f32 %v10584_v26, %v10585_v40  ;;  %v14230_v33 = vpop.f32.mrb[56].mxu1  ;;  %v15160_v13 = vld [vmem:[#allocation8 + $0x50] sm:$0xff]   ;;  %v15164_v52 = vld [vmem:[#allocation8 + $0x58] sm:$0xff]  }
 0x74c   :  { %10650 = vst [vmem:[#allocation3 + $0x30] sm:$0xff] %v10634_v2  ;;  %v10573_v15 = vadd.f32 %v14230_v33, %v18464_v17  ;;  %v10510_v50 = vpop.f32.mrb[57].mxu1  ;;  %v10660_v30 = vld [vmem:[#allocation3 + $0x9] sm:$0x1]  ;;  %v10661_v20 = vld [vmem:[#allocation3 + $0xa] sm:$0x1] }
 0x74d   :  { %10648 = vst [vmem:[#allocation3 + $0x20] sm:$0xff] %v10632_v49  ;;  %10649 = vst [vmem:[#allocation3 + $0x28] sm:$0xff] %v10633_v25  ;;  %v10571_v27 = vadd.f32 %v18464_v17, %v10510_v50  ;;  %v14231_v0 = vpop.f32.mrb[58].mxu1  ;;  %v10662_v43 = vmax.f32 %v10660_v30, %v10661_v20  ;;  %v15162_v40 = vld [vmem:[#allocation8 + $0x10] sm:$0xff]   ;;  %v15165_v26 = vld [vmem:[#allocation8 + $0xd8] sm:$0xff]  }
 0x74e   :  { %v10574_v14 = vadd.f32 %v14231_v0, %v18464_v17  ;;  %v10513_v34 = vpop.f32.mrb[59].mxu1  ;;  %v10589_v54 = vmax.f32 %v10573_v15, 0.0  ;;  %v15166_v2 = vld [vmem:[#allocation8 + $0x18] sm:$0xff]   ;;  %v15168_v25 = vld [vmem:[#allocation8 + $0x60] sm:$0xff]   ;;  %v15172_v30 = vld [vmem:[#allocation8 + $0x68] sm:$0xff]  }
 0x74f   :  { %v10587_v21 = vmax.f32 %v10571_v27, 0.0  ;;  %v10572_v18 = vadd.f32 %v18464_v17, %v10513_v34  ;;  %v10663_v47 = vpack.c.bf16 %v10662_v43, %v10662_v43  ;;  %v15167_v49 = vld [vmem:[#allocation8 + $0x98] sm:$0xff]   ;;  %v15169_v33 = vld [vmem:[#allocation8 + $0xe0] sm:$0xff]   ;;  %v15173_v20 = vld [vmem:[#allocation8 + $0xe8] sm:$0xff]  }
 0x750   :  { %v10590_v56 = vmax.f32 %v10574_v14, 0.0  ;;  %v15170_v15 = vld [vmem:[#allocation8 + $0x20] sm:$0xff]   ;;  %v15174_v27 = vld [vmem:[#allocation8 + $0x28] sm:$0xff]   ;;  %v15176_v43 = vld [vmem:[#allocation8 + $0x70] sm:$0xff]  }
 0x751   :  { %v10635_v31 = vmax.f32 %v10586_v60, %v10587_v21  ;;  %v10588_v35 = vmax.f32 %v10572_v18, 0.0  ;;  %v10665_v8 = vsel %vm15585_vm2, %v10663_v47, %v10664_v57  ;;  %vm10679_vm2 = vmand %vm1387_vm0, %vm10678_vm1  ;;  %v15163_v60 = vld [vmem:[#allocation8 + $0x90] sm:$0xff]   ;;  %v15171_v50 = vld [vmem:[#allocation8 + $0xa0] sm:$0xff]  }
 0x752   :  { %v10638_v42 = vmax.f32 %v10589_v54, %v10590_v56  ;;  %10666 = vst [vmem:[#allocation7] sm:$0x1] %v10665_v8  ;;  %v15175_v0 = vld [vmem:[#allocation8 + $0xa8] sm:$0xff]   ;;  %v15177_v14 = vld [vmem:[#allocation8 + $0xf0] sm:$0xff]   ;;  %v15181_v18 = vld [vmem:[#allocation8 + $0xf8] sm:$0xff]  }
 0x753   :  { %10651 = vst [vmem:[#allocation3 + $0x38] sm:$0xff] %v10635_v31  ;;  %v10636_v3 = vmax.f32 %v10587_v21, %v10588_v35  ;;  %v10637_v29 = vmax.f32 %v10588_v35, %v10589_v54  ;;  %v14234_v19 = vpop.f32.mrb[60].mxu1  ;;  %v15178_v34 = vld [vmem:[#allocation8 + $0x30] sm:$0xff]   ;;  %v15180_v21 = vld [vmem:[#allocation8 + $0x78] sm:$0xff]   ;;  %v10716_v8 = vld [vmem:[%s18505_s10] sm:$0xf] }
 0x754   :  { %10654 = vst [vmem:[#allocation3 + $0x50] sm:$0xff] %v10638_v42  ;;  %v10577_v53 = vadd.f32 %v14234_v19, %v18464_v17  ;;  %v10526_v28 = vpop.f32.mrb[61].mxu1  ;;  %v15179_v57 = vld [vmem:[#allocation8 + $0xb0] sm:$0xff]   ;;  %v15182_v47 = vld [vmem:[#allocation8 + $0x38] sm:$0xff]  }
 0x755   :  { %10652 = vst [vmem:[#allocation3 + $0x40] sm:$0xff] %v10636_v3  ;;  %10653 = vst [vmem:[#allocation3 + $0x48] sm:$0xff] %v10637_v29  ;;  %v10575_v62 = vadd.f32 %v18464_v17, %v10526_v28  ;;  %v14235_v45 = vpop.f32.mrb[62].mxu1  ;;  %v15183_v54 = vld [vmem:[#allocation8 + $0xb8] sm:$0xff]  }
 0x756   :  { %v10578_v36 = vadd.f32 %v14235_v45, %v18464_v17  ;;  %v10529_v4 = vpop.f32.mrb[63].mxu1  ;;  %v10593_v9 = vmax.f32 %v10577_v53, 0.0 }
 0x757   :  { %v10591_v59 = vmax.f32 %v10575_v62, 0.0  ;;  %v10576_v11 = vadd.f32 %v18464_v17, %v10529_v4 }
 0x758   :  { %v10594_v63 = vmax.f32 %v10578_v36, 0.0 }
 0x759   :  { %v10639_v7 = vmax.f32 %v10590_v56, %v10591_v59  ;;  %v10592_v39 = vmax.f32 %v10576_v11, 0.0  ;;  %v10680_v16 = vld [vmem:[#allocation7] sm:$0x1]  ;;  %v10718_v56 = vlaneseq }
 0x75a   :  { %v10642_v41 = vmax.f32 %v10593_v9, %v10594_v63  ;;  %v10643_v32 = vmax.f32 %v10594_v63, %v18660_v55 }
 0x75b   :  { %10655 = vst [vmem:[#allocation3 + $0x58] sm:$0xff] %v10639_v7  ;;  %v10640_v5 = vmax.f32 %v10591_v59, %v10592_v39  ;;  %v10641_v48 = vmax.f32 %v10592_v39, %v10593_v9  ;;  %v10719_v31 = vshrl.u32 %v10718_v56, 7 }
 0x75c   :  { %10658 = vst [vmem:[#allocation3 + $0x70] sm:$0xff] %v10642_v41  ;;  %10659 = vst [vmem:[#allocation3 + $0x78] sm:$0xff] %v10643_v32  ;;  %v10667_v22 = vld [vmem:[#allocation3 + $0x49] sm:$0x1]  ;;  %v10668_v61 = vld [vmem:[#allocation3 + $0x4a] sm:$0x1] }
 0x75d   :  { %10656 = vst [vmem:[#allocation3 + $0x60] sm:$0xff] %v10640_v5  ;;  %10657 = vst [vmem:[#allocation3 + $0x68] sm:$0xff] %v10641_v48  ;;  %v10669_v23 = vmax.f32 %v10667_v22, %v10668_v61  ;;  %v10720_v35 = vsub.s32 0, %v10719_v31  ;;  %v10728_v58 = vsub.s32 2, %v10719_v31  ;;  %v10724_v42 = vsub.s32 1, %v10719_v31 }
 0x75e   :  { %v10732_v3 = vsub.s32 3, %v10719_v31 }
 0x75f   :  { %v12271_v38 = vpack.c.bf16 %v10669_v23, %v10669_v23  ;;  %v10721_v29 = vrot.slane %v10716_v8, %v10720_v35  ;;  %v10729_v19 = vrot.slane %v10716_v8, %v10728_v58  ;;  %v10725_v53 = vrot.slane %v10716_v8, %v10724_v42 }
 0x760   :  { %v10733_v28 = vrot.slane %v10716_v8, %v10732_v3 }
 0x761   :  { %v10675_v17 = vshll.u32 %v12271_v38, 16 }
 0x763   :  { %v10681_v37 = vsel %vm10679_vm2, %v10675_v17, %v10680_v16 }
 0x764   :  { %10682 = vst [vmem:[#allocation7] sm:$0x1] %v10681_v37 }
 0x76b   :  { %v10683_v1 = vld [vmem:[#allocation7] sm:$0xf] }
 0x76c   :  { %10931 = vmatmul.mubr.bf16.vlgmr.msra.gmra.mrb[64].mxu0 %v10683_v1  ;;  %10972 = vmatmul.mubr.bf16.vlgmr.msra.gmra.mrb[64].mxu1 %v10683_v1 }
 0x76d   :  { %12913 = vmatpush3.bf16.msra.mxu0 %v15154_v6  ;;  %12935 = vmatpush3.bf16.msra.mxu1 %v15155_v44  ;;  %v12238_v6 = vld [vmem:[%s18507_s12] ss:$0 sm:$0xff] }
 0x76e   :  { %12914 = vmatprep.subr.bf16.mxu0 %v15156_v51  ;;  %12936 = vmatprep.subr.bf16.mxu1 %v15157_v12 }
 0x771   :  { %12915 = vmatpush3.bf16.msra.mxu0 %v15158_v24  ;;  %12937 = vmatpush3.bf16.msra.mxu1 %v15159_v46 }
 0x772   :  { %12916 = vmatprep.subr.bf16.mxu0 %v15160_v13  ;;  %12938 = vmatprep.subr.bf16.mxu1 %v15161_v10 }
 0x775   :  { %12917 = vmatpush3.bf16.msra.mxu0 %v15162_v40  ;;  %12939 = vmatpush3.bf16.msra.mxu1 %v15163_v60 }
 0x776   :  { %12918 = vmatprep.subr.bf16.mxu0 %v15164_v52  ;;  %12940 = vmatprep.subr.bf16.mxu1 %v15165_v26 }
 0x779   :  { %12919 = vmatpush3.bf16.msra.mxu0 %v15166_v2  ;;  %12941 = vmatpush3.bf16.msra.mxu1 %v15167_v49 }
 0x77a   :  { %12920 = vmatprep.subr.bf16.mxu0 %v15168_v25  ;;  %12942 = vmatprep.subr.bf16.mxu1 %v15169_v33 }
 0x77d   :  { %12921 = vmatpush3.bf16.msra.mxu0 %v15170_v15  ;;  %12943 = vmatpush3.bf16.msra.mxu1 %v15171_v50 }
 0x77e   :  { %12922 = vmatprep.subr.bf16.mxu0 %v15172_v30  ;;  %12944 = vmatprep.subr.bf16.mxu1 %v15173_v20 }
 0x781   :  { %12923 = vmatpush3.bf16.msra.mxu0 %v15174_v27  ;;  %12945 = vmatpush3.bf16.msra.mxu1 %v15175_v0 }
 0x782   :  { %12924 = vmatprep.subr.bf16.mxu0 %v15176_v43  ;;  %12946 = vmatprep.subr.bf16.mxu1 %v15177_v14 }
 0x785   :  { %12925 = vmatpush3.bf16.msra.mxu0 %v15178_v34  ;;  %12947 = vmatpush3.bf16.msra.mxu1 %v15179_v57 }
 0x786   :  { %12926 = vmatprep.subr.bf16.mxu0 %v15180_v21  ;;  %12948 = vmatprep.subr.bf16.mxu1 %v15181_v18 }
 0x789   :  { %12927 = vmatpush3.bf16.msra.mxu0 %v15182_v47  ;;  %12949 = vmatpush3.bf16.msra.mxu1 %v15183_v54 }
 0x83f   :  { %v10932_v62 = vpop.f32.mrb[64].mxu0  ;;  %v10973_v45 = vpop.f32.mrb[64].mxu1 }
 0x840   :  { %v10933_v36 = vadd.f32 %v10932_v62, %v10721_v29  ;;  %v10974_v4 = vadd.f32 %v10973_v45, %v10729_v19  ;;  %v10934_v59 = vpop.f32.mrb[65].mxu0  ;;  %v10975_v11 = vpop.f32.mrb[65].mxu1 }
 0x841   :  { %v10935_v9 = vadd.f32 %v10934_v59, %v10725_v53  ;;  %v10976_v63 = vadd.f32 %v10975_v11, %v10733_v28  ;;  %v10936_v7 = vpop.f32.mrb[66].mxu0  ;;  %v10977_v39 = vpop.f32.mrb[66].mxu1 }
 0x842   :  { %v10980_v41 = vmax.f32 %v10933_v36, 0.0  ;;  %v10982_v55 = vmax.f32 %v10974_v4, 0.0  ;;  %v10937_v32 = vpop.f32.mrb[67].mxu0  ;;  %v10978_v5 = vpop.f32.mrb[67].mxu1 }
 0x843   :  { %v10981_v48 = vmax.f32 %v10935_v9, 0.0  ;;  %v10983_v22 = vmax.f32 %v10976_v63, 0.0 }
 0x844   :  { %v10984_v38 = vpack.c.bf16 %v10980_v41, %v10980_v41  ;;  %v10986_v17 = vpack.c.bf16 %v10982_v55, %v10982_v55 }
 0x845   :  { %v10985_v61 = vpack.c.bf16 %v10981_v48, %v10981_v48  ;;  %v10987_v23 = vpack.c.bf16 %v10983_v22, %v10983_v22 }
 0x847   :  { %11283 = vmatprep.mubr.bf16.mxu0 %v10985_v61  ;;  %11323 = vmatprep.mubr.bf16.mxu1 %v10987_v23 }
 0x848   :  { %11284 = vmatmul.mubr.bf16.vlgmr.msra.gmra.mrb[68].mxu0 %v10984_v38  ;;  %11324 = vmatmul.mubr.bf16.vlgmr.msra.gmra.mrb[68].mxu1 %v10986_v17 }
 0x91b   :  { %v12928_v16 = vpop.f32.mrb[68].mxu0  ;;  %v12950_v37 = vpop.f32.mrb[68].mxu1 }
 0x91c   :  { %v12929_v44 = vpop.f32.mrb[69].mxu0  ;;  %v12951_v51 = vpop.f32.mrb[69].mxu1 }
 0x91d   :  { %v12930_v12 = vadd.f32 %v12929_v44, %v12928_v16  ;;  %v12952_v1 = vadd.f32 %v12951_v51, %v12950_v37  ;;  %v12931_v24 = vpop.f32.mrb[70].mxu0  ;;  %v12953_v46 = vpop.f32.mrb[70].mxu1 }
 0x91e   :  { %v12932_v13 = vpop.f32.mrb[71].mxu0  ;;  %v12954_v10 = vpop.f32.mrb[71].mxu1 }
 0x91f   :  { %v11286_v40 = vadd.f32 %v12930_v12, %v12238_v6 }
 0x921   :  { %v11326_v60 = vadd.f32 %v12952_v1, %v11286_v40 }
 0x923   :  { %11331 = vst [vmem:[%s18508_s13] sm:$0xff] %v11326_v60 }
 0x924   :  { %11336 = vsyncpa [#allocation9], 1 }

</bundles_post_ra>
